<compile_context>
chip_gen: v7x
topology: tpu7x:2x2x1
jax: 0.10.0
libtpu: 0.0.40
codegen_flags: <defaults>
</compile_context>

<pallas_src>
import math
import functools

import jax
import jax.numpy as jnp
from jax.experimental import pallas as pl
from jax.experimental.pallas import tpu as pltpu

NEG_INF = -1e30   # additive mask for padded keys (exp underflows to exactly 0)
LN_EPS = 1e-5     # nn.LayerNorm default

# Canonical flat ordering of all (stacked) weight arrays passed to the kernel.
WEIGHT_ORDER = (
    # encoder stack (leading axis = layer)
    "enc_wqkv", "enc_bqkv", "enc_wo", "enc_bo", "enc_ln1_g", "enc_ln1_b",
    "enc_w1", "enc_b1", "enc_w2", "enc_b2", "enc_ln2_g", "enc_ln2_b",
    # final encoder LayerNorm
    "enc_norm_g", "enc_norm_b",
    # decoder stack (leading axis = layer)
    "dec_sa_wqkv", "dec_sa_bqkv", "dec_sa_wo", "dec_sa_bo", "dec_ln1_g", "dec_ln1_b",
    "dec_ca_wq", "dec_ca_bq", "dec_ca_wkv", "dec_ca_bkv", "dec_ca_wo", "dec_ca_bo",
    "dec_ln2_g", "dec_ln2_b",
    "dec_w1", "dec_b1", "dec_w2", "dec_b2", "dec_ln3_g", "dec_ln3_b",
    # final decoder LayerNorm + lane-padded vocab projection
    "dec_norm_g", "dec_norm_b", "out_w", "out_b",
)

# Weight matrices that may be pre-cast to bf16 for the MXU (biases / LN params stay f32).
_MATMUL_WEIGHTS = {
    "enc_wqkv", "enc_wo", "enc_w1", "enc_w2",
    "dec_sa_wqkv", "dec_sa_wo", "dec_ca_wq", "dec_ca_wkv", "dec_ca_wo",
    "dec_w1", "dec_w2", "out_w",
}


# ---------------------------- in-kernel helpers ----------------------------

def _ln(y, g, b):
    """Row-wise LayerNorm over the last axis (f32 math)."""
    mean = jnp.mean(y, axis=-1, keepdims=True)
    var = jnp.mean(jnp.square(y - mean), axis=-1, keepdims=True)
    return (y - mean) * jax.lax.rsqrt(var + LN_EPS) * g + b


# ---------------------------- fused whole-model kernel ----------------------------

def _mol_transformer_kernel(*refs, n_enc, n_dec, num_heads, head_dim, mm_dtype):
    """One grid step == one batch element.  Entire encoder stack -> memory -> decoder
    stack -> output projection, all in VMEM/vregs."""
    assert len(refs) == 4 + len(WEIGHT_ORDER) + 1
    src_ref, tgt_ref, smask_ref, tmask_ref = refs[:4]
    out_ref = refs[-1]
    w = dict(zip(WEIGHT_ORDER, refs[4:-1]))

    d = num_heads * head_dim
    scale = 1.0 / math.sqrt(head_dim)

    def mm(a, b):
        # MXU matmul, f32 accumulation; operands optionally bf16 (mm_dtype) on v6e/v7x.
        return jnp.dot(a.astype(mm_dtype), b.astype(mm_dtype),
                       preferred_element_type=jnp.float32)

    def attention(q, k, v, amask, wo, bo):
        """Multi-head attention with the output projection folded into the head loop.

        acc = bo + sum_h softmax(q_h k_h^T * scale + mask) v_h @ Wo[h*Dh:(h+1)*Dh, :]
        == concat_h(head_h) @ Wo + bo, but every intermediate is lane-dense in vregs:
        no VMEM scratch, no masked partial stores.
        """
        acc = bo
        for h in range(num_heads):                       # static unroll
            lo = h * head_dim
            qh = q[:, lo:lo + head_dim]
            kh = k[:, lo:lo + head_dim]
            vh = v[:, lo:lo + head_dim]
            # q @ k^T without materializing an explicit transpose of k.
            s = jax.lax.dot_general(
                qh.astype(mm_dtype), kh.astype(mm_dtype),
                (((1,), (1,)), ((), ())),
                preferred_element_type=jnp.float32) * scale
            if amask is not None:
                s = s + amask
            s = s - jnp.max(s, axis=-1, keepdims=True)
            p = jnp.exp(s)
            p = p / jnp.sum(p, axis=-1, keepdims=True)   # exact softmax (reference parity)
            oh = mm(p, vh)                               # (Sq, Dh)
            acc = acc + mm(oh, wo[lo:lo + head_dim, :])  # (Sq, D) lane-dense
        return acc

    def ffn(x, w1, b1, w2, b2):
        # (S, dff) intermediate never leaves VMEM/vregs.
        h = jnp.maximum(mm(x, w1) + b1, 0.0)
        return mm(h, w2) + b2

    # -------- encoder stack (post-LN, relu FFN) --------
    x = src_ref[0]            # (S_src, D)
    smask = smask_ref[0]      # (1, S_src) additive key-padding mask
    for l in range(n_enc):
        qkv = mm(x, w["enc_wqkv"][l]) + w["enc_bqkv"][l]
        q, k, v = qkv[:, :d], qkv[:, d:2 * d], qkv[:, 2 * d:]
        x = _ln(x + attention(q, k, v, smask, w["enc_wo"][l], w["enc_bo"][l]),
                w["enc_ln1_g"][l], w["enc_ln1_b"][l])
        x = _ln(x + ffn(x, w["enc_w1"][l], w["enc_b1"][l],
                        w["enc_w2"][l], w["enc_b2"][l]),
                w["enc_ln2_g"][l], w["enc_ln2_b"][l])
    memory = _ln(x, w["enc_norm_g"][...], w["enc_norm_b"][...])   # final encoder LN, fused

    # -------- decoder stack --------
    y = tgt_ref[0]            # (S_tgt, D)
    tmask = tmask_ref[0]      # (1, S_tgt)
    for l in range(n_dec):
        # self-attention (key-padding mask only; reference passes no causal mask)
        qkv = mm(y, w["dec_sa_wqkv"][l]) + w["dec_sa_bqkv"][l]
        q, k, v = qkv[:, :d], qkv[:, d:2 * d], qkv[:, 2 * d:]
        y = _ln(y + attention(q, k, v, tmask, w["dec_sa_wo"][l], w["dec_sa_bo"][l]),
                w["dec_ln1_g"][l], w["dec_ln1_b"][l])
        # cross-attention: no memory_key_padding_mask in the reference forward
        q = mm(y, w["dec_ca_wq"][l]) + w["dec_ca_bq"][l]
        kv = mm(memory, w["dec_ca_wkv"][l]) + w["dec_ca_bkv"][l]
        y = _ln(y + attention(q, kv[:, :d], kv[:, d:], None,
                              w["dec_ca_wo"][l], w["dec_ca_bo"][l]),
                w["dec_ln2_g"][l], w["dec_ln2_b"][l])
        y = _ln(y + ffn(y, w["dec_w1"][l], w["dec_b1"][l],
                        w["dec_w2"][l], w["dec_b2"][l]),
                w["dec_ln3_g"][l], w["dec_ln3_b"][l])
    y = _ln(y, w["dec_norm_g"][...], w["dec_norm_b"][...])        # final decoder LN, fused

    # -------- vocab projection (lane-padded to a multiple of 128 -> unmasked stores) --------
    out_ref[0] = mm(y, w["out_w"][...]) + w["out_b"][...]


# ---------------------------- wrapper ----------------------------

def _const_spec(shape):
    zero = (0,) * len(shape)
    return pl.BlockSpec(shape, lambda b, _z=zero: _z)


def mol_transformer_forward(params, src_ids, tgt_ids, src_kpm, tgt_kpm, *,
                            num_heads, dim_model, num_tokens,
                            matmul_dtype=jnp.float32):
    D = dim_model
    B, S_src = src_ids.shape
    _, S_tgt = tgt_ids.shape
    n_enc = params["enc_wqkv"].shape[0]
    n_dec = params["dec_sa_wqkv"].shape[0]
    n_pad = params["out_w"].shape[1]
    dff = params["enc_w1"].shape[-1]
    head_dim = D // num_heads

    # Tiny elementwise prologue in plain JAX (embedding gather + sqrt(D) scale + PE add).
    # NOTE: pos_encoding[:x.size(0)] indexes by BATCH size, exactly as the reference
    # PositionalEncoding does with batch_first inputs (a per-batch constant added to
    # every sequence position).
    emb_scale = math.sqrt(D)
    src_x = jnp.take(params["embedding"], src_ids, axis=0) * emb_scale + params["pos_encoding"][:B]
    tgt_x = jnp.take(params["embedding"], tgt_ids, axis=0) * emb_scale + params["pos_encoding"][:B]

    # boolean key-padding masks (True = ignore) -> additive float masks (B, 1, Sk)
    smask = jnp.where(src_kpm, NEG_INF, 0.0).astype(jnp.float32)[:, None, :]
    tmask = jnp.where(tgt_kpm, NEG_INF, 0.0).astype(jnp.float32)[:, None, :]

    # Pre-cast the big weight matrices once if bf16 matmul operands are requested
    # (no-op when matmul_dtype == float32, which is the default for reference parity).
    weights = [params[k].astype(matmul_dtype) if k in _MATMUL_WEIGHTS else params[k]
               for k in WEIGHT_ORDER]

    in_specs = (
        [pl.BlockSpec((1, S_src, D), lambda b: (b, 0, 0)),   # src activations
         pl.BlockSpec((1, S_tgt, D), lambda b: (b, 0, 0)),   # tgt activations
         pl.BlockSpec((1, 1, S_src), lambda b: (b, 0, 0)),   # src additive mask
         pl.BlockSpec((1, 1, S_tgt), lambda b: (b, 0, 0))]   # tgt additive mask
        + [_const_spec(a.shape) for a in weights]            # grid-invariant weights
    )

    # Advisory cost estimate so XLA can overlap the JAX-side prologue with the custom call.
    def mmf(m, k, n):
        return 2 * m * k * n
    attn_f = lambda sq, sk: num_heads * (mmf(sq, head_dim, sk) + mmf(sq, sk, head_dim)
                                         + mmf(sq, head_dim, D))
    enc_f = n_enc * (mmf(S_src, D, 3 * D) + attn_f(S_src, S_src)
                     + mmf(S_src, D, dff) + mmf(S_src, dff, D))
    dec_f = n_dec * (mmf(S_tgt, D, 3 * D) + attn_f(S_tgt, S_tgt)
                     + mmf(S_tgt, D, D) + mmf(S_src, D, 2 * D) + attn_f(S_tgt, S_src)
                     + mmf(S_tgt, D, dff) + mmf(S_tgt, dff, D))
    flops = B * (enc_f + dec_f + mmf(S_tgt, D, n_pad))
    transcendentals = B * num_heads * (n_enc * S_src * S_src
                                       + n_dec * (S_tgt * S_tgt + S_tgt * S_src))
    bytes_accessed = (sum(int(a.size) * a.dtype.itemsize
                          for a in [src_x, tgt_x, smask, tmask] + weights)
                      + B * S_tgt * n_pad * 4)
    cost = pl.CostEstimate(flops=int(flops), transcendentals=int(transcendentals),
                           bytes_accessed=int(bytes_accessed))

    kernel = functools.partial(_mol_transformer_kernel, n_enc=n_enc, n_dec=n_dec,
                               num_heads=num_heads, head_dim=head_dim,
                               mm_dtype=matmul_dtype)

    logits_pad = pl.pallas_call(
        kernel,
        out_shape=jax.ShapeDtypeStruct((B, S_tgt, n_pad), jnp.float32),
        grid=(B,),
        in_specs=in_specs,
        out_specs=pl.BlockSpec((1, S_tgt, n_pad), lambda b: (b, 0, 0)),
        compiler_params=pltpu.CompilerParams(dimension_semantics=("parallel",)),
        cost_estimate=cost,
    )(src_x, tgt_x, smask, tmask, *weights)

    return logits_pad[:, :, :num_tokens]


# ---------------------------- parameter init ----------------------------

def _dense_init(key, shape, scale=0.02):
    return jax.random.normal(key, shape, jnp.float32) * scale


def make_pos_encoding(max_len, d):
    pos = jnp.arange(max_len, dtype=jnp.float32)[:, None]
    div = jnp.exp(jnp.arange(0, d, 2, dtype=jnp.float32) * (-math.log(10000.0) / d))
    pe = jnp.zeros((max_len, d), jnp.float32)
    pe = pe.at[:, 0::2].set(jnp.sin(pos * div))
    pe = pe.at[:, 1::2].set(jnp.cos(pos * div))
    return pe[:, None, :]   # (max_len, 1, d) == unsqueeze(0).transpose(0, 1)


def init_params(key, num_tokens, d, n_enc, n_dec, dff, max_len=100):
    n_pad = max(128, -(-num_tokens // 128) * 128)
    keys = iter(jax.random.split(key, 64))

    def rand_stack(n, shape):
        return jnp.stack([_dense_init(next(keys), shape) for _ in range(n)])

    def zeros(n, shape):
        return jnp.zeros((n,) + shape, jnp.float32)

    def ones(n, shape):
        return jnp.ones((n,) + shape, jnp.float32)

    p = {
        "embedding": jax.random.normal(next(keys), (num_tokens, d), jnp.float32),
        "pos_encoding": make_pos_encoding(max_len, d),
        # encoder stack (leading axis = layer); Wq/Wk/Wv fused into one (D, 3D) weight
        "enc_wqkv": rand_stack(n_enc, (d, 3 * d)), "enc_bqkv": zeros(n_enc, (1, 3 * d)),
        "enc_wo": rand_stack(n_enc, (d, d)), "enc_bo": zeros(n_enc, (1, d)),
        "enc_ln1_g": ones(n_enc, (1, d)), "enc_ln1_b": zeros(n_enc, (1, d)),
        "enc_w1": rand_stack(n_enc, (d, dff)), "enc_b1": zeros(n_enc, (1, dff)),
        "enc_w2": rand_stack(n_enc, (dff, d)), "enc_b2": zeros(n_enc, (1, d)),
        "enc_ln2_g": ones(n_enc, (1, d)), "enc_ln2_b": zeros(n_enc, (1, d)),
        "enc_norm_g": jnp.ones((1, d), jnp.float32), "enc_norm_b": jnp.zeros((1, d), jnp.float32),
        # decoder stack
        "dec_sa_wqkv": rand_stack(n_dec, (d, 3 * d)), "dec_sa_bqkv": zeros(n_dec, (1, 3 * d)),
        "dec_sa_wo": rand_stack(n_dec, (d, d)), "dec_sa_bo": zeros(n_dec, (1, d)),
        "dec_ln1_g": ones(n_dec, (1, d)), "dec_ln1_b": zeros(n_dec, (1, d)),
        "dec_ca_wq": rand_stack(n_dec, (d, d)), "dec_ca_bq": zeros(n_dec, (1, d)),
        "dec_ca_wkv": rand_stack(n_dec, (d, 2 * d)), "dec_ca_bkv": zeros(n_dec, (1, 2 * d)),
        "dec_ca_wo": rand_stack(n_dec, (d, d)), "dec_ca_bo": zeros(n_dec, (1, d)),
        "dec_ln2_g": ones(n_dec, (1, d)), "dec_ln2_b": zeros(n_dec, (1, d)),
        "dec_w1": rand_stack(n_dec, (d, dff)), "dec_b1": zeros(n_dec, (1, dff)),
        "dec_w2": rand_stack(n_dec, (dff, d)), "dec_b2": zeros(n_dec, (1, d)),
        "dec_ln3_g": ones(n_dec, (1, d)), "dec_ln3_b": zeros(n_dec, (1, d)),
        "dec_norm_g": jnp.ones((1, d), jnp.float32), "dec_norm_b": jnp.zeros((1, d), jnp.float32),
    }
    # vocab projection padded to 128 lanes (lane-dense, unmasked stores); sliced in the wrapper
    out_w = _dense_init(next(keys), (d, num_tokens))
    p["out_w"] = jnp.zeros((d, n_pad), jnp.float32).at[:, :num_tokens].set(out_w)
    p["out_b"] = jnp.zeros((1, n_pad), jnp.float32)
    return p


# ---------------------------- main ----------------------------

if __name__ == "__main__":
    # module hyper-parameters (small, consistent with the reference __init__)
    num_tokens = 20
    dim_model = 32
    num_heads = 4
    num_encoder_layers = 2
    num_decoder_layers = 2
    dropout_p = 0.1                 # identity at inference
    dim_feedforward = 2048          # nn.Transformer default

    B, S_src, S_tgt = 2, 8, 8

    root = jax.random.PRNGKey(0)
    kp, ks, kt = jax.random.split(root, 3)
    params = init_params(kp, num_tokens, dim_model,
                         num_encoder_layers, num_decoder_layers, dim_feedforward)

    src = jax.random.randint(ks, (B, S_src), 0, num_tokens, dtype=jnp.int32)
    tgt = jax.random.randint(kt, (B, S_tgt), 0, num_tokens, dtype=jnp.int32)
    src_key_padding_mask = jnp.array(
        [[False] * S_src,
         [False] * (S_src - 2) + [True] * 2])
    target_key_padding_mask = jnp.array(
        [[False] * S_tgt,
         [False] * (S_tgt - 3) + [True] * 3])

    # TODO(synk): set matmul_dtype=jnp.bfloat16 on v6e/v7x for MXU-native operands
    # (f32 accumulation, f32 LN/softmax kept); default f32 preserves exact reference parity.
    fwd = jax.jit(functools.partial(
        mol_transformer_forward,
        num_heads=num_heads, dim_model=dim_model, num_tokens=num_tokens))

    logits = fwd(params, src, tgt, src_key_padding_mask, target_key_padding_mask)
    jax.block_until_ready(logits)

    assert logits.shape == (B, S_tgt, num_tokens), logits.shape
    assert bool(jnp.all(jnp.isfinite(logits)))
    print("KERNEL_OK")
</pallas_src>

<mosaic_0001>
module attributes {stable_mosaic.version = 11 : i64} {
  func.func @_mol_transformer_kernel(%arg0: i32, %arg1: memref<1x8x32xf32, #tpu.memory_space<vmem>>, %arg2: memref<1x8x32xf32, #tpu.memory_space<vmem>>, %arg3: memref<1x1x8xf32, #tpu.memory_space<vmem>>, %arg4: memref<1x1x8xf32, #tpu.memory_space<vmem>>, %arg5: memref<2x32x96xf32, #tpu.memory_space<vmem>>, %arg6: memref<2x1x96xf32, #tpu.memory_space<vmem>>, %arg7: memref<2x32x32xf32, #tpu.memory_space<vmem>>, %arg8: memref<2x1x32xf32, #tpu.memory_space<vmem>>, %arg9: memref<2x1x32xf32, #tpu.memory_space<vmem>>, %arg10: memref<2x1x32xf32, #tpu.memory_space<vmem>>, %arg11: memref<2x32x2048xf32, #tpu.memory_space<vmem>>, %arg12: memref<2x1x2048xf32, #tpu.memory_space<vmem>>, %arg13: memref<2x2048x32xf32, #tpu.memory_space<vmem>>, %arg14: memref<2x1x32xf32, #tpu.memory_space<vmem>>, %arg15: memref<2x1x32xf32, #tpu.memory_space<vmem>>, %arg16: memref<2x1x32xf32, #tpu.memory_space<vmem>>, %arg17: memref<1x32xf32, #tpu.memory_space<vmem>>, %arg18: memref<1x32xf32, #tpu.memory_space<vmem>>, %arg19: memref<2x32x96xf32, #tpu.memory_space<vmem>>, %arg20: memref<2x1x96xf32, #tpu.memory_space<vmem>>, %arg21: memref<2x32x32xf32, #tpu.memory_space<vmem>>, %arg22: memref<2x1x32xf32, #tpu.memory_space<vmem>>, %arg23: memref<2x1x32xf32, #tpu.memory_space<vmem>>, %arg24: memref<2x1x32xf32, #tpu.memory_space<vmem>>, %arg25: memref<2x32x32xf32, #tpu.memory_space<vmem>>, %arg26: memref<2x1x32xf32, #tpu.memory_space<vmem>>, %arg27: memref<2x32x64xf32, #tpu.memory_space<vmem>>, %arg28: memref<2x1x64xf32, #tpu.memory_space<vmem>>, %arg29: memref<2x32x32xf32, #tpu.memory_space<vmem>>, %arg30: memref<2x1x32xf32, #tpu.memory_space<vmem>>, %arg31: memref<2x1x32xf32, #tpu.memory_space<vmem>>, %arg32: memref<2x1x32xf32, #tpu.memory_space<vmem>>, %arg33: memref<2x32x2048xf32, #tpu.memory_space<vmem>>, %arg34: memref<2x1x2048xf32, #tpu.memory_space<vmem>>, %arg35: memref<2x2048x32xf32, #tpu.memory_space<vmem>>, %arg36: memref<2x1x32xf32, #tpu.memory_space<vmem>>, %arg37: memref<2x1x32xf32, #tpu.memory_space<vmem>>, %arg38: memref<2x1x32xf32, #tpu.memory_space<vmem>>, %arg39: memref<1x32xf32, #tpu.memory_space<vmem>>, %arg40: memref<1x32xf32, #tpu.memory_space<vmem>>, %arg41: memref<32x128xf32, #tpu.memory_space<vmem>>, %arg42: memref<1x128xf32, #tpu.memory_space<vmem>>, %arg43: memref<1x8x128xf32, #tpu.memory_space<vmem>>) attributes {dimension_semantics = [#tpu.dimension_semantics<parallel>], iteration_bounds = array<i64: 2>, scalar_prefetch = 0 : i64, scratch_operands = 0 : i64, tpu.core_type = #tpu.core_type<tc>, window_params = [{transform_indices = @transform_0, window_bounds = array<i64: 1, 8, 32>}, {transform_indices = @transform_1, window_bounds = array<i64: 1, 8, 32>}, {transform_indices = @transform_2, window_bounds = array<i64: 1, 1, 8>}, {transform_indices = @transform_3, window_bounds = array<i64: 1, 1, 8>}, {pipeline_mode = #tpu.pipeline_mode<synchronous>, transform_indices = @transform_4, window_bounds = array<i64: 2, 32, 96>}, {pipeline_mode = #tpu.pipeline_mode<synchronous>, transform_indices = @transform_5, window_bounds = array<i64: 2, 1, 96>}, {pipeline_mode = #tpu.pipeline_mode<synchronous>, transform_indices = @transform_6, window_bounds = array<i64: 2, 32, 32>}, {pipeline_mode = #tpu.pipeline_mode<synchronous>, transform_indices = @transform_7, window_bounds = array<i64: 2, 1, 32>}, {pipeline_mode = #tpu.pipeline_mode<synchronous>, transform_indices = @transform_8, window_bounds = array<i64: 2, 1, 32>}, {pipeline_mode = #tpu.pipeline_mode<synchronous>, transform_indices = @transform_9, window_bounds = array<i64: 2, 1, 32>}, {pipeline_mode = #tpu.pipeline_mode<synchronous>, transform_indices = @transform_10, window_bounds = array<i64: 2, 32, 2048>}, {pipeline_mode = #tpu.pipeline_mode<synchronous>, transform_indices = @transform_11, window_bounds = array<i64: 2, 1, 2048>}, {pipeline_mode = #tpu.pipeline_mode<synchronous>, transform_indices = @transform_12, window_bounds = array<i64: 2, 2048, 32>}, {pipeline_mode = #tpu.pipeline_mode<synchronous>, transform_indices = @transform_13, window_bounds = array<i64: 2, 1, 32>}, {pipeline_mode = #tpu.pipeline_mode<synchronous>, transform_indices = @transform_14, window_bounds = array<i64: 2, 1, 32>}, {pipeline_mode = #tpu.pipeline_mode<synchronous>, transform_indices = @transform_15, window_bounds = array<i64: 2, 1, 32>}, {pipeline_mode = #tpu.pipeline_mode<synchronous>, transform_indices = @transform_16, window_bounds = array<i64: 1, 32>}, {pipeline_mode = #tpu.pipeline_mode<synchronous>, transform_indices = @transform_17, window_bounds = array<i64: 1, 32>}, {pipeline_mode = #tpu.pipeline_mode<synchronous>, transform_indices = @transform_18, window_bounds = array<i64: 2, 32, 96>}, {pipeline_mode = #tpu.pipeline_mode<synchronous>, transform_indices = @transform_19, window_bounds = array<i64: 2, 1, 96>}, {pipeline_mode = #tpu.pipeline_mode<synchronous>, transform_indices = @transform_20, window_bounds = array<i64: 2, 32, 32>}, {pipeline_mode = #tpu.pipeline_mode<synchronous>, transform_indices = @transform_21, window_bounds = array<i64: 2, 1, 32>}, {pipeline_mode = #tpu.pipeline_mode<synchronous>, transform_indices = @transform_22, window_bounds = array<i64: 2, 1, 32>}, {pipeline_mode = #tpu.pipeline_mode<synchronous>, transform_indices = @transform_23, window_bounds = array<i64: 2, 1, 32>}, {pipeline_mode = #tpu.pipeline_mode<synchronous>, transform_indices = @transform_24, window_bounds = array<i64: 2, 32, 32>}, {pipeline_mode = #tpu.pipeline_mode<synchronous>, transform_indices = @transform_25, window_bounds = array<i64: 2, 1, 32>}, {pipeline_mode = #tpu.pipeline_mode<synchronous>, transform_indices = @transform_26, window_bounds = array<i64: 2, 32, 64>}, {pipeline_mode = #tpu.pipeline_mode<synchronous>, transform_indices = @transform_27, window_bounds = array<i64: 2, 1, 64>}, {pipeline_mode = #tpu.pipeline_mode<synchronous>, transform_indices = @transform_28, window_bounds = array<i64: 2, 32, 32>}, {pipeline_mode = #tpu.pipeline_mode<synchronous>, transform_indices = @transform_29, window_bounds = array<i64: 2, 1, 32>}, {pipeline_mode = #tpu.pipeline_mode<synchronous>, transform_indices = @transform_30, window_bounds = array<i64: 2, 1, 32>}, {pipeline_mode = #tpu.pipeline_mode<synchronous>, transform_indices = @transform_31, window_bounds = array<i64: 2, 1, 32>}, {pipeline_mode = #tpu.pipeline_mode<synchronous>, transform_indices = @transform_32, window_bounds = array<i64: 2, 32, 2048>}, {pipeline_mode = #tpu.pipeline_mode<synchronous>, transform_indices = @transform_33, window_bounds = array<i64: 2, 1, 2048>}, {pipeline_mode = #tpu.pipeline_mode<synchronous>, transform_indices = @transform_34, window_bounds = array<i64: 2, 2048, 32>}, {pipeline_mode = #tpu.pipeline_mode<synchronous>, transform_indices = @transform_35, window_bounds = array<i64: 2, 1, 32>}, {pipeline_mode = #tpu.pipeline_mode<synchronous>, transform_indices = @transform_36, window_bounds = array<i64: 2, 1, 32>}, {pipeline_mode = #tpu.pipeline_mode<synchronous>, transform_indices = @transform_37, window_bounds = array<i64: 2, 1, 32>}, {pipeline_mode = #tpu.pipeline_mode<synchronous>, transform_indices = @transform_38, window_bounds = array<i64: 1, 32>}, {pipeline_mode = #tpu.pipeline_mode<synchronous>, transform_indices = @transform_39, window_bounds = array<i64: 1, 32>}, {pipeline_mode = #tpu.pipeline_mode<synchronous>, transform_indices = @transform_40, window_bounds = array<i64: 32, 128>}, {pipeline_mode = #tpu.pipeline_mode<synchronous>, transform_indices = @transform_41, window_bounds = array<i64: 1, 128>}, {transform_indices = @transform_42, window_bounds = array<i64: 1, 8, 128>}]} {
    %c0 = arith.constant 0 : index
    %c0_0 = arith.constant 0 : index
    %c0_1 = arith.constant 0 : index
    %0 = vector.load %arg1[%c0, %c0_0, %c0_1] : memref<1x8x32xf32, #tpu.memory_space<vmem>>, vector<1x8x32xf32>
    %1 = vector.shape_cast %0 : vector<1x8x32xf32> to vector<8x32xf32>
    %c0_2 = arith.constant 0 : index
    %c0_3 = arith.constant 0 : index
    %c0_4 = arith.constant 0 : index
    %2 = vector.load %arg3[%c0_2, %c0_3, %c0_4] : memref<1x1x8xf32, #tpu.memory_space<vmem>>, vector<1x1x8xf32>
    %3 = vector.shape_cast %2 : vector<1x1x8xf32> to vector<1x8xf32>
    %c0_5 = arith.constant 0 : index
    %c0_6 = arith.constant 0 : index
    %c0_7 = arith.constant 0 : index
    %4 = vector.load %arg5[%c0_5, %c0_6, %c0_7] : memref<2x32x96xf32, #tpu.memory_space<vmem>>, vector<1x32x96xf32>
    %5 = vector.shape_cast %4 : vector<1x32x96xf32> to vector<32x96xf32>
    %cst = arith.constant dense<0.000000e+00> : vector<8x96xf32>
    %6 = tpu.matmul %1, %5, %cst {dimension_numbers = #tpu.dot_dimension_numbers<[1], [0], [0], [1], [0, 0, 1, 1], [], []>} : vector<8x32xf32>, vector<32x96xf32>, vector<8x96xf32> -> vector<8x96xf32>
    %c0_8 = arith.constant 0 : index
    %c0_9 = arith.constant 0 : index
    %c0_10 = arith.constant 0 : index
    %7 = vector.load %arg6[%c0_8, %c0_9, %c0_10] : memref<2x1x96xf32, #tpu.memory_space<vmem>>, vector<1x1x96xf32>
    %8 = vector.shape_cast %7 : vector<1x1x96xf32> to vector<1x96xf32>
    %9 = vector.broadcast %8 : vector<1x96xf32> to vector<8x96xf32>
    %10 = arith.addf %6, %9 : vector<8x96xf32>
    %11 = vector.extract_strided_slice %10 {offsets = [0, 0], sizes = [8, 32], strides = [1, 1]} : vector<8x96xf32> to vector<8x32xf32>
    %12 = vector.extract_strided_slice %10 {offsets = [0, 32], sizes = [8, 32], strides = [1, 1]} : vector<8x96xf32> to vector<8x32xf32>
    %13 = vector.extract_strided_slice %10 {offsets = [0, 64], sizes = [8, 32], strides = [1, 1]} : vector<8x96xf32> to vector<8x32xf32>
    %c0_11 = arith.constant 0 : index
    %c0_12 = arith.constant 0 : index
    %c0_13 = arith.constant 0 : index
    %14 = vector.load %arg7[%c0_11, %c0_12, %c0_13] : memref<2x32x32xf32, #tpu.memory_space<vmem>>, vector<1x32x32xf32>
    %15 = vector.shape_cast %14 : vector<1x32x32xf32> to vector<32x32xf32>
    %c0_14 = arith.constant 0 : index
    %c0_15 = arith.constant 0 : index
    %c0_16 = arith.constant 0 : index
    %16 = vector.load %arg8[%c0_14, %c0_15, %c0_16] : memref<2x1x32xf32, #tpu.memory_space<vmem>>, vector<1x1x32xf32>
    %17 = vector.shape_cast %16 : vector<1x1x32xf32> to vector<1x32xf32>
    %18 = vector.extract_strided_slice %11 {offsets = [0, 0], sizes = [8, 8], strides = [1, 1]} : vector<8x32xf32> to vector<8x8xf32>
    %19 = vector.extract_strided_slice %12 {offsets = [0, 0], sizes = [8, 8], strides = [1, 1]} : vector<8x32xf32> to vector<8x8xf32>
    %20 = vector.extract_strided_slice %13 {offsets = [0, 0], sizes = [8, 8], strides = [1, 1]} : vector<8x32xf32> to vector<8x8xf32>
    %cst_17 = arith.constant dense<0.000000e+00> : vector<8x8xf32>
    %21 = tpu.matmul %18, %19, %cst_17 {dimension_numbers = #tpu.dot_dimension_numbers<[1], [1], [0], [0], [0, 0, 1, 0], [], []>} : vector<8x8xf32>, vector<8x8xf32>, vector<8x8xf32> -> vector<8x8xf32>
    %cst_18 = arith.constant 0.353553385 : f32
    %22 = vector.broadcast %cst_18 : f32 to vector<8x8xf32>
    %23 = arith.mulf %21, %22 : vector<8x8xf32>
    %24 = vector.broadcast %3 : vector<1x8xf32> to vector<8x8xf32>
    %25 = arith.addf %23, %24 : vector<8x8xf32>
    %cst_19 = arith.constant dense<0xFF800000> : vector<8xf32>
    %26 = vector.multi_reduction <maximumf>, %25, %cst_19 [1] : vector<8x8xf32> to vector<8xf32>
    %27 = vector.shape_cast %26 : vector<8xf32> to vector<8x1xf32>
    %28 = vector.broadcast %27 : vector<8x1xf32> to vector<8x8xf32>
    %29 = arith.subf %25, %28 : vector<8x8xf32>
    %30 = math.exp %29 : vector<8x8xf32>
    %cst_20 = arith.constant dense<0.000000e+00> : vector<8xf32>
    %31 = vector.multi_reduction <add>, %30, %cst_20 [1] : vector<8x8xf32> to vector<8xf32>
    %32 = vector.shape_cast %31 : vector<8xf32> to vector<8x1xf32>
    %33 = vector.broadcast %32 : vector<8x1xf32> to vector<8x8xf32>
    %34 = arith.divf %30, %33 : vector<8x8xf32>
    %cst_21 = arith.constant dense<0.000000e+00> : vector<8x8xf32>
    %35 = tpu.matmul %34, %20, %cst_21 {dimension_numbers = #tpu.dot_dimension_numbers<[1], [0], [0], [1], [0, 0, 1, 1], [], []>} : vector<8x8xf32>, vector<8x8xf32>, vector<8x8xf32> -> vector<8x8xf32>
    %36 = vector.extract_strided_slice %15 {offsets = [0, 0], sizes = [8, 32], strides = [1, 1]} : vector<32x32xf32> to vector<8x32xf32>
    %cst_22 = arith.constant dense<0.000000e+00> : vector<8x32xf32>
    %37 = tpu.matmul %35, %36, %cst_22 {dimension_numbers = #tpu.dot_dimension_numbers<[1], [0], [0], [1], [0, 0, 1, 1], [], []>} : vector<8x8xf32>, vector<8x32xf32>, vector<8x32xf32> -> vector<8x32xf32>
    %38 = vector.broadcast %17 : vector<1x32xf32> to vector<8x32xf32>
    %39 = arith.addf %38, %37 : vector<8x32xf32>
    %40 = vector.extract_strided_slice %11 {offsets = [0, 8], sizes = [8, 8], strides = [1, 1]} : vector<8x32xf32> to vector<8x8xf32>
    %41 = vector.extract_strided_slice %12 {offsets = [0, 8], sizes = [8, 8], strides = [1, 1]} : vector<8x32xf32> to vector<8x8xf32>
    %42 = vector.extract_strided_slice %13 {offsets = [0, 8], sizes = [8, 8], strides = [1, 1]} : vector<8x32xf32> to vector<8x8xf32>
    %cst_23 = arith.constant dense<0.000000e+00> : vector<8x8xf32>
    %43 = tpu.matmul %40, %41, %cst_23 {dimension_numbers = #tpu.dot_dimension_numbers<[1], [1], [0], [0], [0, 0, 1, 0], [], []>} : vector<8x8xf32>, vector<8x8xf32>, vector<8x8xf32> -> vector<8x8xf32>
    %cst_24 = arith.constant 0.353553385 : f32
    %44 = vector.broadcast %cst_24 : f32 to vector<8x8xf32>
    %45 = arith.mulf %43, %44 : vector<8x8xf32>
    %46 = vector.broadcast %3 : vector<1x8xf32> to vector<8x8xf32>
    %47 = arith.addf %45, %46 : vector<8x8xf32>
    %cst_25 = arith.constant dense<0xFF800000> : vector<8xf32>
    %48 = vector.multi_reduction <maximumf>, %47, %cst_25 [1] : vector<8x8xf32> to vector<8xf32>
    %49 = vector.shape_cast %48 : vector<8xf32> to vector<8x1xf32>
    %50 = vector.broadcast %49 : vector<8x1xf32> to vector<8x8xf32>
    %51 = arith.subf %47, %50 : vector<8x8xf32>
    %52 = math.exp %51 : vector<8x8xf32>
    %cst_26 = arith.constant dense<0.000000e+00> : vector<8xf32>
    %53 = vector.multi_reduction <add>, %52, %cst_26 [1] : vector<8x8xf32> to vector<8xf32>
    %54 = vector.shape_cast %53 : vector<8xf32> to vector<8x1xf32>
    %55 = vector.broadcast %54 : vector<8x1xf32> to vector<8x8xf32>
    %56 = arith.divf %52, %55 : vector<8x8xf32>
    %cst_27 = arith.constant dense<0.000000e+00> : vector<8x8xf32>
    %57 = tpu.matmul %56, %42, %cst_27 {dimension_numbers = #tpu.dot_dimension_numbers<[1], [0], [0], [1], [0, 0, 1, 1], [], []>} : vector<8x8xf32>, vector<8x8xf32>, vector<8x8xf32> -> vector<8x8xf32>
    %58 = vector.extract_strided_slice %15 {offsets = [8, 0], sizes = [8, 32], strides = [1, 1]} : vector<32x32xf32> to vector<8x32xf32>
    %cst_28 = arith.constant dense<0.000000e+00> : vector<8x32xf32>
    %59 = tpu.matmul %57, %58, %cst_28 {dimension_numbers = #tpu.dot_dimension_numbers<[1], [0], [0], [1], [0, 0, 1, 1], [], []>} : vector<8x8xf32>, vector<8x32xf32>, vector<8x32xf32> -> vector<8x32xf32>
    %60 = arith.addf %39, %59 : vector<8x32xf32>
    %61 = vector.extract_strided_slice %11 {offsets = [0, 16], sizes = [8, 8], strides = [1, 1]} : vector<8x32xf32> to vector<8x8xf32>
    %62 = vector.extract_strided_slice %12 {offsets = [0, 16], sizes = [8, 8], strides = [1, 1]} : vector<8x32xf32> to vector<8x8xf32>
    %63 = vector.extract_strided_slice %13 {offsets = [0, 16], sizes = [8, 8], strides = [1, 1]} : vector<8x32xf32> to vector<8x8xf32>
    %cst_29 = arith.constant dense<0.000000e+00> : vector<8x8xf32>
    %64 = tpu.matmul %61, %62, %cst_29 {dimension_numbers = #tpu.dot_dimension_numbers<[1], [1], [0], [0], [0, 0, 1, 0], [], []>} : vector<8x8xf32>, vector<8x8xf32>, vector<8x8xf32> -> vector<8x8xf32>
    %cst_30 = arith.constant 0.353553385 : f32
    %65 = vector.broadcast %cst_30 : f32 to vector<8x8xf32>
    %66 = arith.mulf %64, %65 : vector<8x8xf32>
    %67 = vector.broadcast %3 : vector<1x8xf32> to vector<8x8xf32>
    %68 = arith.addf %66, %67 : vector<8x8xf32>
    %cst_31 = arith.constant dense<0xFF800000> : vector<8xf32>
    %69 = vector.multi_reduction <maximumf>, %68, %cst_31 [1] : vector<8x8xf32> to vector<8xf32>
    %70 = vector.shape_cast %69 : vector<8xf32> to vector<8x1xf32>
    %71 = vector.broadcast %70 : vector<8x1xf32> to vector<8x8xf32>
    %72 = arith.subf %68, %71 : vector<8x8xf32>
    %73 = math.exp %72 : vector<8x8xf32>
    %cst_32 = arith.constant dense<0.000000e+00> : vector<8xf32>
    %74 = vector.multi_reduction <add>, %73, %cst_32 [1] : vector<8x8xf32> to vector<8xf32>
    %75 = vector.shape_cast %74 : vector<8xf32> to vector<8x1xf32>
    %76 = vector.broadcast %75 : vector<8x1xf32> to vector<8x8xf32>
    %77 = arith.divf %73, %76 : vector<8x8xf32>
    %cst_33 = arith.constant dense<0.000000e+00> : vector<8x8xf32>
    %78 = tpu.matmul %77, %63, %cst_33 {dimension_numbers = #tpu.dot_dimension_numbers<[1], [0], [0], [1], [0, 0, 1, 1], [], []>} : vector<8x8xf32>, vector<8x8xf32>, vector<8x8xf32> -> vector<8x8xf32>
    %79 = vector.extract_strided_slice %15 {offsets = [16, 0], sizes = [8, 32], strides = [1, 1]} : vector<32x32xf32> to vector<8x32xf32>
    %cst_34 = arith.constant dense<0.000000e+00> : vector<8x32xf32>
    %80 = tpu.matmul %78, %79, %cst_34 {dimension_numbers = #tpu.dot_dimension_numbers<[1], [0], [0], [1], [0, 0, 1, 1], [], []>} : vector<8x8xf32>, vector<8x32xf32>, vector<8x32xf32> -> vector<8x32xf32>
    %81 = arith.addf %60, %80 : vector<8x32xf32>
    %82 = vector.extract_strided_slice %11 {offsets = [0, 24], sizes = [8, 8], strides = [1, 1]} : vector<8x32xf32> to vector<8x8xf32>
    %83 = vector.extract_strided_slice %12 {offsets = [0, 24], sizes = [8, 8], strides = [1, 1]} : vector<8x32xf32> to vector<8x8xf32>
    %84 = vector.extract_strided_slice %13 {offsets = [0, 24], sizes = [8, 8], strides = [1, 1]} : vector<8x32xf32> to vector<8x8xf32>
    %cst_35 = arith.constant dense<0.000000e+00> : vector<8x8xf32>
    %85 = tpu.matmul %82, %83, %cst_35 {dimension_numbers = #tpu.dot_dimension_numbers<[1], [1], [0], [0], [0, 0, 1, 0], [], []>} : vector<8x8xf32>, vector<8x8xf32>, vector<8x8xf32> -> vector<8x8xf32>
    %cst_36 = arith.constant 0.353553385 : f32
    %86 = vector.broadcast %cst_36 : f32 to vector<8x8xf32>
    %87 = arith.mulf %85, %86 : vector<8x8xf32>
    %88 = vector.broadcast %3 : vector<1x8xf32> to vector<8x8xf32>
    %89 = arith.addf %87, %88 : vector<8x8xf32>
    %cst_37 = arith.constant dense<0xFF800000> : vector<8xf32>
    %90 = vector.multi_reduction <maximumf>, %89, %cst_37 [1] : vector<8x8xf32> to vector<8xf32>
    %91 = vector.shape_cast %90 : vector<8xf32> to vector<8x1xf32>
    %92 = vector.broadcast %91 : vector<8x1xf32> to vector<8x8xf32>
    %93 = arith.subf %89, %92 : vector<8x8xf32>
    %94 = math.exp %93 : vector<8x8xf32>
    %cst_38 = arith.constant dense<0.000000e+00> : vector<8xf32>
    %95 = vector.multi_reduction <add>, %94, %cst_38 [1] : vector<8x8xf32> to vector<8xf32>
    %96 = vector.shape_cast %95 : vector<8xf32> to vector<8x1xf32>
    %97 = vector.broadcast %96 : vector<8x1xf32> to vector<8x8xf32>
    %98 = arith.divf %94, %97 : vector<8x8xf32>
    %cst_39 = arith.constant dense<0.000000e+00> : vector<8x8xf32>
    %99 = tpu.matmul %98, %84, %cst_39 {dimension_numbers = #tpu.dot_dimension_numbers<[1], [0], [0], [1], [0, 0, 1, 1], [], []>} : vector<8x8xf32>, vector<8x8xf32>, vector<8x8xf32> -> vector<8x8xf32>
    %100 = vector.extract_strided_slice %15 {offsets = [24, 0], sizes = [8, 32], strides = [1, 1]} : vector<32x32xf32> to vector<8x32xf32>
    %cst_40 = arith.constant dense<0.000000e+00> : vector<8x32xf32>
    %101 = tpu.matmul %99, %100, %cst_40 {dimension_numbers = #tpu.dot_dimension_numbers<[1], [0], [0], [1], [0, 0, 1, 1], [], []>} : vector<8x8xf32>, vector<8x32xf32>, vector<8x32xf32> -> vector<8x32xf32>
    %102 = arith.addf %81, %101 : vector<8x32xf32>
    %103 = arith.addf %1, %102 : vector<8x32xf32>
    %c0_41 = arith.constant 0 : index
    %c0_42 = arith.constant 0 : index
    %c0_43 = arith.constant 0 : index
    %104 = vector.load %arg9[%c0_41, %c0_42, %c0_43] : memref<2x1x32xf32, #tpu.memory_space<vmem>>, vector<1x1x32xf32>
    %105 = vector.shape_cast %104 : vector<1x1x32xf32> to vector<1x32xf32>
    %c0_44 = arith.constant 0 : index
    %c0_45 = arith.constant 0 : index
    %c0_46 = arith.constant 0 : index
    %106 = vector.load %arg10[%c0_44, %c0_45, %c0_46] : memref<2x1x32xf32, #tpu.memory_space<vmem>>, vector<1x1x32xf32>
    %107 = vector.shape_cast %106 : vector<1x1x32xf32> to vector<1x32xf32>
    %cst_47 = arith.constant dense<0.000000e+00> : vector<8xf32>
    %108 = vector.multi_reduction <add>, %103, %cst_47 [1] : vector<8x32xf32> to vector<8xf32>
    %109 = vector.shape_cast %108 : vector<8xf32> to vector<8x1xf32>
    %cst_48 = arith.constant 3.200000e+01 : f32
    %110 = vector.broadcast %cst_48 : f32 to vector<8x1xf32>
    %111 = arith.divf %109, %110 : vector<8x1xf32>
    %112 = vector.broadcast %111 : vector<8x1xf32> to vector<8x32xf32>
    %113 = arith.subf %103, %112 : vector<8x32xf32>
    %114 = arith.mulf %113, %113 : vector<8x32xf32>
    %cst_49 = arith.constant dense<0.000000e+00> : vector<8xf32>
    %115 = vector.multi_reduction <add>, %114, %cst_49 [1] : vector<8x32xf32> to vector<8xf32>
    %116 = vector.shape_cast %115 : vector<8xf32> to vector<8x1xf32>
    %cst_50 = arith.constant 3.200000e+01 : f32
    %117 = vector.broadcast %cst_50 : f32 to vector<8x1xf32>
    %118 = arith.divf %116, %117 : vector<8x1xf32>
    %119 = vector.broadcast %111 : vector<8x1xf32> to vector<8x32xf32>
    %120 = arith.subf %103, %119 : vector<8x32xf32>
    %cst_51 = arith.constant 9.99999974E-6 : f32
    %121 = vector.broadcast %cst_51 : f32 to vector<8x1xf32>
    %122 = arith.addf %118, %121 : vector<8x1xf32>
    %123 = math.rsqrt %122 : vector<8x1xf32>
    %124 = vector.broadcast %123 : vector<8x1xf32> to vector<8x32xf32>
    %125 = arith.mulf %120, %124 : vector<8x32xf32>
    %126 = vector.broadcast %105 : vector<1x32xf32> to vector<8x32xf32>
    %127 = arith.mulf %125, %126 : vector<8x32xf32>
    %128 = vector.broadcast %107 : vector<1x32xf32> to vector<8x32xf32>
    %129 = arith.addf %127, %128 : vector<8x32xf32>
    %c0_52 = arith.constant 0 : index
    %c0_53 = arith.constant 0 : index
    %c0_54 = arith.constant 0 : index
    %130 = vector.load %arg11[%c0_52, %c0_53, %c0_54] : memref<2x32x2048xf32, #tpu.memory_space<vmem>>, vector<1x32x2048xf32>
    %131 = vector.shape_cast %130 : vector<1x32x2048xf32> to vector<32x2048xf32>
    %c0_55 = arith.constant 0 : index
    %c0_56 = arith.constant 0 : index
    %c0_57 = arith.constant 0 : index
    %132 = vector.load %arg12[%c0_55, %c0_56, %c0_57] : memref<2x1x2048xf32, #tpu.memory_space<vmem>>, vector<1x1x2048xf32>
    %133 = vector.shape_cast %132 : vector<1x1x2048xf32> to vector<1x2048xf32>
    %c0_58 = arith.constant 0 : index
    %c0_59 = arith.constant 0 : index
    %c0_60 = arith.constant 0 : index
    %134 = vector.load %arg13[%c0_58, %c0_59, %c0_60] : memref<2x2048x32xf32, #tpu.memory_space<vmem>>, vector<1x2048x32xf32>
    %135 = vector.shape_cast %134 : vector<1x2048x32xf32> to vector<2048x32xf32>
    %c0_61 = arith.constant 0 : index
    %c0_62 = arith.constant 0 : index
    %c0_63 = arith.constant 0 : index
    %136 = vector.load %arg14[%c0_61, %c0_62, %c0_63] : memref<2x1x32xf32, #tpu.memory_space<vmem>>, vector<1x1x32xf32>
    %137 = vector.shape_cast %136 : vector<1x1x32xf32> to vector<1x32xf32>
    %cst_64 = arith.constant dense<0.000000e+00> : vector<8x2048xf32>
    %138 = tpu.matmul %129, %131, %cst_64 {dimension_numbers = #tpu.dot_dimension_numbers<[1], [0], [0], [1], [0, 0, 1, 1], [], []>} : vector<8x32xf32>, vector<32x2048xf32>, vector<8x2048xf32> -> vector<8x2048xf32>
    %139 = vector.broadcast %133 : vector<1x2048xf32> to vector<8x2048xf32>
    %140 = arith.addf %138, %139 : vector<8x2048xf32>
    %cst_65 = arith.constant 0.000000e+00 : f32
    %141 = vector.broadcast %cst_65 : f32 to vector<8x2048xf32>
    %142 = arith.maximumf %140, %141 : vector<8x2048xf32>
    %cst_66 = arith.constant dense<0.000000e+00> : vector<8x32xf32>
    %143 = tpu.matmul %142, %135, %cst_66 {dimension_numbers = #tpu.dot_dimension_numbers<[1], [0], [0], [1], [0, 0, 1, 1], [], []>} : vector<8x2048xf32>, vector<2048x32xf32>, vector<8x32xf32> -> vector<8x32xf32>
    %144 = vector.broadcast %137 : vector<1x32xf32> to vector<8x32xf32>
    %145 = arith.addf %143, %144 : vector<8x32xf32>
    %146 = arith.addf %129, %145 : vector<8x32xf32>
    %c0_67 = arith.constant 0 : index
    %c0_68 = arith.constant 0 : index
    %c0_69 = arith.constant 0 : index
    %147 = vector.load %arg15[%c0_67, %c0_68, %c0_69] : memref<2x1x32xf32, #tpu.memory_space<vmem>>, vector<1x1x32xf32>
    %148 = vector.shape_cast %147 : vector<1x1x32xf32> to vector<1x32xf32>
    %c0_70 = arith.constant 0 : index
    %c0_71 = arith.constant 0 : index
    %c0_72 = arith.constant 0 : index
    %149 = vector.load %arg16[%c0_70, %c0_71, %c0_72] : memref<2x1x32xf32, #tpu.memory_space<vmem>>, vector<1x1x32xf32>
    %150 = vector.shape_cast %149 : vector<1x1x32xf32> to vector<1x32xf32>
    %cst_73 = arith.constant dense<0.000000e+00> : vector<8xf32>
    %151 = vector.multi_reduction <add>, %146, %cst_73 [1] : vector<8x32xf32> to vector<8xf32>
    %152 = vector.shape_cast %151 : vector<8xf32> to vector<8x1xf32>
    %cst_74 = arith.constant 3.200000e+01 : f32
    %153 = vector.broadcast %cst_74 : f32 to vector<8x1xf32>
    %154 = arith.divf %152, %153 : vector<8x1xf32>
    %155 = vector.broadcast %154 : vector<8x1xf32> to vector<8x32xf32>
    %156 = arith.subf %146, %155 : vector<8x32xf32>
    %157 = arith.mulf %156, %156 : vector<8x32xf32>
    %cst_75 = arith.constant dense<0.000000e+00> : vector<8xf32>
    %158 = vector.multi_reduction <add>, %157, %cst_75 [1] : vector<8x32xf32> to vector<8xf32>
    %159 = vector.shape_cast %158 : vector<8xf32> to vector<8x1xf32>
    %cst_76 = arith.constant 3.200000e+01 : f32
    %160 = vector.broadcast %cst_76 : f32 to vector<8x1xf32>
    %161 = arith.divf %159, %160 : vector<8x1xf32>
    %162 = vector.broadcast %154 : vector<8x1xf32> to vector<8x32xf32>
    %163 = arith.subf %146, %162 : vector<8x32xf32>
    %cst_77 = arith.constant 9.99999974E-6 : f32
    %164 = vector.broadcast %cst_77 : f32 to vector<8x1xf32>
    %165 = arith.addf %161, %164 : vector<8x1xf32>
    %166 = math.rsqrt %165 : vector<8x1xf32>
    %167 = vector.broadcast %166 : vector<8x1xf32> to vector<8x32xf32>
    %168 = arith.mulf %163, %167 : vector<8x32xf32>
    %169 = vector.broadcast %148 : vector<1x32xf32> to vector<8x32xf32>
    %170 = arith.mulf %168, %169 : vector<8x32xf32>
    %171 = vector.broadcast %150 : vector<1x32xf32> to vector<8x32xf32>
    %172 = arith.addf %170, %171 : vector<8x32xf32>
    %c1 = arith.constant 1 : index
    %c0_78 = arith.constant 0 : index
    %c0_79 = arith.constant 0 : index
    %173 = vector.load %arg5[%c1, %c0_78, %c0_79] : memref<2x32x96xf32, #tpu.memory_space<vmem>>, vector<1x32x96xf32>
    %174 = vector.shape_cast %173 : vector<1x32x96xf32> to vector<32x96xf32>
    %cst_80 = arith.constant dense<0.000000e+00> : vector<8x96xf32>
    %175 = tpu.matmul %172, %174, %cst_80 {dimension_numbers = #tpu.dot_dimension_numbers<[1], [0], [0], [1], [0, 0, 1, 1], [], []>} : vector<8x32xf32>, vector<32x96xf32>, vector<8x96xf32> -> vector<8x96xf32>
    %c1_81 = arith.constant 1 : index
    %c0_82 = arith.constant 0 : index
    %c0_83 = arith.constant 0 : index
    %176 = vector.load %arg6[%c1_81, %c0_82, %c0_83] : memref<2x1x96xf32, #tpu.memory_space<vmem>>, vector<1x1x96xf32>
    %177 = vector.shape_cast %176 : vector<1x1x96xf32> to vector<1x96xf32>
    %178 = vector.broadcast %177 : vector<1x96xf32> to vector<8x96xf32>
    %179 = arith.addf %175, %178 : vector<8x96xf32>
    %180 = vector.extract_strided_slice %179 {offsets = [0, 0], sizes = [8, 32], strides = [1, 1]} : vector<8x96xf32> to vector<8x32xf32>
    %181 = vector.extract_strided_slice %179 {offsets = [0, 32], sizes = [8, 32], strides = [1, 1]} : vector<8x96xf32> to vector<8x32xf32>
    %182 = vector.extract_strided_slice %179 {offsets = [0, 64], sizes = [8, 32], strides = [1, 1]} : vector<8x96xf32> to vector<8x32xf32>
    %c1_84 = arith.constant 1 : index
    %c0_85 = arith.constant 0 : index
    %c0_86 = arith.constant 0 : index
    %183 = vector.load %arg7[%c1_84, %c0_85, %c0_86] : memref<2x32x32xf32, #tpu.memory_space<vmem>>, vector<1x32x32xf32>
    %184 = vector.shape_cast %183 : vector<1x32x32xf32> to vector<32x32xf32>
    %c1_87 = arith.constant 1 : index
    %c0_88 = arith.constant 0 : index
    %c0_89 = arith.constant 0 : index
    %185 = vector.load %arg8[%c1_87, %c0_88, %c0_89] : memref<2x1x32xf32, #tpu.memory_space<vmem>>, vector<1x1x32xf32>
    %186 = vector.shape_cast %185 : vector<1x1x32xf32> to vector<1x32xf32>
    %187 = vector.extract_strided_slice %180 {offsets = [0, 0], sizes = [8, 8], strides = [1, 1]} : vector<8x32xf32> to vector<8x8xf32>
    %188 = vector.extract_strided_slice %181 {offsets = [0, 0], sizes = [8, 8], strides = [1, 1]} : vector<8x32xf32> to vector<8x8xf32>
    %189 = vector.extract_strided_slice %182 {offsets = [0, 0], sizes = [8, 8], strides = [1, 1]} : vector<8x32xf32> to vector<8x8xf32>
    %cst_90 = arith.constant dense<0.000000e+00> : vector<8x8xf32>
    %190 = tpu.matmul %187, %188, %cst_90 {dimension_numbers = #tpu.dot_dimension_numbers<[1], [1], [0], [0], [0, 0, 1, 0], [], []>} : vector<8x8xf32>, vector<8x8xf32>, vector<8x8xf32> -> vector<8x8xf32>
    %cst_91 = arith.constant 0.353553385 : f32
    %191 = vector.broadcast %cst_91 : f32 to vector<8x8xf32>
    %192 = arith.mulf %190, %191 : vector<8x8xf32>
    %193 = vector.broadcast %3 : vector<1x8xf32> to vector<8x8xf32>
    %194 = arith.addf %192, %193 : vector<8x8xf32>
    %cst_92 = arith.constant dense<0xFF800000> : vector<8xf32>
    %195 = vector.multi_reduction <maximumf>, %194, %cst_92 [1] : vector<8x8xf32> to vector<8xf32>
    %196 = vector.shape_cast %195 : vector<8xf32> to vector<8x1xf32>
    %197 = vector.broadcast %196 : vector<8x1xf32> to vector<8x8xf32>
    %198 = arith.subf %194, %197 : vector<8x8xf32>
    %199 = math.exp %198 : vector<8x8xf32>
    %cst_93 = arith.constant dense<0.000000e+00> : vector<8xf32>
    %200 = vector.multi_reduction <add>, %199, %cst_93 [1] : vector<8x8xf32> to vector<8xf32>
    %201 = vector.shape_cast %200 : vector<8xf32> to vector<8x1xf32>
    %202 = vector.broadcast %201 : vector<8x1xf32> to vector<8x8xf32>
    %203 = arith.divf %199, %202 : vector<8x8xf32>
    %cst_94 = arith.constant dense<0.000000e+00> : vector<8x8xf32>
    %204 = tpu.matmul %203, %189, %cst_94 {dimension_numbers = #tpu.dot_dimension_numbers<[1], [0], [0], [1], [0, 0, 1, 1], [], []>} : vector<8x8xf32>, vector<8x8xf32>, vector<8x8xf32> -> vector<8x8xf32>
    %205 = vector.extract_strided_slice %184 {offsets = [0, 0], sizes = [8, 32], strides = [1, 1]} : vector<32x32xf32> to vector<8x32xf32>
    %cst_95 = arith.constant dense<0.000000e+00> : vector<8x32xf32>
    %206 = tpu.matmul %204, %205, %cst_95 {dimension_numbers = #tpu.dot_dimension_numbers<[1], [0], [0], [1], [0, 0, 1, 1], [], []>} : vector<8x8xf32>, vector<8x32xf32>, vector<8x32xf32> -> vector<8x32xf32>
    %207 = vector.broadcast %186 : vector<1x32xf32> to vector<8x32xf32>
    %208 = arith.addf %207, %206 : vector<8x32xf32>
    %209 = vector.extract_strided_slice %180 {offsets = [0, 8], sizes = [8, 8], strides = [1, 1]} : vector<8x32xf32> to vector<8x8xf32>
    %210 = vector.extract_strided_slice %181 {offsets = [0, 8], sizes = [8, 8], strides = [1, 1]} : vector<8x32xf32> to vector<8x8xf32>
    %211 = vector.extract_strided_slice %182 {offsets = [0, 8], sizes = [8, 8], strides = [1, 1]} : vector<8x32xf32> to vector<8x8xf32>
    %cst_96 = arith.constant dense<0.000000e+00> : vector<8x8xf32>
    %212 = tpu.matmul %209, %210, %cst_96 {dimension_numbers = #tpu.dot_dimension_numbers<[1], [1], [0], [0], [0, 0, 1, 0], [], []>} : vector<8x8xf32>, vector<8x8xf32>, vector<8x8xf32> -> vector<8x8xf32>
    %cst_97 = arith.constant 0.353553385 : f32
    %213 = vector.broadcast %cst_97 : f32 to vector<8x8xf32>
    %214 = arith.mulf %212, %213 : vector<8x8xf32>
    %215 = vector.broadcast %3 : vector<1x8xf32> to vector<8x8xf32>
    %216 = arith.addf %214, %215 : vector<8x8xf32>
    %cst_98 = arith.constant dense<0xFF800000> : vector<8xf32>
    %217 = vector.multi_reduction <maximumf>, %216, %cst_98 [1] : vector<8x8xf32> to vector<8xf32>
    %218 = vector.shape_cast %217 : vector<8xf32> to vector<8x1xf32>
    %219 = vector.broadcast %218 : vector<8x1xf32> to vector<8x8xf32>
    %220 = arith.subf %216, %219 : vector<8x8xf32>
    %221 = math.exp %220 : vector<8x8xf32>
    %cst_99 = arith.constant dense<0.000000e+00> : vector<8xf32>
    %222 = vector.multi_reduction <add>, %221, %cst_99 [1] : vector<8x8xf32> to vector<8xf32>
    %223 = vector.shape_cast %222 : vector<8xf32> to vector<8x1xf32>
    %224 = vector.broadcast %223 : vector<8x1xf32> to vector<8x8xf32>
    %225 = arith.divf %221, %224 : vector<8x8xf32>
    %cst_100 = arith.constant dense<0.000000e+00> : vector<8x8xf32>
    %226 = tpu.matmul %225, %211, %cst_100 {dimension_numbers = #tpu.dot_dimension_numbers<[1], [0], [0], [1], [0, 0, 1, 1], [], []>} : vector<8x8xf32>, vector<8x8xf32>, vector<8x8xf32> -> vector<8x8xf32>
    %227 = vector.extract_strided_slice %184 {offsets = [8, 0], sizes = [8, 32], strides = [1, 1]} : vector<32x32xf32> to vector<8x32xf32>
    %cst_101 = arith.constant dense<0.000000e+00> : vector<8x32xf32>
    %228 = tpu.matmul %226, %227, %cst_101 {dimension_numbers = #tpu.dot_dimension_numbers<[1], [0], [0], [1], [0, 0, 1, 1], [], []>} : vector<8x8xf32>, vector<8x32xf32>, vector<8x32xf32> -> vector<8x32xf32>
    %229 = arith.addf %208, %228 : vector<8x32xf32>
    %230 = vector.extract_strided_slice %180 {offsets = [0, 16], sizes = [8, 8], strides = [1, 1]} : vector<8x32xf32> to vector<8x8xf32>
    %231 = vector.extract_strided_slice %181 {offsets = [0, 16], sizes = [8, 8], strides = [1, 1]} : vector<8x32xf32> to vector<8x8xf32>
    %232 = vector.extract_strided_slice %182 {offsets = [0, 16], sizes = [8, 8], strides = [1, 1]} : vector<8x32xf32> to vector<8x8xf32>
    %cst_102 = arith.constant dense<0.000000e+00> : vector<8x8xf32>
    %233 = tpu.matmul %230, %231, %cst_102 {dimension_numbers = #tpu.dot_dimension_numbers<[1], [1], [0], [0], [0, 0, 1, 0], [], []>} : vector<8x8xf32>, vector<8x8xf32>, vector<8x8xf32> -> vector<8x8xf32>
    %cst_103 = arith.constant 0.353553385 : f32
    %234 = vector.broadcast %cst_103 : f32 to vector<8x8xf32>
    %235 = arith.mulf %233, %234 : vector<8x8xf32>
    %236 = vector.broadcast %3 : vector<1x8xf32> to vector<8x8xf32>
    %237 = arith.addf %235, %236 : vector<8x8xf32>
    %cst_104 = arith.constant dense<0xFF800000> : vector<8xf32>
    %238 = vector.multi_reduction <maximumf>, %237, %cst_104 [1] : vector<8x8xf32> to vector<8xf32>
    %239 = vector.shape_cast %238 : vector<8xf32> to vector<8x1xf32>
    %240 = vector.broadcast %239 : vector<8x1xf32> to vector<8x8xf32>
    %241 = arith.subf %237, %240 : vector<8x8xf32>
    %242 = math.exp %241 : vector<8x8xf32>
    %cst_105 = arith.constant dense<0.000000e+00> : vector<8xf32>
    %243 = vector.multi_reduction <add>, %242, %cst_105 [1] : vector<8x8xf32> to vector<8xf32>
    %244 = vector.shape_cast %243 : vector<8xf32> to vector<8x1xf32>
    %245 = vector.broadcast %244 : vector<8x1xf32> to vector<8x8xf32>
    %246 = arith.divf %242, %245 : vector<8x8xf32>
    %cst_106 = arith.constant dense<0.000000e+00> : vector<8x8xf32>
    %247 = tpu.matmul %246, %232, %cst_106 {dimension_numbers = #tpu.dot_dimension_numbers<[1], [0], [0], [1], [0, 0, 1, 1], [], []>} : vector<8x8xf32>, vector<8x8xf32>, vector<8x8xf32> -> vector<8x8xf32>
    %248 = vector.extract_strided_slice %184 {offsets = [16, 0], sizes = [8, 32], strides = [1, 1]} : vector<32x32xf32> to vector<8x32xf32>
    %cst_107 = arith.constant dense<0.000000e+00> : vector<8x32xf32>
    %249 = tpu.matmul %247, %248, %cst_107 {dimension_numbers = #tpu.dot_dimension_numbers<[1], [0], [0], [1], [0, 0, 1, 1], [], []>} : vector<8x8xf32>, vector<8x32xf32>, vector<8x32xf32> -> vector<8x32xf32>
    %250 = arith.addf %229, %249 : vector<8x32xf32>
    %251 = vector.extract_strided_slice %180 {offsets = [0, 24], sizes = [8, 8], strides = [1, 1]} : vector<8x32xf32> to vector<8x8xf32>
    %252 = vector.extract_strided_slice %181 {offsets = [0, 24], sizes = [8, 8], strides = [1, 1]} : vector<8x32xf32> to vector<8x8xf32>
    %253 = vector.extract_strided_slice %182 {offsets = [0, 24], sizes = [8, 8], strides = [1, 1]} : vector<8x32xf32> to vector<8x8xf32>
    %cst_108 = arith.constant dense<0.000000e+00> : vector<8x8xf32>
    %254 = tpu.matmul %251, %252, %cst_108 {dimension_numbers = #tpu.dot_dimension_numbers<[1], [1], [0], [0], [0, 0, 1, 0], [], []>} : vector<8x8xf32>, vector<8x8xf32>, vector<8x8xf32> -> vector<8x8xf32>
    %cst_109 = arith.constant 0.353553385 : f32
    %255 = vector.broadcast %cst_109 : f32 to vector<8x8xf32>
    %256 = arith.mulf %254, %255 : vector<8x8xf32>
    %257 = vector.broadcast %3 : vector<1x8xf32> to vector<8x8xf32>
    %258 = arith.addf %256, %257 : vector<8x8xf32>
    %cst_110 = arith.constant dense<0xFF800000> : vector<8xf32>
    %259 = vector.multi_reduction <maximumf>, %258, %cst_110 [1] : vector<8x8xf32> to vector<8xf32>
    %260 = vector.shape_cast %259 : vector<8xf32> to vector<8x1xf32>
    %261 = vector.broadcast %260 : vector<8x1xf32> to vector<8x8xf32>
    %262 = arith.subf %258, %261 : vector<8x8xf32>
    %263 = math.exp %262 : vector<8x8xf32>
    %cst_111 = arith.constant dense<0.000000e+00> : vector<8xf32>
    %264 = vector.multi_reduction <add>, %263, %cst_111 [1] : vector<8x8xf32> to vector<8xf32>
    %265 = vector.shape_cast %264 : vector<8xf32> to vector<8x1xf32>
    %266 = vector.broadcast %265 : vector<8x1xf32> to vector<8x8xf32>
    %267 = arith.divf %263, %266 : vector<8x8xf32>
    %cst_112 = arith.constant dense<0.000000e+00> : vector<8x8xf32>
    %268 = tpu.matmul %267, %253, %cst_112 {dimension_numbers = #tpu.dot_dimension_numbers<[1], [0], [0], [1], [0, 0, 1, 1], [], []>} : vector<8x8xf32>, vector<8x8xf32>, vector<8x8xf32> -> vector<8x8xf32>
    %269 = vector.extract_strided_slice %184 {offsets = [24, 0], sizes = [8, 32], strides = [1, 1]} : vector<32x32xf32> to vector<8x32xf32>
    %cst_113 = arith.constant dense<0.000000e+00> : vector<8x32xf32>
    %270 = tpu.matmul %268, %269, %cst_113 {dimension_numbers = #tpu.dot_dimension_numbers<[1], [0], [0], [1], [0, 0, 1, 1], [], []>} : vector<8x8xf32>, vector<8x32xf32>, vector<8x32xf32> -> vector<8x32xf32>
    %271 = arith.addf %250, %270 : vector<8x32xf32>
    %272 = arith.addf %172, %271 : vector<8x32xf32>
    %c1_114 = arith.constant 1 : index
    %c0_115 = arith.constant 0 : index
    %c0_116 = arith.constant 0 : index
    %273 = vector.load %arg9[%c1_114, %c0_115, %c0_116] : memref<2x1x32xf32, #tpu.memory_space<vmem>>, vector<1x1x32xf32>
    %274 = vector.shape_cast %273 : vector<1x1x32xf32> to vector<1x32xf32>
    %c1_117 = arith.constant 1 : index
    %c0_118 = arith.constant 0 : index
    %c0_119 = arith.constant 0 : index
    %275 = vector.load %arg10[%c1_117, %c0_118, %c0_119] : memref<2x1x32xf32, #tpu.memory_space<vmem>>, vector<1x1x32xf32>
    %276 = vector.shape_cast %275 : vector<1x1x32xf32> to vector<1x32xf32>
    %cst_120 = arith.constant dense<0.000000e+00> : vector<8xf32>
    %277 = vector.multi_reduction <add>, %272, %cst_120 [1] : vector<8x32xf32> to vector<8xf32>
    %278 = vector.shape_cast %277 : vector<8xf32> to vector<8x1xf32>
    %cst_121 = arith.constant 3.200000e+01 : f32
    %279 = vector.broadcast %cst_121 : f32 to vector<8x1xf32>
    %280 = arith.divf %278, %279 : vector<8x1xf32>
    %281 = vector.broadcast %280 : vector<8x1xf32> to vector<8x32xf32>
    %282 = arith.subf %272, %281 : vector<8x32xf32>
    %283 = arith.mulf %282, %282 : vector<8x32xf32>
    %cst_122 = arith.constant dense<0.000000e+00> : vector<8xf32>
    %284 = vector.multi_reduction <add>, %283, %cst_122 [1] : vector<8x32xf32> to vector<8xf32>
    %285 = vector.shape_cast %284 : vector<8xf32> to vector<8x1xf32>
    %cst_123 = arith.constant 3.200000e+01 : f32
    %286 = vector.broadcast %cst_123 : f32 to vector<8x1xf32>
    %287 = arith.divf %285, %286 : vector<8x1xf32>
    %288 = vector.broadcast %280 : vector<8x1xf32> to vector<8x32xf32>
    %289 = arith.subf %272, %288 : vector<8x32xf32>
    %cst_124 = arith.constant 9.99999974E-6 : f32
    %290 = vector.broadcast %cst_124 : f32 to vector<8x1xf32>
    %291 = arith.addf %287, %290 : vector<8x1xf32>
    %292 = math.rsqrt %291 : vector<8x1xf32>
    %293 = vector.broadcast %292 : vector<8x1xf32> to vector<8x32xf32>
    %294 = arith.mulf %289, %293 : vector<8x32xf32>
    %295 = vector.broadcast %274 : vector<1x32xf32> to vector<8x32xf32>
    %296 = arith.mulf %294, %295 : vector<8x32xf32>
    %297 = vector.broadcast %276 : vector<1x32xf32> to vector<8x32xf32>
    %298 = arith.addf %296, %297 : vector<8x32xf32>
    %c1_125 = arith.constant 1 : index
    %c0_126 = arith.constant 0 : index
    %c0_127 = arith.constant 0 : index
    %299 = vector.load %arg11[%c1_125, %c0_126, %c0_127] : memref<2x32x2048xf32, #tpu.memory_space<vmem>>, vector<1x32x2048xf32>
    %300 = vector.shape_cast %299 : vector<1x32x2048xf32> to vector<32x2048xf32>
    %c1_128 = arith.constant 1 : index
    %c0_129 = arith.constant 0 : index
    %c0_130 = arith.constant 0 : index
    %301 = vector.load %arg12[%c1_128, %c0_129, %c0_130] : memref<2x1x2048xf32, #tpu.memory_space<vmem>>, vector<1x1x2048xf32>
    %302 = vector.shape_cast %301 : vector<1x1x2048xf32> to vector<1x2048xf32>
    %c1_131 = arith.constant 1 : index
    %c0_132 = arith.constant 0 : index
    %c0_133 = arith.constant 0 : index
    %303 = vector.load %arg13[%c1_131, %c0_132, %c0_133] : memref<2x2048x32xf32, #tpu.memory_space<vmem>>, vector<1x2048x32xf32>
    %304 = vector.shape_cast %303 : vector<1x2048x32xf32> to vector<2048x32xf32>
    %c1_134 = arith.constant 1 : index
    %c0_135 = arith.constant 0 : index
    %c0_136 = arith.constant 0 : index
    %305 = vector.load %arg14[%c1_134, %c0_135, %c0_136] : memref<2x1x32xf32, #tpu.memory_space<vmem>>, vector<1x1x32xf32>
    %306 = vector.shape_cast %305 : vector<1x1x32xf32> to vector<1x32xf32>
    %cst_137 = arith.constant dense<0.000000e+00> : vector<8x2048xf32>
    %307 = tpu.matmul %298, %300, %cst_137 {dimension_numbers = #tpu.dot_dimension_numbers<[1], [0], [0], [1], [0, 0, 1, 1], [], []>} : vector<8x32xf32>, vector<32x2048xf32>, vector<8x2048xf32> -> vector<8x2048xf32>
    %308 = vector.broadcast %302 : vector<1x2048xf32> to vector<8x2048xf32>
    %309 = arith.addf %307, %308 : vector<8x2048xf32>
    %cst_138 = arith.constant 0.000000e+00 : f32
    %310 = vector.broadcast %cst_138 : f32 to vector<8x2048xf32>
    %311 = arith.maximumf %309, %310 : vector<8x2048xf32>
    %cst_139 = arith.constant dense<0.000000e+00> : vector<8x32xf32>
    %312 = tpu.matmul %311, %304, %cst_139 {dimension_numbers = #tpu.dot_dimension_numbers<[1], [0], [0], [1], [0, 0, 1, 1], [], []>} : vector<8x2048xf32>, vector<2048x32xf32>, vector<8x32xf32> -> vector<8x32xf32>
    %313 = vector.broadcast %306 : vector<1x32xf32> to vector<8x32xf32>
    %314 = arith.addf %312, %313 : vector<8x32xf32>
    %315 = arith.addf %298, %314 : vector<8x32xf32>
    %c1_140 = arith.constant 1 : index
    %c0_141 = arith.constant 0 : index
    %c0_142 = arith.constant 0 : index
    %316 = vector.load %arg15[%c1_140, %c0_141, %c0_142] : memref<2x1x32xf32, #tpu.memory_space<vmem>>, vector<1x1x32xf32>
    %317 = vector.shape_cast %316 : vector<1x1x32xf32> to vector<1x32xf32>
    %c1_143 = arith.constant 1 : index
    %c0_144 = arith.constant 0 : index
    %c0_145 = arith.constant 0 : index
    %318 = vector.load %arg16[%c1_143, %c0_144, %c0_145] : memref<2x1x32xf32, #tpu.memory_space<vmem>>, vector<1x1x32xf32>
    %319 = vector.shape_cast %318 : vector<1x1x32xf32> to vector<1x32xf32>
    %cst_146 = arith.constant dense<0.000000e+00> : vector<8xf32>
    %320 = vector.multi_reduction <add>, %315, %cst_146 [1] : vector<8x32xf32> to vector<8xf32>
    %321 = vector.shape_cast %320 : vector<8xf32> to vector<8x1xf32>
    %cst_147 = arith.constant 3.200000e+01 : f32
    %322 = vector.broadcast %cst_147 : f32 to vector<8x1xf32>
    %323 = arith.divf %321, %322 : vector<8x1xf32>
    %324 = vector.broadcast %323 : vector<8x1xf32> to vector<8x32xf32>
    %325 = arith.subf %315, %324 : vector<8x32xf32>
    %326 = arith.mulf %325, %325 : vector<8x32xf32>
    %cst_148 = arith.constant dense<0.000000e+00> : vector<8xf32>
    %327 = vector.multi_reduction <add>, %326, %cst_148 [1] : vector<8x32xf32> to vector<8xf32>
    %328 = vector.shape_cast %327 : vector<8xf32> to vector<8x1xf32>
    %cst_149 = arith.constant 3.200000e+01 : f32
    %329 = vector.broadcast %cst_149 : f32 to vector<8x1xf32>
    %330 = arith.divf %328, %329 : vector<8x1xf32>
    %331 = vector.broadcast %323 : vector<8x1xf32> to vector<8x32xf32>
    %332 = arith.subf %315, %331 : vector<8x32xf32>
    %cst_150 = arith.constant 9.99999974E-6 : f32
    %333 = vector.broadcast %cst_150 : f32 to vector<8x1xf32>
    %334 = arith.addf %330, %333 : vector<8x1xf32>
    %335 = math.rsqrt %334 : vector<8x1xf32>
    %336 = vector.broadcast %335 : vector<8x1xf32> to vector<8x32xf32>
    %337 = arith.mulf %332, %336 : vector<8x32xf32>
    %338 = vector.broadcast %317 : vector<1x32xf32> to vector<8x32xf32>
    %339 = arith.mulf %337, %338 : vector<8x32xf32>
    %340 = vector.broadcast %319 : vector<1x32xf32> to vector<8x32xf32>
    %341 = arith.addf %339, %340 : vector<8x32xf32>
    %c0_151 = arith.constant 0 : index
    %c0_152 = arith.constant 0 : index
    %342 = vector.load %arg17[%c0_151, %c0_152] : memref<1x32xf32, #tpu.memory_space<vmem>>, vector<1x32xf32>
    %c0_153 = arith.constant 0 : index
    %c0_154 = arith.constant 0 : index
    %343 = vector.load %arg18[%c0_153, %c0_154] : memref<1x32xf32, #tpu.memory_space<vmem>>, vector<1x32xf32>
    %cst_155 = arith.constant dense<0.000000e+00> : vector<8xf32>
    %344 = vector.multi_reduction <add>, %341, %cst_155 [1] : vector<8x32xf32> to vector<8xf32>
    %345 = vector.shape_cast %344 : vector<8xf32> to vector<8x1xf32>
    %cst_156 = arith.constant 3.200000e+01 : f32
    %346 = vector.broadcast %cst_156 : f32 to vector<8x1xf32>
    %347 = arith.divf %345, %346 : vector<8x1xf32>
    %348 = vector.broadcast %347 : vector<8x1xf32> to vector<8x32xf32>
    %349 = arith.subf %341, %348 : vector<8x32xf32>
    %350 = arith.mulf %349, %349 : vector<8x32xf32>
    %cst_157 = arith.constant dense<0.000000e+00> : vector<8xf32>
    %351 = vector.multi_reduction <add>, %350, %cst_157 [1] : vector<8x32xf32> to vector<8xf32>
    %352 = vector.shape_cast %351 : vector<8xf32> to vector<8x1xf32>
    %cst_158 = arith.constant 3.200000e+01 : f32
    %353 = vector.broadcast %cst_158 : f32 to vector<8x1xf32>
    %354 = arith.divf %352, %353 : vector<8x1xf32>
    %355 = vector.broadcast %347 : vector<8x1xf32> to vector<8x32xf32>
    %356 = arith.subf %341, %355 : vector<8x32xf32>
    %cst_159 = arith.constant 9.99999974E-6 : f32
    %357 = vector.broadcast %cst_159 : f32 to vector<8x1xf32>
    %358 = arith.addf %354, %357 : vector<8x1xf32>
    %359 = math.rsqrt %358 : vector<8x1xf32>
    %360 = vector.broadcast %359 : vector<8x1xf32> to vector<8x32xf32>
    %361 = arith.mulf %356, %360 : vector<8x32xf32>
    %362 = vector.broadcast %342 : vector<1x32xf32> to vector<8x32xf32>
    %363 = arith.mulf %361, %362 : vector<8x32xf32>
    %364 = vector.broadcast %343 : vector<1x32xf32> to vector<8x32xf32>
    %365 = arith.addf %363, %364 : vector<8x32xf32>
    %c0_160 = arith.constant 0 : index
    %c0_161 = arith.constant 0 : index
    %c0_162 = arith.constant 0 : index
    %366 = vector.load %arg2[%c0_160, %c0_161, %c0_162] : memref<1x8x32xf32, #tpu.memory_space<vmem>>, vector<1x8x32xf32>
    %367 = vector.shape_cast %366 : vector<1x8x32xf32> to vector<8x32xf32>
    %c0_163 = arith.constant 0 : index
    %c0_164 = arith.constant 0 : index
    %c0_165 = arith.constant 0 : index
    %368 = vector.load %arg4[%c0_163, %c0_164, %c0_165] : memref<1x1x8xf32, #tpu.memory_space<vmem>>, vector<1x1x8xf32>
    %369 = vector.shape_cast %368 : vector<1x1x8xf32> to vector<1x8xf32>
    %c0_166 = arith.constant 0 : index
    %c0_167 = arith.constant 0 : index
    %c0_168 = arith.constant 0 : index
    %370 = vector.load %arg19[%c0_166, %c0_167, %c0_168] : memref<2x32x96xf32, #tpu.memory_space<vmem>>, vector<1x32x96xf32>
    %371 = vector.shape_cast %370 : vector<1x32x96xf32> to vector<32x96xf32>
    %cst_169 = arith.constant dense<0.000000e+00> : vector<8x96xf32>
    %372 = tpu.matmul %367, %371, %cst_169 {dimension_numbers = #tpu.dot_dimension_numbers<[1], [0], [0], [1], [0, 0, 1, 1], [], []>} : vector<8x32xf32>, vector<32x96xf32>, vector<8x96xf32> -> vector<8x96xf32>
    %c0_170 = arith.constant 0 : index
    %c0_171 = arith.constant 0 : index
    %c0_172 = arith.constant 0 : index
    %373 = vector.load %arg20[%c0_170, %c0_171, %c0_172] : memref<2x1x96xf32, #tpu.memory_space<vmem>>, vector<1x1x96xf32>
    %374 = vector.shape_cast %373 : vector<1x1x96xf32> to vector<1x96xf32>
    %375 = vector.broadcast %374 : vector<1x96xf32> to vector<8x96xf32>
    %376 = arith.addf %372, %375 : vector<8x96xf32>
    %377 = vector.extract_strided_slice %376 {offsets = [0, 0], sizes = [8, 32], strides = [1, 1]} : vector<8x96xf32> to vector<8x32xf32>
    %378 = vector.extract_strided_slice %376 {offsets = [0, 32], sizes = [8, 32], strides = [1, 1]} : vector<8x96xf32> to vector<8x32xf32>
    %379 = vector.extract_strided_slice %376 {offsets = [0, 64], sizes = [8, 32], strides = [1, 1]} : vector<8x96xf32> to vector<8x32xf32>
    %c0_173 = arith.constant 0 : index
    %c0_174 = arith.constant 0 : index
    %c0_175 = arith.constant 0 : index
    %380 = vector.load %arg21[%c0_173, %c0_174, %c0_175] : memref<2x32x32xf32, #tpu.memory_space<vmem>>, vector<1x32x32xf32>
    %381 = vector.shape_cast %380 : vector<1x32x32xf32> to vector<32x32xf32>
    %c0_176 = arith.constant 0 : index
    %c0_177 = arith.constant 0 : index
    %c0_178 = arith.constant 0 : index
    %382 = vector.load %arg22[%c0_176, %c0_177, %c0_178] : memref<2x1x32xf32, #tpu.memory_space<vmem>>, vector<1x1x32xf32>
    %383 = vector.shape_cast %382 : vector<1x1x32xf32> to vector<1x32xf32>
    %384 = vector.extract_strided_slice %377 {offsets = [0, 0], sizes = [8, 8], strides = [1, 1]} : vector<8x32xf32> to vector<8x8xf32>
    %385 = vector.extract_strided_slice %378 {offsets = [0, 0], sizes = [8, 8], strides = [1, 1]} : vector<8x32xf32> to vector<8x8xf32>
    %386 = vector.extract_strided_slice %379 {offsets = [0, 0], sizes = [8, 8], strides = [1, 1]} : vector<8x32xf32> to vector<8x8xf32>
    %cst_179 = arith.constant dense<0.000000e+00> : vector<8x8xf32>
    %387 = tpu.matmul %384, %385, %cst_179 {dimension_numbers = #tpu.dot_dimension_numbers<[1], [1], [0], [0], [0, 0, 1, 0], [], []>} : vector<8x8xf32>, vector<8x8xf32>, vector<8x8xf32> -> vector<8x8xf32>
    %cst_180 = arith.constant 0.353553385 : f32
    %388 = vector.broadcast %cst_180 : f32 to vector<8x8xf32>
    %389 = arith.mulf %387, %388 : vector<8x8xf32>
    %390 = vector.broadcast %369 : vector<1x8xf32> to vector<8x8xf32>
    %391 = arith.addf %389, %390 : vector<8x8xf32>
    %cst_181 = arith.constant dense<0xFF800000> : vector<8xf32>
    %392 = vector.multi_reduction <maximumf>, %391, %cst_181 [1] : vector<8x8xf32> to vector<8xf32>
    %393 = vector.shape_cast %392 : vector<8xf32> to vector<8x1xf32>
    %394 = vector.broadcast %393 : vector<8x1xf32> to vector<8x8xf32>
    %395 = arith.subf %391, %394 : vector<8x8xf32>
    %396 = math.exp %395 : vector<8x8xf32>
    %cst_182 = arith.constant dense<0.000000e+00> : vector<8xf32>
    %397 = vector.multi_reduction <add>, %396, %cst_182 [1] : vector<8x8xf32> to vector<8xf32>
    %398 = vector.shape_cast %397 : vector<8xf32> to vector<8x1xf32>
    %399 = vector.broadcast %398 : vector<8x1xf32> to vector<8x8xf32>
    %400 = arith.divf %396, %399 : vector<8x8xf32>
    %cst_183 = arith.constant dense<0.000000e+00> : vector<8x8xf32>
    %401 = tpu.matmul %400, %386, %cst_183 {dimension_numbers = #tpu.dot_dimension_numbers<[1], [0], [0], [1], [0, 0, 1, 1], [], []>} : vector<8x8xf32>, vector<8x8xf32>, vector<8x8xf32> -> vector<8x8xf32>
    %402 = vector.extract_strided_slice %381 {offsets = [0, 0], sizes = [8, 32], strides = [1, 1]} : vector<32x32xf32> to vector<8x32xf32>
    %cst_184 = arith.constant dense<0.000000e+00> : vector<8x32xf32>
    %403 = tpu.matmul %401, %402, %cst_184 {dimension_numbers = #tpu.dot_dimension_numbers<[1], [0], [0], [1], [0, 0, 1, 1], [], []>} : vector<8x8xf32>, vector<8x32xf32>, vector<8x32xf32> -> vector<8x32xf32>
    %404 = vector.broadcast %383 : vector<1x32xf32> to vector<8x32xf32>
    %405 = arith.addf %404, %403 : vector<8x32xf32>
    %406 = vector.extract_strided_slice %377 {offsets = [0, 8], sizes = [8, 8], strides = [1, 1]} : vector<8x32xf32> to vector<8x8xf32>
    %407 = vector.extract_strided_slice %378 {offsets = [0, 8], sizes = [8, 8], strides = [1, 1]} : vector<8x32xf32> to vector<8x8xf32>
    %408 = vector.extract_strided_slice %379 {offsets = [0, 8], sizes = [8, 8], strides = [1, 1]} : vector<8x32xf32> to vector<8x8xf32>
    %cst_185 = arith.constant dense<0.000000e+00> : vector<8x8xf32>
    %409 = tpu.matmul %406, %407, %cst_185 {dimension_numbers = #tpu.dot_dimension_numbers<[1], [1], [0], [0], [0, 0, 1, 0], [], []>} : vector<8x8xf32>, vector<8x8xf32>, vector<8x8xf32> -> vector<8x8xf32>
    %cst_186 = arith.constant 0.353553385 : f32
    %410 = vector.broadcast %cst_186 : f32 to vector<8x8xf32>
    %411 = arith.mulf %409, %410 : vector<8x8xf32>
    %412 = vector.broadcast %369 : vector<1x8xf32> to vector<8x8xf32>
    %413 = arith.addf %411, %412 : vector<8x8xf32>
    %cst_187 = arith.constant dense<0xFF800000> : vector<8xf32>
    %414 = vector.multi_reduction <maximumf>, %413, %cst_187 [1] : vector<8x8xf32> to vector<8xf32>
    %415 = vector.shape_cast %414 : vector<8xf32> to vector<8x1xf32>
    %416 = vector.broadcast %415 : vector<8x1xf32> to vector<8x8xf32>
    %417 = arith.subf %413, %416 : vector<8x8xf32>
    %418 = math.exp %417 : vector<8x8xf32>
    %cst_188 = arith.constant dense<0.000000e+00> : vector<8xf32>
    %419 = vector.multi_reduction <add>, %418, %cst_188 [1] : vector<8x8xf32> to vector<8xf32>
    %420 = vector.shape_cast %419 : vector<8xf32> to vector<8x1xf32>
    %421 = vector.broadcast %420 : vector<8x1xf32> to vector<8x8xf32>
    %422 = arith.divf %418, %421 : vector<8x8xf32>
    %cst_189 = arith.constant dense<0.000000e+00> : vector<8x8xf32>
    %423 = tpu.matmul %422, %408, %cst_189 {dimension_numbers = #tpu.dot_dimension_numbers<[1], [0], [0], [1], [0, 0, 1, 1], [], []>} : vector<8x8xf32>, vector<8x8xf32>, vector<8x8xf32> -> vector<8x8xf32>
    %424 = vector.extract_strided_slice %381 {offsets = [8, 0], sizes = [8, 32], strides = [1, 1]} : vector<32x32xf32> to vector<8x32xf32>
    %cst_190 = arith.constant dense<0.000000e+00> : vector<8x32xf32>
    %425 = tpu.matmul %423, %424, %cst_190 {dimension_numbers = #tpu.dot_dimension_numbers<[1], [0], [0], [1], [0, 0, 1, 1], [], []>} : vector<8x8xf32>, vector<8x32xf32>, vector<8x32xf32> -> vector<8x32xf32>
    %426 = arith.addf %405, %425 : vector<8x32xf32>
    %427 = vector.extract_strided_slice %377 {offsets = [0, 16], sizes = [8, 8], strides = [1, 1]} : vector<8x32xf32> to vector<8x8xf32>
    %428 = vector.extract_strided_slice %378 {offsets = [0, 16], sizes = [8, 8], strides = [1, 1]} : vector<8x32xf32> to vector<8x8xf32>
    %429 = vector.extract_strided_slice %379 {offsets = [0, 16], sizes = [8, 8], strides = [1, 1]} : vector<8x32xf32> to vector<8x8xf32>
    %cst_191 = arith.constant dense<0.000000e+00> : vector<8x8xf32>
    %430 = tpu.matmul %427, %428, %cst_191 {dimension_numbers = #tpu.dot_dimension_numbers<[1], [1], [0], [0], [0, 0, 1, 0], [], []>} : vector<8x8xf32>, vector<8x8xf32>, vector<8x8xf32> -> vector<8x8xf32>
    %cst_192 = arith.constant 0.353553385 : f32
    %431 = vector.broadcast %cst_192 : f32 to vector<8x8xf32>
    %432 = arith.mulf %430, %431 : vector<8x8xf32>
    %433 = vector.broadcast %369 : vector<1x8xf32> to vector<8x8xf32>
    %434 = arith.addf %432, %433 : vector<8x8xf32>
    %cst_193 = arith.constant dense<0xFF800000> : vector<8xf32>
    %435 = vector.multi_reduction <maximumf>, %434, %cst_193 [1] : vector<8x8xf32> to vector<8xf32>
    %436 = vector.shape_cast %435 : vector<8xf32> to vector<8x1xf32>
    %437 = vector.broadcast %436 : vector<8x1xf32> to vector<8x8xf32>
    %438 = arith.subf %434, %437 : vector<8x8xf32>
    %439 = math.exp %438 : vector<8x8xf32>
    %cst_194 = arith.constant dense<0.000000e+00> : vector<8xf32>
    %440 = vector.multi_reduction <add>, %439, %cst_194 [1] : vector<8x8xf32> to vector<8xf32>
    %441 = vector.shape_cast %440 : vector<8xf32> to vector<8x1xf32>
    %442 = vector.broadcast %441 : vector<8x1xf32> to vector<8x8xf32>
    %443 = arith.divf %439, %442 : vector<8x8xf32>
    %cst_195 = arith.constant dense<0.000000e+00> : vector<8x8xf32>
    %444 = tpu.matmul %443, %429, %cst_195 {dimension_numbers = #tpu.dot_dimension_numbers<[1], [0], [0], [1], [0, 0, 1, 1], [], []>} : vector<8x8xf32>, vector<8x8xf32>, vector<8x8xf32> -> vector<8x8xf32>
    %445 = vector.extract_strided_slice %381 {offsets = [16, 0], sizes = [8, 32], strides = [1, 1]} : vector<32x32xf32> to vector<8x32xf32>
    %cst_196 = arith.constant dense<0.000000e+00> : vector<8x32xf32>
    %446 = tpu.matmul %444, %445, %cst_196 {dimension_numbers = #tpu.dot_dimension_numbers<[1], [0], [0], [1], [0, 0, 1, 1], [], []>} : vector<8x8xf32>, vector<8x32xf32>, vector<8x32xf32> -> vector<8x32xf32>
    %447 = arith.addf %426, %446 : vector<8x32xf32>
    %448 = vector.extract_strided_slice %377 {offsets = [0, 24], sizes = [8, 8], strides = [1, 1]} : vector<8x32xf32> to vector<8x8xf32>
    %449 = vector.extract_strided_slice %378 {offsets = [0, 24], sizes = [8, 8], strides = [1, 1]} : vector<8x32xf32> to vector<8x8xf32>
    %450 = vector.extract_strided_slice %379 {offsets = [0, 24], sizes = [8, 8], strides = [1, 1]} : vector<8x32xf32> to vector<8x8xf32>
    %cst_197 = arith.constant dense<0.000000e+00> : vector<8x8xf32>
    %451 = tpu.matmul %448, %449, %cst_197 {dimension_numbers = #tpu.dot_dimension_numbers<[1], [1], [0], [0], [0, 0, 1, 0], [], []>} : vector<8x8xf32>, vector<8x8xf32>, vector<8x8xf32> -> vector<8x8xf32>
    %cst_198 = arith.constant 0.353553385 : f32
    %452 = vector.broadcast %cst_198 : f32 to vector<8x8xf32>
    %453 = arith.mulf %451, %452 : vector<8x8xf32>
    %454 = vector.broadcast %369 : vector<1x8xf32> to vector<8x8xf32>
    %455 = arith.addf %453, %454 : vector<8x8xf32>
    %cst_199 = arith.constant dense<0xFF800000> : vector<8xf32>
    %456 = vector.multi_reduction <maximumf>, %455, %cst_199 [1] : vector<8x8xf32> to vector<8xf32>
    %457 = vector.shape_cast %456 : vector<8xf32> to vector<8x1xf32>
    %458 = vector.broadcast %457 : vector<8x1xf32> to vector<8x8xf32>
    %459 = arith.subf %455, %458 : vector<8x8xf32>
    %460 = math.exp %459 : vector<8x8xf32>
    %cst_200 = arith.constant dense<0.000000e+00> : vector<8xf32>
    %461 = vector.multi_reduction <add>, %460, %cst_200 [1] : vector<8x8xf32> to vector<8xf32>
    %462 = vector.shape_cast %461 : vector<8xf32> to vector<8x1xf32>
    %463 = vector.broadcast %462 : vector<8x1xf32> to vector<8x8xf32>
    %464 = arith.divf %460, %463 : vector<8x8xf32>
    %cst_201 = arith.constant dense<0.000000e+00> : vector<8x8xf32>
    %465 = tpu.matmul %464, %450, %cst_201 {dimension_numbers = #tpu.dot_dimension_numbers<[1], [0], [0], [1], [0, 0, 1, 1], [], []>} : vector<8x8xf32>, vector<8x8xf32>, vector<8x8xf32> -> vector<8x8xf32>
    %466 = vector.extract_strided_slice %381 {offsets = [24, 0], sizes = [8, 32], strides = [1, 1]} : vector<32x32xf32> to vector<8x32xf32>
    %cst_202 = arith.constant dense<0.000000e+00> : vector<8x32xf32>
    %467 = tpu.matmul %465, %466, %cst_202 {dimension_numbers = #tpu.dot_dimension_numbers<[1], [0], [0], [1], [0, 0, 1, 1], [], []>} : vector<8x8xf32>, vector<8x32xf32>, vector<8x32xf32> -> vector<8x32xf32>
    %468 = arith.addf %447, %467 : vector<8x32xf32>
    %469 = arith.addf %367, %468 : vector<8x32xf32>
    %c0_203 = arith.constant 0 : index
    %c0_204 = arith.constant 0 : index
    %c0_205 = arith.constant 0 : index
    %470 = vector.load %arg23[%c0_203, %c0_204, %c0_205] : memref<2x1x32xf32, #tpu.memory_space<vmem>>, vector<1x1x32xf32>
    %471 = vector.shape_cast %470 : vector<1x1x32xf32> to vector<1x32xf32>
    %c0_206 = arith.constant 0 : index
    %c0_207 = arith.constant 0 : index
    %c0_208 = arith.constant 0 : index
    %472 = vector.load %arg24[%c0_206, %c0_207, %c0_208] : memref<2x1x32xf32, #tpu.memory_space<vmem>>, vector<1x1x32xf32>
    %473 = vector.shape_cast %472 : vector<1x1x32xf32> to vector<1x32xf32>
    %cst_209 = arith.constant dense<0.000000e+00> : vector<8xf32>
    %474 = vector.multi_reduction <add>, %469, %cst_209 [1] : vector<8x32xf32> to vector<8xf32>
    %475 = vector.shape_cast %474 : vector<8xf32> to vector<8x1xf32>
    %cst_210 = arith.constant 3.200000e+01 : f32
    %476 = vector.broadcast %cst_210 : f32 to vector<8x1xf32>
    %477 = arith.divf %475, %476 : vector<8x1xf32>
    %478 = vector.broadcast %477 : vector<8x1xf32> to vector<8x32xf32>
    %479 = arith.subf %469, %478 : vector<8x32xf32>
    %480 = arith.mulf %479, %479 : vector<8x32xf32>
    %cst_211 = arith.constant dense<0.000000e+00> : vector<8xf32>
    %481 = vector.multi_reduction <add>, %480, %cst_211 [1] : vector<8x32xf32> to vector<8xf32>
    %482 = vector.shape_cast %481 : vector<8xf32> to vector<8x1xf32>
    %cst_212 = arith.constant 3.200000e+01 : f32
    %483 = vector.broadcast %cst_212 : f32 to vector<8x1xf32>
    %484 = arith.divf %482, %483 : vector<8x1xf32>
    %485 = vector.broadcast %477 : vector<8x1xf32> to vector<8x32xf32>
    %486 = arith.subf %469, %485 : vector<8x32xf32>
    %cst_213 = arith.constant 9.99999974E-6 : f32
    %487 = vector.broadcast %cst_213 : f32 to vector<8x1xf32>
    %488 = arith.addf %484, %487 : vector<8x1xf32>
    %489 = math.rsqrt %488 : vector<8x1xf32>
    %490 = vector.broadcast %489 : vector<8x1xf32> to vector<8x32xf32>
    %491 = arith.mulf %486, %490 : vector<8x32xf32>
    %492 = vector.broadcast %471 : vector<1x32xf32> to vector<8x32xf32>
    %493 = arith.mulf %491, %492 : vector<8x32xf32>
    %494 = vector.broadcast %473 : vector<1x32xf32> to vector<8x32xf32>
    %495 = arith.addf %493, %494 : vector<8x32xf32>
    %c0_214 = arith.constant 0 : index
    %c0_215 = arith.constant 0 : index
    %c0_216 = arith.constant 0 : index
    %496 = vector.load %arg25[%c0_214, %c0_215, %c0_216] : memref<2x32x32xf32, #tpu.memory_space<vmem>>, vector<1x32x32xf32>
    %497 = vector.shape_cast %496 : vector<1x32x32xf32> to vector<32x32xf32>
    %cst_217 = arith.constant dense<0.000000e+00> : vector<8x32xf32>
    %498 = tpu.matmul %495, %497, %cst_217 {dimension_numbers = #tpu.dot_dimension_numbers<[1], [0], [0], [1], [0, 0, 1, 1], [], []>} : vector<8x32xf32>, vector<32x32xf32>, vector<8x32xf32> -> vector<8x32xf32>
    %c0_218 = arith.constant 0 : index
    %c0_219 = arith.constant 0 : index
    %c0_220 = arith.constant 0 : index
    %499 = vector.load %arg26[%c0_218, %c0_219, %c0_220] : memref<2x1x32xf32, #tpu.memory_space<vmem>>, vector<1x1x32xf32>
    %500 = vector.shape_cast %499 : vector<1x1x32xf32> to vector<1x32xf32>
    %501 = vector.broadcast %500 : vector<1x32xf32> to vector<8x32xf32>
    %502 = arith.addf %498, %501 : vector<8x32xf32>
    %c0_221 = arith.constant 0 : index
    %c0_222 = arith.constant 0 : index
    %c0_223 = arith.constant 0 : index
    %503 = vector.load %arg27[%c0_221, %c0_222, %c0_223] : memref<2x32x64xf32, #tpu.memory_space<vmem>>, vector<1x32x64xf32>
    %504 = vector.shape_cast %503 : vector<1x32x64xf32> to vector<32x64xf32>
    %cst_224 = arith.constant dense<0.000000e+00> : vector<8x64xf32>
    %505 = tpu.matmul %365, %504, %cst_224 {dimension_numbers = #tpu.dot_dimension_numbers<[1], [0], [0], [1], [0, 0, 1, 1], [], []>} : vector<8x32xf32>, vector<32x64xf32>, vector<8x64xf32> -> vector<8x64xf32>
    %c0_225 = arith.constant 0 : index
    %c0_226 = arith.constant 0 : index
    %c0_227 = arith.constant 0 : index
    %506 = vector.load %arg28[%c0_225, %c0_226, %c0_227] : memref<2x1x64xf32, #tpu.memory_space<vmem>>, vector<1x1x64xf32>
    %507 = vector.shape_cast %506 : vector<1x1x64xf32> to vector<1x64xf32>
    %508 = vector.broadcast %507 : vector<1x64xf32> to vector<8x64xf32>
    %509 = arith.addf %505, %508 : vector<8x64xf32>
    %510 = vector.extract_strided_slice %509 {offsets = [0, 0], sizes = [8, 32], strides = [1, 1]} : vector<8x64xf32> to vector<8x32xf32>
    %511 = vector.extract_strided_slice %509 {offsets = [0, 32], sizes = [8, 32], strides = [1, 1]} : vector<8x64xf32> to vector<8x32xf32>
    %c0_228 = arith.constant 0 : index
    %c0_229 = arith.constant 0 : index
    %c0_230 = arith.constant 0 : index
    %512 = vector.load %arg29[%c0_228, %c0_229, %c0_230] : memref<2x32x32xf32, #tpu.memory_space<vmem>>, vector<1x32x32xf32>
    %513 = vector.shape_cast %512 : vector<1x32x32xf32> to vector<32x32xf32>
    %c0_231 = arith.constant 0 : index
    %c0_232 = arith.constant 0 : index
    %c0_233 = arith.constant 0 : index
    %514 = vector.load %arg30[%c0_231, %c0_232, %c0_233] : memref<2x1x32xf32, #tpu.memory_space<vmem>>, vector<1x1x32xf32>
    %515 = vector.shape_cast %514 : vector<1x1x32xf32> to vector<1x32xf32>
    %516 = vector.extract_strided_slice %502 {offsets = [0, 0], sizes = [8, 8], strides = [1, 1]} : vector<8x32xf32> to vector<8x8xf32>
    %517 = vector.extract_strided_slice %510 {offsets = [0, 0], sizes = [8, 8], strides = [1, 1]} : vector<8x32xf32> to vector<8x8xf32>
    %518 = vector.extract_strided_slice %511 {offsets = [0, 0], sizes = [8, 8], strides = [1, 1]} : vector<8x32xf32> to vector<8x8xf32>
    %cst_234 = arith.constant dense<0.000000e+00> : vector<8x8xf32>
    %519 = tpu.matmul %516, %517, %cst_234 {dimension_numbers = #tpu.dot_dimension_numbers<[1], [1], [0], [0], [0, 0, 1, 0], [], []>} : vector<8x8xf32>, vector<8x8xf32>, vector<8x8xf32> -> vector<8x8xf32>
    %cst_235 = arith.constant 0.353553385 : f32
    %520 = vector.broadcast %cst_235 : f32 to vector<8x8xf32>
    %521 = arith.mulf %519, %520 : vector<8x8xf32>
    %cst_236 = arith.constant dense<0xFF800000> : vector<8xf32>
    %522 = vector.multi_reduction <maximumf>, %521, %cst_236 [1] : vector<8x8xf32> to vector<8xf32>
    %523 = vector.shape_cast %522 : vector<8xf32> to vector<8x1xf32>
    %524 = vector.broadcast %523 : vector<8x1xf32> to vector<8x8xf32>
    %525 = arith.subf %521, %524 : vector<8x8xf32>
    %526 = math.exp %525 : vector<8x8xf32>
    %cst_237 = arith.constant dense<0.000000e+00> : vector<8xf32>
    %527 = vector.multi_reduction <add>, %526, %cst_237 [1] : vector<8x8xf32> to vector<8xf32>
    %528 = vector.shape_cast %527 : vector<8xf32> to vector<8x1xf32>
    %529 = vector.broadcast %528 : vector<8x1xf32> to vector<8x8xf32>
    %530 = arith.divf %526, %529 : vector<8x8xf32>
    %cst_238 = arith.constant dense<0.000000e+00> : vector<8x8xf32>
    %531 = tpu.matmul %530, %518, %cst_238 {dimension_numbers = #tpu.dot_dimension_numbers<[1], [0], [0], [1], [0, 0, 1, 1], [], []>} : vector<8x8xf32>, vector<8x8xf32>, vector<8x8xf32> -> vector<8x8xf32>
    %532 = vector.extract_strided_slice %513 {offsets = [0, 0], sizes = [8, 32], strides = [1, 1]} : vector<32x32xf32> to vector<8x32xf32>
    %cst_239 = arith.constant dense<0.000000e+00> : vector<8x32xf32>
    %533 = tpu.matmul %531, %532, %cst_239 {dimension_numbers = #tpu.dot_dimension_numbers<[1], [0], [0], [1], [0, 0, 1, 1], [], []>} : vector<8x8xf32>, vector<8x32xf32>, vector<8x32xf32> -> vector<8x32xf32>
    %534 = vector.broadcast %515 : vector<1x32xf32> to vector<8x32xf32>
    %535 = arith.addf %534, %533 : vector<8x32xf32>
    %536 = vector.extract_strided_slice %502 {offsets = [0, 8], sizes = [8, 8], strides = [1, 1]} : vector<8x32xf32> to vector<8x8xf32>
    %537 = vector.extract_strided_slice %510 {offsets = [0, 8], sizes = [8, 8], strides = [1, 1]} : vector<8x32xf32> to vector<8x8xf32>
    %538 = vector.extract_strided_slice %511 {offsets = [0, 8], sizes = [8, 8], strides = [1, 1]} : vector<8x32xf32> to vector<8x8xf32>
    %cst_240 = arith.constant dense<0.000000e+00> : vector<8x8xf32>
    %539 = tpu.matmul %536, %537, %cst_240 {dimension_numbers = #tpu.dot_dimension_numbers<[1], [1], [0], [0], [0, 0, 1, 0], [], []>} : vector<8x8xf32>, vector<8x8xf32>, vector<8x8xf32> -> vector<8x8xf32>
    %cst_241 = arith.constant 0.353553385 : f32
    %540 = vector.broadcast %cst_241 : f32 to vector<8x8xf32>
    %541 = arith.mulf %539, %540 : vector<8x8xf32>
    %cst_242 = arith.constant dense<0xFF800000> : vector<8xf32>
    %542 = vector.multi_reduction <maximumf>, %541, %cst_242 [1] : vector<8x8xf32> to vector<8xf32>
    %543 = vector.shape_cast %542 : vector<8xf32> to vector<8x1xf32>
    %544 = vector.broadcast %543 : vector<8x1xf32> to vector<8x8xf32>
    %545 = arith.subf %541, %544 : vector<8x8xf32>
    %546 = math.exp %545 : vector<8x8xf32>
    %cst_243 = arith.constant dense<0.000000e+00> : vector<8xf32>
    %547 = vector.multi_reduction <add>, %546, %cst_243 [1] : vector<8x8xf32> to vector<8xf32>
    %548 = vector.shape_cast %547 : vector<8xf32> to vector<8x1xf32>
    %549 = vector.broadcast %548 : vector<8x1xf32> to vector<8x8xf32>
    %550 = arith.divf %546, %549 : vector<8x8xf32>
    %cst_244 = arith.constant dense<0.000000e+00> : vector<8x8xf32>
    %551 = tpu.matmul %550, %538, %cst_244 {dimension_numbers = #tpu.dot_dimension_numbers<[1], [0], [0], [1], [0, 0, 1, 1], [], []>} : vector<8x8xf32>, vector<8x8xf32>, vector<8x8xf32> -> vector<8x8xf32>
    %552 = vector.extract_strided_slice %513 {offsets = [8, 0], sizes = [8, 32], strides = [1, 1]} : vector<32x32xf32> to vector<8x32xf32>
    %cst_245 = arith.constant dense<0.000000e+00> : vector<8x32xf32>
    %553 = tpu.matmul %551, %552, %cst_245 {dimension_numbers = #tpu.dot_dimension_numbers<[1], [0], [0], [1], [0, 0, 1, 1], [], []>} : vector<8x8xf32>, vector<8x32xf32>, vector<8x32xf32> -> vector<8x32xf32>
    %554 = arith.addf %535, %553 : vector<8x32xf32>
    %555 = vector.extract_strided_slice %502 {offsets = [0, 16], sizes = [8, 8], strides = [1, 1]} : vector<8x32xf32> to vector<8x8xf32>
    %556 = vector.extract_strided_slice %510 {offsets = [0, 16], sizes = [8, 8], strides = [1, 1]} : vector<8x32xf32> to vector<8x8xf32>
    %557 = vector.extract_strided_slice %511 {offsets = [0, 16], sizes = [8, 8], strides = [1, 1]} : vector<8x32xf32> to vector<8x8xf32>
    %cst_246 = arith.constant dense<0.000000e+00> : vector<8x8xf32>
    %558 = tpu.matmul %555, %556, %cst_246 {dimension_numbers = #tpu.dot_dimension_numbers<[1], [1], [0], [0], [0, 0, 1, 0], [], []>} : vector<8x8xf32>, vector<8x8xf32>, vector<8x8xf32> -> vector<8x8xf32>
    %cst_247 = arith.constant 0.353553385 : f32
    %559 = vector.broadcast %cst_247 : f32 to vector<8x8xf32>
    %560 = arith.mulf %558, %559 : vector<8x8xf32>
    %cst_248 = arith.constant dense<0xFF800000> : vector<8xf32>
    %561 = vector.multi_reduction <maximumf>, %560, %cst_248 [1] : vector<8x8xf32> to vector<8xf32>
    %562 = vector.shape_cast %561 : vector<8xf32> to vector<8x1xf32>
    %563 = vector.broadcast %562 : vector<8x1xf32> to vector<8x8xf32>
    %564 = arith.subf %560, %563 : vector<8x8xf32>
    %565 = math.exp %564 : vector<8x8xf32>
    %cst_249 = arith.constant dense<0.000000e+00> : vector<8xf32>
    %566 = vector.multi_reduction <add>, %565, %cst_249 [1] : vector<8x8xf32> to vector<8xf32>
    %567 = vector.shape_cast %566 : vector<8xf32> to vector<8x1xf32>
    %568 = vector.broadcast %567 : vector<8x1xf32> to vector<8x8xf32>
    %569 = arith.divf %565, %568 : vector<8x8xf32>
    %cst_250 = arith.constant dense<0.000000e+00> : vector<8x8xf32>
    %570 = tpu.matmul %569, %557, %cst_250 {dimension_numbers = #tpu.dot_dimension_numbers<[1], [0], [0], [1], [0, 0, 1, 1], [], []>} : vector<8x8xf32>, vector<8x8xf32>, vector<8x8xf32> -> vector<8x8xf32>
    %571 = vector.extract_strided_slice %513 {offsets = [16, 0], sizes = [8, 32], strides = [1, 1]} : vector<32x32xf32> to vector<8x32xf32>
    %cst_251 = arith.constant dense<0.000000e+00> : vector<8x32xf32>
    %572 = tpu.matmul %570, %571, %cst_251 {dimension_numbers = #tpu.dot_dimension_numbers<[1], [0], [0], [1], [0, 0, 1, 1], [], []>} : vector<8x8xf32>, vector<8x32xf32>, vector<8x32xf32> -> vector<8x32xf32>
    %573 = arith.addf %554, %572 : vector<8x32xf32>
    %574 = vector.extract_strided_slice %502 {offsets = [0, 24], sizes = [8, 8], strides = [1, 1]} : vector<8x32xf32> to vector<8x8xf32>
    %575 = vector.extract_strided_slice %510 {offsets = [0, 24], sizes = [8, 8], strides = [1, 1]} : vector<8x32xf32> to vector<8x8xf32>
    %576 = vector.extract_strided_slice %511 {offsets = [0, 24], sizes = [8, 8], strides = [1, 1]} : vector<8x32xf32> to vector<8x8xf32>
    %cst_252 = arith.constant dense<0.000000e+00> : vector<8x8xf32>
    %577 = tpu.matmul %574, %575, %cst_252 {dimension_numbers = #tpu.dot_dimension_numbers<[1], [1], [0], [0], [0, 0, 1, 0], [], []>} : vector<8x8xf32>, vector<8x8xf32>, vector<8x8xf32> -> vector<8x8xf32>
    %cst_253 = arith.constant 0.353553385 : f32
    %578 = vector.broadcast %cst_253 : f32 to vector<8x8xf32>
    %579 = arith.mulf %577, %578 : vector<8x8xf32>
    %cst_254 = arith.constant dense<0xFF800000> : vector<8xf32>
    %580 = vector.multi_reduction <maximumf>, %579, %cst_254 [1] : vector<8x8xf32> to vector<8xf32>
    %581 = vector.shape_cast %580 : vector<8xf32> to vector<8x1xf32>
    %582 = vector.broadcast %581 : vector<8x1xf32> to vector<8x8xf32>
    %583 = arith.subf %579, %582 : vector<8x8xf32>
    %584 = math.exp %583 : vector<8x8xf32>
    %cst_255 = arith.constant dense<0.000000e+00> : vector<8xf32>
    %585 = vector.multi_reduction <add>, %584, %cst_255 [1] : vector<8x8xf32> to vector<8xf32>
    %586 = vector.shape_cast %585 : vector<8xf32> to vector<8x1xf32>
    %587 = vector.broadcast %586 : vector<8x1xf32> to vector<8x8xf32>
    %588 = arith.divf %584, %587 : vector<8x8xf32>
    %cst_256 = arith.constant dense<0.000000e+00> : vector<8x8xf32>
    %589 = tpu.matmul %588, %576, %cst_256 {dimension_numbers = #tpu.dot_dimension_numbers<[1], [0], [0], [1], [0, 0, 1, 1], [], []>} : vector<8x8xf32>, vector<8x8xf32>, vector<8x8xf32> -> vector<8x8xf32>
    %590 = vector.extract_strided_slice %513 {offsets = [24, 0], sizes = [8, 32], strides = [1, 1]} : vector<32x32xf32> to vector<8x32xf32>
    %cst_257 = arith.constant dense<0.000000e+00> : vector<8x32xf32>
    %591 = tpu.matmul %589, %590, %cst_257 {dimension_numbers = #tpu.dot_dimension_numbers<[1], [0], [0], [1], [0, 0, 1, 1], [], []>} : vector<8x8xf32>, vector<8x32xf32>, vector<8x32xf32> -> vector<8x32xf32>
    %592 = arith.addf %573, %591 : vector<8x32xf32>
    %593 = arith.addf %495, %592 : vector<8x32xf32>
    %c0_258 = arith.constant 0 : index
    %c0_259 = arith.constant 0 : index
    %c0_260 = arith.constant 0 : index
    %594 = vector.load %arg31[%c0_258, %c0_259, %c0_260] : memref<2x1x32xf32, #tpu.memory_space<vmem>>, vector<1x1x32xf32>
    %595 = vector.shape_cast %594 : vector<1x1x32xf32> to vector<1x32xf32>
    %c0_261 = arith.constant 0 : index
    %c0_262 = arith.constant 0 : index
    %c0_263 = arith.constant 0 : index
    %596 = vector.load %arg32[%c0_261, %c0_262, %c0_263] : memref<2x1x32xf32, #tpu.memory_space<vmem>>, vector<1x1x32xf32>
    %597 = vector.shape_cast %596 : vector<1x1x32xf32> to vector<1x32xf32>
    %cst_264 = arith.constant dense<0.000000e+00> : vector<8xf32>
    %598 = vector.multi_reduction <add>, %593, %cst_264 [1] : vector<8x32xf32> to vector<8xf32>
    %599 = vector.shape_cast %598 : vector<8xf32> to vector<8x1xf32>
    %cst_265 = arith.constant 3.200000e+01 : f32
    %600 = vector.broadcast %cst_265 : f32 to vector<8x1xf32>
    %601 = arith.divf %599, %600 : vector<8x1xf32>
    %602 = vector.broadcast %601 : vector<8x1xf32> to vector<8x32xf32>
    %603 = arith.subf %593, %602 : vector<8x32xf32>
    %604 = arith.mulf %603, %603 : vector<8x32xf32>
    %cst_266 = arith.constant dense<0.000000e+00> : vector<8xf32>
    %605 = vector.multi_reduction <add>, %604, %cst_266 [1] : vector<8x32xf32> to vector<8xf32>
    %606 = vector.shape_cast %605 : vector<8xf32> to vector<8x1xf32>
    %cst_267 = arith.constant 3.200000e+01 : f32
    %607 = vector.broadcast %cst_267 : f32 to vector<8x1xf32>
    %608 = arith.divf %606, %607 : vector<8x1xf32>
    %609 = vector.broadcast %601 : vector<8x1xf32> to vector<8x32xf32>
    %610 = arith.subf %593, %609 : vector<8x32xf32>
    %cst_268 = arith.constant 9.99999974E-6 : f32
    %611 = vector.broadcast %cst_268 : f32 to vector<8x1xf32>
    %612 = arith.addf %608, %611 : vector<8x1xf32>
    %613 = math.rsqrt %612 : vector<8x1xf32>
    %614 = vector.broadcast %613 : vector<8x1xf32> to vector<8x32xf32>
    %615 = arith.mulf %610, %614 : vector<8x32xf32>
    %616 = vector.broadcast %595 : vector<1x32xf32> to vector<8x32xf32>
    %617 = arith.mulf %615, %616 : vector<8x32xf32>
    %618 = vector.broadcast %597 : vector<1x32xf32> to vector<8x32xf32>
    %619 = arith.addf %617, %618 : vector<8x32xf32>
    %c0_269 = arith.constant 0 : index
    %c0_270 = arith.constant 0 : index
    %c0_271 = arith.constant 0 : index
    %620 = vector.load %arg33[%c0_269, %c0_270, %c0_271] : memref<2x32x2048xf32, #tpu.memory_space<vmem>>, vector<1x32x2048xf32>
    %621 = vector.shape_cast %620 : vector<1x32x2048xf32> to vector<32x2048xf32>
    %c0_272 = arith.constant 0 : index
    %c0_273 = arith.constant 0 : index
    %c0_274 = arith.constant 0 : index
    %622 = vector.load %arg34[%c0_272, %c0_273, %c0_274] : memref<2x1x2048xf32, #tpu.memory_space<vmem>>, vector<1x1x2048xf32>
    %623 = vector.shape_cast %622 : vector<1x1x2048xf32> to vector<1x2048xf32>
    %c0_275 = arith.constant 0 : index
    %c0_276 = arith.constant 0 : index
    %c0_277 = arith.constant 0 : index
    %624 = vector.load %arg35[%c0_275, %c0_276, %c0_277] : memref<2x2048x32xf32, #tpu.memory_space<vmem>>, vector<1x2048x32xf32>
    %625 = vector.shape_cast %624 : vector<1x2048x32xf32> to vector<2048x32xf32>
    %c0_278 = arith.constant 0 : index
    %c0_279 = arith.constant 0 : index
    %c0_280 = arith.constant 0 : index
    %626 = vector.load %arg36[%c0_278, %c0_279, %c0_280] : memref<2x1x32xf32, #tpu.memory_space<vmem>>, vector<1x1x32xf32>
    %627 = vector.shape_cast %626 : vector<1x1x32xf32> to vector<1x32xf32>
    %cst_281 = arith.constant dense<0.000000e+00> : vector<8x2048xf32>
    %628 = tpu.matmul %619, %621, %cst_281 {dimension_numbers = #tpu.dot_dimension_numbers<[1], [0], [0], [1], [0, 0, 1, 1], [], []>} : vector<8x32xf32>, vector<32x2048xf32>, vector<8x2048xf32> -> vector<8x2048xf32>
    %629 = vector.broadcast %623 : vector<1x2048xf32> to vector<8x2048xf32>
    %630 = arith.addf %628, %629 : vector<8x2048xf32>
    %cst_282 = arith.constant 0.000000e+00 : f32
    %631 = vector.broadcast %cst_282 : f32 to vector<8x2048xf32>
    %632 = arith.maximumf %630, %631 : vector<8x2048xf32>
    %cst_283 = arith.constant dense<0.000000e+00> : vector<8x32xf32>
    %633 = tpu.matmul %632, %625, %cst_283 {dimension_numbers = #tpu.dot_dimension_numbers<[1], [0], [0], [1], [0, 0, 1, 1], [], []>} : vector<8x2048xf32>, vector<2048x32xf32>, vector<8x32xf32> -> vector<8x32xf32>
    %634 = vector.broadcast %627 : vector<1x32xf32> to vector<8x32xf32>
    %635 = arith.addf %633, %634 : vector<8x32xf32>
    %636 = arith.addf %619, %635 : vector<8x32xf32>
    %c0_284 = arith.constant 0 : index
    %c0_285 = arith.constant 0 : index
    %c0_286 = arith.constant 0 : index
    %637 = vector.load %arg37[%c0_284, %c0_285, %c0_286] : memref<2x1x32xf32, #tpu.memory_space<vmem>>, vector<1x1x32xf32>
    %638 = vector.shape_cast %637 : vector<1x1x32xf32> to vector<1x32xf32>
    %c0_287 = arith.constant 0 : index
    %c0_288 = arith.constant 0 : index
    %c0_289 = arith.constant 0 : index
    %639 = vector.load %arg38[%c0_287, %c0_288, %c0_289] : memref<2x1x32xf32, #tpu.memory_space<vmem>>, vector<1x1x32xf32>
    %640 = vector.shape_cast %639 : vector<1x1x32xf32> to vector<1x32xf32>
    %cst_290 = arith.constant dense<0.000000e+00> : vector<8xf32>
    %641 = vector.multi_reduction <add>, %636, %cst_290 [1] : vector<8x32xf32> to vector<8xf32>
    %642 = vector.shape_cast %641 : vector<8xf32> to vector<8x1xf32>
    %cst_291 = arith.constant 3.200000e+01 : f32
    %643 = vector.broadcast %cst_291 : f32 to vector<8x1xf32>
    %644 = arith.divf %642, %643 : vector<8x1xf32>
    %645 = vector.broadcast %644 : vector<8x1xf32> to vector<8x32xf32>
    %646 = arith.subf %636, %645 : vector<8x32xf32>
    %647 = arith.mulf %646, %646 : vector<8x32xf32>
    %cst_292 = arith.constant dense<0.000000e+00> : vector<8xf32>
    %648 = vector.multi_reduction <add>, %647, %cst_292 [1] : vector<8x32xf32> to vector<8xf32>
    %649 = vector.shape_cast %648 : vector<8xf32> to vector<8x1xf32>
    %cst_293 = arith.constant 3.200000e+01 : f32
    %650 = vector.broadcast %cst_293 : f32 to vector<8x1xf32>
    %651 = arith.divf %649, %650 : vector<8x1xf32>
    %652 = vector.broadcast %644 : vector<8x1xf32> to vector<8x32xf32>
    %653 = arith.subf %636, %652 : vector<8x32xf32>
    %cst_294 = arith.constant 9.99999974E-6 : f32
    %654 = vector.broadcast %cst_294 : f32 to vector<8x1xf32>
    %655 = arith.addf %651, %654 : vector<8x1xf32>
    %656 = math.rsqrt %655 : vector<8x1xf32>
    %657 = vector.broadcast %656 : vector<8x1xf32> to vector<8x32xf32>
    %658 = arith.mulf %653, %657 : vector<8x32xf32>
    %659 = vector.broadcast %638 : vector<1x32xf32> to vector<8x32xf32>
    %660 = arith.mulf %658, %659 : vector<8x32xf32>
    %661 = vector.broadcast %640 : vector<1x32xf32> to vector<8x32xf32>
    %662 = arith.addf %660, %661 : vector<8x32xf32>
    %c1_295 = arith.constant 1 : index
    %c0_296 = arith.constant 0 : index
    %c0_297 = arith.constant 0 : index
    %663 = vector.load %arg19[%c1_295, %c0_296, %c0_297] : memref<2x32x96xf32, #tpu.memory_space<vmem>>, vector<1x32x96xf32>
    %664 = vector.shape_cast %663 : vector<1x32x96xf32> to vector<32x96xf32>
    %cst_298 = arith.constant dense<0.000000e+00> : vector<8x96xf32>
    %665 = tpu.matmul %662, %664, %cst_298 {dimension_numbers = #tpu.dot_dimension_numbers<[1], [0], [0], [1], [0, 0, 1, 1], [], []>} : vector<8x32xf32>, vector<32x96xf32>, vector<8x96xf32> -> vector<8x96xf32>
    %c1_299 = arith.constant 1 : index
    %c0_300 = arith.constant 0 : index
    %c0_301 = arith.constant 0 : index
    %666 = vector.load %arg20[%c1_299, %c0_300, %c0_301] : memref<2x1x96xf32, #tpu.memory_space<vmem>>, vector<1x1x96xf32>
    %667 = vector.shape_cast %666 : vector<1x1x96xf32> to vector<1x96xf32>
    %668 = vector.broadcast %667 : vector<1x96xf32> to vector<8x96xf32>
    %669 = arith.addf %665, %668 : vector<8x96xf32>
    %670 = vector.extract_strided_slice %669 {offsets = [0, 0], sizes = [8, 32], strides = [1, 1]} : vector<8x96xf32> to vector<8x32xf32>
    %671 = vector.extract_strided_slice %669 {offsets = [0, 32], sizes = [8, 32], strides = [1, 1]} : vector<8x96xf32> to vector<8x32xf32>
    %672 = vector.extract_strided_slice %669 {offsets = [0, 64], sizes = [8, 32], strides = [1, 1]} : vector<8x96xf32> to vector<8x32xf32>
    %c1_302 = arith.constant 1 : index
    %c0_303 = arith.constant 0 : index
    %c0_304 = arith.constant 0 : index
    %673 = vector.load %arg21[%c1_302, %c0_303, %c0_304] : memref<2x32x32xf32, #tpu.memory_space<vmem>>, vector<1x32x32xf32>
    %674 = vector.shape_cast %673 : vector<1x32x32xf32> to vector<32x32xf32>
    %c1_305 = arith.constant 1 : index
    %c0_306 = arith.constant 0 : index
    %c0_307 = arith.constant 0 : index
    %675 = vector.load %arg22[%c1_305, %c0_306, %c0_307] : memref<2x1x32xf32, #tpu.memory_space<vmem>>, vector<1x1x32xf32>
    %676 = vector.shape_cast %675 : vector<1x1x32xf32> to vector<1x32xf32>
    %677 = vector.extract_strided_slice %670 {offsets = [0, 0], sizes = [8, 8], strides = [1, 1]} : vector<8x32xf32> to vector<8x8xf32>
    %678 = vector.extract_strided_slice %671 {offsets = [0, 0], sizes = [8, 8], strides = [1, 1]} : vector<8x32xf32> to vector<8x8xf32>
    %679 = vector.extract_strided_slice %672 {offsets = [0, 0], sizes = [8, 8], strides = [1, 1]} : vector<8x32xf32> to vector<8x8xf32>
    %cst_308 = arith.constant dense<0.000000e+00> : vector<8x8xf32>
    %680 = tpu.matmul %677, %678, %cst_308 {dimension_numbers = #tpu.dot_dimension_numbers<[1], [1], [0], [0], [0, 0, 1, 0], [], []>} : vector<8x8xf32>, vector<8x8xf32>, vector<8x8xf32> -> vector<8x8xf32>
    %cst_309 = arith.constant 0.353553385 : f32
    %681 = vector.broadcast %cst_309 : f32 to vector<8x8xf32>
    %682 = arith.mulf %680, %681 : vector<8x8xf32>
    %683 = vector.broadcast %369 : vector<1x8xf32> to vector<8x8xf32>
    %684 = arith.addf %682, %683 : vector<8x8xf32>
    %cst_310 = arith.constant dense<0xFF800000> : vector<8xf32>
    %685 = vector.multi_reduction <maximumf>, %684, %cst_310 [1] : vector<8x8xf32> to vector<8xf32>
    %686 = vector.shape_cast %685 : vector<8xf32> to vector<8x1xf32>
    %687 = vector.broadcast %686 : vector<8x1xf32> to vector<8x8xf32>
    %688 = arith.subf %684, %687 : vector<8x8xf32>
    %689 = math.exp %688 : vector<8x8xf32>
    %cst_311 = arith.constant dense<0.000000e+00> : vector<8xf32>
    %690 = vector.multi_reduction <add>, %689, %cst_311 [1] : vector<8x8xf32> to vector<8xf32>
    %691 = vector.shape_cast %690 : vector<8xf32> to vector<8x1xf32>
    %692 = vector.broadcast %691 : vector<8x1xf32> to vector<8x8xf32>
    %693 = arith.divf %689, %692 : vector<8x8xf32>
    %cst_312 = arith.constant dense<0.000000e+00> : vector<8x8xf32>
    %694 = tpu.matmul %693, %679, %cst_312 {dimension_numbers = #tpu.dot_dimension_numbers<[1], [0], [0], [1], [0, 0, 1, 1], [], []>} : vector<8x8xf32>, vector<8x8xf32>, vector<8x8xf32> -> vector<8x8xf32>
    %695 = vector.extract_strided_slice %674 {offsets = [0, 0], sizes = [8, 32], strides = [1, 1]} : vector<32x32xf32> to vector<8x32xf32>
    %cst_313 = arith.constant dense<0.000000e+00> : vector<8x32xf32>
    %696 = tpu.matmul %694, %695, %cst_313 {dimension_numbers = #tpu.dot_dimension_numbers<[1], [0], [0], [1], [0, 0, 1, 1], [], []>} : vector<8x8xf32>, vector<8x32xf32>, vector<8x32xf32> -> vector<8x32xf32>
    %697 = vector.broadcast %676 : vector<1x32xf32> to vector<8x32xf32>
    %698 = arith.addf %697, %696 : vector<8x32xf32>
    %699 = vector.extract_strided_slice %670 {offsets = [0, 8], sizes = [8, 8], strides = [1, 1]} : vector<8x32xf32> to vector<8x8xf32>
    %700 = vector.extract_strided_slice %671 {offsets = [0, 8], sizes = [8, 8], strides = [1, 1]} : vector<8x32xf32> to vector<8x8xf32>
    %701 = vector.extract_strided_slice %672 {offsets = [0, 8], sizes = [8, 8], strides = [1, 1]} : vector<8x32xf32> to vector<8x8xf32>
    %cst_314 = arith.constant dense<0.000000e+00> : vector<8x8xf32>
    %702 = tpu.matmul %699, %700, %cst_314 {dimension_numbers = #tpu.dot_dimension_numbers<[1], [1], [0], [0], [0, 0, 1, 0], [], []>} : vector<8x8xf32>, vector<8x8xf32>, vector<8x8xf32> -> vector<8x8xf32>
    %cst_315 = arith.constant 0.353553385 : f32
    %703 = vector.broadcast %cst_315 : f32 to vector<8x8xf32>
    %704 = arith.mulf %702, %703 : vector<8x8xf32>
    %705 = vector.broadcast %369 : vector<1x8xf32> to vector<8x8xf32>
    %706 = arith.addf %704, %705 : vector<8x8xf32>
    %cst_316 = arith.constant dense<0xFF800000> : vector<8xf32>
    %707 = vector.multi_reduction <maximumf>, %706, %cst_316 [1] : vector<8x8xf32> to vector<8xf32>
    %708 = vector.shape_cast %707 : vector<8xf32> to vector<8x1xf32>
    %709 = vector.broadcast %708 : vector<8x1xf32> to vector<8x8xf32>
    %710 = arith.subf %706, %709 : vector<8x8xf32>
    %711 = math.exp %710 : vector<8x8xf32>
    %cst_317 = arith.constant dense<0.000000e+00> : vector<8xf32>
    %712 = vector.multi_reduction <add>, %711, %cst_317 [1] : vector<8x8xf32> to vector<8xf32>
    %713 = vector.shape_cast %712 : vector<8xf32> to vector<8x1xf32>
    %714 = vector.broadcast %713 : vector<8x1xf32> to vector<8x8xf32>
    %715 = arith.divf %711, %714 : vector<8x8xf32>
    %cst_318 = arith.constant dense<0.000000e+00> : vector<8x8xf32>
    %716 = tpu.matmul %715, %701, %cst_318 {dimension_numbers = #tpu.dot_dimension_numbers<[1], [0], [0], [1], [0, 0, 1, 1], [], []>} : vector<8x8xf32>, vector<8x8xf32>, vector<8x8xf32> -> vector<8x8xf32>
    %717 = vector.extract_strided_slice %674 {offsets = [8, 0], sizes = [8, 32], strides = [1, 1]} : vector<32x32xf32> to vector<8x32xf32>
    %cst_319 = arith.constant dense<0.000000e+00> : vector<8x32xf32>
    %718 = tpu.matmul %716, %717, %cst_319 {dimension_numbers = #tpu.dot_dimension_numbers<[1], [0], [0], [1], [0, 0, 1, 1], [], []>} : vector<8x8xf32>, vector<8x32xf32>, vector<8x32xf32> -> vector<8x32xf32>
    %719 = arith.addf %698, %718 : vector<8x32xf32>
    %720 = vector.extract_strided_slice %670 {offsets = [0, 16], sizes = [8, 8], strides = [1, 1]} : vector<8x32xf32> to vector<8x8xf32>
    %721 = vector.extract_strided_slice %671 {offsets = [0, 16], sizes = [8, 8], strides = [1, 1]} : vector<8x32xf32> to vector<8x8xf32>
    %722 = vector.extract_strided_slice %672 {offsets = [0, 16], sizes = [8, 8], strides = [1, 1]} : vector<8x32xf32> to vector<8x8xf32>
    %cst_320 = arith.constant dense<0.000000e+00> : vector<8x8xf32>
    %723 = tpu.matmul %720, %721, %cst_320 {dimension_numbers = #tpu.dot_dimension_numbers<[1], [1], [0], [0], [0, 0, 1, 0], [], []>} : vector<8x8xf32>, vector<8x8xf32>, vector<8x8xf32> -> vector<8x8xf32>
    %cst_321 = arith.constant 0.353553385 : f32
    %724 = vector.broadcast %cst_321 : f32 to vector<8x8xf32>
    %725 = arith.mulf %723, %724 : vector<8x8xf32>
    %726 = vector.broadcast %369 : vector<1x8xf32> to vector<8x8xf32>
    %727 = arith.addf %725, %726 : vector<8x8xf32>
    %cst_322 = arith.constant dense<0xFF800000> : vector<8xf32>
    %728 = vector.multi_reduction <maximumf>, %727, %cst_322 [1] : vector<8x8xf32> to vector<8xf32>
    %729 = vector.shape_cast %728 : vector<8xf32> to vector<8x1xf32>
    %730 = vector.broadcast %729 : vector<8x1xf32> to vector<8x8xf32>
    %731 = arith.subf %727, %730 : vector<8x8xf32>
    %732 = math.exp %731 : vector<8x8xf32>
    %cst_323 = arith.constant dense<0.000000e+00> : vector<8xf32>
    %733 = vector.multi_reduction <add>, %732, %cst_323 [1] : vector<8x8xf32> to vector<8xf32>
    %734 = vector.shape_cast %733 : vector<8xf32> to vector<8x1xf32>
    %735 = vector.broadcast %734 : vector<8x1xf32> to vector<8x8xf32>
    %736 = arith.divf %732, %735 : vector<8x8xf32>
    %cst_324 = arith.constant dense<0.000000e+00> : vector<8x8xf32>
    %737 = tpu.matmul %736, %722, %cst_324 {dimension_numbers = #tpu.dot_dimension_numbers<[1], [0], [0], [1], [0, 0, 1, 1], [], []>} : vector<8x8xf32>, vector<8x8xf32>, vector<8x8xf32> -> vector<8x8xf32>
    %738 = vector.extract_strided_slice %674 {offsets = [16, 0], sizes = [8, 32], strides = [1, 1]} : vector<32x32xf32> to vector<8x32xf32>
    %cst_325 = arith.constant dense<0.000000e+00> : vector<8x32xf32>
    %739 = tpu.matmul %737, %738, %cst_325 {dimension_numbers = #tpu.dot_dimension_numbers<[1], [0], [0], [1], [0, 0, 1, 1], [], []>} : vector<8x8xf32>, vector<8x32xf32>, vector<8x32xf32> -> vector<8x32xf32>
    %740 = arith.addf %719, %739 : vector<8x32xf32>
    %741 = vector.extract_strided_slice %670 {offsets = [0, 24], sizes = [8, 8], strides = [1, 1]} : vector<8x32xf32> to vector<8x8xf32>
    %742 = vector.extract_strided_slice %671 {offsets = [0, 24], sizes = [8, 8], strides = [1, 1]} : vector<8x32xf32> to vector<8x8xf32>
    %743 = vector.extract_strided_slice %672 {offsets = [0, 24], sizes = [8, 8], strides = [1, 1]} : vector<8x32xf32> to vector<8x8xf32>
    %cst_326 = arith.constant dense<0.000000e+00> : vector<8x8xf32>
    %744 = tpu.matmul %741, %742, %cst_326 {dimension_numbers = #tpu.dot_dimension_numbers<[1], [1], [0], [0], [0, 0, 1, 0], [], []>} : vector<8x8xf32>, vector<8x8xf32>, vector<8x8xf32> -> vector<8x8xf32>
    %cst_327 = arith.constant 0.353553385 : f32
    %745 = vector.broadcast %cst_327 : f32 to vector<8x8xf32>
    %746 = arith.mulf %744, %745 : vector<8x8xf32>
    %747 = vector.broadcast %369 : vector<1x8xf32> to vector<8x8xf32>
    %748 = arith.addf %746, %747 : vector<8x8xf32>
    %cst_328 = arith.constant dense<0xFF800000> : vector<8xf32>
    %749 = vector.multi_reduction <maximumf>, %748, %cst_328 [1] : vector<8x8xf32> to vector<8xf32>
    %750 = vector.shape_cast %749 : vector<8xf32> to vector<8x1xf32>
    %751 = vector.broadcast %750 : vector<8x1xf32> to vector<8x8xf32>
    %752 = arith.subf %748, %751 : vector<8x8xf32>
    %753 = math.exp %752 : vector<8x8xf32>
    %cst_329 = arith.constant dense<0.000000e+00> : vector<8xf32>
    %754 = vector.multi_reduction <add>, %753, %cst_329 [1] : vector<8x8xf32> to vector<8xf32>
    %755 = vector.shape_cast %754 : vector<8xf32> to vector<8x1xf32>
    %756 = vector.broadcast %755 : vector<8x1xf32> to vector<8x8xf32>
    %757 = arith.divf %753, %756 : vector<8x8xf32>
    %cst_330 = arith.constant dense<0.000000e+00> : vector<8x8xf32>
    %758 = tpu.matmul %757, %743, %cst_330 {dimension_numbers = #tpu.dot_dimension_numbers<[1], [0], [0], [1], [0, 0, 1, 1], [], []>} : vector<8x8xf32>, vector<8x8xf32>, vector<8x8xf32> -> vector<8x8xf32>
    %759 = vector.extract_strided_slice %674 {offsets = [24, 0], sizes = [8, 32], strides = [1, 1]} : vector<32x32xf32> to vector<8x32xf32>
    %cst_331 = arith.constant dense<0.000000e+00> : vector<8x32xf32>
    %760 = tpu.matmul %758, %759, %cst_331 {dimension_numbers = #tpu.dot_dimension_numbers<[1], [0], [0], [1], [0, 0, 1, 1], [], []>} : vector<8x8xf32>, vector<8x32xf32>, vector<8x32xf32> -> vector<8x32xf32>
    %761 = arith.addf %740, %760 : vector<8x32xf32>
    %762 = arith.addf %662, %761 : vector<8x32xf32>
    %c1_332 = arith.constant 1 : index
    %c0_333 = arith.constant 0 : index
    %c0_334 = arith.constant 0 : index
    %763 = vector.load %arg23[%c1_332, %c0_333, %c0_334] : memref<2x1x32xf32, #tpu.memory_space<vmem>>, vector<1x1x32xf32>
    %764 = vector.shape_cast %763 : vector<1x1x32xf32> to vector<1x32xf32>
    %c1_335 = arith.constant 1 : index
    %c0_336 = arith.constant 0 : index
    %c0_337 = arith.constant 0 : index
    %765 = vector.load %arg24[%c1_335, %c0_336, %c0_337] : memref<2x1x32xf32, #tpu.memory_space<vmem>>, vector<1x1x32xf32>
    %766 = vector.shape_cast %765 : vector<1x1x32xf32> to vector<1x32xf32>
    %cst_338 = arith.constant dense<0.000000e+00> : vector<8xf32>
    %767 = vector.multi_reduction <add>, %762, %cst_338 [1] : vector<8x32xf32> to vector<8xf32>
    %768 = vector.shape_cast %767 : vector<8xf32> to vector<8x1xf32>
    %cst_339 = arith.constant 3.200000e+01 : f32
    %769 = vector.broadcast %cst_339 : f32 to vector<8x1xf32>
    %770 = arith.divf %768, %769 : vector<8x1xf32>
    %771 = vector.broadcast %770 : vector<8x1xf32> to vector<8x32xf32>
    %772 = arith.subf %762, %771 : vector<8x32xf32>
    %773 = arith.mulf %772, %772 : vector<8x32xf32>
    %cst_340 = arith.constant dense<0.000000e+00> : vector<8xf32>
    %774 = vector.multi_reduction <add>, %773, %cst_340 [1] : vector<8x32xf32> to vector<8xf32>
    %775 = vector.shape_cast %774 : vector<8xf32> to vector<8x1xf32>
    %cst_341 = arith.constant 3.200000e+01 : f32
    %776 = vector.broadcast %cst_341 : f32 to vector<8x1xf32>
    %777 = arith.divf %775, %776 : vector<8x1xf32>
    %778 = vector.broadcast %770 : vector<8x1xf32> to vector<8x32xf32>
    %779 = arith.subf %762, %778 : vector<8x32xf32>
    %cst_342 = arith.constant 9.99999974E-6 : f32
    %780 = vector.broadcast %cst_342 : f32 to vector<8x1xf32>
    %781 = arith.addf %777, %780 : vector<8x1xf32>
    %782 = math.rsqrt %781 : vector<8x1xf32>
    %783 = vector.broadcast %782 : vector<8x1xf32> to vector<8x32xf32>
    %784 = arith.mulf %779, %783 : vector<8x32xf32>
    %785 = vector.broadcast %764 : vector<1x32xf32> to vector<8x32xf32>
    %786 = arith.mulf %784, %785 : vector<8x32xf32>
    %787 = vector.broadcast %766 : vector<1x32xf32> to vector<8x32xf32>
    %788 = arith.addf %786, %787 : vector<8x32xf32>
    %c1_343 = arith.constant 1 : index
    %c0_344 = arith.constant 0 : index
    %c0_345 = arith.constant 0 : index
    %789 = vector.load %arg25[%c1_343, %c0_344, %c0_345] : memref<2x32x32xf32, #tpu.memory_space<vmem>>, vector<1x32x32xf32>
    %790 = vector.shape_cast %789 : vector<1x32x32xf32> to vector<32x32xf32>
    %cst_346 = arith.constant dense<0.000000e+00> : vector<8x32xf32>
    %791 = tpu.matmul %788, %790, %cst_346 {dimension_numbers = #tpu.dot_dimension_numbers<[1], [0], [0], [1], [0, 0, 1, 1], [], []>} : vector<8x32xf32>, vector<32x32xf32>, vector<8x32xf32> -> vector<8x32xf32>
    %c1_347 = arith.constant 1 : index
    %c0_348 = arith.constant 0 : index
    %c0_349 = arith.constant 0 : index
    %792 = vector.load %arg26[%c1_347, %c0_348, %c0_349] : memref<2x1x32xf32, #tpu.memory_space<vmem>>, vector<1x1x32xf32>
    %793 = vector.shape_cast %792 : vector<1x1x32xf32> to vector<1x32xf32>
    %794 = vector.broadcast %793 : vector<1x32xf32> to vector<8x32xf32>
    %795 = arith.addf %791, %794 : vector<8x32xf32>
    %c1_350 = arith.constant 1 : index
    %c0_351 = arith.constant 0 : index
    %c0_352 = arith.constant 0 : index
    %796 = vector.load %arg27[%c1_350, %c0_351, %c0_352] : memref<2x32x64xf32, #tpu.memory_space<vmem>>, vector<1x32x64xf32>
    %797 = vector.shape_cast %796 : vector<1x32x64xf32> to vector<32x64xf32>
    %cst_353 = arith.constant dense<0.000000e+00> : vector<8x64xf32>
    %798 = tpu.matmul %365, %797, %cst_353 {dimension_numbers = #tpu.dot_dimension_numbers<[1], [0], [0], [1], [0, 0, 1, 1], [], []>} : vector<8x32xf32>, vector<32x64xf32>, vector<8x64xf32> -> vector<8x64xf32>
    %c1_354 = arith.constant 1 : index
    %c0_355 = arith.constant 0 : index
    %c0_356 = arith.constant 0 : index
    %799 = vector.load %arg28[%c1_354, %c0_355, %c0_356] : memref<2x1x64xf32, #tpu.memory_space<vmem>>, vector<1x1x64xf32>
    %800 = vector.shape_cast %799 : vector<1x1x64xf32> to vector<1x64xf32>
    %801 = vector.broadcast %800 : vector<1x64xf32> to vector<8x64xf32>
    %802 = arith.addf %798, %801 : vector<8x64xf32>
    %803 = vector.extract_strided_slice %802 {offsets = [0, 0], sizes = [8, 32], strides = [1, 1]} : vector<8x64xf32> to vector<8x32xf32>
    %804 = vector.extract_strided_slice %802 {offsets = [0, 32], sizes = [8, 32], strides = [1, 1]} : vector<8x64xf32> to vector<8x32xf32>
    %c1_357 = arith.constant 1 : index
    %c0_358 = arith.constant 0 : index
    %c0_359 = arith.constant 0 : index
    %805 = vector.load %arg29[%c1_357, %c0_358, %c0_359] : memref<2x32x32xf32, #tpu.memory_space<vmem>>, vector<1x32x32xf32>
    %806 = vector.shape_cast %805 : vector<1x32x32xf32> to vector<32x32xf32>
    %c1_360 = arith.constant 1 : index
    %c0_361 = arith.constant 0 : index
    %c0_362 = arith.constant 0 : index
    %807 = vector.load %arg30[%c1_360, %c0_361, %c0_362] : memref<2x1x32xf32, #tpu.memory_space<vmem>>, vector<1x1x32xf32>
    %808 = vector.shape_cast %807 : vector<1x1x32xf32> to vector<1x32xf32>
    %809 = vector.extract_strided_slice %795 {offsets = [0, 0], sizes = [8, 8], strides = [1, 1]} : vector<8x32xf32> to vector<8x8xf32>
    %810 = vector.extract_strided_slice %803 {offsets = [0, 0], sizes = [8, 8], strides = [1, 1]} : vector<8x32xf32> to vector<8x8xf32>
    %811 = vector.extract_strided_slice %804 {offsets = [0, 0], sizes = [8, 8], strides = [1, 1]} : vector<8x32xf32> to vector<8x8xf32>
    %cst_363 = arith.constant dense<0.000000e+00> : vector<8x8xf32>
    %812 = tpu.matmul %809, %810, %cst_363 {dimension_numbers = #tpu.dot_dimension_numbers<[1], [1], [0], [0], [0, 0, 1, 0], [], []>} : vector<8x8xf32>, vector<8x8xf32>, vector<8x8xf32> -> vector<8x8xf32>
    %cst_364 = arith.constant 0.353553385 : f32
    %813 = vector.broadcast %cst_364 : f32 to vector<8x8xf32>
    %814 = arith.mulf %812, %813 : vector<8x8xf32>
    %cst_365 = arith.constant dense<0xFF800000> : vector<8xf32>
    %815 = vector.multi_reduction <maximumf>, %814, %cst_365 [1] : vector<8x8xf32> to vector<8xf32>
    %816 = vector.shape_cast %815 : vector<8xf32> to vector<8x1xf32>
    %817 = vector.broadcast %816 : vector<8x1xf32> to vector<8x8xf32>
    %818 = arith.subf %814, %817 : vector<8x8xf32>
    %819 = math.exp %818 : vector<8x8xf32>
    %cst_366 = arith.constant dense<0.000000e+00> : vector<8xf32>
    %820 = vector.multi_reduction <add>, %819, %cst_366 [1] : vector<8x8xf32> to vector<8xf32>
    %821 = vector.shape_cast %820 : vector<8xf32> to vector<8x1xf32>
    %822 = vector.broadcast %821 : vector<8x1xf32> to vector<8x8xf32>
    %823 = arith.divf %819, %822 : vector<8x8xf32>
    %cst_367 = arith.constant dense<0.000000e+00> : vector<8x8xf32>
    %824 = tpu.matmul %823, %811, %cst_367 {dimension_numbers = #tpu.dot_dimension_numbers<[1], [0], [0], [1], [0, 0, 1, 1], [], []>} : vector<8x8xf32>, vector<8x8xf32>, vector<8x8xf32> -> vector<8x8xf32>
    %825 = vector.extract_strided_slice %806 {offsets = [0, 0], sizes = [8, 32], strides = [1, 1]} : vector<32x32xf32> to vector<8x32xf32>
    %cst_368 = arith.constant dense<0.000000e+00> : vector<8x32xf32>
    %826 = tpu.matmul %824, %825, %cst_368 {dimension_numbers = #tpu.dot_dimension_numbers<[1], [0], [0], [1], [0, 0, 1, 1], [], []>} : vector<8x8xf32>, vector<8x32xf32>, vector<8x32xf32> -> vector<8x32xf32>
    %827 = vector.broadcast %808 : vector<1x32xf32> to vector<8x32xf32>
    %828 = arith.addf %827, %826 : vector<8x32xf32>
    %829 = vector.extract_strided_slice %795 {offsets = [0, 8], sizes = [8, 8], strides = [1, 1]} : vector<8x32xf32> to vector<8x8xf32>
    %830 = vector.extract_strided_slice %803 {offsets = [0, 8], sizes = [8, 8], strides = [1, 1]} : vector<8x32xf32> to vector<8x8xf32>
    %831 = vector.extract_strided_slice %804 {offsets = [0, 8], sizes = [8, 8], strides = [1, 1]} : vector<8x32xf32> to vector<8x8xf32>
    %cst_369 = arith.constant dense<0.000000e+00> : vector<8x8xf32>
    %832 = tpu.matmul %829, %830, %cst_369 {dimension_numbers = #tpu.dot_dimension_numbers<[1], [1], [0], [0], [0, 0, 1, 0], [], []>} : vector<8x8xf32>, vector<8x8xf32>, vector<8x8xf32> -> vector<8x8xf32>
    %cst_370 = arith.constant 0.353553385 : f32
    %833 = vector.broadcast %cst_370 : f32 to vector<8x8xf32>
    %834 = arith.mulf %832, %833 : vector<8x8xf32>
    %cst_371 = arith.constant dense<0xFF800000> : vector<8xf32>
    %835 = vector.multi_reduction <maximumf>, %834, %cst_371 [1] : vector<8x8xf32> to vector<8xf32>
    %836 = vector.shape_cast %835 : vector<8xf32> to vector<8x1xf32>
    %837 = vector.broadcast %836 : vector<8x1xf32> to vector<8x8xf32>
    %838 = arith.subf %834, %837 : vector<8x8xf32>
    %839 = math.exp %838 : vector<8x8xf32>
    %cst_372 = arith.constant dense<0.000000e+00> : vector<8xf32>
    %840 = vector.multi_reduction <add>, %839, %cst_372 [1] : vector<8x8xf32> to vector<8xf32>
    %841 = vector.shape_cast %840 : vector<8xf32> to vector<8x1xf32>
    %842 = vector.broadcast %841 : vector<8x1xf32> to vector<8x8xf32>
    %843 = arith.divf %839, %842 : vector<8x8xf32>
    %cst_373 = arith.constant dense<0.000000e+00> : vector<8x8xf32>
    %844 = tpu.matmul %843, %831, %cst_373 {dimension_numbers = #tpu.dot_dimension_numbers<[1], [0], [0], [1], [0, 0, 1, 1], [], []>} : vector<8x8xf32>, vector<8x8xf32>, vector<8x8xf32> -> vector<8x8xf32>
    %845 = vector.extract_strided_slice %806 {offsets = [8, 0], sizes = [8, 32], strides = [1, 1]} : vector<32x32xf32> to vector<8x32xf32>
    %cst_374 = arith.constant dense<0.000000e+00> : vector<8x32xf32>
    %846 = tpu.matmul %844, %845, %cst_374 {dimension_numbers = #tpu.dot_dimension_numbers<[1], [0], [0], [1], [0, 0, 1, 1], [], []>} : vector<8x8xf32>, vector<8x32xf32>, vector<8x32xf32> -> vector<8x32xf32>
    %847 = arith.addf %828, %846 : vector<8x32xf32>
    %848 = vector.extract_strided_slice %795 {offsets = [0, 16], sizes = [8, 8], strides = [1, 1]} : vector<8x32xf32> to vector<8x8xf32>
    %849 = vector.extract_strided_slice %803 {offsets = [0, 16], sizes = [8, 8], strides = [1, 1]} : vector<8x32xf32> to vector<8x8xf32>
    %850 = vector.extract_strided_slice %804 {offsets = [0, 16], sizes = [8, 8], strides = [1, 1]} : vector<8x32xf32> to vector<8x8xf32>
    %cst_375 = arith.constant dense<0.000000e+00> : vector<8x8xf32>
    %851 = tpu.matmul %848, %849, %cst_375 {dimension_numbers = #tpu.dot_dimension_numbers<[1], [1], [0], [0], [0, 0, 1, 0], [], []>} : vector<8x8xf32>, vector<8x8xf32>, vector<8x8xf32> -> vector<8x8xf32>
    %cst_376 = arith.constant 0.353553385 : f32
    %852 = vector.broadcast %cst_376 : f32 to vector<8x8xf32>
    %853 = arith.mulf %851, %852 : vector<8x8xf32>
    %cst_377 = arith.constant dense<0xFF800000> : vector<8xf32>
    %854 = vector.multi_reduction <maximumf>, %853, %cst_377 [1] : vector<8x8xf32> to vector<8xf32>
    %855 = vector.shape_cast %854 : vector<8xf32> to vector<8x1xf32>
    %856 = vector.broadcast %855 : vector<8x1xf32> to vector<8x8xf32>
    %857 = arith.subf %853, %856 : vector<8x8xf32>
    %858 = math.exp %857 : vector<8x8xf32>
    %cst_378 = arith.constant dense<0.000000e+00> : vector<8xf32>
    %859 = vector.multi_reduction <add>, %858, %cst_378 [1] : vector<8x8xf32> to vector<8xf32>
    %860 = vector.shape_cast %859 : vector<8xf32> to vector<8x1xf32>
    %861 = vector.broadcast %860 : vector<8x1xf32> to vector<8x8xf32>
    %862 = arith.divf %858, %861 : vector<8x8xf32>
    %cst_379 = arith.constant dense<0.000000e+00> : vector<8x8xf32>
    %863 = tpu.matmul %862, %850, %cst_379 {dimension_numbers = #tpu.dot_dimension_numbers<[1], [0], [0], [1], [0, 0, 1, 1], [], []>} : vector<8x8xf32>, vector<8x8xf32>, vector<8x8xf32> -> vector<8x8xf32>
    %864 = vector.extract_strided_slice %806 {offsets = [16, 0], sizes = [8, 32], strides = [1, 1]} : vector<32x32xf32> to vector<8x32xf32>
    %cst_380 = arith.constant dense<0.000000e+00> : vector<8x32xf32>
    %865 = tpu.matmul %863, %864, %cst_380 {dimension_numbers = #tpu.dot_dimension_numbers<[1], [0], [0], [1], [0, 0, 1, 1], [], []>} : vector<8x8xf32>, vector<8x32xf32>, vector<8x32xf32> -> vector<8x32xf32>
    %866 = arith.addf %847, %865 : vector<8x32xf32>
    %867 = vector.extract_strided_slice %795 {offsets = [0, 24], sizes = [8, 8], strides = [1, 1]} : vector<8x32xf32> to vector<8x8xf32>
    %868 = vector.extract_strided_slice %803 {offsets = [0, 24], sizes = [8, 8], strides = [1, 1]} : vector<8x32xf32> to vector<8x8xf32>
    %869 = vector.extract_strided_slice %804 {offsets = [0, 24], sizes = [8, 8], strides = [1, 1]} : vector<8x32xf32> to vector<8x8xf32>
    %cst_381 = arith.constant dense<0.000000e+00> : vector<8x8xf32>
    %870 = tpu.matmul %867, %868, %cst_381 {dimension_numbers = #tpu.dot_dimension_numbers<[1], [1], [0], [0], [0, 0, 1, 0], [], []>} : vector<8x8xf32>, vector<8x8xf32>, vector<8x8xf32> -> vector<8x8xf32>
    %cst_382 = arith.constant 0.353553385 : f32
    %871 = vector.broadcast %cst_382 : f32 to vector<8x8xf32>
    %872 = arith.mulf %870, %871 : vector<8x8xf32>
    %cst_383 = arith.constant dense<0xFF800000> : vector<8xf32>
    %873 = vector.multi_reduction <maximumf>, %872, %cst_383 [1] : vector<8x8xf32> to vector<8xf32>
    %874 = vector.shape_cast %873 : vector<8xf32> to vector<8x1xf32>
    %875 = vector.broadcast %874 : vector<8x1xf32> to vector<8x8xf32>
    %876 = arith.subf %872, %875 : vector<8x8xf32>
    %877 = math.exp %876 : vector<8x8xf32>
    %cst_384 = arith.constant dense<0.000000e+00> : vector<8xf32>
    %878 = vector.multi_reduction <add>, %877, %cst_384 [1] : vector<8x8xf32> to vector<8xf32>
    %879 = vector.shape_cast %878 : vector<8xf32> to vector<8x1xf32>
    %880 = vector.broadcast %879 : vector<8x1xf32> to vector<8x8xf32>
    %881 = arith.divf %877, %880 : vector<8x8xf32>
    %cst_385 = arith.constant dense<0.000000e+00> : vector<8x8xf32>
    %882 = tpu.matmul %881, %869, %cst_385 {dimension_numbers = #tpu.dot_dimension_numbers<[1], [0], [0], [1], [0, 0, 1, 1], [], []>} : vector<8x8xf32>, vector<8x8xf32>, vector<8x8xf32> -> vector<8x8xf32>
    %883 = vector.extract_strided_slice %806 {offsets = [24, 0], sizes = [8, 32], strides = [1, 1]} : vector<32x32xf32> to vector<8x32xf32>
    %cst_386 = arith.constant dense<0.000000e+00> : vector<8x32xf32>
    %884 = tpu.matmul %882, %883, %cst_386 {dimension_numbers = #tpu.dot_dimension_numbers<[1], [0], [0], [1], [0, 0, 1, 1], [], []>} : vector<8x8xf32>, vector<8x32xf32>, vector<8x32xf32> -> vector<8x32xf32>
    %885 = arith.addf %866, %884 : vector<8x32xf32>
    %886 = arith.addf %788, %885 : vector<8x32xf32>
    %c1_387 = arith.constant 1 : index
    %c0_388 = arith.constant 0 : index
    %c0_389 = arith.constant 0 : index
    %887 = vector.load %arg31[%c1_387, %c0_388, %c0_389] : memref<2x1x32xf32, #tpu.memory_space<vmem>>, vector<1x1x32xf32>
    %888 = vector.shape_cast %887 : vector<1x1x32xf32> to vector<1x32xf32>
    %c1_390 = arith.constant 1 : index
    %c0_391 = arith.constant 0 : index
    %c0_392 = arith.constant 0 : index
    %889 = vector.load %arg32[%c1_390, %c0_391, %c0_392] : memref<2x1x32xf32, #tpu.memory_space<vmem>>, vector<1x1x32xf32>
    %890 = vector.shape_cast %889 : vector<1x1x32xf32> to vector<1x32xf32>
    %cst_393 = arith.constant dense<0.000000e+00> : vector<8xf32>
    %891 = vector.multi_reduction <add>, %886, %cst_393 [1] : vector<8x32xf32> to vector<8xf32>
    %892 = vector.shape_cast %891 : vector<8xf32> to vector<8x1xf32>
    %cst_394 = arith.constant 3.200000e+01 : f32
    %893 = vector.broadcast %cst_394 : f32 to vector<8x1xf32>
    %894 = arith.divf %892, %893 : vector<8x1xf32>
    %895 = vector.broadcast %894 : vector<8x1xf32> to vector<8x32xf32>
    %896 = arith.subf %886, %895 : vector<8x32xf32>
    %897 = arith.mulf %896, %896 : vector<8x32xf32>
    %cst_395 = arith.constant dense<0.000000e+00> : vector<8xf32>
    %898 = vector.multi_reduction <add>, %897, %cst_395 [1] : vector<8x32xf32> to vector<8xf32>
    %899 = vector.shape_cast %898 : vector<8xf32> to vector<8x1xf32>
    %cst_396 = arith.constant 3.200000e+01 : f32
    %900 = vector.broadcast %cst_396 : f32 to vector<8x1xf32>
    %901 = arith.divf %899, %900 : vector<8x1xf32>
    %902 = vector.broadcast %894 : vector<8x1xf32> to vector<8x32xf32>
    %903 = arith.subf %886, %902 : vector<8x32xf32>
    %cst_397 = arith.constant 9.99999974E-6 : f32
    %904 = vector.broadcast %cst_397 : f32 to vector<8x1xf32>
    %905 = arith.addf %901, %904 : vector<8x1xf32>
    %906 = math.rsqrt %905 : vector<8x1xf32>
    %907 = vector.broadcast %906 : vector<8x1xf32> to vector<8x32xf32>
    %908 = arith.mulf %903, %907 : vector<8x32xf32>
    %909 = vector.broadcast %888 : vector<1x32xf32> to vector<8x32xf32>
    %910 = arith.mulf %908, %909 : vector<8x32xf32>
    %911 = vector.broadcast %890 : vector<1x32xf32> to vector<8x32xf32>
    %912 = arith.addf %910, %911 : vector<8x32xf32>
    %c1_398 = arith.constant 1 : index
    %c0_399 = arith.constant 0 : index
    %c0_400 = arith.constant 0 : index
    %913 = vector.load %arg33[%c1_398, %c0_399, %c0_400] : memref<2x32x2048xf32, #tpu.memory_space<vmem>>, vector<1x32x2048xf32>
    %914 = vector.shape_cast %913 : vector<1x32x2048xf32> to vector<32x2048xf32>
    %c1_401 = arith.constant 1 : index
    %c0_402 = arith.constant 0 : index
    %c0_403 = arith.constant 0 : index
    %915 = vector.load %arg34[%c1_401, %c0_402, %c0_403] : memref<2x1x2048xf32, #tpu.memory_space<vmem>>, vector<1x1x2048xf32>
    %916 = vector.shape_cast %915 : vector<1x1x2048xf32> to vector<1x2048xf32>
    %c1_404 = arith.constant 1 : index
    %c0_405 = arith.constant 0 : index
    %c0_406 = arith.constant 0 : index
    %917 = vector.load %arg35[%c1_404, %c0_405, %c0_406] : memref<2x2048x32xf32, #tpu.memory_space<vmem>>, vector<1x2048x32xf32>
    %918 = vector.shape_cast %917 : vector<1x2048x32xf32> to vector<2048x32xf32>
    %c1_407 = arith.constant 1 : index
    %c0_408 = arith.constant 0 : index
    %c0_409 = arith.constant 0 : index
    %919 = vector.load %arg36[%c1_407, %c0_408, %c0_409] : memref<2x1x32xf32, #tpu.memory_space<vmem>>, vector<1x1x32xf32>
    %920 = vector.shape_cast %919 : vector<1x1x32xf32> to vector<1x32xf32>
    %cst_410 = arith.constant dense<0.000000e+00> : vector<8x2048xf32>
    %921 = tpu.matmul %912, %914, %cst_410 {dimension_numbers = #tpu.dot_dimension_numbers<[1], [0], [0], [1], [0, 0, 1, 1], [], []>} : vector<8x32xf32>, vector<32x2048xf32>, vector<8x2048xf32> -> vector<8x2048xf32>
    %922 = vector.broadcast %916 : vector<1x2048xf32> to vector<8x2048xf32>
    %923 = arith.addf %921, %922 : vector<8x2048xf32>
    %cst_411 = arith.constant 0.000000e+00 : f32
    %924 = vector.broadcast %cst_411 : f32 to vector<8x2048xf32>
    %925 = arith.maximumf %923, %924 : vector<8x2048xf32>
    %cst_412 = arith.constant dense<0.000000e+00> : vector<8x32xf32>
    %926 = tpu.matmul %925, %918, %cst_412 {dimension_numbers = #tpu.dot_dimension_numbers<[1], [0], [0], [1], [0, 0, 1, 1], [], []>} : vector<8x2048xf32>, vector<2048x32xf32>, vector<8x32xf32> -> vector<8x32xf32>
    %927 = vector.broadcast %920 : vector<1x32xf32> to vector<8x32xf32>
    %928 = arith.addf %926, %927 : vector<8x32xf32>
    %929 = arith.addf %912, %928 : vector<8x32xf32>
    %c1_413 = arith.constant 1 : index
    %c0_414 = arith.constant 0 : index
    %c0_415 = arith.constant 0 : index
    %930 = vector.load %arg37[%c1_413, %c0_414, %c0_415] : memref<2x1x32xf32, #tpu.memory_space<vmem>>, vector<1x1x32xf32>
    %931 = vector.shape_cast %930 : vector<1x1x32xf32> to vector<1x32xf32>
    %c1_416 = arith.constant 1 : index
    %c0_417 = arith.constant 0 : index
    %c0_418 = arith.constant 0 : index
    %932 = vector.load %arg38[%c1_416, %c0_417, %c0_418] : memref<2x1x32xf32, #tpu.memory_space<vmem>>, vector<1x1x32xf32>
    %933 = vector.shape_cast %932 : vector<1x1x32xf32> to vector<1x32xf32>
    %cst_419 = arith.constant dense<0.000000e+00> : vector<8xf32>
    %934 = vector.multi_reduction <add>, %929, %cst_419 [1] : vector<8x32xf32> to vector<8xf32>
    %935 = vector.shape_cast %934 : vector<8xf32> to vector<8x1xf32>
    %cst_420 = arith.constant 3.200000e+01 : f32
    %936 = vector.broadcast %cst_420 : f32 to vector<8x1xf32>
    %937 = arith.divf %935, %936 : vector<8x1xf32>
    %938 = vector.broadcast %937 : vector<8x1xf32> to vector<8x32xf32>
    %939 = arith.subf %929, %938 : vector<8x32xf32>
    %940 = arith.mulf %939, %939 : vector<8x32xf32>
    %cst_421 = arith.constant dense<0.000000e+00> : vector<8xf32>
    %941 = vector.multi_reduction <add>, %940, %cst_421 [1] : vector<8x32xf32> to vector<8xf32>
    %942 = vector.shape_cast %941 : vector<8xf32> to vector<8x1xf32>
    %cst_422 = arith.constant 3.200000e+01 : f32
    %943 = vector.broadcast %cst_422 : f32 to vector<8x1xf32>
    %944 = arith.divf %942, %943 : vector<8x1xf32>
    %945 = vector.broadcast %937 : vector<8x1xf32> to vector<8x32xf32>
    %946 = arith.subf %929, %945 : vector<8x32xf32>
    %cst_423 = arith.constant 9.99999974E-6 : f32
    %947 = vector.broadcast %cst_423 : f32 to vector<8x1xf32>
    %948 = arith.addf %944, %947 : vector<8x1xf32>
    %949 = math.rsqrt %948 : vector<8x1xf32>
    %950 = vector.broadcast %949 : vector<8x1xf32> to vector<8x32xf32>
    %951 = arith.mulf %946, %950 : vector<8x32xf32>
    %952 = vector.broadcast %931 : vector<1x32xf32> to vector<8x32xf32>
    %953 = arith.mulf %951, %952 : vector<8x32xf32>
    %954 = vector.broadcast %933 : vector<1x32xf32> to vector<8x32xf32>
    %955 = arith.addf %953, %954 : vector<8x32xf32>
    %c0_424 = arith.constant 0 : index
    %c0_425 = arith.constant 0 : index
    %956 = vector.load %arg39[%c0_424, %c0_425] : memref<1x32xf32, #tpu.memory_space<vmem>>, vector<1x32xf32>
    %c0_426 = arith.constant 0 : index
    %c0_427 = arith.constant 0 : index
    %957 = vector.load %arg40[%c0_426, %c0_427] : memref<1x32xf32, #tpu.memory_space<vmem>>, vector<1x32xf32>
    %cst_428 = arith.constant dense<0.000000e+00> : vector<8xf32>
    %958 = vector.multi_reduction <add>, %955, %cst_428 [1] : vector<8x32xf32> to vector<8xf32>
    %959 = vector.shape_cast %958 : vector<8xf32> to vector<8x1xf32>
    %cst_429 = arith.constant 3.200000e+01 : f32
    %960 = vector.broadcast %cst_429 : f32 to vector<8x1xf32>
    %961 = arith.divf %959, %960 : vector<8x1xf32>
    %962 = vector.broadcast %961 : vector<8x1xf32> to vector<8x32xf32>
    %963 = arith.subf %955, %962 : vector<8x32xf32>
    %964 = arith.mulf %963, %963 : vector<8x32xf32>
    %cst_430 = arith.constant dense<0.000000e+00> : vector<8xf32>
    %965 = vector.multi_reduction <add>, %964, %cst_430 [1] : vector<8x32xf32> to vector<8xf32>
    %966 = vector.shape_cast %965 : vector<8xf32> to vector<8x1xf32>
    %cst_431 = arith.constant 3.200000e+01 : f32
    %967 = vector.broadcast %cst_431 : f32 to vector<8x1xf32>
    %968 = arith.divf %966, %967 : vector<8x1xf32>
    %969 = vector.broadcast %961 : vector<8x1xf32> to vector<8x32xf32>
    %970 = arith.subf %955, %969 : vector<8x32xf32>
    %cst_432 = arith.constant 9.99999974E-6 : f32
    %971 = vector.broadcast %cst_432 : f32 to vector<8x1xf32>
    %972 = arith.addf %968, %971 : vector<8x1xf32>
    %973 = math.rsqrt %972 : vector<8x1xf32>
    %974 = vector.broadcast %973 : vector<8x1xf32> to vector<8x32xf32>
    %975 = arith.mulf %970, %974 : vector<8x32xf32>
    %976 = vector.broadcast %956 : vector<1x32xf32> to vector<8x32xf32>
    %977 = arith.mulf %975, %976 : vector<8x32xf32>
    %978 = vector.broadcast %957 : vector<1x32xf32> to vector<8x32xf32>
    %979 = arith.addf %977, %978 : vector<8x32xf32>
    %c0_433 = arith.constant 0 : index
    %c0_434 = arith.constant 0 : index
    %980 = vector.load %arg41[%c0_433, %c0_434] : memref<32x128xf32, #tpu.memory_space<vmem>>, vector<32x128xf32>
    %cst_435 = arith.constant dense<0.000000e+00> : vector<8x128xf32>
    %981 = tpu.matmul %979, %980, %cst_435 {dimension_numbers = #tpu.dot_dimension_numbers<[1], [0], [0], [1], [0, 0, 1, 1], [], []>} : vector<8x32xf32>, vector<32x128xf32>, vector<8x128xf32> -> vector<8x128xf32>
    %c0_436 = arith.constant 0 : index
    %c0_437 = arith.constant 0 : index
    %982 = vector.load %arg42[%c0_436, %c0_437] : memref<1x128xf32, #tpu.memory_space<vmem>>, vector<1x128xf32>
    %983 = vector.broadcast %982 : vector<1x128xf32> to vector<8x128xf32>
    %984 = arith.addf %981, %983 : vector<8x128xf32>
    %c0_438 = arith.constant 0 : index
    %c0_439 = arith.constant 0 : index
    %c0_440 = arith.constant 0 : index
    %985 = vector.load %arg43[%c0_438, %c0_439, %c0_440] : memref<1x8x128xf32, #tpu.memory_space<vmem>>, vector<1x8x128xf32>
    %986 = vector.shape_cast %985 : vector<1x8x128xf32> to vector<8x128xf32>
    %987 = vector.shape_cast %984 : vector<8x128xf32> to vector<1x8x128xf32>
    tpu.vector_store %arg43[%c0_438, %c0_439, %c0_440], %987 {strides = array<i32>} : memref<1x8x128xf32, #tpu.memory_space<vmem>>, vector<1x8x128xf32>,
    return
  }
  func.func @transform_0(%arg0: i32) -> (i32, i32, i32) {
    %c0_i32 = arith.constant 0 : i32
    %c0_i32_0 = arith.constant 0 : i32
    %c0_i32_1 = arith.constant 0 : i32
    return %arg0, %c0_i32, %c0_i32_0 : i32, i32, i32
  }
  func.func @transform_1(%arg0: i32) -> (i32, i32, i32) {
    %c0_i32 = arith.constant 0 : i32
    %c0_i32_0 = arith.constant 0 : i32
    %c0_i32_1 = arith.constant 0 : i32
    return %arg0, %c0_i32, %c0_i32_0 : i32, i32, i32
  }
  func.func @transform_2(%arg0: i32) -> (i32, i32, i32) {
    %c0_i32 = arith.constant 0 : i32
    %c0_i32_0 = arith.constant 0 : i32
    %c0_i32_1 = arith.constant 0 : i32
    return %arg0, %c0_i32, %c0_i32_0 : i32, i32, i32
  }
  func.func @transform_3(%arg0: i32) -> (i32, i32, i32) {
    %c0_i32 = arith.constant 0 : i32
    %c0_i32_0 = arith.constant 0 : i32
    %c0_i32_1 = arith.constant 0 : i32
    return %arg0, %c0_i32, %c0_i32_0 : i32, i32, i32
  }
  func.func @transform_4(%arg0: i32) -> (i32, i32, i32) {
    %c0_i32 = arith.constant 0 : i32
    %c0_i32_0 = arith.constant 0 : i32
    %c0_i32_1 = arith.constant 0 : i32
    %c0_i32_2 = arith.constant 0 : i32
    return %c0_i32, %c0_i32_0, %c0_i32_1 : i32, i32, i32
  }
  func.func @transform_5(%arg0: i32) -> (i32, i32, i32) {
    %c0_i32 = arith.constant 0 : i32
    %c0_i32_0 = arith.constant 0 : i32
    %c0_i32_1 = arith.constant 0 : i32
    %c0_i32_2 = arith.constant 0 : i32
    return %c0_i32, %c0_i32_0, %c0_i32_1 : i32, i32, i32
  }
  func.func @transform_6(%arg0: i32) -> (i32, i32, i32) {
    %c0_i32 = arith.constant 0 : i32
    %c0_i32_0 = arith.constant 0 : i32
    %c0_i32_1 = arith.constant 0 : i32
    %c0_i32_2 = arith.constant 0 : i32
    return %c0_i32, %c0_i32_0, %c0_i32_1 : i32, i32, i32
  }
  func.func @transform_7(%arg0: i32) -> (i32, i32, i32) {
    %c0_i32 = arith.constant 0 : i32
    %c0_i32_0 = arith.constant 0 : i32
    %c0_i32_1 = arith.constant 0 : i32
    %c0_i32_2 = arith.constant 0 : i32
    return %c0_i32, %c0_i32_0, %c0_i32_1 : i32, i32, i32
  }
  func.func @transform_8(%arg0: i32) -> (i32, i32, i32) {
    %c0_i32 = arith.constant 0 : i32
    %c0_i32_0 = arith.constant 0 : i32
    %c0_i32_1 = arith.constant 0 : i32
    %c0_i32_2 = arith.constant 0 : i32
    return %c0_i32, %c0_i32_0, %c0_i32_1 : i32, i32, i32
  }
  func.func @transform_9(%arg0: i32) -> (i32, i32, i32) {
    %c0_i32 = arith.constant 0 : i32
    %c0_i32_0 = arith.constant 0 : i32
    %c0_i32_1 = arith.constant 0 : i32
    %c0_i32_2 = arith.constant 0 : i32
    return %c0_i32, %c0_i32_0, %c0_i32_1 : i32, i32, i32
  }
  func.func @transform_10(%arg0: i32) -> (i32, i32, i32) {
    %c0_i32 = arith.constant 0 : i32
    %c0_i32_0 = arith.constant 0 : i32
    %c0_i32_1 = arith.constant 0 : i32
    %c0_i32_2 = arith.constant 0 : i32
    return %c0_i32, %c0_i32_0, %c0_i32_1 : i32, i32, i32
  }
  func.func @transform_11(%arg0: i32) -> (i32, i32, i32) {
    %c0_i32 = arith.constant 0 : i32
    %c0_i32_0 = arith.constant 0 : i32
    %c0_i32_1 = arith.constant 0 : i32
    %c0_i32_2 = arith.constant 0 : i32
    return %c0_i32, %c0_i32_0, %c0_i32_1 : i32, i32, i32
  }
  func.func @transform_12(%arg0: i32) -> (i32, i32, i32) {
    %c0_i32 = arith.constant 0 : i32
    %c0_i32_0 = arith.constant 0 : i32
    %c0_i32_1 = arith.constant 0 : i32
    %c0_i32_2 = arith.constant 0 : i32
    return %c0_i32, %c0_i32_0, %c0_i32_1 : i32, i32, i32
  }
  func.func @transform_13(%arg0: i32) -> (i32, i32, i32) {
    %c0_i32 = arith.constant 0 : i32
    %c0_i32_0 = arith.constant 0 : i32
    %c0_i32_1 = arith.constant 0 : i32
    %c0_i32_2 = arith.constant 0 : i32
    return %c0_i32, %c0_i32_0, %c0_i32_1 : i32, i32, i32
  }
  func.func @transform_14(%arg0: i32) -> (i32, i32, i32) {
    %c0_i32 = arith.constant 0 : i32
    %c0_i32_0 = arith.constant 0 : i32
    %c0_i32_1 = arith.constant 0 : i32
    %c0_i32_2 = arith.constant 0 : i32
    return %c0_i32, %c0_i32_0, %c0_i32_1 : i32, i32, i32
  }
  func.func @transform_15(%arg0: i32) -> (i32, i32, i32) {
    %c0_i32 = arith.constant 0 : i32
    %c0_i32_0 = arith.constant 0 : i32
    %c0_i32_1 = arith.constant 0 : i32
    %c0_i32_2 = arith.constant 0 : i32
    return %c0_i32, %c0_i32_0, %c0_i32_1 : i32, i32, i32
  }
  func.func @transform_16(%arg0: i32) -> (i32, i32) {
    %c0_i32 = arith.constant 0 : i32
    %c0_i32_0 = arith.constant 0 : i32
    %c0_i32_1 = arith.constant 0 : i32
    return %c0_i32, %c0_i32_0 : i32, i32
  }
  func.func @transform_17(%arg0: i32) -> (i32, i32) {
    %c0_i32 = arith.constant 0 : i32
    %c0_i32_0 = arith.constant 0 : i32
    %c0_i32_1 = arith.constant 0 : i32
    return %c0_i32, %c0_i32_0 : i32, i32
  }
  func.func @transform_18(%arg0: i32) -> (i32, i32, i32) {
    %c0_i32 = arith.constant 0 : i32
    %c0_i32_0 = arith.constant 0 : i32
    %c0_i32_1 = arith.constant 0 : i32
    %c0_i32_2 = arith.constant 0 : i32
    return %c0_i32, %c0_i32_0, %c0_i32_1 : i32, i32, i32
  }
  func.func @transform_19(%arg0: i32) -> (i32, i32, i32) {
    %c0_i32 = arith.constant 0 : i32
    %c0_i32_0 = arith.constant 0 : i32
    %c0_i32_1 = arith.constant 0 : i32
    %c0_i32_2 = arith.constant 0 : i32
    return %c0_i32, %c0_i32_0, %c0_i32_1 : i32, i32, i32
  }
  func.func @transform_20(%arg0: i32) -> (i32, i32, i32) {
    %c0_i32 = arith.constant 0 : i32
    %c0_i32_0 = arith.constant 0 : i32
    %c0_i32_1 = arith.constant 0 : i32
    %c0_i32_2 = arith.constant 0 : i32
    return %c0_i32, %c0_i32_0, %c0_i32_1 : i32, i32, i32
  }
  func.func @transform_21(%arg0: i32) -> (i32, i32, i32) {
    %c0_i32 = arith.constant 0 : i32
    %c0_i32_0 = arith.constant 0 : i32
    %c0_i32_1 = arith.constant 0 : i32
    %c0_i32_2 = arith.constant 0 : i32
    return %c0_i32, %c0_i32_0, %c0_i32_1 : i32, i32, i32
  }
  func.func @transform_22(%arg0: i32) -> (i32, i32, i32) {
    %c0_i32 = arith.constant 0 : i32
    %c0_i32_0 = arith.constant 0 : i32
    %c0_i32_1 = arith.constant 0 : i32
    %c0_i32_2 = arith.constant 0 : i32
    return %c0_i32, %c0_i32_0, %c0_i32_1 : i32, i32, i32
  }
  func.func @transform_23(%arg0: i32) -> (i32, i32, i32) {
    %c0_i32 = arith.constant 0 : i32
    %c0_i32_0 = arith.constant 0 : i32
    %c0_i32_1 = arith.constant 0 : i32
    %c0_i32_2 = arith.constant 0 : i32
    return %c0_i32, %c0_i32_0, %c0_i32_1 : i32, i32, i32
  }
  func.func @transform_24(%arg0: i32) -> (i32, i32, i32) {
    %c0_i32 = arith.constant 0 : i32
    %c0_i32_0 = arith.constant 0 : i32
    %c0_i32_1 = arith.constant 0 : i32
    %c0_i32_2 = arith.constant 0 : i32
    return %c0_i32, %c0_i32_0, %c0_i32_1 : i32, i32, i32
  }
  func.func @transform_25(%arg0: i32) -> (i32, i32, i32) {
    %c0_i32 = arith.constant 0 : i32
    %c0_i32_0 = arith.constant 0 : i32
    %c0_i32_1 = arith.constant 0 : i32
    %c0_i32_2 = arith.constant 0 : i32
    return %c0_i32, %c0_i32_0, %c0_i32_1 : i32, i32, i32
  }
  func.func @transform_26(%arg0: i32) -> (i32, i32, i32) {
    %c0_i32 = arith.constant 0 : i32
    %c0_i32_0 = arith.constant 0 : i32
    %c0_i32_1 = arith.constant 0 : i32
    %c0_i32_2 = arith.constant 0 : i32
    return %c0_i32, %c0_i32_0, %c0_i32_1 : i32, i32, i32
  }
  func.func @transform_27(%arg0: i32) -> (i32, i32, i32) {
    %c0_i32 = arith.constant 0 : i32
    %c0_i32_0 = arith.constant 0 : i32
    %c0_i32_1 = arith.constant 0 : i32
    %c0_i32_2 = arith.constant 0 : i32
    return %c0_i32, %c0_i32_0, %c0_i32_1 : i32, i32, i32
  }
  func.func @transform_28(%arg0: i32) -> (i32, i32, i32) {
    %c0_i32 = arith.constant 0 : i32
    %c0_i32_0 = arith.constant 0 : i32
    %c0_i32_1 = arith.constant 0 : i32
    %c0_i32_2 = arith.constant 0 : i32
    return %c0_i32, %c0_i32_0, %c0_i32_1 : i32, i32, i32
  }
  func.func @transform_29(%arg0: i32) -> (i32, i32, i32) {
    %c0_i32 = arith.constant 0 : i32
    %c0_i32_0 = arith.constant 0 : i32
    %c0_i32_1 = arith.constant 0 : i32
    %c0_i32_2 = arith.constant 0 : i32
    return %c0_i32, %c0_i32_0, %c0_i32_1 : i32, i32, i32
  }
  func.func @transform_30(%arg0: i32) -> (i32, i32, i32) {
    %c0_i32 = arith.constant 0 : i32
    %c0_i32_0 = arith.constant 0 : i32
    %c0_i32_1 = arith.constant 0 : i32
    %c0_i32_2 = arith.constant 0 : i32
    return %c0_i32, %c0_i32_0, %c0_i32_1 : i32, i32, i32
  }
  func.func @transform_31(%arg0: i32) -> (i32, i32, i32) {
    %c0_i32 = arith.constant 0 : i32
    %c0_i32_0 = arith.constant 0 : i32
    %c0_i32_1 = arith.constant 0 : i32
    %c0_i32_2 = arith.constant 0 : i32
    return %c0_i32, %c0_i32_0, %c0_i32_1 : i32, i32, i32
  }
  func.func @transform_32(%arg0: i32) -> (i32, i32, i32) {
    %c0_i32 = arith.constant 0 : i32
    %c0_i32_0 = arith.constant 0 : i32
    %c0_i32_1 = arith.constant 0 : i32
    %c0_i32_2 = arith.constant 0 : i32
    return %c0_i32, %c0_i32_0, %c0_i32_1 : i32, i32, i32
  }
  func.func @transform_33(%arg0: i32) -> (i32, i32, i32) {
    %c0_i32 = arith.constant 0 : i32
    %c0_i32_0 = arith.constant 0 : i32
    %c0_i32_1 = arith.constant 0 : i32
    %c0_i32_2 = arith.constant 0 : i32
    return %c0_i32, %c0_i32_0, %c0_i32_1 : i32, i32, i32
  }
  func.func @transform_34(%arg0: i32) -> (i32, i32, i32) {
    %c0_i32 = arith.constant 0 : i32
    %c0_i32_0 = arith.constant 0 : i32
    %c0_i32_1 = arith.constant 0 : i32
    %c0_i32_2 = arith.constant 0 : i32
    return %c0_i32, %c0_i32_0, %c0_i32_1 : i32, i32, i32
  }
  func.func @transform_35(%arg0: i32) -> (i32, i32, i32) {
    %c0_i32 = arith.constant 0 : i32
    %c0_i32_0 = arith.constant 0 : i32
    %c0_i32_1 = arith.constant 0 : i32
    %c0_i32_2 = arith.constant 0 : i32
    return %c0_i32, %c0_i32_0, %c0_i32_1 : i32, i32, i32
  }
  func.func @transform_36(%arg0: i32) -> (i32, i32, i32) {
    %c0_i32 = arith.constant 0 : i32
    %c0_i32_0 = arith.constant 0 : i32
    %c0_i32_1 = arith.constant 0 : i32
    %c0_i32_2 = arith.constant 0 : i32
    return %c0_i32, %c0_i32_0, %c0_i32_1 : i32, i32, i32
  }
  func.func @transform_37(%arg0: i32) -> (i32, i32, i32) {
    %c0_i32 = arith.constant 0 : i32
    %c0_i32_0 = arith.constant 0 : i32
    %c0_i32_1 = arith.constant 0 : i32
    %c0_i32_2 = arith.constant 0 : i32
    return %c0_i32, %c0_i32_0, %c0_i32_1 : i32, i32, i32
  }
  func.func @transform_38(%arg0: i32) -> (i32, i32) {
    %c0_i32 = arith.constant 0 : i32
    %c0_i32_0 = arith.constant 0 : i32
    %c0_i32_1 = arith.constant 0 : i32
    return %c0_i32, %c0_i32_0 : i32, i32
  }
  func.func @transform_39(%arg0: i32) -> (i32, i32) {
    %c0_i32 = arith.constant 0 : i32
    %c0_i32_0 = arith.constant 0 : i32
    %c0_i32_1 = arith.constant 0 : i32
    return %c0_i32, %c0_i32_0 : i32, i32
  }
  func.func @transform_40(%arg0: i32) -> (i32, i32) {
    %c0_i32 = arith.constant 0 : i32
    %c0_i32_0 = arith.constant 0 : i32
    %c0_i32_1 = arith.constant 0 : i32
    return %c0_i32, %c0_i32_0 : i32, i32
  }
  func.func @transform_41(%arg0: i32) -> (i32, i32) {
    %c0_i32 = arith.constant 0 : i32
    %c0_i32_0 = arith.constant 0 : i32
    %c0_i32_1 = arith.constant 0 : i32
    return %c0_i32, %c0_i32_0 : i32, i32
  }
  func.func @transform_42(%arg0: i32) -> (i32, i32, i32) {
    %c0_i32 = arith.constant 0 : i32
    %c0_i32_0 = arith.constant 0 : i32
    %c0_i32_1 = arith.constant 0 : i32
    return %arg0, %c0_i32, %c0_i32_0 : i32, i32, i32
  }
}

</mosaic_0001>

<bundles_post_ra>
// kernel: mol_transformer_forward.1
= control target key start
LH: loop header
LB: loop body
LE: loop exit
PB: predicated region body
PF: predicated region fallthrough
CT: control target
= control target key end

     0   :  { %s18948_s6 = smov 1   ;;  %s18949_s10 = smov 2   ;;  %s21762_s0 = inlined_call_operand.smem [shape: u32[43], index: -1, kind: input, shape index: {}] }
   0x1   :  { %s19013_s5 = sld [smem:[%s21762_s0]]   ;;  %s18950_s14 = smov 3  }
   0x2   :  { %s19018_s9 = sld [smem:[%s21762_s0 + %s18948_s6]]   ;;  %s18951_s18 = smov 4  }
   0x3   :  { %s19023_s13 = sld [smem:[%s21762_s0 + %s18949_s10]]   ;;  %s18952_s22 = smov 5  }
   0x4   :  { %s19028_s17 = sld [smem:[%s21762_s0 + %s18950_s14]]   ;;  %s18953_s26 = smov 6  }
   0x5   :  { %s19033_s21 = sld [smem:[%s21762_s0 + %s18951_s18]]   ;;  %s18954_s30 = smov 7  }
   0x6   :  { %s19038_s25 = sld [smem:[%s21762_s0 + %s18952_s22]]   ;;  %s18955_s4 = smov 8  }
   0x7   :  { %21832 = sst [smem:[#allocation5_spill]] %s19013_s5  ;;  %s18956_s10 = smov 9  }
   0x8   :  { %21833 = sst [smem:[#allocation6_spill]] %s19018_s9  ;;  %s18957_s15 = smov 10  }
   0x9   :  { %21834 = sst [smem:[#allocation7_spill]] %s19023_s13  ;;  %s18958_s20 = smov 11  }
   0xa   :  { %21835 = sst [smem:[#allocation8_spill]] %s19028_s17  ;;  %s18960_s1 = smov 13  }
   0xb   :  { %21836 = sst [smem:[#allocation9_spill]] %s19033_s21  ;;  %s18961_s7 = smov 14  }
   0xc   :  { %21837 = sst [smem:[#allocation10_spill]] %s19038_s25  ;;  %s18963_s22 = smov 16  }
   0xd   :  { %s19043_s29 = sld [smem:[%s21762_s0 + %s18953_s26]]   ;;  %s18959_s26 = smov 12  }
   0xe   :  { %s19048_s3 = sld [smem:[%s21762_s0 + %s18954_s30]]   ;;  %s18964_s28 = smov 17  }
   0xf   :  { %s19053_s8 = sld [smem:[%s21762_s0 + %s18955_s4]]  }
  0x10   :  { %s19058_s14 = sld [smem:[%s21762_s0 + %s18956_s10]]  }
  0x11   :  { %s19063_s19 = sld [smem:[%s21762_s0 + %s18957_s15]]   ;;  %s18962_s15 = smov 15  }
  0x12   :  { %s19068_s24 = sld [smem:[%s21762_s0 + %s18958_s20]]  }
  0x13   :  { %21838 = sst [smem:[#allocation11_spill]] %s19043_s29 }
  0x14   :  { %21839 = sst [smem:[#allocation12_spill]] %s19048_s3 }
  0x15   :  { %21840 = sst [smem:[#allocation13_spill]] %s19053_s8 }
  0x16   :  { %21841 = sst [smem:[#allocation14_spill]] %s19058_s14 }
  0x17   :  { %21842 = sst [smem:[#allocation15_spill]] %s19063_s19 }
  0x18   :  { %21843 = sst [smem:[#allocation16_spill]] %s19068_s24 }
  0x19   :  { %s19073_s30 = sld [smem:[%s21762_s0 + %s18959_s26]]  }
  0x1a   :  { %s19078_s6 = sld [smem:[%s21762_s0 + %s18960_s1]]  }
  0x1b   :  { %s19083_s12 = sld [smem:[%s21762_s0 + %s18961_s7]]   ;;  %s18965_s7 = smov 18  }
  0x1c   :  { %s19088_s20 = sld [smem:[%s21762_s0 + %s18962_s15]]   ;;  %s18966_s15 = smov 19  }
  0x1d   :  { %s19093_s27 = sld [smem:[%s21762_s0 + %s18963_s22]]   ;;  %s18967_s22 = smov 20  }
  0x1e   :  { %s19098_s4 = sld [smem:[%s21762_s0 + %s18964_s28]]   ;;  %s18968_s28 = smov 21  }
  0x1f   :  { %21844 = sst [smem:[#allocation17_spill]] %s19073_s30 }
  0x20   :  { %21845 = sst [smem:[#allocation18_spill]] %s19078_s6 }
  0x21   :  { %21846 = sst [smem:[#allocation19_spill]] %s19083_s12 }
  0x22   :  { %21847 = sst [smem:[#allocation20_spill]] %s19088_s20 }
  0x23   :  { %21848 = sst [smem:[#allocation21_spill]] %s19093_s27 }
  0x24   :  { %21849 = sst [smem:[#allocation22_spill]] %s19098_s4 }
  0x25   :  { %s19103_s17 = sld [smem:[%s21762_s0 + %s18965_s7]]   ;;  %s18969_s7 = smov 22  }
  0x26   :  { %s19108_s9 = sld [smem:[%s21762_s0 + %s18966_s15]]   ;;  %s18970_s15 = smov 23  }
  0x27   :  { %s19113_s27 = sld [smem:[%s21762_s0 + %s18967_s22]]   ;;  %s18971_s22 = smov 24  }
  0x28   :  { %s19118_s4 = sld [smem:[%s21762_s0 + %s18968_s28]]   ;;  %s18972_s28 = smov 25  }
  0x2b   :  { %21850 = sst [smem:[#allocation23_spill]] %s19103_s17 }
  0x2c   :  { %21851 = sst [smem:[#allocation24_spill]] %s19108_s9 }
  0x2d   :  { %21852 = sst [smem:[#allocation25_spill]] %s19113_s27 }
  0x2e   :  { %21853 = sst [smem:[#allocation26_spill]] %s19118_s4 }
  0x2f   :  { %s19123_s17 = sld [smem:[%s21762_s0 + %s18969_s7]]   ;;  %s18973_s7 = smov 26  }
  0x30   :  { %s19128_s9 = sld [smem:[%s21762_s0 + %s18970_s15]]   ;;  %s18974_s15 = smov 27  }
  0x31   :  { %s19133_s27 = sld [smem:[%s21762_s0 + %s18971_s22]]   ;;  %s18975_s22 = smov 28  }
  0x32   :  { %s19138_s4 = sld [smem:[%s21762_s0 + %s18972_s28]]   ;;  %s18976_s28 = smov 29  }
  0x35   :  { %21854 = sst [smem:[#allocation27_spill]] %s19123_s17 }
  0x36   :  { %21855 = sst [smem:[#allocation28_spill]] %s19128_s9 }
  0x37   :  { %21856 = sst [smem:[#allocation29_spill]] %s19133_s27 }
  0x38   :  { %21857 = sst [smem:[#allocation30_spill]] %s19138_s4 }
  0x39   :  { %s19143_s17 = sld [smem:[%s21762_s0 + %s18973_s7]]   ;;  %s18977_s7 = smov 30  }
  0x3a   :  { %s19148_s9 = sld [smem:[%s21762_s0 + %s18974_s15]]   ;;  %s18978_s15 = smov 31  }
  0x3b   :  { %s19153_s27 = sld [smem:[%s21762_s0 + %s18975_s22]]   ;;  %s18979_s22 = smov 32  }
  0x3c   :  { %s19158_s4 = sld [smem:[%s21762_s0 + %s18976_s28]]   ;;  %s18980_s28 = smov 33  }
  0x3f   :  { %21858 = sst [smem:[#allocation31_spill]] %s19143_s17 }
  0x40   :  { %21859 = sst [smem:[#allocation32_spill]] %s19148_s9 }
  0x41   :  { %21860 = sst [smem:[#allocation33_spill]] %s19153_s27 }
  0x42   :  { %21861 = sst [smem:[#allocation34_spill]] %s19158_s4 }
  0x43   :  { %s19163_s17 = sld [smem:[%s21762_s0 + %s18977_s7]]   ;;  %s18981_s7 = smov 34  }
  0x44   :  { %s19168_s9 = sld [smem:[%s21762_s0 + %s18978_s15]]   ;;  %s18982_s15 = smov 35  }
  0x45   :  { %s19173_s27 = sld [smem:[%s21762_s0 + %s18979_s22]]   ;;  %s18983_s22 = smov 36  }
  0x46   :  { %s19178_s4 = sld [smem:[%s21762_s0 + %s18980_s28]]   ;;  %s18984_s28 = smov 37  }
  0x49   :  { %21862 = sst [smem:[#allocation35_spill]] %s19163_s17 }
  0x4a   :  { %21863 = sst [smem:[#allocation36_spill]] %s19168_s9 }
  0x4b   :  { %21864 = sst [smem:[#allocation37_spill]] %s19173_s27 }
  0x4c   :  { %21865 = sst [smem:[#allocation38_spill]] %s19178_s4 }
  0x4d   :  { %s19183_s17 = sld [smem:[%s21762_s0 + %s18981_s7]]   ;;  %s18985_s7 = smov 38  }
  0x4e   :  { %s19188_s9 = sld [smem:[%s21762_s0 + %s18982_s15]]   ;;  %s18986_s15 = smov 39  }
  0x4f   :  { %s19193_s27 = sld [smem:[%s21762_s0 + %s18983_s22]]   ;;  %s18987_s22 = smov 40  }
  0x50   :  { %s19198_s4 = sld [smem:[%s21762_s0 + %s18984_s28]]   ;;  %s18988_s28 = smov 41  }
  0x53   :  { %21866 = sst [smem:[#allocation39_spill]] %s19183_s17 }
  0x54   :  { %21867 = sst [smem:[#allocation40_spill]] %s19188_s9 }
  0x55   :  { %21868 = sst [smem:[#allocation41_spill]] %s19193_s27 }
  0x56   :  { %21869 = sst [smem:[#allocation42_spill]] %s19198_s4 }
  0x57   :  { %s19203_s17 = sld [smem:[%s21762_s0 + %s18985_s7]]   ;;  %s18989_s7 = smov 42  }
  0x58   :  { %s19208_s9 = sld [smem:[%s21762_s0 + %s18986_s15]]  }
  0x59   :  { %s19213_s27 = sld [smem:[%s21762_s0 + %s18987_s22]]  }
  0x5a   :  { %s19218_s4 = sld [smem:[%s21762_s0 + %s18988_s28]]  }
  0x5d   :  { %21870 = sst [smem:[#allocation43_spill]] %s19203_s17 }
  0x5e   :  { %21871 = sst [smem:[#allocation44_spill]] %s19208_s9 }
  0x5f   :  { %21872 = sst [smem:[#allocation45_spill]] %s19213_s27 }
  0x60   :  { %21873 = sst [smem:[#allocation46_spill]] %s19218_s4 }
  0x61   :  { %s19223_s17 = sld [smem:[%s21762_s0 + %s18989_s7]]  }
  0x67   :  { %21874 = sst [smem:[#allocation47_spill]] %s19223_s17 }
  0x68   :  { %90 = vsyncpa [#allocation3], 0 }
  0x69   :  { %92 = vsyncpa [#allocation3 + $0x1], 0  ;;  %s19225_s15 = smov 0   ;;  %s19227_s16 = smov 0  }
  0x6a   :  { %s19229_s18 = smov 0   ;;  %s19231_s22 = smov 0  }
  0x6b LB: > { %s21875_s30 = sld [smem:[#allocation17_spill]]  ;;  %s21876_s29 = sld [smem:[#allocation11_spill]]  ;;  %s18946_s22 = sphi %s19231_s22, %s21957_s22   ;;  %s18942_s18 = sphi %s19229_s18, %s21959_s18   ;;  %s18938_s16 = sphi %s19227_s16, %s21961_s16   ;;  %s18934_s15 = sphi %s19225_s15, %s21960_s15  }
  0x6c   : > { %s21877_s20 = sld [smem:[#allocation20_spill]]  ;;  %s21878_s12 = sld [smem:[#allocation19_spill]] }
  0x6d   : > { %s21879_s6 = sld [smem:[#allocation18_spill]]  ;;  %s21880_s24 = sld [smem:[#allocation16_spill]] }
  0x6e   : > { %s21881_s19 = sld [smem:[#allocation15_spill]]  ;;  %s21882_s14 = sld [smem:[#allocation14_spill]] }
  0x6f   : > { %s21883_s8 = sld [smem:[#allocation13_spill]]  ;;  %s21884_s3 = sld [smem:[#allocation12_spill]] }
  0x70   : > { %s21885_s25 = sld [smem:[#allocation10_spill]]  ;;  %s21886_s21 = sld [smem:[#allocation9_spill]] }
  0x71   : > { %21887 = sst [smem:[#allocation48_spill]] %s18934_s15  ;;  %s19246_s0 = sadd.s32 4294967295, %s18946_s22  }
  0x72   : > { %21888 = sst [smem:[#allocation49_spill]] %s18942_s18  ;;  %s14681_s23 = sadd.s32 4294967294, %s18946_s22  }
  0x73   : > { %21889 = sst [smem:[#allocation50_spill]] %s18946_s22  ;;  %s19250_s26 = sadd.s32 1, %s18946_s22  }
  0x74   : > { %21890 = sst [smem:[#allocation51_spill]] %s19246_s0  ;;  %s1007_s28 = sadd.s32 1, %s18942_s18 }
  0x75   : > { %21891 = sst [smem:[#allocation52_spill]] %s19250_s26  ;;  %s1004_s1 = ssub.s32 %s18946_s22, %s19250_s26 }
  0x76   : > { %p1017_p0 = scmp.ne.s32.totalorder %s18942_s18, %s18938_s16  ;;  %p1005_p1 = scmp.eq.s32.totalorder %s1004_s1, 0 }
  0x77   : > { %p1018_p2 = scmp.eq.s32.totalorder %s19246_s0, 1  ;;  %p1023_p3 = scmp.ne.s32.totalorder %s18938_s16, %s18934_s15 }
  0x78   : > { %p1024_p4 = scmp.eq.s32.totalorder %s14681_s23, 1  ;;  %p14684_p7 = scmp.ge.s32.totalorder %s18946_s22, 1 }
  0x79   : > { %s19261_s2 = scalar_select %p1005_p1, %s18942_s18, %s1007_s28  }
  0x7a   : > { %p19263_p5 = por %p1018_p2, %p1017_p0  ;;  %p19267_p6 = por %p1024_p4, %p1023_p3 }
  0x7b   : > { %21892 = sst [smem:[#allocation53_spill]] %s19261_s2  ;;  %p1182_p8 = scmp.lt.s32.totalorder %s18946_s22, 3 }
  0x7c   : > { %s21893_s7 = scalar_select %p19263_p5, 1, 0 }
  0x7d   : > { %s21895_s10 = scalar_select %p19267_p6, 1, 0 }
  0x7e   : > { %21894 = sst [smem:[#allocation54_spill]] %s21893_s7  ;;  %p1183_p9 = pnand %p14684_p7, %p1182_p8 }
  0x7f   : > { %21896 = sst [smem:[#allocation55_spill]] %s21895_s10  ;;  %v1309_v0 = vld [vmem:[%s21886_s21] sm:$0xff] (!%p1183_p9)  ;;  %v1310_v1 = vld [vmem:[%s21886_s21 + $0x8] sm:$0xff] (!%p1183_p9)  ;;  %v1311_v2 = vld [vmem:[%s21886_s21 + $0x10] sm:$0xff] (!%p1183_p9)  ;;  %s21897_s5 = sld [smem:[#allocation5_spill]] (!%p1183_p9)  ;;  %v18990_v3 = vmov (!%p1183_p9), 0.0|0.0  }
  0x80   : > { %1186 = sbr.rel (%p1183_p9) target bundleno = 22737 (0x58d1), region = 188  ;;  %17333 = vmatprep.subr.bf16.mxu0 (!%p1183_p9), %v18990_v3  ;;  %v17334_v4 = vpack.c.bf16 (!%p1183_p9), %v1310_v1, %v1309_v0  ;;  %v1312_v5 = vld [vmem:[%s21886_s21 + $0x18] sm:$0xff] (!%p1183_p9)  ;;  %vm18991_vm0 = vmmov (!%p1183_p9), 0   ;;  %v18992_v6 = vmov (!%p1183_p9), 0.0   ;;  %p1293_p10 = scmp.lt.s32.totalorder (!%p1183_p9), %s19246_s0, 1  ;;  %vm1320_vm1 = vcmask (!%p1183_p9), 261120  }
  0x81   : > { %16882 = vmatprep.mubr.msk.f32.mxu0 (!%p1183_p9), %vm18991_vm0, %v18992_v6  ;;  %16885 = vmatprep.subr.mxu1 (!%p1183_p9), %v18992_v6  ;;  %v17337_v7 = vpack.c.bf16 (!%p1183_p9), %v1312_v5, %v1311_v2  ;;  %s21898_s13 = sld [smem:[#allocation7_spill]] (!%p1183_p9)  ;;  %v14688_v9 = vld [vmem:[%s21885_s25] ss:$0 sm:$0xff] (!%p1183_p9)  ;;  %s21784_s1 = smov (!%p1183_p9), 96   ;;  %vm1402_vm2 = vcmask (!%p1183_p9), 64512   ;;  %v1395_v52 = vld [vmem:[%s21876_s29 + $0x8] sm:$0xff] (!%p1183_p9) }
  0x82   : > { %16887 = vmatprep.mubr.msk.f32.mxu1 (!%p1183_p9), %vm18991_vm0, %v18992_v6  ;;  %17335 = vmatpush3.bf16.msra.mxu0 (!%p1183_p9), %v17334_v4  ;;  %v1394_v30 = vld [vmem:[%s21876_s29] sm:$0xff] (!%p1183_p9)  ;;  %s21906_s2 = smov (!%p1183_p9), 48   ;;  %s21907_s18 = smov (!%p1183_p9), 72  }
  0x83   : > { %17336 = vmatprep.subr.bf16.mxu0 (!%p1183_p9), %v18990_v3  ;;  %v14695_v2 = vld [vmem:[%s21884_s3] ss:$0 sm:$0xff] (!%p1183_p9)  ;;  %s21908_s26 = smov (!%p1183_p9), 104   ;;  %s21922_s10 = sld [smem:[#allocation28_spill]] (!%p1183_p9) }
  0x84   : > { %s21925_s15 = sld [smem:[#allocation33_spill]] (!%p1183_p9)  ;;  %s21933_s22 = sld [smem:[#allocation36_spill]] (!%p1183_p9) }
  0x86   : > { %17338 = vmatpush3.bf16.msra.mxu0 (!%p1183_p9), %v17337_v7 }
  0x87   : > { %s19285_s11 = scalar_select %p1293_p10, %s19246_s0, 1  ;;  %16905 = vmatprep.subr.mxu0 %v18992_v6 }
  0x89   : > { %s21783_s23 = sshll.u32 %s19285_s11, 3 }
  0x8a   : > { %s1296_s28 = scalar_lea.vmem %s21897_s5, %s21783_s23  ;;  %s21786_s23 = smov 56  }
  0x8b   : > { %v19292_v8 = vld [vmem:[%s1296_s28] sm:$0xff]  ;;  %s19312_s28 = scalar_lea.vmem %s21898_s13, %s19285_s11  ;;  %s21796_s5 = smov 64  }
  0x8c   : > { %16883 = vmatmul.mubr.msk.f32.vlgmr.msra.gmra.mrb[0].mxu0 %vm1320_vm1, %v19292_v8  ;;  %v19315_v14 = vld [vmem:[%s19312_s28] ss:$0 sm:$0xff]  ;;  %s21902_s13 = smov 120   ;;  %s21926_s7 = smov %s21925_s15 }
  0x8d   : > { %16907 = vmatprep.mubr.msk.f32.mxu0 %vm18991_vm0, %v18992_v6 }
 0x15f   : > { %v1390_v10 = vpop.f32.mrb[0].mxu0 }
 0x160   : > { %v19300_v11 = vadd.f32 %v14688_v9, %v1390_v10  ;;  %v16884_v12 = vpop.f32.mrb[1].mxu0 }
 0x162   : > { %1400 = vrot.lane.b32.xlu0 %v19300_v11, %s21784_s1  ;;  %s21788_s1 = smov 80  }
 0x1d4   : > { %v1401_v13 = vpop.permute.xlu0 %1400 }
 0x1d5   : > { %16886 = vmatpush3.xpose.msk.msra.mxu1 %vm1402_vm2, %v1401_v13 }
 0x1d6   : > { %16890 = vmatprep.subr.mxu1 %v18992_v6 }
 0x1d8   : > { %16888 = vmatmul.mubr.msk.f32.vlgmr.msra.gmra.mrb[0].mxu1 %vm1402_vm2, %v19300_v11 }
 0x1d9   : > { %16892 = vmatprep.mubr.msk.f32.mxu1 %vm18991_vm0, %v18992_v6 }
 0x2ab   : > { %v1473_v15 = vpop.f32.mrb[0].mxu1 }
 0x2ac   : > { %v1477_v16 = vmul.f32 0.35355338, %v1473_v15  ;;  %v16889_v17 = vpop.f32.mrb[1].mxu1 }
 0x2ad   : > { %v1396_v17 = vld [vmem:[%s21876_s29 + $0x10] sm:$0xff] }
 0x2ae   : > { %v1484_v18 = vadd.f32 %v19315_v14, %v1477_v16 }
 0x2b0   : > { %v1485_v19 = vsel %vm1402_vm2, %v1484_v18, -inf }
 0x2b1   : > { %1486 = vmax.xlane.f32.xlu0 %v1485_v19 }
 0x2c7   : > { %1743 = vrot.lane.b32.xlu0 %v19300_v11, %s21786_s23  ;;  %s21794_s23 = smov 88  }
 0x2cb   : > { %1895 = vrot.lane.b32.xlu0 %v19300_v11, %s21788_s1  ;;  %s21790_s1 = smov 120  }
 0x33e   : > { %v1487_v20 = vpop.xlane.xlu0 %1486 }
 0x33f   : > { %v1488_v21 = vsub.f32 %v1484_v18, %v1487_v20 }
 0x341   : > { %v1489_v22 = vmul.f32 1.442695, %v1488_v21 }
 0x342   : > { %v1744_v23 = vpop.permute.xlu0 %1743 }
 0x343   : > { %18762 = vpow2.f32 %v1489_v22  ;;  %16906 = vmatpush3.msra.mxu0 %v1744_v23 }
 0x344   : > { %16915 = vmatprep.subr.mxu0 %v18992_v6 }
 0x346   : > { %v1896_v47 = vpop.permute.xlu0 %1895 }
 0x34d   : > { %v18763_v24 = vpop.eup %18762 }
 0x34e   : > { %v1491_v25 = vsel %vm1402_vm2, %v18763_v24, 0.0 }
 0x34f   : > { %1492 = vadd.xlane.f32.xlu1 %v1491_v25 }
 0x360   : > { %1496 = vrot.lane.b32.xlu1 %v19300_v11, %s21796_s5  ;;  %s21798_s5 = smov 104  }
 0x364   : > { %1654 = vrot.lane.b32.xlu1 %v19300_v11, %s21794_s23  ;;  %s21802_s23 = smov 72  }
 0x368   : > { %1652 = vrot.lane.b32.xlu1 %v19300_v11, %s21790_s1  ;;  %s21792_s1 = smov 112  }
 0x3dc   : > { %v1493_v26 = vpop.xlane.xlu1 %1492 }
 0x3dd   : > { %18764 = vrcp.f32 %v1493_v26 }
 0x3e0   : > { %v1497_v27 = vpop.permute.xlu1 %1496 }
 0x3e1   : > { %16891 = vmatpush3.msra.mxu1 %v1497_v27 }
 0x3e2   : > { %16895 = vmatprep.subr.mxu1 %v18992_v6 }
 0x3e4   : > { %v1655_v31 = vpop.permute.xlu1 %1654 }
 0x3e7   : > { %v18765_v28 = vpop.eup %18764 }
 0x3e8   : > { %v1495_v29 = vmul.f32 %v18765_v28, %v18763_v24  ;;  %v1653_v34 = vpop.permute.xlu1 %1652 }
 0x3ea   : > { %16893 = vmatmul.mubr.msk.f32.vlgmr.msra.gmra.mrb[2].mxu1 %vm1402_vm2, %v1495_v29 }
 0x3eb   : > { %16896 = vmatpush3.msra.mxu1 %v1394_v30  ;;  %16897 = vmatprep.mubr.msk.f32.mxu1 %vm18991_vm0, %v18992_v6  ;;  %v1397_v30 = vld [vmem:[%s21876_s29 + $0x18] sm:$0xff] }
 0x3ec   : > { %16900 = vmatprep.subr.mxu1 %v18992_v6 }
 0x4bd   : > { %v1568_v32 = vpop.f32.mrb[2].mxu1 }
 0x4be   : > { %v16894_v33 = vpop.f32.mrb[3].mxu1  ;;  %16898 = vmatmul.mubr.msk.f32.vlgmr.msra.gmra.mrb[4].mxu1 %vm1402_vm2, %v1568_v32 }
 0x4bf   : > { %16901 = vmatpush3.xpose.msk.msra.mxu1 %vm1402_vm2, %v1655_v31  ;;  %16902 = vmatprep.mubr.msk.f32.mxu1 %vm18991_vm0, %v18992_v6 }
 0x4c0   : > { %16910 = vmatprep.subr.mxu1 %v18992_v6 }
 0x4c2   : > { %16903 = vmatmul.mubr.msk.f32.vlgmr.msra.gmra.mrb[6].mxu1 %vm1402_vm2, %v1653_v34 }
 0x4c3   : > { %16912 = vmatprep.mubr.msk.f32.mxu1 %vm18991_vm0, %v18992_v6  ;;  %16911 = vmatpush3.msra.mxu1 %v1395_v52  ;;  %v2406_v52 = vld [vmem:[%s21881_s19] sm:$0xff] }
 0x4c4   : > { %16920 = vmatprep.subr.mxu1 %v18992_v6 }
 0x591   : > { %v1641_v35 = vpop.f32.mrb[4].mxu1 }
 0x592   : > { %v16899_v36 = vpop.f32.mrb[5].mxu1  ;;  %v1651_v4 = vadd.f32 %v14695_v2, %v1641_v35 }
 0x595   : > { %v1726_v37 = vpop.f32.mrb[6].mxu1 }
 0x596   : > { %v1730_v38 = vmul.f32 0.35355338, %v1726_v37  ;;  %v16904_v39 = vpop.f32.mrb[7].mxu1 }
 0x598   : > { %v1731_v40 = vadd.f32 %v19315_v14, %v1730_v38 }
 0x59a   : > { %v1732_v41 = vsel %vm1402_vm2, %v1731_v40, -inf }
 0x59b   : > { %1733 = vmax.xlane.f32.xlu1 %v1732_v41 }
 0x628   : > { %v1734_v42 = vpop.xlane.xlu1 %1733 }
 0x629   : > { %v1735_v43 = vsub.f32 %v1731_v40, %v1734_v42 }
 0x62b   : > { %v1736_v44 = vmul.f32 1.442695, %v1735_v43 }
 0x62d   : > { %18766 = vpow2.f32 %v1736_v44 }
 0x637   : > { %v18767_v45 = vpop.eup %18766 }
 0x638   : > { %v1738_v46 = vsel %vm1402_vm2, %v18767_v45, 0.0 }
 0x639   : > { %1739 = vadd.xlane.f32.xlu0 %v1738_v46 }
 0x64f   : > { %1893 = vrot.lane.b32.xlu0 %v19300_v11, %s21792_s1  ;;  %s21804_s1 = smov 48  }
 0x6c6   : > { %v1740_v48 = vpop.xlane.xlu0 %1739 }
 0x6c7   : > { %18768 = vrcp.f32 %v1740_v48  ;;  %v2407_v48 = vld [vmem:[%s21881_s19 + $0x8] sm:$0xff] }
 0x6ca   : > { %v1894_v51 = vpop.permute.xlu0 %1893 }
 0x6d1   : > { %v18769_v49 = vpop.eup %18768 }
 0x6d2   : > { %v1742_v50 = vmul.f32 %v18769_v49, %v18767_v45  ;;  %v2423_v49 = vld [vmem:[%s21881_s19 + $0x88] sm:$0xff] }
 0x6d4   : > { %16908 = vmatmul.mubr.msk.f32.vlgmr.msra.gmra.mrb[2].mxu0 %vm1402_vm2, %v1742_v50  ;;  %v2409_v50 = vld [vmem:[%s21881_s19 + $0x18] sm:$0xff] }
 0x6d5   : > { %16916 = vmatpush3.xpose.msk.msra.mxu0 %vm1402_vm2, %v1896_v47  ;;  %16917 = vmatprep.mubr.msk.f32.mxu0 %vm18991_vm0, %v18992_v6 }
 0x6d6   : > { %16925 = vmatprep.subr.mxu0 %v18992_v6 }
 0x6d8   : > { %16918 = vmatmul.mubr.msk.f32.vlgmr.msra.gmra.mrb[4].mxu0 %vm1402_vm2, %v1894_v51  ;;  %v17339_v51 = vpack.c.bf16 %v2423_v49, %v2407_v48  ;;  %v2430_v48 = vld [vmem:[%s21881_s19 + $0xc0] sm:$0xff] }
 0x6d9   : > { %16927 = vmatprep.mubr.msk.f32.mxu0 %vm18991_vm0, %v18992_v6  ;;  %16926 = vmatpush3.msra.mxu0 %v1396_v17 }
 0x6da   : > { %16935 = vmatprep.subr.mxu0 %v18992_v6 }
 0x7a7   : > { %v1815_v53 = vpop.f32.mrb[2].mxu0 }
 0x7a8   : > { %v16909_v54 = vpop.f32.mrb[3].mxu0  ;;  %16913 = vmatmul.mubr.msk.f32.vlgmr.msra.gmra.mrb[8].mxu1 %vm1402_vm2, %v1815_v53  ;;  %v2422_v53 = vld [vmem:[%s21881_s19 + $0x80] sm:$0xff] }
 0x7a9   : > { %16922 = vmatprep.mubr.msk.f32.mxu1 %vm18991_vm0, %v18992_v6 }
 0x7ab   : > { %v1967_v55 = vpop.f32.mrb[4].mxu0 }
 0x7ac   : > { %v1971_v56 = vmul.f32 0.35355338, %v1967_v55  ;;  %v16919_v57 = vpop.f32.mrb[5].mxu0  ;;  %v17341_v55 = vpack.c.bf16 %v2422_v53, %v2406_v52  ;;  %v2447_v52 = vld [vmem:[%s21881_s19 + $0x148] sm:$0xff] }
 0x7ad   : > { %v2424_v57 = vld [vmem:[%s21881_s19 + $0x90] sm:$0xff]  ;;  %v2463_v53 = vld [vmem:[%s21881_s19 + $0x1c8] sm:$0xff] }
 0x7ae   : > { %v1972_v58 = vadd.f32 %v19315_v14, %v1971_v56  ;;  %v2408_v56 = vld [vmem:[%s21881_s19 + $0x10] sm:$0xff] }
 0x7b0   : > { %v1973_v59 = vsel %vm1402_vm2, %v1972_v58, -inf }
 0x7b1   : > { %1974 = vmax.xlane.f32.xlu1 %v1973_v59  ;;  %v2439_v59 = vld [vmem:[%s21881_s19 + $0x108] sm:$0xff] }
 0x7c2   : > { %1984 = vrot.lane.b32.xlu1 %v19300_v11, %s21804_s1  ;;  %s21901_s1 = smov 88  }
 0x7c6   : > { %2136 = vrot.lane.b32.xlu1 %v19300_v11, %s21802_s23  ;;  %s21900_s23 = smov 64  }
 0x7ca   : > { %2134 = vrot.lane.b32.xlu1 %v19300_v11, %s21798_s5  ;;  %s21800_s5 = smov 40  }
 0x83e   : > { %v1975_v60 = vpop.xlane.xlu1 %1974 }
 0x83f   : > { %v1976_v61 = vsub.f32 %v1972_v58, %v1975_v60  ;;  %v17349_v58 = vpack.c.bf16 %v2424_v57, %v2408_v56  ;;  %v2455_v60 = vld [vmem:[%s21881_s19 + $0x188] sm:$0xff] }
 0x841   : > { %v1977_v62 = vmul.f32 1.442695, %v1976_v61  ;;  %v2441_v61 = vld [vmem:[%s21881_s19 + $0x118] sm:$0xff] }
 0x842   : > { %v1985_v63 = vpop.permute.xlu1 %1984 }
 0x843   : > { %18770 = vpow2.f32 %v1977_v62  ;;  %16921 = vmatpush3.msra.mxu1 %v1985_v63  ;;  %v17343_v62 = vpack.c.bf16 %v2455_v60, %v2439_v59  ;;  %v2457_v63 = vld [vmem:[%s21881_s19 + $0x198] sm:$0xff]  ;;  %v2462_v59 = vld [vmem:[%s21881_s19 + $0x1c0] sm:$0xff]  ;;  %v17375_v60 = vpack.c.bf16 %v2463_v53, %v2447_v52  ;;  %v2493_v52 = vld [vmem:[%s21875_s30 + $0xa8] sm:$0xff] }
 0x844   : > { %16930 = vmatprep.subr.mxu1 %v18992_v6  ;;  %v17351_v2 = vpack.c.bf16 %v2457_v63, %v2441_v61  ;;  %v2464_v63 = vld [vmem:[%s21881_s19 + $0x1d0] sm:$0xff]  ;;  %v2524_v53 = vld [vmem:[%s21875_s30 + $0x1a0] sm:$0xff] }
 0x846   : > { %v2137_v13 = vpop.permute.xlu1 %2136 }
 0x84a   : > { %v2135_v16 = vpop.permute.xlu1 %2134 }
 0x84d   : > { %v18771_v0 = vpop.eup %18770 }
 0x84e   : > { %v1979_v1 = vsel %vm1402_vm2, %v18771_v0, 0.0 }
 0x84f   : > { %1980 = vadd.xlane.f32.xlu0 %v1979_v1  ;;  %v2454_v1 = vld [vmem:[%s21881_s19 + $0x180] sm:$0xff] }
 0x87b   : > { %v1888_v5 = vpop.f32.mrb[8].mxu1 }
 0x87c   : > { %v1892_v7 = vadd.f32 %v1888_v5, %v1651_v4  ;;  %v16914_v9 = vpop.f32.mrb[9].mxu1  ;;  %v2440_v5 = vld [vmem:[%s21881_s19 + $0x110] sm:$0xff] }
 0x8dc   : > { %v1981_v10 = vpop.xlane.xlu0 %1980 }
 0x8dd   : > { %18772 = vrcp.f32 %v1981_v10  ;;  %v2411_v10 = vld [vmem:[%s21881_s19 + $0x28] sm:$0xff] }
 0x8e7   : > { %v18773_v12 = vpop.eup %18772 }
 0x8e8   : > { %v1983_v15 = vmul.f32 %v18773_v12, %v18771_v0  ;;  %v2438_v0 = vld [vmem:[%s21881_s19 + $0x100] sm:$0xff]  ;;  %v2427_v12 = vld [vmem:[%s21881_s19 + $0xa8] sm:$0xff] }
 0x8e9   : > { %v17345_v4 = vpack.c.bf16 %v2454_v1, %v2438_v0  ;;  %v2419_v0 = vld [vmem:[%s21881_s19 + $0x68] sm:$0xff] }
 0x8ea   : > { %16923 = vmatmul.mubr.msk.f32.vlgmr.msra.gmra.mrb[10].mxu1 %vm1402_vm2, %v1983_v15  ;;  %v17355_v15 = vpack.c.bf16 %v2427_v12, %v2411_v10  ;;  %v2435_v1 = vld [vmem:[%s21881_s19 + $0xe8] sm:$0xff]  ;;  %v2434_v10 = vld [vmem:[%s21881_s19 + $0xe0] sm:$0xff] }
 0x8eb   : > { %16931 = vmatpush3.xpose.msk.msra.mxu1 %vm1402_vm2, %v2137_v13  ;;  %16932 = vmatprep.mubr.msk.f32.mxu1 %vm18991_vm0, %v18992_v6  ;;  %v2413_v13 = vld [vmem:[%s21881_s19 + $0x38] sm:$0xff]  ;;  %v17387_v12 = vpack.c.bf16 %v2435_v1, %v2419_v0  ;;  %v2526_v1 = vld [vmem:[%s21875_s30 + $0x1b0] sm:$0xff] }
 0x8ec   : > { %16940 = vmatprep.subr.mxu1 %v18992_v6  ;;  %v2495_v0 = vld [vmem:[%s21875_s30 + $0xb8] sm:$0xff] }
 0x8ee   : > { %16933 = vmatmul.mubr.msk.f32.vlgmr.msra.gmra.mrb[12].mxu1 %vm1402_vm2, %v2135_v16  ;;  %v2429_v16 = vld [vmem:[%s21881_s19 + $0xb8] sm:$0xff] }
 0x8ef   : > { %16942 = vmatprep.mubr.msk.f32.mxu1 %vm18991_vm0, %v18992_v6  ;;  %16941 = vmatpush3.msra.mxu1 %v1397_v30  ;;  %v17363_v17 = vpack.c.bf16 %v2429_v16, %v2413_v13  ;;  %v2459_v30 = vld [vmem:[%s21881_s19 + $0x1a8] sm:$0xff]  ;;  %v2436_v16 = vld [vmem:[%s21881_s19 + $0xf0] sm:$0xff] }
 0x9bd   : > { %v2056_v18 = vpop.f32.mrb[10].mxu1 }
 0x9be   : > { %v16924_v19 = vpop.f32.mrb[11].mxu1  ;;  %16928 = vmatmul.mubr.msk.f32.vlgmr.msra.gmra.mrb[6].mxu0 %vm1402_vm2, %v2056_v18 }
 0x9bf   : > { %16937 = vmatprep.mubr.msk.f32.mxu0 %vm18991_vm0, %v18992_v6 }
 0x9c1   : > { %v2208_v20 = vpop.f32.mrb[12].mxu1 }
 0x9c2   : > { %v2212_v21 = vmul.f32 0.35355338, %v2208_v20  ;;  %v16934_v22 = vpop.f32.mrb[13].mxu1 }
 0x9c4   : > { %v2213_v23 = vadd.f32 %v19315_v14, %v2212_v21  ;;  %v14708_v21 = vld [vmem:[%s21883_s8] ss:$0 sm:$0xff] }
 0x9c6   : > { %v2214_v24 = vsel %vm1402_vm2, %v2213_v23, -inf }
 0x9c7   : > { %2215 = vmax.xlane.f32.xlu1 %v2214_v24  ;;  %v2410_v24 = vld [vmem:[%s21881_s19 + $0x20] sm:$0xff] }
 0xa54   : > { %v2216_v25 = vpop.xlane.xlu1 %2215 }
 0xa55   : > { %v2217_v26 = vsub.f32 %v2213_v23, %v2216_v25  ;;  %v14709_v23 = vld [vmem:[%s21882_s14] ss:$0 sm:$0xff] }
 0xa56   : > { %v2426_v25 = vld [vmem:[%s21881_s19 + $0xa0] sm:$0xff] }
 0xa57   : > { %v2218_v27 = vmul.f32 1.442695, %v2217_v26 }
 0xa59   : > { %18774 = vpow2.f32 %v2218_v27  ;;  %v2412_v27 = vld [vmem:[%s21881_s19 + $0x30] sm:$0xff] }
 0xa63   : > { %v18775_v28 = vpop.eup %18774 }
 0xa64   : > { %v2220_v29 = vsel %vm1402_vm2, %v18775_v28, 0.0 }
 0xa65   : > { %2221 = vadd.xlane.f32.xlu0 %v2220_v29  ;;  %v2443_v29 = vld [vmem:[%s21881_s19 + $0x128] sm:$0xff] }
 0xa7b   : > { %2225 = vrot.lane.b32.xlu0 %v19300_v11, %s21800_s5  ;;  %s21899_s5 = smov 96  }
 0xa91   : > { %v2129_v31 = vpop.f32.mrb[6].mxu0 }
 0xa92   : > { %v2133_v32 = vadd.f32 %v2129_v31, %v1892_v7  ;;  %v16929_v14 = vpop.f32.mrb[7].mxu0  ;;  %v2456_v7 = vld [vmem:[%s21881_s19 + $0x190] sm:$0xff]  ;;  %v2445_v31 = vld [vmem:[%s21881_s19 + $0x138] sm:$0xff] }
 0xa93   : > { %v17353_v9 = vpack.c.bf16 %v2456_v7, %v2440_v5 }
 0xaf2   : > { %v2222_v33 = vpop.xlane.xlu0 %2221 }
 0xaf3   : > { %18776 = vrcp.f32 %v2222_v33  ;;  %v17357_v33 = vpack.c.bf16 %v2426_v25, %v2410_v24  ;;  %v2466_v24 = vld [vmem:[%s21881_s19 + $0x1e0] sm:$0xff] }
 0xaf6   : > { %v2226_v34 = vpop.permute.xlu0 %2225 }
 0xaf7   : > { %16936 = vmatpush3.msra.mxu0 %v2226_v34 }
 0xaf8   : > { %17340 = vmatprep.subr.bf16.mxu0 %v17339_v51  ;;  %v2416_v51 = vld [vmem:[%s21881_s19 + $0x50] sm:$0xff] }
 0xafd   : > { %v18777_v35 = vpop.eup %18776 }
 0xafe   : > { %v2224_v36 = vmul.f32 %v18777_v35, %v18775_v28  ;;  %v2428_v28 = vld [vmem:[%s21881_s19 + $0xb0] sm:$0xff]  ;;  %v2442_v35 = vld [vmem:[%s21881_s19 + $0x120] sm:$0xff] }
 0xaff   : > { %v17365_v34 = vpack.c.bf16 %v2428_v28, %v2412_v27  ;;  %v2452_v27 = vld [vmem:[%s21881_s19 + $0x170] sm:$0xff] }
 0xb00   : > { %16938 = vmatmul.mubr.msk.f32.vlgmr.msra.gmra.mrb[8].mxu0 %vm1402_vm2, %v2224_v36  ;;  %v2458_v36 = vld [vmem:[%s21881_s19 + $0x1a0] sm:$0xff]  ;;  %v2468_v28 = vld [vmem:[%s21881_s19 + $0x1f0] sm:$0xff] }
 0xb01   : > { %2878 = vmatprep.mubr.f32.mxu0 %v18992_v6  ;;  %17342 = vmatpush1.bf16.msra.mxu0 %v17341_v55  ;;  %v2465_v55 = vld [vmem:[%s21881_s19 + $0x1d8] sm:$0xff] }
 0xb02   : > { %17344 = vmatprep.subr.bf16.mxu0 %v17343_v62  ;;  %v2448_v62 = vld [vmem:[%s21881_s19 + $0x150] sm:$0xff] }
 0xb03   : > { %v17385_v7 = vpack.c.bf16 %v2464_v63, %v2448_v62  ;;  %v2509_v62 = vld [vmem:[%s21875_s30 + $0x128] sm:$0xff]  ;;  %v2494_v63 = vld [vmem:[%s21875_s30 + $0xb0] sm:$0xff] }
 0xb05   : > { %17346 = vmatpush1.bf16.msra.mxu0 %v17345_v4  ;;  %v2437_v4 = vld [vmem:[%s21881_s19 + $0xf8] sm:$0xff] }
 0xb06   : > { %17356 = vmatprep.subr.bf16.mxu0 %v17355_v15  ;;  %v2420_v15 = vld [vmem:[%s21881_s19 + $0x70] sm:$0xff] }
 0xbd3   : > { %v2297_v37 = vpop.f32.mrb[8].mxu0 }
 0xbd4   : > { %v16939_v38 = vpop.f32.mrb[9].mxu0  ;;  %16943 = vmatmul.mubr.msk.f32.vlgmr.msra.gmra.mrb[14].mxu1 %vm1402_vm2, %v2297_v37 }
 0xbd5   : > { %2949 = vmatprep.mubr.f32.mxu1 %v18992_v6  ;;  %v17359_v38 = vpack.c.bf16 %v2459_v30, %v2443_v29  ;;  %v2488_v29 = vld [vmem:[%s21875_s30 + $0x80] sm:$0xff]  ;;  %v2489_v30 = vld [vmem:[%s21875_s30 + $0x88] sm:$0xff] }
 0xca7   : > { %v2370_v11 = vpop.f32.mrb[14].mxu1 }
 0xca8   : > { %v2374_v39 = vadd.f32 %v2370_v11, %v2133_v32  ;;  %v16944_v40 = vpop.f32.mrb[15].mxu1  ;;  %v2461_v32 = vld [vmem:[%s21881_s19 + $0x1b8] sm:$0xff] }
 0xca9   : > { %v17367_v11 = vpack.c.bf16 %v2461_v32, %v2445_v31  ;;  %v2460_v40 = vld [vmem:[%s21881_s19 + $0x1b0] sm:$0xff]  ;;  %v2520_v31 = vld [vmem:[%s21875_s30 + $0x180] sm:$0xff]  ;;  %v2521_v32 = vld [vmem:[%s21875_s30 + $0x188] sm:$0xff] }
 0xcaa   : > { %v2375_v41 = vadd.f32 %v2374_v39, %v19292_v8  ;;  %v2425_v8 = vld [vmem:[%s21881_s19 + $0x98] sm:$0xff]  ;;  %v2444_v39 = vld [vmem:[%s21881_s19 + $0x130] sm:$0xff] }
 0xcab   : > { %v17347_v54 = vpack.c.bf16 %v2425_v8, %v2409_v50  ;;  %v2432_v8 = vld [vmem:[%s21881_s19 + $0xd0] sm:$0xff] }
 0xcac   : > { %v2378_v42 = vsel %vm1320_vm1, %v2375_v41, 0.0  ;;  %v17381_v57 = vpack.c.bf16 %v2432_v8, %v2416_v51  ;;  %v2507_v51 = vld [vmem:[%s21875_s30 + $0x118] sm:$0xff]  ;;  %v2492_v8 = vld [vmem:[%s21875_s30 + $0xa0] sm:$0xff] }
 0xcad   : > { %2379 = vadd.xlane.f32.xlu0 %v2378_v42  ;;  %17348 = vmatprep.subr.bf16.mxu1 %v17347_v54  ;;  %v2431_v42 = vld [vmem:[%s21881_s19 + $0xc8] sm:$0xff]  ;;  %v2449_v54 = vld [vmem:[%s21881_s19 + $0x158] sm:$0xff] }
 0xcae   : > { %17350 = vmatpush1.bf16.msra.mxu1 %v17349_v58  ;;  %v2446_v58 = vld [vmem:[%s21881_s19 + $0x140] sm:$0xff]  ;;  %v17383_v61 = vpack.c.bf16 %v2465_v55, %v2449_v54  ;;  %v2525_v54 = vld [vmem:[%s21875_s30 + $0x1a8] sm:$0xff] }
 0xcaf   : > { %17352 = vmatprep.subr.bf16.mxu1 %v17351_v2  ;;  %v2421_v2 = vld [vmem:[%s21881_s19 + $0x78] sm:$0xff]  ;;  %v17377_v5 = vpack.c.bf16 %v2462_v59, %v2446_v58  ;;  %v2477_v58 = vld [vmem:[%s21875_s30 + $0x28] sm:$0xff]  ;;  %v17411_v59 = vpack.c.bf16 %v2493_v52, %v2492_v8  ;;  %v2502_v52 = vld [vmem:[%s21875_s30 + $0xf0] sm:$0xff] }
 0xcb0   : > { %v17395_v13 = vpack.c.bf16 %v2437_v4, %v2421_v2  ;;  %v2527_v2 = vld [vmem:[%s21875_s30 + $0x1b8] sm:$0xff] }
 0xcb2   : > { %17354 = vmatpush1.bf16.msra.mxu1 %v17353_v9  ;;  %v2418_v9 = vld [vmem:[%s21881_s19 + $0x60] sm:$0xff] }
 0xcb3   : > { %17364 = vmatprep.subr.bf16.mxu1 %v17363_v17  ;;  %v2451_v17 = vld [vmem:[%s21881_s19 + $0x168] sm:$0xff] }
 0xd3a   : > { %v2380_v43 = vpop.xlane.xlu0 %2379 }
 0xd3b   : > { %v2382_v44 = vmul.f32 0.03125, %v2380_v43  ;;  %v2417_v43 = vld [vmem:[%s21881_s19 + $0x58] sm:$0xff] }
 0xd3d   : > { %v2383_v45 = vsub.f32 %v2375_v41, %v2382_v44  ;;  %v2415_v41 = vld [vmem:[%s21881_s19 + $0x48] sm:$0xff]  ;;  %v2433_v44 = vld [vmem:[%s21881_s19 + $0xd8] sm:$0xff] }
 0xd3e   : > { %v17371_v49 = vpack.c.bf16 %v2431_v42, %v2415_v41  ;;  %v17379_v50 = vpack.c.bf16 %v2433_v44, %v2417_v43  ;;  %v2491_v41 = vld [vmem:[%s21875_s30 + $0x98] sm:$0xff]  ;;  %v2522_v42 = vld [vmem:[%s21875_s30 + $0x190] sm:$0xff] }
 0xd3f   : > { %v2384_v46 = vmul.f32 %v2383_v45, %v2383_v45  ;;  %v2523_v43 = vld [vmem:[%s21875_s30 + $0x198] sm:$0xff] }
 0xd41   : > { %v2385_v47 = vsel %vm1320_vm1, %v2384_v46, 0.0  ;;  %v17369_v46 = vpack.c.bf16 %v2460_v40, %v2444_v39  ;;  %v2505_v39 = vld [vmem:[%s21875_s30 + $0x108] sm:$0xff]  ;;  %v2490_v40 = vld [vmem:[%s21875_s30 + $0x90] sm:$0xff] }
 0xd42   : > { %2386 = vadd.xlane.f32.xlu1 %v2385_v47  ;;  %v2414_v47 = vld [vmem:[%s21881_s19 + $0x40] sm:$0xff] }
 0xd43   : > { %v17373_v56 = vpack.c.bf16 %v2430_v48, %v2414_v47  ;;  %v2475_v47 = vld [vmem:[%s21875_s30 + $0x18] sm:$0xff]  ;;  %v17407_v48 = vpack.c.bf16 %v2491_v41, %v2490_v40  ;;  %v2501_v40 = vld [vmem:[%s21875_s30 + $0xe8] sm:$0xff]  ;;  %v2532_v41 = vld [vmem:[%s21875_s30 + $0x1e0] sm:$0xff] }
 0xdcf   : > { %v2387_v18 = vpop.xlane.xlu1 %2386 }
 0xdd0   : > { %v2388_v19 = vmul.f32 0.03125, %v2387_v18  ;;  %v2467_v18 = vld [vmem:[%s21881_s19 + $0x1e8] sm:$0xff] }
 0xdd1   : > { %v17391_v25 = vpack.c.bf16 %v2467_v18, %v2451_v17  ;;  %v2497_v17 = vld [vmem:[%s21875_s30 + $0xc8] sm:$0xff]  ;;  %v2528_v18 = vld [vmem:[%s21875_s30 + $0x1c0] sm:$0xff] }
 0xdd2   : > { %v2389_v20 = vadd.f32 1e-05, %v2388_v19  ;;  %v2453_v19 = vld [vmem:[%s21881_s19 + $0x178] sm:$0xff] }
 0xdd4   : > { %18778 = vrsqrt.f32 %v2389_v20  ;;  %v2469_v20 = vld [vmem:[%s21881_s19 + $0x1f8] sm:$0xff] }
 0xdde   : > { %v18779_v22 = vpop.eup %18778 }
 0xddf   : > { %v2391_v26 = vmul.f32 %v18779_v22, %v2383_v45  ;;  %v17361_v45 = vpack.c.bf16 %v2458_v36, %v2442_v35  ;;  %v17397_v22 = vpack.c.bf16 %v2436_v16, %v2420_v15  ;;  %v2473_v35 = vld [vmem:[%s21875_s30 + $0x8] sm:$0xff]  ;;  %v17403_v36 = vpack.c.bf16 %v2489_v30, %v2488_v29  ;;  %v2511_v15 = vld [vmem:[%s21875_s30 + $0x138] sm:$0xff]  ;;  %v2496_v16 = vld [vmem:[%s21875_s30 + $0xc0] sm:$0xff] }
 0xde0   : > { %v2499_v29 = vld [vmem:[%s21875_s30 + $0xd8] sm:$0xff]  ;;  %v2530_v30 = vld [vmem:[%s21875_s30 + $0x1d0] sm:$0xff] }
 0xde1   : > { %v2398_v14 = vmul.f32 %v14708_v21, %v2391_v26  ;;  %v17389_v21 = vpack.c.bf16 %v2434_v10, %v2418_v9  ;;  %v17399_v26 = vpack.c.bf16 %v2469_v20, %v2453_v19  ;;  %v2479_v9 = vld [vmem:[%s21875_s30 + $0x38] sm:$0xff]  ;;  %v17415_v10 = vpack.c.bf16 %v2495_v0, %v2494_v63  ;;  %v2529_v19 = vld [vmem:[%s21875_s30 + $0x1c8] sm:$0xff]  ;;  %v2552_v0 = vld [vmem:[%s21875_s30 + $0x280] sm:$0xff] }
 0xde3   : > { %v19432_v37 = vadd.f32 %v14709_v23, %v2398_v14  ;;  %v2450_v23 = vld [vmem:[%s21881_s19 + $0x160] sm:$0xff] }
 0xde4   : > { %v17393_v14 = vpack.c.bf16 %v2466_v24, %v2450_v23  ;;  %v2481_v23 = vld [vmem:[%s21875_s30 + $0x48] sm:$0xff]  ;;  %v17419_v24 = vpack.c.bf16 %v2497_v17, %v2496_v16 }
 0xde5   : > { %14710 = vmatmul.mubr.msk.f32.vlgmr.msra.gmra.mrb[10].mxu0 %vm1320_vm1, %v19432_v37  ;;  %14711 = vmatmul.mubr.msk.f32.vlgmr.msra.gmra.mrb[16].mxu1 %vm1320_vm1, %v19432_v37 }
 0xde6   : > { %17358 = vmatpush1.bf16.msra.mxu0 %v17357_v33  ;;  %17366 = vmatpush1.bf16.msra.mxu1 %v17365_v34  ;;  %v17401_v33 = vpack.c.bf16 %v2468_v28, %v2452_v27  ;;  %v2472_v34 = vld [vmem:[%s21875_s30] sm:$0xff]  ;;  %v2513_v27 = vld [vmem:[%s21875_s30 + $0x148] sm:$0xff]  ;;  %v2498_v28 = vld [vmem:[%s21875_s30 + $0xd0] sm:$0xff] }
 0xde7   : > { %17360 = vmatprep.subr.bf16.mxu0 %v17359_v38  ;;  %17368 = vmatprep.subr.bf16.mxu1 %v17367_v11  ;;  %v17435_v38 = vpack.c.bf16 %v2521_v32, %v2520_v31  ;;  %v2504_v11 = vld [vmem:[%s21875_s30 + $0x100] sm:$0xff]  ;;  %v17405_v44 = vpack.c.bf16 %v2473_v35, %v2472_v34  ;;  %v2531_v31 = vld [vmem:[%s21875_s30 + $0x1d8] sm:$0xff]  ;;  %v17423_v35 = vpack.c.bf16 %v2499_v29, %v2498_v28 }
 0xde8   : > { %3020 = vmatprep.mubr.f32.mxu0 %v18992_v6  ;;  %3091 = vmatprep.mubr.f32.mxu1 %v18992_v6  ;;  %v2483_v34 = vld [vmem:[%s21875_s30 + $0x58] sm:$0xff] }
 0xdea   : > { %17362 = vmatpush1.bf16.msra.mxu0 %v17361_v45  ;;  %17370 = vmatpush1.bf16.msra.mxu1 %v17369_v46  ;;  %v17437_v45 = vpack.c.bf16 %v2505_v39, %v2504_v11  ;;  %v2474_v46 = vld [vmem:[%s21875_s30 + $0x10] sm:$0xff]  ;;  %v2515_v11 = vld [vmem:[%s21875_s30 + $0x158] sm:$0xff]  ;;  %v2500_v39 = vld [vmem:[%s21875_s30 + $0xe0] sm:$0xff] }
 0xdeb   : > { %17372 = vmatprep.subr.bf16.mxu0 %v17371_v49  ;;  %17380 = vmatprep.subr.bf16.mxu1 %v17379_v50  ;;  %v17439_v49 = vpack.c.bf16 %v2523_v43, %v2522_v42  ;;  %v2506_v50 = vld [vmem:[%s21875_s30 + $0x110] sm:$0xff]  ;;  %v17409_v55 = vpack.c.bf16 %v2475_v47, %v2474_v46  ;;  %v2533_v42 = vld [vmem:[%s21875_s30 + $0x1e8] sm:$0xff]  ;;  %v17427_v46 = vpack.c.bf16 %v2501_v40, %v2500_v39 }
 0xdec   : > { %v17459_v47 = vpack.c.bf16 %v2533_v42, %v2532_v41 }
 0xded   : > { %14712 = vmatmul.mubr.msk.f32.vlgmr.msra.gmra.mrb[12].mxu0 %vm1320_vm1, %v19432_v37  ;;  %14713 = vmatmul.mubr.msk.f32.vlgmr.msra.gmra.mrb[18].mxu1 %vm1320_vm1, %v19432_v37 }
 0xdee   : > { %17374 = vmatpush1.bf16.msra.mxu0 %v17373_v56  ;;  %17382 = vmatpush1.bf16.msra.mxu1 %v17381_v57  ;;  %v17441_v56 = vpack.c.bf16 %v2507_v51, %v2506_v50  ;;  %v2476_v57 = vld [vmem:[%s21875_s30 + $0x20] sm:$0xff]  ;;  %v2517_v50 = vld [vmem:[%s21875_s30 + $0x168] sm:$0xff] }
 0xdef   : > { %17376 = vmatprep.subr.bf16.mxu0 %v17375_v60  ;;  %17384 = vmatprep.subr.bf16.mxu1 %v17383_v61  ;;  %v17443_v60 = vpack.c.bf16 %v2525_v54, %v2524_v53  ;;  %v2508_v61 = vld [vmem:[%s21875_s30 + $0x120] sm:$0xff]  ;;  %v17413_v4 = vpack.c.bf16 %v2477_v58, %v2476_v57  ;;  %v2503_v53 = vld [vmem:[%s21875_s30 + $0xf8] sm:$0xff]  ;;  %v2534_v54 = vld [vmem:[%s21875_s30 + $0x1f0] sm:$0xff] }
 0xdf0   : > { %3162 = vmatprep.mubr.f32.mxu0 %v18992_v6  ;;  %3233 = vmatprep.mubr.f32.mxu1 %v18992_v6  ;;  %v2486_v57 = vld [vmem:[%s21875_s30 + $0x70] sm:$0xff]  ;;  %v2487_v58 = vld [vmem:[%s21875_s30 + $0x78] sm:$0xff] }
 0xdf2   : > { %17378 = vmatpush1.bf16.msra.mxu0 %v17377_v5  ;;  %17386 = vmatpush1.bf16.msra.mxu1 %v17385_v7  ;;  %v17445_v5 = vpack.c.bf16 %v2509_v62, %v2508_v61  ;;  %v2478_v7 = vld [vmem:[%s21875_s30 + $0x30] sm:$0xff]  ;;  %v2519_v62 = vld [vmem:[%s21875_s30 + $0x178] sm:$0xff] }
 0xdf3   : > { %17388 = vmatprep.subr.bf16.mxu0 %v17387_v12  ;;  %17396 = vmatprep.subr.bf16.mxu1 %v17395_v13  ;;  %v17447_v12 = vpack.c.bf16 %v2527_v2, %v2526_v1  ;;  %v2510_v13 = vld [vmem:[%s21875_s30 + $0x130] sm:$0xff]  ;;  %v17417_v20 = vpack.c.bf16 %v2479_v9, %v2478_v7  ;;  %v2553_v1 = vld [vmem:[%s21875_s30 + $0x288] sm:$0xff]  ;;  %v2584_v2 = vld [vmem:[%s21875_s30 + $0x380] sm:$0xff]  ;;  %v2731_v9 = vlaneseq }
 0xdf4   : > { %v2518_v61 = vld [vmem:[%s21875_s30 + $0x170] sm:$0xff] }
 0xdf5   : > { %14714 = vmatmul.mubr.msk.f32.vlgmr.msra.gmra.mrb[14].mxu0 %vm1320_vm1, %v19432_v37  ;;  %14715 = vmatmul.mubr.msk.f32.vlgmr.msra.gmra.mrb[20].mxu1 %vm1320_vm1, %v19432_v37  ;;  %v17465_v63 = vpack.c.bf16 %v2519_v62, %v2518_v61  ;;  %v2541_v61 = vld [vmem:[%s21875_s30 + $0x228] sm:$0xff] }
 0xdf6   : > { %17390 = vmatpush1.bf16.msra.mxu0 %v17389_v21  ;;  %17398 = vmatpush1.bf16.msra.mxu1 %v17397_v22  ;;  %v17449_v21 = vpack.c.bf16 %v2511_v15, %v2510_v13  ;;  %v2480_v22 = vld [vmem:[%s21875_s30 + $0x40] sm:$0xff] }
 0xdf7   : > { %17392 = vmatprep.subr.bf16.mxu0 %v17391_v25  ;;  %17400 = vmatprep.subr.bf16.mxu1 %v17399_v26  ;;  %v17451_v25 = vpack.c.bf16 %v2529_v19, %v2528_v18  ;;  %v2512_v26 = vld [vmem:[%s21875_s30 + $0x140] sm:$0xff]  ;;  %v17421_v32 = vpack.c.bf16 %v2481_v23, %v2480_v22 }
 0xdf8   : > { %3304 = vmatprep.mubr.f32.mxu0 %v18992_v6  ;;  %3375 = vmatprep.mubr.f32.mxu1 %v18992_v6  ;;  %v19567_v15 = vld [vmem:[%s21880_s24] sm:$0xff] }
 0xdfa   : > { %17394 = vmatpush1.bf16.msra.mxu0 %v17393_v14  ;;  %17402 = vmatpush1.bf16.msra.mxu1 %v17401_v33  ;;  %v17453_v14 = vpack.c.bf16 %v2513_v27, %v2512_v26  ;;  %v2482_v33 = vld [vmem:[%s21875_s30 + $0x50] sm:$0xff] }
 0xdfb   : > { %17404 = vmatprep.subr.bf16.mxu0 %v17403_v36  ;;  %17436 = vmatprep.subr.bf16.mxu1 %v17435_v38  ;;  %v17455_v36 = vpack.c.bf16 %v2531_v31, %v2530_v30  ;;  %v2514_v38 = vld [vmem:[%s21875_s30 + $0x150] sm:$0xff]  ;;  %v17425_v43 = vpack.c.bf16 %v2483_v34, %v2482_v33  ;;  %v2568_v30 = vld [vmem:[%s21875_s30 + $0x300] sm:$0xff]  ;;  %v2569_v31 = vld [vmem:[%s21875_s30 + $0x308] sm:$0xff] }
 0xdfc   : > { %v17501_v42 = vpack.c.bf16 %v2569_v31, %v2568_v30  ;;  %v2575_v30 = vld [vmem:[%s21875_s30 + $0x338] sm:$0xff]  ;;  %v2560_v31 = vld [vmem:[%s21875_s30 + $0x2c0] sm:$0xff] }
 0xdfd   : > { %14716 = vmatmul.mubr.msk.f32.vlgmr.msra.gmra.mrb[16].mxu0 %vm1320_vm1, %v19432_v37  ;;  %14717 = vmatmul.mubr.msk.f32.vlgmr.msra.gmra.mrb[22].mxu1 %vm1320_vm1, %v19432_v37 }
 0xdfe   : > { %17406 = vmatpush3.bf16.msra.mxu0 %v17405_v44  ;;  %17438 = vmatpush3.bf16.msra.mxu1 %v17437_v45  ;;  %v17457_v44 = vpack.c.bf16 %v2515_v11, %v2514_v38  ;;  %v2484_v45 = vld [vmem:[%s21875_s30 + $0x60] sm:$0xff]  ;;  %v2586_v38 = vld [vmem:[%s21875_s30 + $0x390] sm:$0xff]  ;;  %v2587_v11 = vld [vmem:[%s21875_s30 + $0x398] sm:$0xff] }
 0xdff   : > { %17408 = vmatprep.subr.bf16.mxu0 %v17407_v48  ;;  %17440 = vmatprep.subr.bf16.mxu1 %v17439_v49  ;;  %v2485_v48 = vld [vmem:[%s21875_s30 + $0x68] sm:$0xff]  ;;  %v2516_v49 = vld [vmem:[%s21875_s30 + $0x160] sm:$0xff] }
 0xe00   : > { %v17429_v51 = vpack.c.bf16 %v2485_v48, %v2484_v45  ;;  %v17461_v8 = vpack.c.bf16 %v2517_v50, %v2516_v49  ;;  %v17503_v48 = vpack.c.bf16 %v2587_v11, %v2586_v38  ;;  %v2570_v49 = vld [vmem:[%s21875_s30 + $0x310] sm:$0xff]  ;;  %v2571_v50 = vld [vmem:[%s21875_s30 + $0x318] sm:$0xff] }
 0xe02   : > { %17410 = vmatpush3.bf16.msra.mxu0 %v17409_v55  ;;  %17442 = vmatpush3.bf16.msra.mxu1 %v17441_v56  ;;  %v17431_v55 = vpack.c.bf16 %v2503_v53, %v2502_v52  ;;  %v2535_v56 = vld [vmem:[%s21875_s30 + $0x1f8] sm:$0xff]  ;;  %v2557_v53 = vld [vmem:[%s21875_s30 + $0x2a8] sm:$0xff] }
 0xe03   : > { %17412 = vmatprep.subr.bf16.mxu0 %v17411_v59  ;;  %17444 = vmatprep.subr.bf16.mxu1 %v17443_v60  ;;  %v17463_v59 = vpack.c.bf16 %v2535_v56, %v2534_v54  ;;  %v17433_v60 = vpack.c.bf16 %v2487_v58, %v2486_v57  ;;  %v2588_v54 = vld [vmem:[%s21875_s30 + $0x3a0] sm:$0xff] }
 0xe06   : > { %17414 = vmatpush3.bf16.msra.mxu0 %v17413_v4  ;;  %17446 = vmatpush3.bf16.msra.mxu1 %v17445_v5  ;;  %v17467_v4 = vpack.c.bf16 %v2553_v1, %v2552_v0  ;;  %v2585_v5 = vld [vmem:[%s21875_s30 + $0x388] sm:$0xff] }
 0xe07   : > { %17416 = vmatprep.subr.bf16.mxu0 %v17415_v10  ;;  %17448 = vmatprep.subr.bf16.mxu1 %v17447_v12  ;;  %v17499_v7 = vpack.c.bf16 %v2585_v5, %v2584_v2  ;;  %v19558_v10 = vshrl.u32 %v2731_v9, 7  ;;  %v2572_v2 = vld [vmem:[%s21875_s30 + $0x320] sm:$0xff]  ;;  %v2558_v5 = vld [vmem:[%s21875_s30 + $0x2b0] sm:$0xff] }
 0xe09   : > { %v19561_v12 = vsub.s32 0, %v19558_v10  ;;  %v19564_v13 = vsub.s32 2, %v19558_v10  ;;  %v19570_v16 = vsub.s32 1, %v19558_v10  ;;  %v19573_v17 = vsub.s32 3, %v19558_v10 }
 0xe0a   : > { %17418 = vmatpush3.bf16.msra.mxu0 %v17417_v20  ;;  %17450 = vmatpush3.bf16.msra.mxu1 %v17449_v21  ;;  %v19589_v34 = vsub.s32 5, %v19558_v10 }
 0xe0b   : > { %17420 = vmatprep.subr.bf16.mxu0 %v17419_v24  ;;  %17452 = vmatprep.subr.bf16.mxu1 %v17451_v25  ;;  %v2734_v18 = vrot.slane %v19567_v15, %v19561_v12  ;;  %v2742_v19 = vrot.slane %v19567_v15, %v19564_v13  ;;  %v2738_v20 = vrot.slane %v19567_v15, %v19570_v16  ;;  %v2536_v24 = vld [vmem:[%s21875_s30 + $0x200] sm:$0xff]  ;;  %v2537_v25 = vld [vmem:[%s21875_s30 + $0x208] sm:$0xff] }
 0xe0c   : > { %v2746_v21 = vrot.slane %v19567_v15, %v19573_v17  ;;  %v17469_v41 = vpack.c.bf16 %v2537_v25, %v2536_v24  ;;  %v2542_v25 = vld [vmem:[%s21875_s30 + $0x230] sm:$0xff] }
 0xe0e   : > { %17422 = vmatpush3.bf16.msra.mxu0 %v17421_v32  ;;  %17454 = vmatpush3.bf16.msra.mxu1 %v17453_v14  ;;  %v2554_v32 = vld [vmem:[%s21875_s30 + $0x290] sm:$0xff] }
 0xe0f   : > { %17424 = vmatprep.subr.bf16.mxu0 %v17423_v35  ;;  %17456 = vmatprep.subr.bf16.mxu1 %v17455_v36  ;;  %v19592_v35 = vsub.s32 7, %v19558_v10  ;;  %v2555_v36 = vld [vmem:[%s21875_s30 + $0x298] sm:$0xff] }
 0xe11   : > { %v2762_v52 = vrot.slane %v19567_v15, %v19592_v35 }
 0xe12   : > { %17426 = vmatpush3.bf16.msra.mxu0 %v17425_v43  ;;  %17458 = vmatpush3.bf16.msra.mxu1 %v17457_v44  ;;  %v2538_v43 = vld [vmem:[%s21875_s30 + $0x210] sm:$0xff]  ;;  %v2539_v44 = vld [vmem:[%s21875_s30 + $0x218] sm:$0xff] }
 0xe13   : > { %17428 = vmatprep.subr.bf16.mxu0 %v17427_v46  ;;  %17460 = vmatprep.subr.bf16.mxu1 %v17459_v47  ;;  %v17471_v47 = vpack.c.bf16 %v2555_v36, %v2554_v32  ;;  %v17473_v58 = vpack.c.bf16 %v2539_v44, %v2538_v43  ;;  %v2561_v32 = vld [vmem:[%s21875_s30 + $0x2c8] sm:$0xff] }
 0xe14   : > { %v17483_v44 = vpack.c.bf16 %v2561_v32, %v2560_v31  ;;  %v2599_v31 = vld [vmem:[%s21875_s30 + $0x3f8] sm:$0xff] }
 0xe16   : > { %17430 = vmatpush3.bf16.msra.mxu0 %v17429_v51  ;;  %17462 = vmatpush3.bf16.msra.mxu1 %v17461_v8  ;;  %v2556_v51 = vld [vmem:[%s21875_s30 + $0x2a0] sm:$0xff]  ;;  %v2754_v8 = vrot.slane %v19567_v15, %v19589_v34 }
 0xe17   : > { %17432 = vmatprep.subr.bf16.mxu0 %v17431_v55  ;;  %17464 = vmatprep.subr.bf16.mxu1 %v17463_v59  ;;  %v2589_v55 = vld [vmem:[%s21875_s30 + $0x3a8] sm:$0xff]  ;;  %v17505_v59 = vpack.c.bf16 %v2571_v50, %v2570_v49  ;;  %v17475_v0 = vpack.c.bf16 %v2557_v53, %v2556_v51  ;;  %v2563_v49 = vld [vmem:[%s21875_s30 + $0x2d8] sm:$0xff]  ;;  %v2594_v50 = vld [vmem:[%s21875_s30 + $0x3d0] sm:$0xff] }
 0xe18   : > { %v17507_v1 = vpack.c.bf16 %v2589_v55, %v2588_v54  ;;  %v2595_v51 = vld [vmem:[%s21875_s30 + $0x3d8] sm:$0xff]  ;;  %v2546_v55 = vld [vmem:[%s21875_s30 + $0x250] sm:$0xff] }
 0xe1a   : > { %17434 = vmatpush3.bf16.msra.mxu0 %v17433_v60  ;;  %17466 = vmatpush3.bf16.msra.mxu1 %v17465_v63  ;;  %v2540_v60 = vld [vmem:[%s21875_s30 + $0x220] sm:$0xff] }
 0xe1b   : > { %17468 = vmatprep.subr.bf16.mxu0 %v17467_v4  ;;  %17500 = vmatprep.subr.bf16.mxu1 %v17499_v7  ;;  %v2573_v4 = vld [vmem:[%s21875_s30 + $0x328] sm:$0xff] }
 0xe1c   : > { %v17509_v24 = vpack.c.bf16 %v2573_v4, %v2572_v2  ;;  %v2596_v2 = vld [vmem:[%s21875_s30 + $0x3e0] sm:$0xff]  ;;  %v2597_v4 = vld [vmem:[%s21875_s30 + $0x3e8] sm:$0xff] }
 0xeb8   : > { %v2880_v22 = vpop.f32.mrb[10].mxu0  ;;  %v2951_v23 = vpop.f32.mrb[16].mxu1 }
 0xeb9   : > { %v2881_v26 = vadd.f32 %v2880_v22, %v2734_v18  ;;  %v2952_v27 = vadd.f32 %v2951_v23, %v2742_v19  ;;  %v2882_v28 = vpop.f32.mrb[11].mxu0  ;;  %v2953_v29 = vpop.f32.mrb[17].mxu1  ;;  %v2559_v18 = vld [vmem:[%s21875_s30 + $0x2b8] sm:$0xff]  ;;  %v2590_v19 = vld [vmem:[%s21875_s30 + $0x3b0] sm:$0xff]  ;;  %v17477_v23 = vpack.c.bf16 %v2541_v61, %v2540_v60  ;;  %v17519_v61 = vpack.c.bf16 %v2595_v51, %v2594_v50  ;;  %v2648_v50 = vld [vmem:[%s21875_s30 + $0x580] sm:$0xff] }
 0xeba   : > { %v2883_v14 = vadd.f32 %v2882_v28, %v2738_v20  ;;  %v2954_v33 = vadd.f32 %v2953_v29, %v2746_v21  ;;  %v2591_v20 = vld [vmem:[%s21875_s30 + $0x3b8] sm:$0xff]  ;;  %v2574_v29 = vld [vmem:[%s21875_s30 + $0x330] sm:$0xff]  ;;  %v2649_v51 = vld [vmem:[%s21875_s30 + $0x588] sm:$0xff] }
 0xebb   : > { %v3382_v45 = vmax.f32 %v2881_v26, 0.0  ;;  %v3384_v46 = vmax.f32 %v2952_v27, 0.0  ;;  %v2543_v26 = vld [vmem:[%s21875_s30 + $0x238] sm:$0xff]  ;;  %v17479_v27 = vpack.c.bf16 %v2559_v18, %v2558_v5  ;;  %v17511_v28 = vpack.c.bf16 %v2591_v20, %v2590_v19  ;;  %v2548_v20 = vld [vmem:[%s21875_s30 + $0x260] sm:$0xff] }
 0xebc   : > { %v3383_v39 = vmax.f32 %v2883_v14, 0.0  ;;  %v3385_v40 = vmax.f32 %v2954_v33, 0.0  ;;  %v2592_v14 = vld [vmem:[%s21875_s30 + $0x3c0] sm:$0xff]  ;;  %v2593_v33 = vld [vmem:[%s21875_s30 + $0x3c8] sm:$0xff]  ;;  %v17481_v11 = vpack.c.bf16 %v2543_v26, %v2542_v25  ;;  %v19662_v5 = vsub.s32 4, %v19558_v10 }
 0xebd   : > { %v17523_v25 = vpack.c.bf16 %v2597_v4, %v2596_v2  ;;  %v2580_v26 = vld [vmem:[%s21875_s30 + $0x360] sm:$0xff]  ;;  %v2618_v2 = vld [vmem:[%s21875_s30 + $0x490] sm:$0xff] }
 0xebe   : > { %3468 = vmatprep.mubr.f32.mxu0 %v3383_v39  ;;  %3538 = vmatprep.mubr.f32.mxu1 %v3385_v40  ;;  %v17513_v39 = vpack.c.bf16 %v2575_v30, %v2574_v29  ;;  %v2544_v40 = vld [vmem:[%s21875_s30 + $0x240] sm:$0xff]  ;;  %v2567_v29 = vld [vmem:[%s21875_s30 + $0x2f8] sm:$0xff]  ;;  %v2598_v30 = vld [vmem:[%s21875_s30 + $0x3f0] sm:$0xff]  ;;  %v2750_v32 = vrot.slane %v19567_v15, %v19662_v5 }
 0xebf   : > { %3469 = vmatmul.mubr.f32.vlgmr.msra.gmra.mrb[18].mxu0 %v3382_v45  ;;  %3539 = vmatmul.mubr.f32.vlgmr.msra.gmra.mrb[24].mxu1 %v3384_v46  ;;  %v17515_v45 = vpack.c.bf16 %v2593_v33, %v2592_v14  ;;  %v2576_v46 = vld [vmem:[%s21875_s30 + $0x340] sm:$0xff] }
 0xec0   : > { %v19609_v56 = vpop.f32.mrb[12].mxu0  ;;  %v19611_v57 = vpop.f32.mrb[18].mxu1  ;;  %17470 = vmatpush3.bf16.msra.mxu0 %v17469_v41  ;;  %17502 = vmatpush3.bf16.msra.mxu1 %v17501_v42  ;;  %v2545_v41 = vld [vmem:[%s21875_s30 + $0x248] sm:$0xff] }
 0xec1   : > { %v3024_v62 = vpop.f32.mrb[13].mxu0  ;;  %v3095_v63 = vpop.f32.mrb[19].mxu1  ;;  %17472 = vmatprep.subr.bf16.mxu0 %v17471_v47  ;;  %17504 = vmatprep.subr.bf16.mxu1 %v17503_v48  ;;  %v2577_v47 = vld [vmem:[%s21875_s30 + $0x348] sm:$0xff]  ;;  %v2562_v48 = vld [vmem:[%s21875_s30 + $0x2d0] sm:$0xff]  ;;  %v17485_v53 = vpack.c.bf16 %v2545_v41, %v2544_v40 }
 0xec2   : > { %v3025_v7 = vadd.f32 %v3024_v62, %v2754_v8  ;;  %v3096_v9 = vadd.f32 %v3095_v63, %v2762_v52  ;;  %v19646_v8 = vsub.s32 6, %v19558_v10  ;;  %v19649_v52 = vld [vmem:[%s21880_s24 + $0x8] sm:$0xff]  ;;  %v17517_v54 = vpack.c.bf16 %v2577_v47, %v2576_v46  ;;  %v2578_v62 = vld [vmem:[%s21875_s30 + $0x350] sm:$0xff]  ;;  %v2579_v63 = vld [vmem:[%s21875_s30 + $0x358] sm:$0xff] }
 0xec3   : > { %v17487_v60 = vpack.c.bf16 %v2563_v49, %v2562_v48  ;;  %v17521_v19 = vpack.c.bf16 %v2579_v63, %v2578_v62  ;;  %v2582_v40 = vld [vmem:[%s21875_s30 + $0x370] sm:$0xff]  ;;  %v2583_v46 = vld [vmem:[%s21875_s30 + $0x378] sm:$0xff]  ;;  %v2616_v47 = vld [vmem:[%s21875_s30 + $0x480] sm:$0xff]  ;;  %v2770_v49 = vrot.slane %v19649_v52, %v19570_v16 }
 0xec4   : > { %v3387_v21 = vmax.f32 %v3025_v7, 0.0  ;;  %v3389_v22 = vmax.f32 %v3096_v9, 0.0  ;;  %17474 = vmatpush3.bf16.msra.mxu0 %v17473_v58  ;;  %17506 = vmatpush3.bf16.msra.mxu1 %v17505_v59  ;;  %v2547_v58 = vld [vmem:[%s21875_s30 + $0x258] sm:$0xff]  ;;  %v2790_v59 = vrot.slane %v19649_v52, %v19646_v8  ;;  %v2758_v41 = vrot.slane %v19567_v15, %v19646_v8  ;;  %v2617_v48 = vld [vmem:[%s21875_s30 + $0x488] sm:$0xff] }
 0xec5   : > { %17476 = vmatprep.subr.bf16.mxu0 %v17475_v0  ;;  %17508 = vmatprep.subr.bf16.mxu1 %v17507_v1  ;;  %v2564_v0 = vld [vmem:[%s21875_s30 + $0x2e0] sm:$0xff]  ;;  %v2565_v1 = vld [vmem:[%s21875_s30 + $0x2e8] sm:$0xff]  ;;  %v17489_v18 = vpack.c.bf16 %v2547_v58, %v2546_v55  ;;  %v17531_v55 = vpack.c.bf16 %v2617_v48, %v2616_v47  ;;  %v3023_v58 = vadd.f32 %v19609_v56, %v2750_v32  ;;  %v2651_v56 = vld [vmem:[%s21875_s30 + $0x598] sm:$0xff] }
 0xec6   : > { %3608 = vmatprep.mubr.f32.mxu0 %v3387_v21  ;;  %3678 = vmatprep.mubr.f32.mxu1 %v3389_v22  ;;  %v2549_v21 = vld [vmem:[%s21875_s30 + $0x268] sm:$0xff]  ;;  %v2652_v32 = vld [vmem:[%s21875_s30 + $0x5a0] sm:$0xff]  ;;  %v2622_v47 = vld [vmem:[%s21875_s30 + $0x4b0] sm:$0xff] }
 0xec7   : > { %v17493_v14 = vpack.c.bf16 %v2549_v21, %v2548_v20  ;;  %v2601_v62 = vld [vmem:[%s21875_s30 + $0x408] sm:$0xff]  ;;  %v2602_v21 = vld [vmem:[%s21875_s30 + $0x410] sm:$0xff]  ;;  %v2623_v48 = vld [vmem:[%s21875_s30 + $0x4b8] sm:$0xff] }
 0xec8   : > { %v19629_v36 = vpop.f32.mrb[14].mxu0  ;;  %v19631_v38 = vpop.f32.mrb[20].mxu1  ;;  %17478 = vmatpush3.bf16.msra.mxu0 %v17477_v23  ;;  %17510 = vmatpush3.bf16.msra.mxu1 %v17509_v24  ;;  %v17491_v24 = vpack.c.bf16 %v2565_v1, %v2564_v0  ;;  %v2632_v0 = vld [vmem:[%s21875_s30 + $0x500] sm:$0xff]  ;;  %v2633_v1 = vld [vmem:[%s21875_s30 + $0x508] sm:$0xff] }
 0xec9   : > { %v19635_v42 = vpop.f32.mrb[15].mxu0  ;;  %v19637_v43 = vpop.f32.mrb[21].mxu1  ;;  %17480 = vmatprep.subr.bf16.mxu0 %v17479_v27  ;;  %17512 = vmatprep.subr.bf16.mxu1 %v17511_v28  ;;  %v2581_v27 = vld [vmem:[%s21875_s30 + $0x368] sm:$0xff]  ;;  %v2566_v28 = vld [vmem:[%s21875_s30 + $0x2f0] sm:$0xff] }
 0xeca   : > { %v17525_v33 = vpack.c.bf16 %v2581_v27, %v2580_v26  ;;  %v3167_v63 = vadd.f32 %v19635_v42, %v2770_v49  ;;  %v17565_v42 = vpack.c.bf16 %v2633_v1, %v2632_v0  ;;  %v2654_v49 = vld [vmem:[%s21875_s30 + $0x5b0] sm:$0xff]  ;;  %v2657_v0 = vld [vmem:[%s21875_s30 + $0x5c8] sm:$0xff] }
 0xecc   : > { %17482 = vmatpush3.bf16.msra.mxu0 %v17481_v11  ;;  %17514 = vmatpush3.bf16.msra.mxu1 %v17513_v39  ;;  %v2550_v11 = vld [vmem:[%s21875_s30 + $0x270] sm:$0xff]  ;;  %v2551_v39 = vld [vmem:[%s21875_s30 + $0x278] sm:$0xff] }
 0xecd   : > { %17484 = vmatprep.subr.bf16.mxu0 %v17483_v44  ;;  %17516 = vmatprep.subr.bf16.mxu1 %v17515_v45  ;;  %v17495_v44 = vpack.c.bf16 %v2567_v29, %v2566_v28  ;;  %v17527_v45 = vpack.c.bf16 %v2599_v31, %v2598_v30  ;;  %v17497_v15 = vpack.c.bf16 %v2551_v39, %v2550_v11  ;;  %v2635_v28 = vld [vmem:[%s21875_s30 + $0x518] sm:$0xff]  ;;  %v2620_v29 = vld [vmem:[%s21875_s30 + $0x4a0] sm:$0xff]  ;;  %v2621_v30 = vld [vmem:[%s21875_s30 + $0x4a8] sm:$0xff] }
 0xece   : > { %v17539_v39 = vpack.c.bf16 %v2621_v30, %v2620_v29  ;;  %v2642_v29 = vld [vmem:[%s21875_s30 + $0x550] sm:$0xff] }
 0xed0   : > { %v19664_v7 = vpop.f32.mrb[16].mxu0  ;;  %v3377_v9 = vpop.f32.mrb[22].mxu1  ;;  %17486 = vmatpush3.bf16.msra.mxu0 %v17485_v53  ;;  %17518 = vmatpush3.bf16.msra.mxu1 %v17517_v54  ;;  %v2778_v53 = vrot.slane %v19649_v52, %v19573_v17  ;;  %v17529_v54 = vpack.c.bf16 %v2583_v46, %v2582_v40  ;;  %v2604_v40 = vld [vmem:[%s21875_s30 + $0x420] sm:$0xff]  ;;  %v2637_v46 = vld [vmem:[%s21875_s30 + $0x528] sm:$0xff] }
 0xed1   : > { %v19668_v22 = vadd.f32 %v3377_v9, %v2790_v59  ;;  %v19670_v23 = vpop.f32.mrb[17].mxu0  ;;  %v19672_v10 = vpop.f32.mrb[23].mxu1  ;;  %17488 = vmatprep.subr.bf16.mxu0 %v17487_v60  ;;  %17520 = vmatprep.subr.bf16.mxu1 %v17519_v61  ;;  %v3094_v59 = vadd.f32 %v19611_v57, %v2758_v41  ;;  %v17563_v60 = vpack.c.bf16 %v2649_v51, %v2648_v50  ;;  %v2600_v61 = vld [vmem:[%s21875_s30 + $0x400] sm:$0xff]  ;;  %v2619_v9 = vld [vmem:[%s21875_s30 + $0x498] sm:$0xff]  ;;  %v2605_v41 = vld [vmem:[%s21875_s30 + $0x428] sm:$0xff] }
 0xed2   : > { %v3238_v4 = vadd.f32 %v19637_v43, %v2778_v53  ;;  %v17533_v57 = vpack.c.bf16 %v2601_v62, %v2600_v61  ;;  %v3391_v43 = vmax.f32 %v3167_v63, 0.0  ;;  %v17535_v26 = vpack.c.bf16 %v2619_v9, %v2618_v2  ;;  %v2655_v50 = vld [vmem:[%s21875_s30 + $0x5b8] sm:$0xff]  ;;  %v2624_v61 = vld [vmem:[%s21875_s30 + $0x4c0] sm:$0xff]  ;;  %v2625_v62 = vld [vmem:[%s21875_s30 + $0x4c8] sm:$0xff] }
 0xed3   : > { %v3388_v20 = vmax.f32 %v3094_v59, 0.0  ;;  %v17541_v51 = vpack.c.bf16 %v2605_v41, %v2604_v40  ;;  %v17575_v59 = vpack.c.bf16 %v2655_v50, %v2654_v49  ;;  %v2656_v63 = vld [vmem:[%s21875_s30 + $0x5c0] sm:$0xff]  ;;  %v2630_v49 = vld [vmem:[%s21875_s30 + $0x4f0] sm:$0xff]  ;;  %v2631_v50 = vld [vmem:[%s21875_s30 + $0x4f8] sm:$0xff] }
 0xed4   : > { %17490 = vmatpush3.bf16.msra.mxu0 %v17489_v18  ;;  %17522 = vmatpush3.bf16.msra.mxu1 %v17521_v19  ;;  %v2650_v18 = vld [vmem:[%s21875_s30 + $0x590] sm:$0xff]  ;;  %v3386_v19 = vmax.f32 %v3023_v58, 0.0  ;;  %v3393_v31 = vmax.f32 %v3238_v4, 0.0  ;;  %v17547_v4 = vpack.c.bf16 %v2625_v62, %v2624_v61  ;;  %v2608_v9 = vld [vmem:[%s21875_s30 + $0x440] sm:$0xff]  ;;  %v2774_v62 = vrot.slane %v19649_v52, %v19564_v13 }
 0xed5   : > { %17492 = vmatprep.subr.bf16.mxu0 %v17491_v24  ;;  %17524 = vmatprep.subr.bf16.mxu1 %v17523_v25  ;;  %v2603_v24 = vld [vmem:[%s21875_s30 + $0x418] sm:$0xff]  ;;  %v2634_v25 = vld [vmem:[%s21875_s30 + $0x510] sm:$0xff]  ;;  %v17567_v27 = vpack.c.bf16 %v2651_v56, %v2650_v18  ;;  %v2609_v18 = vld [vmem:[%s21875_s30 + $0x448] sm:$0xff] }
 0xed6   : > { %v17569_v11 = vpack.c.bf16 %v2635_v28, %v2634_v25  ;;  %v2638_v58 = vld [vmem:[%s21875_s30 + $0x530] sm:$0xff]  ;;  %v2640_v56 = vld [vmem:[%s21875_s30 + $0x540] sm:$0xff]  ;;  %v17549_v25 = vpack.c.bf16 %v2609_v18, %v2608_v9  ;;  %v2611_v28 = vld [vmem:[%s21875_s30 + $0x458] sm:$0xff] }
 0xed7   : > { %v2646_v61 = vld [vmem:[%s21875_s30 + $0x570] sm:$0xff]  ;;  %v2712_v9 = vld [vmem:[%s21875_s30 + $0x780] sm:$0xff]  ;;  %v2713_v18 = vld [vmem:[%s21875_s30 + $0x788] sm:$0xff] }
 0xed8   : > { %17494 = vmatpush3.bf16.msra.mxu0 %v17493_v14  ;;  %17526 = vmatpush3.bf16.msra.mxu1 %v17525_v33  ;;  %v2653_v14 = vld [vmem:[%s21875_s30 + $0x5a8] sm:$0xff]  ;;  %v17537_v33 = vpack.c.bf16 %v2603_v24, %v2602_v21  ;;  %v2658_v21 = vld [vmem:[%s21875_s30 + $0x5d0] sm:$0xff]  ;;  %v2659_v24 = vld [vmem:[%s21875_s30 + $0x5d8] sm:$0xff] }
 0xed9   : > { %17496 = vmatprep.subr.bf16.mxu0 %v17495_v44  ;;  %17528 = vmatprep.subr.bf16.mxu1 %v17527_v45  ;;  %v2636_v44 = vld [vmem:[%s21875_s30 + $0x520] sm:$0xff]  ;;  %v17571_v45 = vpack.c.bf16 %v2653_v14, %v2652_v32  ;;  %v17583_v30 = vpack.c.bf16 %v2659_v24, %v2658_v21  ;;  %v2629_v14 = vld [vmem:[%s21875_s30 + $0x4e8] sm:$0xff] }
 0xeda   : > { %v17573_v53 = vpack.c.bf16 %v2637_v46, %v2636_v44  ;;  %v2628_v32 = vld [vmem:[%s21875_s30 + $0x4e0] sm:$0xff]  ;;  %v2665_v24 = vld [vmem:[%s21875_s30 + $0x608] sm:$0xff] }
 0xedb   : > { %v17555_v41 = vpack.c.bf16 %v2629_v14, %v2628_v32  ;;  %v2612_v44 = vld [vmem:[%s21875_s30 + $0x460] sm:$0xff]  ;;  %v2714_v32 = vld [vmem:[%s21875_s30 + $0x790] sm:$0xff] }
 0xedc   : > { %17498 = vmatpush3.bf16.msra.mxu0 %v17497_v15  ;;  %17530 = vmatpush3.bf16.msra.mxu1 %v17529_v54  ;;  %v17543_v15 = vpack.c.bf16 %v2623_v48, %v2622_v47  ;;  %v2606_v54 = vld [vmem:[%s21875_s30 + $0x430] sm:$0xff]  ;;  %v2644_v46 = vld [vmem:[%s21875_s30 + $0x560] sm:$0xff]  ;;  %v2645_v48 = vld [vmem:[%s21875_s30 + $0x568] sm:$0xff] }
 0xedd   : > { %17532 = vmatprep.subr.bf16.mxu0 %v17531_v55  ;;  %17564 = vmatprep.subr.bf16.mxu1 %v17563_v60  ;;  %v2607_v55 = vld [vmem:[%s21875_s30 + $0x438] sm:$0xff]  ;;  %v2664_v21 = vld [vmem:[%s21875_s30 + $0x600] sm:$0xff] }
 0xede   : > { %v2639_v60 = vld [vmem:[%s21875_s30 + $0x538] sm:$0xff]  ;;  %v17545_v1 = vpack.c.bf16 %v2607_v55, %v2606_v54  ;;  %v2766_v54 = vrot.slane %v19649_v52, %v19561_v12  ;;  %v17589_v55 = vpack.c.bf16 %v2645_v48, %v2644_v46  ;;  %v2716_v48 = vld [vmem:[%s21875_s30 + $0x7a0] sm:$0xff] }
 0xedf   : > { %3609 = vmatmul.mubr.f32.vlgmr.msra.gmra.mrb[20].mxu0 %v3386_v19  ;;  %3679 = vmatmul.mubr.f32.vlgmr.msra.gmra.mrb[26].mxu1 %v3388_v20  ;;  %v17577_v2 = vpack.c.bf16 %v2639_v60, %v2638_v58  ;;  %v2641_v19 = vld [vmem:[%s21875_s30 + $0x548] sm:$0xff]  ;;  %v2626_v20 = vld [vmem:[%s21875_s30 + $0x4d0] sm:$0xff]  ;;  %v17559_v58 = vpack.c.bf16 %v2631_v50, %v2630_v49  ;;  %v2615_v60 = vld [vmem:[%s21875_s30 + $0x478] sm:$0xff] }
 0xee0   : > { %17534 = vmatpush3.bf16.msra.mxu0 %v17533_v57  ;;  %3748 = vmatprep.mubr.f32.mxu0 %v3391_v43  ;;  %v17579_v57 = vpack.c.bf16 %v2657_v0, %v2656_v63  ;;  %v17581_v43 = vpack.c.bf16 %v2641_v19, %v2640_v56  ;;  %v2647_v0 = vld [vmem:[%s21875_s30 + $0x578] sm:$0xff]  ;;  %v2794_v56 = vrot.slane %v19649_v52, %v19592_v35  ;;  %v2717_v49 = vld [vmem:[%s21875_s30 + $0x7a8] sm:$0xff] }
 0xee1   : > { %17566 = vmatpush3.bf16.msra.mxu1 %v17565_v42  ;;  %3818 = vmatprep.mubr.f32.mxu1 %v3393_v31  ;;  %v2627_v42 = vld [vmem:[%s21875_s30 + $0x4d8] sm:$0xff]  ;;  %v3165_v19 = vadd.f32 %v19629_v36, %v2766_v54  ;;  %v2682_v36 = vld [vmem:[%s21875_s30 + $0x690] sm:$0xff]  ;;  %v2668_v54 = vld [vmem:[%s21875_s30 + $0x620] sm:$0xff] }
 0xee2   : > { %17536 = vmatprep.subr.bf16.mxu0 %v17535_v26  ;;  %17568 = vmatprep.subr.bf16.mxu1 %v17567_v27  ;;  %v17551_v26 = vpack.c.bf16 %v2627_v42, %v2626_v20  ;;  %v2610_v27 = vld [vmem:[%s21875_s30 + $0x450] sm:$0xff]  ;;  %v2643_v31 = vld [vmem:[%s21875_s30 + $0x558] sm:$0xff]  ;;  %v17593_v20 = vpack.c.bf16 %v2647_v0, %v2646_v61 }
 0xee3   : > { %v17585_v40 = vpack.c.bf16 %v2643_v31, %v2642_v29  ;;  %v2683_v29 = vld [vmem:[%s21875_s30 + $0x698] sm:$0xff]  ;;  %v17597_v31 = vpack.c.bf16 %v2665_v24, %v2664_v21  ;;  %v3390_v14 = vmax.f32 %v3165_v19, 0.0  ;;  %v2686_v61 = vld [vmem:[%s21875_s30 + $0x6b0] sm:$0xff]  ;;  %v2720_v21 = vld [vmem:[%s21875_s30 + $0x7c0] sm:$0xff] }
 0xee4   : > { %17538 = vmatpush3.bf16.msra.mxu0 %v17537_v33  ;;  %v2660_v33 = vld [vmem:[%s21875_s30 + $0x5e0] sm:$0xff]  ;;  %v2719_v0 = vld [vmem:[%s21875_s30 + $0x7b8] sm:$0xff]  ;;  %v2721_v24 = vld [vmem:[%s21875_s30 + $0x7c8] sm:$0xff] }
 0xee5   : > { %17570 = vmatpush3.bf16.msra.mxu1 %v17569_v11  ;;  %17540 = vmatprep.subr.bf16.mxu0 %v17539_v39  ;;  %v2661_v11 = vld [vmem:[%s21875_s30 + $0x5e8] sm:$0xff]  ;;  %v17553_v39 = vpack.c.bf16 %v2611_v28, %v2610_v27  ;;  %v2703_v19 = vld [vmem:[%s21875_s30 + $0x738] sm:$0xff] }
 0xee6   : > { %17572 = vmatprep.subr.bf16.mxu1 %v17571_v45  ;;  %v2613_v45 = vld [vmem:[%s21875_s30 + $0x468] sm:$0xff]  ;;  %v17587_v47 = vpack.c.bf16 %v2661_v11, %v2660_v33  ;;  %v2666_v11 = vld [vmem:[%s21875_s30 + $0x610] sm:$0xff] }
 0xee7   : > { %v2697_v27 = vld [vmem:[%s21875_s30 + $0x708] sm:$0xff] }
 0xee8   : > { %17542 = vmatpush3.bf16.msra.mxu0 %v17541_v51  ;;  %v2662_v51 = vld [vmem:[%s21875_s30 + $0x5f0] sm:$0xff] }
 0xee9   : > { %17574 = vmatpush3.bf16.msra.mxu1 %v17573_v53  ;;  %17544 = vmatprep.subr.bf16.mxu0 %v17543_v15  ;;  %v2663_v53 = vld [vmem:[%s21875_s30 + $0x5f8] sm:$0xff]  ;;  %v17557_v15 = vpack.c.bf16 %v2613_v45, %v2612_v44  ;;  %v2685_v45 = vld [vmem:[%s21875_s30 + $0x6a8] sm:$0xff] }
 0xeea   : > { %17576 = vmatprep.subr.bf16.mxu1 %v17575_v59  ;;  %v2614_v59 = vld [vmem:[%s21875_s30 + $0x470] sm:$0xff]  ;;  %v17591_v63 = vpack.c.bf16 %v2663_v53, %v2662_v51  ;;  %v2699_v44 = vld [vmem:[%s21875_s30 + $0x718] sm:$0xff] }
 0xeec   : > { %17546 = vmatpush3.bf16.msra.mxu0 %v17545_v1  ;;  %v2680_v1 = vld [vmem:[%s21875_s30 + $0x680] sm:$0xff] }
 0xeed   : > { %17578 = vmatpush3.bf16.msra.mxu1 %v17577_v2  ;;  %17548 = vmatprep.subr.bf16.mxu0 %v17547_v4  ;;  %v2681_v2 = vld [vmem:[%s21875_s30 + $0x688] sm:$0xff]  ;;  %v2786_v4 = vrot.slane %v19649_v52, %v19589_v34 }
 0xeee   : > { %17580 = vmatprep.subr.bf16.mxu1 %v17579_v57  ;;  %v17561_v57 = vpack.c.bf16 %v2615_v60, %v2614_v59  ;;  %v17595_v42 = vpack.c.bf16 %v2681_v2, %v2680_v1  ;;  %v17635_v59 = vpack.c.bf16 %v2717_v49, %v2716_v48  ;;  %v2701_v60 = vld [vmem:[%s21875_s30 + $0x728] sm:$0xff] }
 0xeef   : > { %v3309_v28 = vadd.f32 %v19670_v23, %v2786_v4  ;;  %v2698_v23 = vld [vmem:[%s21875_s30 + $0x710] sm:$0xff]  ;;  %v2725_v48 = vld [vmem:[%s21875_s30 + $0x7e8] sm:$0xff] }
 0xef0   : > { %17550 = vmatpush3.bf16.msra.mxu0 %v17549_v25  ;;  %v3236_v25 = vadd.f32 %v19631_v38, %v2774_v62  ;;  %v2715_v38 = vld [vmem:[%s21875_s30 + $0x798] sm:$0xff]  ;;  %v17633_v53 = vpack.c.bf16 %v2699_v44, %v2698_v23  ;;  %v2674_v23 = vld [vmem:[%s21875_s30 + $0x650] sm:$0xff] }
 0xef1   : > { %17582 = vmatpush3.bf16.msra.mxu1 %v17581_v43  ;;  %17552 = vmatprep.subr.bf16.mxu0 %v17551_v26  ;;  %v17627_v43 = vpack.c.bf16 %v2713_v18, %v2712_v9  ;;  %v2696_v26 = vld [vmem:[%s21875_s30 + $0x700] sm:$0xff]  ;;  %v3395_v46 = vmax.f32 %v3309_v28, 0.0  ;;  %v2687_v62 = vld [vmem:[%s21875_s30 + $0x6b8] sm:$0xff]  ;;  %v2670_v9 = vld [vmem:[%s21875_s30 + $0x630] sm:$0xff] }
 0xef2   : > { %17584 = vmatprep.subr.bf16.mxu1 %v17583_v30  ;;  %v3380_v30 = vadd.f32 %v19672_v10, %v2794_v56  ;;  %v17629_v33 = vpack.c.bf16 %v2697_v27, %v2696_v26  ;;  %v2684_v10 = vld [vmem:[%s21875_s30 + $0x6a0] sm:$0xff]  ;;  %v17607_v4 = vpack.c.bf16 %v2687_v62, %v2686_v61  ;;  %v2671_v18 = vld [vmem:[%s21875_s30 + $0x638] sm:$0xff]  ;;  %v2702_v56 = vld [vmem:[%s21875_s30 + $0x730] sm:$0xff] }
 0xef3   : > { %v2672_v27 = vld [vmem:[%s21875_s30 + $0x640] sm:$0xff]  ;;  %v2673_v28 = vld [vmem:[%s21875_s30 + $0x648] sm:$0xff]  ;;  %v2726_v61 = vld [vmem:[%s21875_s30 + $0x7f0] sm:$0xff] }
 0xef4   : > { %17554 = vmatpush3.bf16.msra.mxu0 %v17553_v39  ;;  %v2667_v39 = vld [vmem:[%s21875_s30 + $0x618] sm:$0xff]  ;;  %v3397_v50 = vmax.f32 %v3380_v30, 0.0  ;;  %v2705_v30 = vld [vmem:[%s21875_s30 + $0x748] sm:$0xff] }
 0xef5   : > { %17586 = vmatpush3.bf16.msra.mxu1 %v17585_v40  ;;  %17556 = vmatprep.subr.bf16.mxu0 %v17555_v41  ;;  %v3392_v40 = vmax.f32 %v3236_v25, 0.0  ;;  %v17599_v41 = vpack.c.bf16 %v2683_v29, %v2682_v36  ;;  %v17601_v51 = vpack.c.bf16 %v2667_v39, %v2666_v11  ;;  %v17609_v25 = vpack.c.bf16 %v2671_v18, %v2670_v9  ;;  %v2704_v36 = vld [vmem:[%s21875_s30 + $0x740] sm:$0xff]  ;;  %v2727_v62 = vld [vmem:[%s21875_s30 + $0x7f8] sm:$0xff] }
 0xef6   : > { %17588 = vmatprep.subr.bf16.mxu1 %v17587_v47  ;;  %v17631_v47 = vpack.c.bf16 %v2715_v38, %v2714_v32  ;;  %v17643_v29 = vpack.c.bf16 %v2721_v24, %v2720_v21  ;;  %v2691_v32 = vld [vmem:[%s21875_s30 + $0x6d8] sm:$0xff]  ;;  %v2722_v38 = vld [vmem:[%s21875_s30 + $0x7d0] sm:$0xff]  ;;  %v17645_v11 = vpack.c.bf16 %v2705_v30, %v2704_v36  ;;  %v17655_v18 = vpack.c.bf16 %v2727_v62, %v2726_v61 }
 0xef7   : > { %v2679_v9 = vld [vmem:[%s21875_s30 + $0x678] sm:$0xff]  ;;  %v3396_v21 = vmax.f32 %v19668_v22, 0.0 }
 0xef8   : > { %17558 = vmatpush3.bf16.msra.mxu0 %v17557_v15  ;;  %v17603_v15 = vpack.c.bf16 %v2685_v45, %v2684_v10  ;;  %v2707_v10 = vld [vmem:[%s21875_s30 + $0x758] sm:$0xff]  ;;  %v2692_v45 = vld [vmem:[%s21875_s30 + $0x6e0] sm:$0xff] }
 0xef9   : > { %17590 = vmatpush3.bf16.msra.mxu1 %v17589_v55  ;;  %17560 = vmatprep.subr.bf16.mxu0 %v17559_v58  ;;  %v2669_v55 = vld [vmem:[%s21875_s30 + $0x628] sm:$0xff]  ;;  %v2700_v58 = vld [vmem:[%s21875_s30 + $0x720] sm:$0xff] }
 0xefa   : > { %17592 = vmatprep.subr.bf16.mxu1 %v17591_v63  ;;  %v2718_v63 = vld [vmem:[%s21875_s30 + $0x7b0] sm:$0xff]  ;;  %v17605_v1 = vpack.c.bf16 %v2669_v55, %v2668_v54  ;;  %v17637_v2 = vpack.c.bf16 %v2701_v60, %v2700_v58  ;;  %v2708_v54 = vld [vmem:[%s21875_s30 + $0x760] sm:$0xff]  ;;  %v2709_v58 = vld [vmem:[%s21875_s30 + $0x768] sm:$0xff] }
 0xefb   : > { %v2695_v60 = vld [vmem:[%s21875_s30 + $0x6f8] sm:$0xff] }
 0xefc   : > { %17562 = vmatpush3.bf16.msra.mxu0 %v17561_v57  ;;  %v17639_v57 = vpack.c.bf16 %v2719_v0, %v2718_v63  ;;  %v2782_v0 = vrot.slane %v19649_v52, %v19662_v5 }
 0xefd   : > { %17594 = vmatpush3.bf16.msra.mxu1 %v17593_v20  ;;  %17596 = vmatprep.subr.bf16.mxu0 %v17595_v42  ;;  %v2688_v20 = vld [vmem:[%s21875_s30 + $0x6c0] sm:$0xff]  ;;  %v2689_v42 = vld [vmem:[%s21875_s30 + $0x6c8] sm:$0xff] }
 0xefe   : > { %17628 = vmatprep.subr.bf16.mxu1 %v17627_v43  ;;  %v17641_v43 = vpack.c.bf16 %v2703_v19, %v2702_v56  ;;  %v17611_v26 = vpack.c.bf16 %v2689_v42, %v2688_v20  ;;  %v2710_v56 = vld [vmem:[%s21875_s30 + $0x770] sm:$0xff]  ;;  %v3307_v20 = vadd.f32 %v19664_v7, %v2782_v0  ;;  %v14721_v0 = vld [vmem:[%s21886_s21 + $0x20] sm:$0xff] }
 0xeff   : > { %3749 = vmatmul.mubr.f32.vlgmr.msra.gmra.mrb[22].mxu0 %v3390_v14  ;;  %v2723_v14 = vld [vmem:[%s21875_s30 + $0x7d8] sm:$0xff] }
 0xf00   : > { %3819 = vmatmul.mubr.f32.vlgmr.msra.gmra.mrb[28].mxu1 %v3392_v40  ;;  %17598 = vmatpush3.bf16.msra.mxu0 %v17597_v31  ;;  %v2690_v31 = vld [vmem:[%s21875_s30 + $0x6d0] sm:$0xff]  ;;  %v2675_v40 = vld [vmem:[%s21875_s30 + $0x658] sm:$0xff]  ;;  %v17647_v44 = vpack.c.bf16 %v2723_v14, %v2722_v38  ;;  %v3394_v52 = vmax.f32 %v3307_v20, 0.0  ;;  %v14719_v20 = vld [vmem:[%s21878_s12] ss:$0 sm:$0xff] }
 0xf01   : > { %3888 = vmatprep.mubr.f32.mxu0 %v3395_v46  ;;  %17630 = vmatpush3.bf16.msra.mxu1 %v17629_v33  ;;  %v17613_v33 = vpack.c.bf16 %v2673_v28, %v2672_v27  ;;  %v17615_v39 = vpack.c.bf16 %v2691_v32, %v2690_v31  ;;  %v2693_v46 = vld [vmem:[%s21875_s30 + $0x6e8] sm:$0xff]  ;;  %v17617_v49 = vpack.c.bf16 %v2675_v40, %v2674_v23 }
 0xf02   : > { %3958 = vmatprep.mubr.f32.mxu1 %v3397_v50  ;;  %17600 = vmatprep.subr.bf16.mxu0 %v17599_v41  ;;  %v2706_v41 = vld [vmem:[%s21875_s30 + $0x750] sm:$0xff] }
 0xf03   : > { %17632 = vmatprep.subr.bf16.mxu1 %v17631_v47  ;;  %v2724_v47 = vld [vmem:[%s21875_s30 + $0x7e0] sm:$0xff]  ;;  %v17649_v50 = vpack.c.bf16 %v2707_v10, %v2706_v41 }
 0xf04   : > { %17602 = vmatpush3.bf16.msra.mxu0 %v17601_v51  ;;  %v17619_v51 = vpack.c.bf16 %v2693_v46, %v2692_v45  ;;  %v17651_v55 = vpack.c.bf16 %v2725_v48, %v2724_v47 }
 0xf05   : > { %17634 = vmatpush3.bf16.msra.mxu1 %v17633_v53  ;;  %17604 = vmatprep.subr.bf16.mxu0 %v17603_v15  ;;  %v2676_v53 = vld [vmem:[%s21875_s30 + $0x660] sm:$0xff]  ;;  %v2677_v15 = vld [vmem:[%s21875_s30 + $0x668] sm:$0xff] }
 0xf06   : > { %17636 = vmatprep.subr.bf16.mxu1 %v17635_v59  ;;  %v2694_v59 = vld [vmem:[%s21875_s30 + $0x6f0] sm:$0xff]  ;;  %v17621_v63 = vpack.c.bf16 %v2677_v15, %v2676_v53 }
 0xf08   : > { %17606 = vmatpush3.bf16.msra.mxu0 %v17605_v1  ;;  %v17653_v1 = vpack.c.bf16 %v2709_v58, %v2708_v54 }
 0xf09   : > { %17638 = vmatpush3.bf16.msra.mxu1 %v17637_v2  ;;  %17608 = vmatprep.subr.bf16.mxu0 %v17607_v4  ;;  %v17623_v2 = vpack.c.bf16 %v2695_v60, %v2694_v59  ;;  %v2678_v4 = vld [vmem:[%s21875_s30 + $0x670] sm:$0xff] }
 0xf0a   : > { %17640 = vmatprep.subr.bf16.mxu1 %v17639_v57  ;;  %v2711_v57 = vld [vmem:[%s21875_s30 + $0x778] sm:$0xff]  ;;  %v17625_v19 = vpack.c.bf16 %v2679_v9, %v2678_v4  ;;  %v14723_v4 = vld [vmem:[%s21886_s21 + $0x30] sm:$0xff] }
 0xf0b   : > { %v17657_v42 = vpack.c.bf16 %v2711_v57, %v2710_v56  ;;  %v14724_v9 = vld [vmem:[%s21886_s21 + $0x38] sm:$0xff] }
 0xf0c   : > { %17610 = vmatpush3.bf16.msra.mxu0 %v17609_v25  ;;  %v14718_v25 = vld [vmem:[%s21879_s6] ss:$0 sm:$0xff] }
 0xf0d   : > { %17642 = vmatpush3.bf16.msra.mxu1 %v17641_v43  ;;  %17612 = vmatprep.subr.bf16.mxu0 %v17611_v26 }
 0xf0e   : > { %17644 = vmatprep.subr.bf16.mxu1 %v17643_v29 }
 0xf10   : > { %17614 = vmatpush3.bf16.msra.mxu0 %v17613_v33 }
 0xf11   : > { %17646 = vmatpush3.bf16.msra.mxu1 %v17645_v11  ;;  %17616 = vmatprep.subr.bf16.mxu0 %v17615_v39 }
 0xf12   : > { %17648 = vmatprep.subr.bf16.mxu1 %v17647_v44 }
 0xf14   : > { %17618 = vmatpush3.bf16.msra.mxu0 %v17617_v49 }
 0xf15   : > { %17650 = vmatpush3.bf16.msra.mxu1 %v17649_v50  ;;  %17620 = vmatprep.subr.bf16.mxu0 %v17619_v51 }
 0xf16   : > { %17652 = vmatprep.subr.bf16.mxu1 %v17651_v55 }
 0xf18   : > { %17622 = vmatpush3.bf16.msra.mxu0 %v17621_v63 }
 0xf19   : > { %17654 = vmatpush3.bf16.msra.mxu1 %v17653_v1  ;;  %17624 = vmatprep.subr.bf16.mxu0 %v17623_v2  ;;  %v14722_v1 = vld [vmem:[%s21886_s21 + $0x28] sm:$0xff]  ;;  %s21904_s21 = smov 80  }
 0xf1a   : > { %17656 = vmatprep.subr.bf16.mxu1 %v17655_v18  ;;  %v17660_v2 = vpack.c.bf16 %v14722_v1, %v14721_v0  ;;  %v17663_v18 = vpack.c.bf16 %v14724_v9, %v14723_v4  ;;  %v14729_v9 = vld [vmem:[%s21876_s29 + $0x28] sm:$0xff] }
 0xf1c   : > { %17626 = vmatpush3.bf16.msra.mxu0 %v17625_v19 }
 0xf1d   : > { %17658 = vmatpush3.bf16.msra.mxu1 %v17657_v42  ;;  %17659 = vmatprep.subr.bf16.mxu0 %v18990_v3 }
 0xf1e   : > { %16956 = vmatprep.subr.mxu1 %v18992_v6 }
 0xf1f   : > { %3889 = vmatmul.mubr.f32.vlgmr.msra.gmra.mrb[24].mxu0 %v3394_v52  ;;  %v14720_v52 = vld [vmem:[%s21877_s20] ss:$0 sm:$0xff] }
 0xf20   : > { %3959 = vmatmul.mubr.f32.vlgmr.msra.gmra.mrb[30].mxu1 %v3396_v21  ;;  %16953 = vmatprep.mubr.msk.f32.mxu0 %vm18991_vm0, %v18992_v6 }
 0xf21   : > { %16958 = vmatprep.mubr.msk.f32.mxu1 %vm18991_vm0, %v18992_v6  ;;  %17661 = vmatpush3.bf16.msra.mxu0 %v17660_v2 }
 0xf22   : > { %17662 = vmatprep.subr.bf16.mxu0 %v18990_v3 }
 0xf25   : > { %17664 = vmatpush3.bf16.msra.mxu0 %v17663_v18 }
 0xf26   : > { %16966 = vmatprep.subr.mxu0 %v18992_v6 }
 0xf92   : > { %v15626_v7 = vpop.f32.mrb[18].mxu0  ;;  %v15661_v24 = vpop.f32.mrb[24].mxu1 }
 0xf93   : > { %v15627_v43 = vpop.f32.mrb[19].mxu0  ;;  %v15662_v26 = vpop.f32.mrb[25].mxu1 }
 0xf94   : > { %v15628_v27 = vadd.f32 %v15627_v43, %v15626_v7  ;;  %v15663_v28 = vadd.f32 %v15662_v26, %v15661_v24  ;;  %v14726_v24 = vld [vmem:[%s21885_s25 + $0x1] ss:$0 sm:$0xff]  ;;  %s21905_s25 = smov 112  }
 0xf96   : > { %v3471_v36 = vadd.f32 %v15628_v27, %v14718_v25 }
 0xf98   : > { %v3541_v29 = vadd.f32 %v15663_v28, %v3471_v36 }
 0xfb2   : > { %v15696_v22 = vpop.f32.mrb[20].mxu0  ;;  %v15731_v30 = vpop.f32.mrb[26].mxu1 }
 0xfb3   : > { %v15697_v31 = vpop.f32.mrb[21].mxu0  ;;  %v15732_v32 = vpop.f32.mrb[27].mxu1 }
 0xfb4   : > { %v15698_v38 = vadd.f32 %v15697_v31, %v15696_v22  ;;  %v15733_v14 = vadd.f32 %v15732_v32, %v15731_v30  ;;  %v19876_v22 = vld [vmem:[%s19312_s28] ss:$0 sm:$0xff]  ;;  %s21903_s28 = smov 56  }
 0xfb6   : > { %v3611_v33 = vadd.f32 %v15698_v38, %v3541_v29 }
 0xfb8   : > { %v3681_v11 = vadd.f32 %v15733_v14, %v3611_v33 }
 0xfd2   : > { %v15766_v39 = vpop.f32.mrb[22].mxu0 }
 0xfd3   : > { %v15801_v23 = vpop.f32.mrb[28].mxu1  ;;  %v15767_v40 = vpop.f32.mrb[23].mxu0 }
 0xfd4   : > { %v15768_v41 = vadd.f32 %v15767_v40, %v15766_v39  ;;  %v15802_v44 = vpop.f32.mrb[29].mxu1 }
 0xfd5   : > { %v15803_v10 = vadd.f32 %v15802_v44, %v15801_v23  ;;  %v14728_v23 = vld [vmem:[%s21876_s29 + $0x20] sm:$0xff] }
 0xfd6   : > { %v3751_v45 = vadd.f32 %v15768_v41, %v3681_v11 }
 0xfd8   : > { %v3821_v46 = vadd.f32 %v15803_v10, %v3751_v45 }
 0xff2   : > { %v15836_v47 = vpop.f32.mrb[24].mxu0 }
 0xff3   : > { %v15871_v48 = vpop.f32.mrb[30].mxu1  ;;  %v15837_v49 = vpop.f32.mrb[25].mxu0 }
 0xff4   : > { %v15838_v50 = vadd.f32 %v15837_v49, %v15836_v47  ;;  %v15872_v51 = vpop.f32.mrb[31].mxu1 }
 0xff5   : > { %v15873_v53 = vadd.f32 %v15872_v51, %v15871_v48 }
 0xff6   : > { %v3891_v15 = vadd.f32 %v15838_v50, %v3821_v46 }
 0xff8   : > { %v3961_v54 = vadd.f32 %v15873_v53, %v3891_v15 }
 0xffa   : > { %v3964_v55 = vadd.f32 %v3961_v54, %v19432_v37 }
 0xffc   : > { %v3967_v58 = vsel %vm1320_vm1, %v3964_v55, 0.0 }
 0xffd   : > { %3968 = vadd.xlane.f32.xlu1 %v3967_v58 }
0x108a   : > { %v3969_v59 = vpop.xlane.xlu1 %3968 }
0x108b   : > { %v3970_v60 = vmul.f32 0.03125, %v3969_v59 }
0x108d   : > { %v3971_v61 = vsub.f32 %v3964_v55, %v3970_v60 }
0x108f   : > { %v3972_v62 = vmul.f32 %v3971_v61, %v3971_v61 }
0x1091   : > { %v3973_v63 = vsel %vm1320_vm1, %v3972_v62, 0.0 }
0x1092   : > { %3974 = vadd.xlane.f32.xlu1 %v3973_v63 }
0x111f   : > { %v3975_v37 = vpop.xlane.xlu1 %3974 }
0x1120   : > { %v3976_v56 = vmul.f32 0.03125, %v3975_v37 }
0x1122   : > { %v3977_v57 = vadd.f32 1e-05, %v3976_v56 }
0x1124   : > { %18780 = vrsqrt.f32 %v3977_v57 }
0x112e   : > { %v18781_v19 = vpop.eup %18780 }
0x112f   : > { %v3979_v42 = vmul.f32 %v18781_v19, %v3971_v61 }
0x1131   : > { %v3986_v21 = vmul.f32 %v14719_v20, %v3979_v42 }
0x1133   : > { %v19858_v7 = vadd.f32 %v14720_v52, %v3986_v21 }
0x1135   : > { %16954 = vmatmul.mubr.msk.f32.vlgmr.msra.gmra.mrb[26].mxu0 %vm1320_vm1, %v19858_v7 }
0x1136   : > { %16968 = vmatprep.mubr.msk.f32.mxu0 %vm18991_vm0, %v18992_v6  ;;  %16967 = vmatpush3.msra.mxu0 %v14728_v23 }
0x1137   : > { %16976 = vmatprep.subr.mxu0 %v18992_v6 }
0x1208   : > { %v4076_v25 = vpop.f32.mrb[26].mxu0 }
0x1209   : > { %v19865_v43 = vadd.f32 %v14726_v24, %v4076_v25  ;;  %v16955_v26 = vpop.f32.mrb[27].mxu0 }
0x120b   : > { %4088 = vrot.lane.b32.xlu1 %v19865_v43, %s21899_s5 }
0x127d   : > { %v4089_v27 = vpop.permute.xlu1 %4088 }
0x127e   : > { %16957 = vmatpush3.xpose.msk.msra.mxu1 %vm1402_vm2, %v4089_v27 }
0x127f   : > { %16961 = vmatprep.subr.mxu1 %v18992_v6 }
0x1281   : > { %16959 = vmatmul.mubr.msk.f32.vlgmr.msra.gmra.mrb[32].mxu1 %vm1402_vm2, %v19865_v43 }
0x1282   : > { %16963 = vmatprep.mubr.msk.f32.mxu1 %vm18991_vm0, %v18992_v6 }
0x1354   : > { %v4160_v28 = vpop.f32.mrb[32].mxu1 }
0x1355   : > { %v4164_v36 = vmul.f32 0.35355338, %v4160_v28  ;;  %v16960_v29 = vpop.f32.mrb[33].mxu1  ;;  %v14737_v28 = vld [vmem:[%s21884_s3 + $0x1] ss:$0 sm:$0xff]  ;;  %s21909_s3 = smov 40  }
0x1357   : > { %v4165_v30 = vadd.f32 %v19876_v22, %v4164_v36 }
0x1359   : > { %v4166_v31 = vsel %vm1402_vm2, %v4165_v30, -inf }
0x135a   : > { %4167 = vmax.xlane.f32.xlu0 %v4166_v31 }
0x1370   : > { %4177 = vrot.lane.b32.xlu0 %v19865_v43, %s21900_s23 }
0x1374   : > { %4335 = vrot.lane.b32.xlu0 %v19865_v43, %s21901_s1 }
0x1378   : > { %4333 = vrot.lane.b32.xlu0 %v19865_v43, %s21902_s13 }
0x13e7   : > { %v4168_v32 = vpop.xlane.xlu0 %4167 }
0x13e8   : > { %v4169_v38 = vsub.f32 %v4165_v30, %v4168_v32 }
0x13ea   : > { %v4170_v14 = vmul.f32 1.442695, %v4169_v38 }
0x13eb   : > { %v4178_v33 = vpop.permute.xlu0 %4177 }
0x13ec   : > { %18782 = vpow2.f32 %v4170_v14  ;;  %16962 = vmatpush3.msra.mxu1 %v4178_v33 }
0x13ed   : > { %16971 = vmatprep.subr.mxu1 %v18992_v6 }
0x13ef   : > { %v4336_v44 = vpop.permute.xlu0 %4335 }
0x13f3   : > { %v4334_v45 = vpop.permute.xlu0 %4333 }
0x13f6   : > { %v18783_v11 = vpop.eup %18782 }
0x13f7   : > { %v4172_v39 = vsel %vm1402_vm2, %v18783_v11, 0.0 }
0x13f8   : > { %4173 = vadd.xlane.f32.xlu1 %v4172_v39  ;;  %v14730_v39 = vld [vmem:[%s21876_s29 + $0x30] sm:$0xff] }
0x1409   : > { %4424 = vrot.lane.b32.xlu1 %v19865_v43, %s21903_s28 }
0x140d   : > { %4576 = vrot.lane.b32.xlu1 %v19865_v43, %s21904_s21 }
0x1485   : > { %v4174_v40 = vpop.xlane.xlu1 %4173 }
0x1486   : > { %18784 = vrcp.f32 %v4174_v40 }
0x1489   : > { %v4425_v47 = vpop.permute.xlu1 %4424 }
0x148d   : > { %v4577_v63 = vpop.permute.xlu1 %4576 }
0x1490   : > { %v18785_v41 = vpop.eup %18784 }
0x1491   : > { %v4176_v10 = vmul.f32 %v18785_v41, %v18783_v11 }
0x1493   : > { %16964 = vmatmul.mubr.msk.f32.vlgmr.msra.gmra.mrb[34].mxu1 %vm1402_vm2, %v4176_v10 }
0x1494   : > { %16972 = vmatpush3.xpose.msk.msra.mxu1 %vm1402_vm2, %v4336_v44  ;;  %16973 = vmatprep.mubr.msk.f32.mxu1 %vm18991_vm0, %v18992_v6 }
0x1495   : > { %16981 = vmatprep.subr.mxu1 %v18992_v6 }
0x1497   : > { %16974 = vmatmul.mubr.msk.f32.vlgmr.msra.gmra.mrb[36].mxu1 %vm1402_vm2, %v4334_v45 }
0x1498   : > { %16983 = vmatprep.mubr.msk.f32.mxu1 %vm18991_vm0, %v18992_v6  ;;  %16982 = vmatpush3.msra.mxu1 %v14729_v9 }
0x1499   : > { %16991 = vmatprep.subr.mxu1 %v18992_v6 }
0x1566   : > { %v4249_v46 = vpop.f32.mrb[34].mxu1 }
0x1567   : > { %v16965_v48 = vpop.f32.mrb[35].mxu1  ;;  %16969 = vmatmul.mubr.msk.f32.vlgmr.msra.gmra.mrb[28].mxu0 %vm1402_vm2, %v4249_v46 }
0x1568   : > { %16977 = vmatpush3.msra.mxu0 %v4425_v47  ;;  %16978 = vmatprep.mubr.msk.f32.mxu0 %vm18991_vm0, %v18992_v6 }
0x1569   : > { %16986 = vmatprep.subr.mxu0 %v18992_v6 }
0x156a   : > { %v4407_v49 = vpop.f32.mrb[36].mxu1 }
0x156b   : > { %v4411_v50 = vmul.f32 0.35355338, %v4407_v49  ;;  %v16975_v51 = vpop.f32.mrb[37].mxu1 }
0x156d   : > { %v4412_v53 = vadd.f32 %v19876_v22, %v4411_v50 }
0x156f   : > { %v4413_v15 = vsel %vm1402_vm2, %v4412_v53, -inf }
0x1570   : > { %4414 = vmax.xlane.f32.xlu0 %v4413_v15 }
0x15fd   : > { %v4415_v54 = vpop.xlane.xlu0 %4414 }
0x15fe   : > { %v4416_v55 = vsub.f32 %v4412_v53, %v4415_v54  ;;  %v14731_v53 = vld [vmem:[%s21876_s29 + $0x38] sm:$0xff]  ;;  %s21920_s29 = sld [smem:[#allocation29_spill]] }
0x1600   : > { %v4417_v58 = vmul.f32 1.442695, %v4416_v55 }
0x1602   : > { %18786 = vpow2.f32 %v4417_v58 }
0x160c   : > { %v18787_v59 = vpop.eup %18786 }
0x160d   : > { %v4419_v60 = vsel %vm1402_vm2, %v18787_v59, 0.0 }
0x160e   : > { %4420 = vadd.xlane.f32.xlu1 %v4419_v60 }
0x161f   : > { %4574 = vrot.lane.b32.xlu1 %v19865_v43, %s21905_s25 }
0x163a   : > { %v4322_v61 = vpop.f32.mrb[28].mxu0 }
0x163b   : > { %v16970_v62 = vpop.f32.mrb[29].mxu0  ;;  %v4332_v36 = vadd.f32 %v14737_v28, %v4322_v61 }
0x169b   : > { %v4421_v0 = vpop.xlane.xlu1 %4420 }
0x169c   : > { %18788 = vrcp.f32 %v4421_v0 }
0x169f   : > { %v4575_v4 = vpop.permute.xlu1 %4574 }
0x16a6   : > { %v18789_v1 = vpop.eup %18788 }
0x16a7   : > { %v4423_v2 = vmul.f32 %v18789_v1, %v18787_v59 }
0x16a9   : > { %16979 = vmatmul.mubr.msk.f32.vlgmr.msra.gmra.mrb[30].mxu0 %vm1402_vm2, %v4423_v2 }
0x16aa   : > { %16987 = vmatpush3.xpose.msk.msra.mxu0 %vm1402_vm2, %v4577_v63  ;;  %16988 = vmatprep.mubr.msk.f32.mxu0 %vm18991_vm0, %v18992_v6 }
0x16ab   : > { %16996 = vmatprep.subr.mxu0 %v18992_v6 }
0x16ad   : > { %16989 = vmatmul.mubr.msk.f32.vlgmr.msra.gmra.mrb[32].mxu0 %vm1402_vm2, %v4575_v4 }
0x16ae   : > { %16998 = vmatprep.mubr.msk.f32.mxu0 %vm18991_vm0, %v18992_v6  ;;  %16997 = vmatpush3.msra.mxu0 %v14730_v39  ;;  %v14788_v39 = vld [vmem:[%s21881_s19 + $0x310] sm:$0xff] }
0x16af   : > { %17006 = vmatprep.subr.mxu0 %v18992_v6 }
0x177c   : > { %v4496_v18 = vpop.f32.mrb[30].mxu0 }
0x177d   : > { %v16980_v37 = vpop.f32.mrb[31].mxu0  ;;  %16984 = vmatmul.mubr.msk.f32.vlgmr.msra.gmra.mrb[38].mxu1 %vm1402_vm2, %v4496_v18 }
0x177e   : > { %16993 = vmatprep.mubr.msk.f32.mxu1 %vm18991_vm0, %v18992_v6 }
0x1780   : > { %v4648_v56 = vpop.f32.mrb[32].mxu0 }
0x1781   : > { %v4652_v57 = vmul.f32 0.35355338, %v4648_v56  ;;  %v16990_v19 = vpop.f32.mrb[33].mxu0 }
0x1782   : > { %v14771_v19 = vld [vmem:[%s21881_s19 + $0x288] sm:$0xff] }
0x1783   : > { %v4653_v20 = vadd.f32 %v19876_v22, %v4652_v57  ;;  %v14755_v57 = vld [vmem:[%s21881_s19 + $0x208] sm:$0xff] }
0x1785   : > { %v4654_v42 = vsel %vm1402_vm2, %v4653_v20, -inf }
0x1786   : > { %4655 = vmax.xlane.f32.xlu0 %v4654_v42  ;;  %v17665_v42 = vpack.c.bf16 %v14771_v19, %v14755_v57  ;;  %v14808_v57 = vld [vmem:[%s21881_s19 + $0x3b0] sm:$0xff]  ;;  %v14763_v19 = vld [vmem:[%s21881_s19 + $0x248] sm:$0xff] }
0x179c   : > { %4665 = vrot.lane.b32.xlu0 %v19865_v43, %s21906_s2 }
0x17a0   : > { %4817 = vrot.lane.b32.xlu0 %v19865_v43, %s21907_s18 }
0x17a4   : > { %4815 = vrot.lane.b32.xlu0 %v19865_v43, %s21908_s26 }
0x1813   : > { %v4656_v52 = vpop.xlane.xlu0 %4655 }
0x1814   : > { %v4657_v21 = vsub.f32 %v4653_v20, %v4656_v52  ;;  %v14757_v20 = vld [vmem:[%s21881_s19 + $0x218] sm:$0xff]  ;;  %v14754_v52 = vld [vmem:[%s21881_s19 + $0x200] sm:$0xff] }
0x1816   : > { %v4658_v24 = vmul.f32 1.442695, %v4657_v21  ;;  %v14770_v21 = vld [vmem:[%s21881_s19 + $0x280] sm:$0xff] }
0x1817   : > { %v4666_v25 = vpop.permute.xlu0 %4665 }
0x1818   : > { %18790 = vpow2.f32 %v4658_v24  ;;  %16992 = vmatpush3.msra.mxu1 %v4666_v25  ;;  %v17667_v25 = vpack.c.bf16 %v14770_v21, %v14754_v52 }
0x1819   : > { %17001 = vmatprep.subr.mxu1 %v18992_v6 }
0x181b   : > { %v4818_v14 = vpop.permute.xlu0 %4817 }
0x181f   : > { %v4816_v11 = vpop.permute.xlu0 %4815 }
0x1822   : > { %v18791_v26 = vpop.eup %18790 }
0x1823   : > { %v4660_v27 = vsel %vm1402_vm2, %v18791_v26, 0.0 }
0x1824   : > { %4661 = vadd.xlane.f32.xlu1 %v4660_v27  ;;  %v14772_v27 = vld [vmem:[%s21881_s19 + $0x290] sm:$0xff] }
0x1850   : > { %v4569_v29 = vpop.f32.mrb[38].mxu1 }
0x1851   : > { %v4573_v30 = vadd.f32 %v4569_v29, %v4332_v36  ;;  %v16985_v31 = vpop.f32.mrb[39].mxu1  ;;  %v14787_v36 = vld [vmem:[%s21881_s19 + $0x308] sm:$0xff] }
0x1852   : > { %v14803_v29 = vld [vmem:[%s21881_s19 + $0x388] sm:$0xff] }
0x1853   : > { %v17669_v31 = vpack.c.bf16 %v14803_v29, %v14787_v36  ;;  %v14780_v36 = vld [vmem:[%s21881_s19 + $0x2d0] sm:$0xff]  ;;  %v14795_v29 = vld [vmem:[%s21881_s19 + $0x348] sm:$0xff] }
0x18b1   : > { %v4662_v32 = vpop.xlane.xlu1 %4661 }
0x18b2   : > { %18792 = vrcp.f32 %v4662_v32  ;;  %v14805_v32 = vld [vmem:[%s21881_s19 + $0x398] sm:$0xff] }
0x18bc   : > { %v18793_v38 = vpop.eup %18792 }
0x18bd   : > { %v4664_v33 = vmul.f32 %v18793_v38, %v18791_v26  ;;  %v14756_v26 = vld [vmem:[%s21881_s19 + $0x210] sm:$0xff]  ;;  %v14786_v38 = vld [vmem:[%s21881_s19 + $0x300] sm:$0xff] }
0x18be   : > { %v17675_v28 = vpack.c.bf16 %v14772_v27, %v14756_v26 }
0x18bf   : > { %16994 = vmatmul.mubr.msk.f32.vlgmr.msra.gmra.mrb[40].mxu1 %vm1402_vm2, %v4664_v33 }
0x18c0   : > { %17002 = vmatpush3.xpose.msk.msra.mxu1 %vm1402_vm2, %v4818_v14  ;;  %17003 = vmatprep.mubr.msk.f32.mxu1 %vm18991_vm0, %v18992_v6  ;;  %v14802_v14 = vld [vmem:[%s21881_s19 + $0x380] sm:$0xff] }
0x18c1   : > { %17011 = vmatprep.subr.mxu1 %v18992_v6 }
0x18c3   : > { %17004 = vmatmul.mubr.msk.f32.vlgmr.msra.gmra.mrb[42].mxu1 %vm1402_vm2, %v4816_v11  ;;  %v17671_v11 = vpack.c.bf16 %v14802_v14, %v14786_v38 }
0x18c4   : > { %17013 = vmatprep.mubr.msk.f32.mxu1 %vm18991_vm0, %v18992_v6  ;;  %17012 = vmatpush3.msra.mxu1 %v14731_v53 }
0x1992   : > { %v4737_v23 = vpop.f32.mrb[40].mxu1 }
0x1993   : > { %v16995_v40 = vpop.f32.mrb[41].mxu1  ;;  %16999 = vmatmul.mubr.msk.f32.vlgmr.msra.gmra.mrb[34].mxu0 %vm1402_vm2, %v4737_v23  ;;  %v14804_v23 = vld [vmem:[%s21881_s19 + $0x390] sm:$0xff] }
0x1994   : > { %17008 = vmatprep.mubr.msk.f32.mxu0 %vm18991_vm0, %v18992_v6  ;;  %v17679_v40 = vpack.c.bf16 %v14804_v23, %v14788_v39 }
0x1996   : > { %v4889_v41 = vpop.f32.mrb[42].mxu1 }
0x1997   : > { %v4893_v44 = vmul.f32 0.35355338, %v4889_v41  ;;  %v17005_v10 = vpop.f32.mrb[43].mxu1  ;;  %v14759_v41 = vld [vmem:[%s21881_s19 + $0x228] sm:$0xff] }
0x1998   : > { %v14761_v10 = vld [vmem:[%s21881_s19 + $0x238] sm:$0xff] }
0x1999   : > { %v4894_v45 = vadd.f32 %v19876_v22, %v4893_v44  ;;  %v14775_v44 = vld [vmem:[%s21881_s19 + $0x2a8] sm:$0xff] }
0x199b   : > { %v4895_v46 = vsel %vm1402_vm2, %v4894_v45, -inf }
0x199c   : > { %4896 = vmax.xlane.f32.xlu0 %v4895_v46  ;;  %v14777_v46 = vld [vmem:[%s21881_s19 + $0x2b8] sm:$0xff] }
0x1a29   : > { %v4897_v47 = vpop.xlane.xlu0 %4896 }
0x1a2a   : > { %v4898_v48 = vsub.f32 %v4894_v45, %v4897_v47  ;;  %v17681_v45 = vpack.c.bf16 %v14775_v44, %v14759_v41  ;;  %v17689_v47 = vpack.c.bf16 %v14777_v46, %v14761_v10  ;;  %v14812_v41 = vld [vmem:[%s21881_s19 + $0x3d0] sm:$0xff]  ;;  %v14767_v44 = vld [vmem:[%s21881_s19 + $0x268] sm:$0xff]  ;;  %v14785_v46 = vld [vmem:[%s21881_s19 + $0x2f8] sm:$0xff] }
0x1a2b   : > { %v14783_v10 = vld [vmem:[%s21881_s19 + $0x2e8] sm:$0xff] }
0x1a2c   : > { %v4899_v49 = vmul.f32 1.442695, %v4898_v48 }
0x1a2e   : > { %18794 = vpow2.f32 %v4899_v49 }
0x1a38   : > { %v18795_v50 = vpop.eup %18794 }
0x1a39   : > { %v4901_v51 = vsel %vm1402_vm2, %v18795_v50, 0.0 }
0x1a3a   : > { %4902 = vadd.xlane.f32.xlu1 %v4901_v51  ;;  %v14752_v51 = vld [vmem:[%s21883_s8 + $0x1] ss:$0 sm:$0xff]  ;;  %s21910_s8 = sld [smem:[#allocation23_spill]] }
0x1a4b   : > { %4906 = vrot.lane.b32.xlu1 %v19865_v43, %s21909_s3 }
0x1a66   : > { %v4810_v15 = vpop.f32.mrb[34].mxu0 }
0x1a67   : > { %v4814_v54 = vadd.f32 %v4810_v15, %v4573_v30  ;;  %v17000_v55 = vpop.f32.mrb[35].mxu0  ;;  %v14789_v30 = vld [vmem:[%s21881_s19 + $0x318] sm:$0xff]  ;;  %v14753_v15 = vld [vmem:[%s21882_s14 + $0x1] ss:$0 sm:$0xff]  ;;  %s21911_s14 = sld [smem:[#allocation6_spill]] }
0x1a68   : > { %v17677_v33 = vpack.c.bf16 %v14805_v32, %v14789_v30  ;;  %v14774_v55 = vld [vmem:[%s21881_s19 + $0x2a0] sm:$0xff]  ;;  %v14811_v30 = vld [vmem:[%s21881_s19 + $0x3c8] sm:$0xff]  ;;  %v14813_v32 = vld [vmem:[%s21881_s19 + $0x3d8] sm:$0xff] }
0x1a69   : > { %v17701_v39 = vpack.c.bf16 %v14811_v30, %v14795_v29  ;;  %v14822_v30 = vld [vmem:[%s21875_s30 + $0x810] sm:$0xff] }
0x1ac7   : > { %v4903_v22 = vpop.xlane.xlu1 %4902 }
0x1ac8   : > { %18796 = vrcp.f32 %v4903_v22 }
0x1acb   : > { %v4907_v58 = vpop.permute.xlu1 %4906 }
0x1acc   : > { %17007 = vmatpush3.msra.mxu0 %v4907_v58  ;;  %v14760_v58 = vld [vmem:[%s21881_s19 + $0x230] sm:$0xff] }
0x1acd   : > { %17666 = vmatprep.subr.bf16.mxu0 %v17665_v42  ;;  %v14765_v42 = vld [vmem:[%s21881_s19 + $0x258] sm:$0xff] }
0x1ad2   : > { %v18797_v59 = vpop.eup %18796 }
0x1ad3   : > { %v4905_v60 = vmul.f32 %v18797_v59, %v18795_v50  ;;  %v14776_v59 = vld [vmem:[%s21881_s19 + $0x2b0] sm:$0xff] }
0x1ad5   : > { %17009 = vmatmul.mubr.msk.f32.vlgmr.msra.gmra.mrb[36].mxu0 %vm1402_vm2, %v4905_v60  ;;  %v14791_v60 = vld [vmem:[%s21881_s19 + $0x328] sm:$0xff] }
0x1ad6   : > { %5564 = vmatprep.mubr.f32.mxu0 %v18992_v6  ;;  %17668 = vmatpush1.bf16.msra.mxu0 %v17667_v25  ;;  %v14778_v25 = vld [vmem:[%s21881_s19 + $0x2c0] sm:$0xff] }
0x1ad7   : > { %17670 = vmatprep.subr.bf16.mxu0 %v17669_v31  ;;  %v14797_v31 = vld [vmem:[%s21881_s19 + $0x358] sm:$0xff] }
0x1ad8   : > { %v17709_v23 = vpack.c.bf16 %v14813_v32, %v14797_v31  ;;  %v14823_v31 = vld [vmem:[%s21875_s30 + $0x818] sm:$0xff] }
0x1ada   : > { %17672 = vmatpush1.bf16.msra.mxu0 %v17671_v11  ;;  %v14810_v11 = vld [vmem:[%s21881_s19 + $0x3c0] sm:$0xff] }
0x1adb   : > { %17682 = vmatprep.subr.bf16.mxu0 %v17681_v45  ;;  %v14769_v45 = vld [vmem:[%s21881_s19 + $0x278] sm:$0xff] }
0x1ba8   : > { %v4978_v61 = vpop.f32.mrb[36].mxu0 }
0x1ba9   : > { %v17010_v62 = vpop.f32.mrb[37].mxu0  ;;  %17014 = vmatmul.mubr.msk.f32.vlgmr.msra.gmra.mrb[44].mxu1 %vm1402_vm2, %v4978_v61  ;;  %v14807_v61 = vld [vmem:[%s21881_s19 + $0x3a8] sm:$0xff] }
0x1baa   : > { %5635 = vmatprep.mubr.f32.mxu1 %v18992_v6  ;;  %v14793_v62 = vld [vmem:[%s21881_s19 + $0x338] sm:$0xff] }
0x1c7c   : > { %v5051_v43 = vpop.f32.mrb[44].mxu1 }
0x1c7d   : > { %v5055_v63 = vadd.f32 %v5051_v43, %v4814_v54  ;;  %v17015_v0 = vpop.f32.mrb[45].mxu1  ;;  %v14758_v54 = vld [vmem:[%s21881_s19 + $0x220] sm:$0xff]  ;;  %v14809_v43 = vld [vmem:[%s21881_s19 + $0x3b8] sm:$0xff] }
0x1c7e   : > { %v17683_v0 = vpack.c.bf16 %v14774_v55, %v14758_v54  ;;  %v14784_v54 = vld [vmem:[%s21881_s19 + $0x2f0] sm:$0xff]  ;;  %v14799_v55 = vld [vmem:[%s21881_s19 + $0x368] sm:$0xff] }
0x1c7f   : > { %v5056_v1 = vadd.f32 %v5055_v63, %v19858_v7  ;;  %v14773_v7 = vld [vmem:[%s21881_s19 + $0x298] sm:$0xff] }
0x1c80   : > { %v17673_v24 = vpack.c.bf16 %v14773_v7, %v14757_v20  ;;  %v14779_v20 = vld [vmem:[%s21881_s19 + $0x2c8] sm:$0xff]  ;;  %v14781_v7 = vld [vmem:[%s21881_s19 + $0x2d8] sm:$0xff] }
0x1c81   : > { %v5061_v2 = vsel %vm1320_vm1, %v5056_v1, 0.0  ;;  %v17697_v26 = vpack.c.bf16 %v14779_v20, %v14763_v19  ;;  %v17705_v27 = vpack.c.bf16 %v14781_v7, %v14765_v42  ;;  %v14820_v20 = vld [vmem:[%s21875_s30 + $0x800] sm:$0xff]  ;;  %v14821_v42 = vld [vmem:[%s21875_s30 + $0x808] sm:$0xff] }
0x1c82   : > { %5062 = vadd.xlane.f32.xlu1 %v5061_v2  ;;  %17674 = vmatprep.subr.bf16.mxu1 %v17673_v24  ;;  %v14790_v2 = vld [vmem:[%s21881_s19 + $0x320] sm:$0xff] }
0x1c83   : > { %17676 = vmatpush1.bf16.msra.mxu1 %v17675_v28  ;;  %v14762_v24 = vld [vmem:[%s21881_s19 + $0x240] sm:$0xff]  ;;  %v14764_v28 = vld [vmem:[%s21881_s19 + $0x250] sm:$0xff] }
0x1c84   : > { %17678 = vmatprep.subr.bf16.mxu1 %v17677_v33  ;;  %v17699_v38 = vpack.c.bf16 %v14778_v25, %v14762_v24  ;;  %v17707_v14 = vpack.c.bf16 %v14780_v36, %v14764_v28  ;;  %v14794_v33 = vld [vmem:[%s21881_s19 + $0x340] sm:$0xff]  ;;  %v14853_v24 = vld [vmem:[%s21875_s30 + $0x908] sm:$0xff]  ;;  %v14838_v25 = vld [vmem:[%s21875_s30 + $0x890] sm:$0xff]  ;;  %v17731_v36 = vpack.c.bf16 %v14821_v42, %v14820_v20 }
0x1c85   : > { %v14871_v28 = vld [vmem:[%s21875_s30 + $0x998] sm:$0xff]  ;;  %v14861_v20 = vld [vmem:[%s21875_s30 + $0x948] sm:$0xff]  ;;  %v14846_v42 = vld [vmem:[%s21875_s30 + $0x8d0] sm:$0xff] }
0x1c87   : > { %17680 = vmatpush1.bf16.msra.mxu1 %v17679_v40  ;;  %v14796_v40 = vld [vmem:[%s21881_s19 + $0x350] sm:$0xff] }
0x1c88   : > { %17690 = vmatprep.subr.bf16.mxu1 %v17689_v47  ;;  %v17703_v47 = vpack.c.bf16 %v14810_v11, %v14794_v33  ;;  %v14855_v33 = vld [vmem:[%s21875_s30 + $0x918] sm:$0xff]  ;;  %v14840_v11 = vld [vmem:[%s21875_s30 + $0x8a0] sm:$0xff] }
0x1d0f   : > { %v5063_v4 = vpop.xlane.xlu1 %5062 }
0x1d10   : > { %v5064_v9 = vmul.f32 0.03125, %v5063_v4  ;;  %v14806_v4 = vld [vmem:[%s21881_s19 + $0x3a0] sm:$0xff] }
0x1d11   : > { %v17687_v52 = vpack.c.bf16 %v14806_v4, %v14790_v2  ;;  %v14816_v2 = vld [vmem:[%s21881_s19 + $0x3f0] sm:$0xff]  ;;  %v14836_v4 = vld [vmem:[%s21875_s30 + $0x880] sm:$0xff] }
0x1d12   : > { %v5065_v18 = vsub.f32 %v5056_v1, %v5064_v9  ;;  %v17691_v1 = vpack.c.bf16 %v14776_v59, %v14760_v58  ;;  %v14801_v58 = vld [vmem:[%s21881_s19 + $0x378] sm:$0xff] }
0x1d13   : > { %v14817_v59 = vld [vmem:[%s21881_s19 + $0x3f8] sm:$0xff] }
0x1d14   : > { %v5066_v37 = vmul.f32 %v5065_v18, %v5065_v18 }
0x1d16   : > { %v5067_v56 = vsel %vm1320_vm1, %v5066_v37, 0.0  ;;  %v17693_v37 = vpack.c.bf16 %v14809_v43, %v14793_v62  ;;  %v14798_v62 = vld [vmem:[%s21881_s19 + $0x360] sm:$0xff] }
0x1d17   : > { %5068 = vadd.xlane.f32.xlu0 %v5067_v56  ;;  %v14792_v56 = vld [vmem:[%s21881_s19 + $0x330] sm:$0xff]  ;;  %v14814_v43 = vld [vmem:[%s21881_s19 + $0x3e0] sm:$0xff] }
0x1d18   : > { %v17695_v21 = vpack.c.bf16 %v14808_v57, %v14792_v56  ;;  %v14869_v56 = vld [vmem:[%s21875_s30 + $0x988] sm:$0xff]  ;;  %v17719_v57 = vpack.c.bf16 %v14814_v43, %v14798_v62  ;;  %v14859_v62 = vld [vmem:[%s21875_s30 + $0x938] sm:$0xff]  ;;  %v14844_v43 = vld [vmem:[%s21875_s30 + $0x8c0] sm:$0xff] }
0x1da4   : > { %v5069_v48 = vpop.xlane.xlu0 %5068 }
0x1da5   : > { %v5070_v49 = vmul.f32 0.03125, %v5069_v48  ;;  %v17711_v48 = vpack.c.bf16 %v14812_v41, %v14796_v40  ;;  %v14873_v40 = vld [vmem:[%s21875_s30 + $0x9a8] sm:$0xff]  ;;  %v17735_v41 = vpack.c.bf16 %v14823_v31, %v14822_v30  ;;  %v14863_v30 = vld [vmem:[%s21875_s30 + $0x958] sm:$0xff]  ;;  %v14848_v31 = vld [vmem:[%s21875_s30 + $0x8e0] sm:$0xff] }
0x1da7   : > { %v5071_v50 = vadd.f32 1e-05, %v5070_v49  ;;  %v14766_v49 = vld [vmem:[%s21881_s19 + $0x260] sm:$0xff] }
0x1da9   : > { %18798 = vrsqrt.f32 %v5071_v50  ;;  %v14782_v50 = vld [vmem:[%s21881_s19 + $0x2e0] sm:$0xff] }
0x1db3   : > { %v18799_v53 = vpop.eup %18798 }
0x1db4   : > { %v5073_v22 = vmul.f32 %v18799_v53, %v5065_v18  ;;  %v17685_v18 = vpack.c.bf16 %v14807_v61, %v14791_v60  ;;  %v17721_v53 = vpack.c.bf16 %v14785_v46, %v14769_v45  ;;  %v17715_v60 = vpack.c.bf16 %v14782_v50, %v14766_v49  ;;  %v14825_v45 = vld [vmem:[%s21875_s30 + $0x828] sm:$0xff]  ;;  %v14842_v50 = vld [vmem:[%s21875_s30 + $0x8b0] sm:$0xff] }
0x1db5   : > { %v14857_v49 = vld [vmem:[%s21875_s30 + $0x928] sm:$0xff] }
0x1db6   : > { %v5080_v63 = vmul.f32 %v14752_v51, %v5073_v22  ;;  %v17713_v51 = vpack.c.bf16 %v14783_v10, %v14767_v44  ;;  %v14815_v22 = vld [vmem:[%s21881_s19 + $0x3e8] sm:$0xff]  ;;  %v14824_v10 = vld [vmem:[%s21875_s30 + $0x820] sm:$0xff] }
0x1db8   : > { %v19993_v9 = vadd.f32 %v14753_v15, %v5080_v63  ;;  %v14768_v15 = vld [vmem:[%s21881_s19 + $0x270] sm:$0xff]  ;;  %v17717_v63 = vpack.c.bf16 %v14815_v22, %v14799_v55 }
0x1db9   : > { %v17723_v61 = vpack.c.bf16 %v14784_v54, %v14768_v15  ;;  %v14875_v15 = vld [vmem:[%s21875_s30 + $0x9b8] sm:$0xff]  ;;  %v17739_v54 = vpack.c.bf16 %v14825_v45, %v14824_v10  ;;  %v14826_v22 = vld [vmem:[%s21875_s30 + $0x830] sm:$0xff]  ;;  %v14865_v10 = vld [vmem:[%s21875_s30 + $0x968] sm:$0xff] }
0x1dba   : > { %15077 = vmatmul.mubr.msk.f32.vlgmr.msra.gmra.mrb[38].mxu0 %vm1320_vm1, %v19993_v9  ;;  %15078 = vmatmul.mubr.msk.f32.vlgmr.msra.gmra.mrb[46].mxu1 %vm1320_vm1, %v19993_v9 }
0x1dbb   : > { %17684 = vmatpush1.bf16.msra.mxu0 %v17683_v0  ;;  %17692 = vmatpush1.bf16.msra.mxu1 %v17691_v1  ;;  %v17725_v0 = vpack.c.bf16 %v14817_v59, %v14801_v58  ;;  %v14800_v1 = vld [vmem:[%s21881_s19 + $0x370] sm:$0xff]  ;;  %v14827_v58 = vld [vmem:[%s21875_s30 + $0x838] sm:$0xff]  ;;  %s21912_s19 = sshll.u32 %s19285_s11, 3 }
0x1dbc   : > { %17686 = vmatprep.subr.bf16.mxu0 %v17685_v18  ;;  %17694 = vmatprep.subr.bf16.mxu1 %v17693_v37  ;;  %v14837_v18 = vld [vmem:[%s21875_s30 + $0x888] sm:$0xff]  ;;  %v14868_v37 = vld [vmem:[%s21875_s30 + $0x980] sm:$0xff]  ;;  %v17727_v19 = vpack.c.bf16 %v14816_v2, %v14800_v1  ;;  %v17743_v2 = vpack.c.bf16 %v14827_v58, %v14826_v22  ;;  %v14866_v22 = vld [vmem:[%s21875_s30 + $0x970] sm:$0xff] }
0x1dbd   : > { %5706 = vmatprep.mubr.f32.mxu0 %v18992_v6  ;;  %5777 = vmatprep.mubr.f32.mxu1 %v18992_v6  ;;  %v17729_v7 = vpack.c.bf16 %v14837_v18, %v14836_v4  ;;  %v14877_v1 = vld [vmem:[%s21875_s30 + $0x9c8] sm:$0xff]  ;;  %v14828_v18 = vld [vmem:[%s21875_s30 + $0x840] sm:$0xff]  ;;  %v14867_v58 = vld [vmem:[%s21875_s30 + $0x978] sm:$0xff] }
0x1dbf   : > { %17688 = vmatpush1.bf16.msra.mxu0 %v17687_v52  ;;  %17696 = vmatpush1.bf16.msra.mxu1 %v17695_v21  ;;  %v17761_v52 = vpack.c.bf16 %v14869_v56, %v14868_v37  ;;  %v14852_v21 = vld [vmem:[%s21875_s30 + $0x900] sm:$0xff]  ;;  %v14829_v37 = vld [vmem:[%s21875_s30 + $0x848] sm:$0xff] }
0x1dc0   : > { %17698 = vmatprep.subr.bf16.mxu0 %v17697_v26  ;;  %17706 = vmatprep.subr.bf16.mxu1 %v17705_v27  ;;  %v14839_v26 = vld [vmem:[%s21875_s30 + $0x898] sm:$0xff]  ;;  %v14870_v27 = vld [vmem:[%s21875_s30 + $0x990] sm:$0xff]  ;;  %v17763_v29 = vpack.c.bf16 %v14853_v24, %v14852_v21  ;;  %v17747_v24 = vpack.c.bf16 %v14829_v37, %v14828_v18 }
0x1dc1   : > { %v17733_v32 = vpack.c.bf16 %v14839_v26, %v14838_v25  ;;  %v14879_v21 = vld [vmem:[%s21875_s30 + $0x9d8] sm:$0xff]  ;;  %v14830_v26 = vld [vmem:[%s21875_s30 + $0x850] sm:$0xff] }
0x1dc2   : > { %15079 = vmatmul.mubr.msk.f32.vlgmr.msra.gmra.mrb[40].mxu0 %vm1320_vm1, %v19993_v9  ;;  %15080 = vmatmul.mubr.msk.f32.vlgmr.msra.gmra.mrb[48].mxu1 %vm1320_vm1, %v19993_v9 }
0x1dc3   : > { %17700 = vmatpush1.bf16.msra.mxu0 %v17699_v38  ;;  %17708 = vmatpush1.bf16.msra.mxu1 %v17707_v14  ;;  %v17765_v38 = vpack.c.bf16 %v14871_v28, %v14870_v27  ;;  %v14854_v14 = vld [vmem:[%s21875_s30 + $0x910] sm:$0xff]  ;;  %v14831_v27 = vld [vmem:[%s21875_s30 + $0x858] sm:$0xff] }
0x1dc4   : > { %17702 = vmatprep.subr.bf16.mxu0 %v17701_v39  ;;  %17710 = vmatprep.subr.bf16.mxu1 %v17709_v23  ;;  %v14841_v39 = vld [vmem:[%s21875_s30 + $0x8a8] sm:$0xff]  ;;  %v14872_v23 = vld [vmem:[%s21875_s30 + $0x9a0] sm:$0xff]  ;;  %v17767_v44 = vpack.c.bf16 %v14855_v33, %v14854_v14  ;;  %v17751_v33 = vpack.c.bf16 %v14831_v27, %v14830_v26  ;;  %v14902_v26 = vld [vmem:[%s21875_s30 + $0xa90] sm:$0xff] }
0x1dc5   : > { %5848 = vmatprep.mubr.f32.mxu0 %v18992_v6  ;;  %5919 = vmatprep.mubr.f32.mxu1 %v18992_v6  ;;  %v17737_v46 = vpack.c.bf16 %v14841_v39, %v14840_v11  ;;  %v14881_v14 = vld [vmem:[%s21875_s30 + $0x9e8] sm:$0xff]  ;;  %v14832_v39 = vld [vmem:[%s21875_s30 + $0x860] sm:$0xff] }
0x1dc7   : > { %17704 = vmatpush1.bf16.msra.mxu0 %v17703_v47  ;;  %17712 = vmatpush1.bf16.msra.mxu1 %v17711_v48  ;;  %v17769_v47 = vpack.c.bf16 %v14873_v40, %v14872_v23  ;;  %v14856_v48 = vld [vmem:[%s21875_s30 + $0x920] sm:$0xff] }
0x1dc8   : > { %17714 = vmatprep.subr.bf16.mxu0 %v17713_v51  ;;  %17722 = vmatprep.subr.bf16.mxu1 %v17721_v53  ;;  %v14843_v51 = vld [vmem:[%s21875_s30 + $0x8b8] sm:$0xff]  ;;  %v14874_v53 = vld [vmem:[%s21875_s30 + $0x9b0] sm:$0xff]  ;;  %v17771_v55 = vpack.c.bf16 %v14857_v49, %v14856_v48 }
0x1dc9   : > { %v17741_v59 = vpack.c.bf16 %v14843_v51, %v14842_v50  ;;  %v14851_v48 = vld [vmem:[%s21875_s30 + $0x8f8] sm:$0xff]  ;;  %v14882_v49 = vld [vmem:[%s21875_s30 + $0x9f0] sm:$0xff] }
0x1dca   : > { %15081 = vmatmul.mubr.msk.f32.vlgmr.msra.gmra.mrb[42].mxu0 %vm1320_vm1, %v19993_v9  ;;  %15082 = vmatmul.mubr.msk.f32.vlgmr.msra.gmra.mrb[50].mxu1 %vm1320_vm1, %v19993_v9  ;;  %v14883_v51 = vld [vmem:[%s21875_s30 + $0x9f8] sm:$0xff] }
0x1dcb   : > { %17716 = vmatpush1.bf16.msra.mxu0 %v17715_v60  ;;  %17724 = vmatpush1.bf16.msra.mxu1 %v17723_v61  ;;  %v17773_v60 = vpack.c.bf16 %v14875_v15, %v14874_v53  ;;  %v14858_v61 = vld [vmem:[%s21875_s30 + $0x930] sm:$0xff]  ;;  %v14835_v15 = vld [vmem:[%s21875_s30 + $0x878] sm:$0xff] }
0x1dcc   : > { %17718 = vmatprep.subr.bf16.mxu0 %v17717_v63  ;;  %17726 = vmatprep.subr.bf16.mxu1 %v17725_v0  ;;  %v14845_v63 = vld [vmem:[%s21875_s30 + $0x8c8] sm:$0xff]  ;;  %v14876_v0 = vld [vmem:[%s21875_s30 + $0x9c0] sm:$0xff]  ;;  %v17775_v4 = vpack.c.bf16 %v14859_v62, %v14858_v61  ;;  %v14834_v53 = vld [vmem:[%s21875_s30 + $0x870] sm:$0xff] }
0x1dcd   : > { %5990 = vmatprep.mubr.f32.mxu0 %v18992_v6  ;;  %6061 = vmatprep.mubr.f32.mxu1 %v18992_v6  ;;  %v17745_v56 = vpack.c.bf16 %v14845_v63, %v14844_v43  ;;  %v14901_v61 = vld [vmem:[%s21875_s30 + $0xa88] sm:$0xff]  ;;  %v14932_v62 = vld [vmem:[%s21875_s30 + $0xb80] sm:$0xff] }
0x1dce   : > { %v14933_v63 = vld [vmem:[%s21875_s30 + $0xb88] sm:$0xff] }
0x1dcf   : > { %17720 = vmatpush1.bf16.msra.mxu0 %v17719_v57  ;;  %17728 = vmatpush1.bf16.msra.mxu1 %v17727_v19  ;;  %v17777_v57 = vpack.c.bf16 %v14877_v1, %v14876_v0  ;;  %v14860_v19 = vld [vmem:[%s21875_s30 + $0x940] sm:$0xff]  ;;  %v17825_v0 = vpack.c.bf16 %v14933_v63, %v14932_v62  ;;  %v20120_v1 = vld [vmem:[%s21880_s24 + $0x10] sm:$0xff] }
0x1dd0   : > { %17730 = vmatprep.subr.bf16.mxu0 %v17729_v7  ;;  %17762 = vmatprep.subr.bf16.mxu1 %v17761_v52  ;;  %v14847_v7 = vld [vmem:[%s21875_s30 + $0x8d8] sm:$0xff]  ;;  %v14878_v52 = vld [vmem:[%s21875_s30 + $0x9d0] sm:$0xff]  ;;  %v17779_v25 = vpack.c.bf16 %v14861_v20, %v14860_v19  ;;  %v5424_v18 = vrot.slane %v20120_v1, %v19570_v16  ;;  %v5432_v37 = vrot.slane %v20120_v1, %v19573_v17  ;;  %v14884_v19 = vld [vmem:[%s21875_s30 + $0xa00] sm:$0xff] }
0x1dd1   : > { %v17749_v28 = vpack.c.bf16 %v14847_v7, %v14846_v42  ;;  %v14885_v20 = vld [vmem:[%s21875_s30 + $0xa08] sm:$0xff]  ;;  %v14920_v62 = vld [vmem:[%s21875_s30 + $0xb20] sm:$0xff]  ;;  %v14906_v63 = vld [vmem:[%s21875_s30 + $0xab0] sm:$0xff] }
0x1dd2   : > { %15083 = vmatmul.mubr.msk.f32.vlgmr.msra.gmra.mrb[44].mxu0 %vm1320_vm1, %v19993_v9  ;;  %15084 = vmatmul.mubr.msk.f32.vlgmr.msra.gmra.mrb[52].mxu1 %vm1320_vm1, %v19993_v9 }
0x1dd3   : > { %17732 = vmatpush3.bf16.msra.mxu0 %v17731_v36  ;;  %17764 = vmatpush3.bf16.msra.mxu1 %v17763_v29  ;;  %v17781_v36 = vpack.c.bf16 %v14879_v21, %v14878_v52  ;;  %v14862_v29 = vld [vmem:[%s21875_s30 + $0x950] sm:$0xff] }
0x1dd4   : > { %17734 = vmatprep.subr.bf16.mxu0 %v17733_v32  ;;  %17766 = vmatprep.subr.bf16.mxu1 %v17765_v38  ;;  %v14849_v32 = vld [vmem:[%s21875_s30 + $0x8e8] sm:$0xff]  ;;  %v14880_v38 = vld [vmem:[%s21875_s30 + $0x9e0] sm:$0xff]  ;;  %v17783_v11 = vpack.c.bf16 %v14863_v30, %v14862_v29  ;;  %v14934_v29 = vld [vmem:[%s21875_s30 + $0xb90] sm:$0xff] }
0x1dd5   : > { %v17753_v23 = vpack.c.bf16 %v14849_v32, %v14848_v31  ;;  %v17785_v40 = vpack.c.bf16 %v14881_v14, %v14880_v38  ;;  %v14935_v30 = vld [vmem:[%s21875_s30 + $0xb98] sm:$0xff]  ;;  %v17795_v38 = vpack.c.bf16 %v14885_v20, %v14884_v19 }
0x1dd7   : > { %17736 = vmatpush3.bf16.msra.mxu0 %v17735_v41  ;;  %17768 = vmatpush3.bf16.msra.mxu1 %v17767_v44  ;;  %v14833_v41 = vld [vmem:[%s21875_s30 + $0x868] sm:$0xff]  ;;  %v14864_v44 = vld [vmem:[%s21875_s30 + $0x960] sm:$0xff] }
0x1dd8   : > { %17738 = vmatprep.subr.bf16.mxu0 %v17737_v46  ;;  %17770 = vmatprep.subr.bf16.mxu1 %v17769_v47  ;;  %v17755_v45 = vpack.c.bf16 %v14833_v41, %v14832_v39  ;;  %v17787_v46 = vpack.c.bf16 %v14865_v10, %v14864_v44  ;;  %v14850_v47 = vld [vmem:[%s21875_s30 + $0x8f0] sm:$0xff]  ;;  %v17829_v41 = vpack.c.bf16 %v14935_v30, %v14934_v29  ;;  %v14919_v10 = vld [vmem:[%s21875_s30 + $0xb18] sm:$0xff] }
0x1dd9   : > { %v17757_v50 = vpack.c.bf16 %v14851_v48, %v14850_v47  ;;  %v14918_v44 = vld [vmem:[%s21875_s30 + $0xb10] sm:$0xff]  ;;  %v5448_v47 = vrot.slane %v20120_v1, %v19592_v35  ;;  %v14905_v48 = vld [vmem:[%s21875_s30 + $0xaa8] sm:$0xff] }
0x1ddb   : > { %17740 = vmatpush3.bf16.msra.mxu0 %v17739_v54  ;;  %17772 = vmatpush3.bf16.msra.mxu1 %v17771_v55  ;;  %v17789_v54 = vpack.c.bf16 %v14883_v51, %v14882_v49  ;;  %v17759_v55 = vpack.c.bf16 %v14835_v15, %v14834_v53  ;;  %v14936_v49 = vld [vmem:[%s21875_s30 + $0xba0] sm:$0xff] }
0x1ddc   : > { %17742 = vmatprep.subr.bf16.mxu0 %v17741_v59  ;;  %17774 = vmatprep.subr.bf16.mxu1 %v17773_v60  ;;  %v17791_v59 = vpack.c.bf16 %v14867_v58, %v14866_v22  ;;  %v14900_v60 = vld [vmem:[%s21875_s30 + $0xa80] sm:$0xff]  ;;  %v14889_v22 = vld [vmem:[%s21875_s30 + $0xa28] sm:$0xff] }
0x1ddd   : > { %v17793_v43 = vpack.c.bf16 %v14901_v61, %v14900_v60 }
0x1ddf   : > { %17744 = vmatpush3.bf16.msra.mxu0 %v17743_v2  ;;  %17776 = vmatpush3.bf16.msra.mxu1 %v17775_v4  ;;  %v5420_v2 = vrot.slane %v20120_v1, %v19561_v12  ;;  %v5428_v4 = vrot.slane %v20120_v1, %v19564_v13 }
0x1de0   : > { %17746 = vmatprep.subr.bf16.mxu0 %v17745_v56  ;;  %17778 = vmatprep.subr.bf16.mxu1 %v17777_v57 }
0x1de3   : > { %17748 = vmatpush3.bf16.msra.mxu0 %v17747_v24  ;;  %17780 = vmatpush3.bf16.msra.mxu1 %v17779_v25  ;;  %v14916_v24 = vld [vmem:[%s21875_s30 + $0xb00] sm:$0xff]  ;;  %v14917_v25 = vld [vmem:[%s21875_s30 + $0xb08] sm:$0xff] }
0x1de4   : > { %17750 = vmatprep.subr.bf16.mxu0 %v17749_v28  ;;  %17782 = vmatprep.subr.bf16.mxu1 %v17781_v36  ;;  %v14903_v36 = vld [vmem:[%s21875_s30 + $0xa98] sm:$0xff]  ;;  %v17827_v14 = vpack.c.bf16 %v14917_v25, %v14916_v24  ;;  %v14922_v24 = vld [vmem:[%s21875_s30 + $0xb30] sm:$0xff] }
0x1de5   : > { %v14923_v25 = vld [vmem:[%s21875_s30 + $0xb38] sm:$0xff] }
0x1de7   : > { %17752 = vmatpush3.bf16.msra.mxu0 %v17751_v33  ;;  %17784 = vmatpush3.bf16.msra.mxu1 %v17783_v11  ;;  %v14886_v33 = vld [vmem:[%s21875_s30 + $0xa10] sm:$0xff]  ;;  %v14887_v11 = vld [vmem:[%s21875_s30 + $0xa18] sm:$0xff] }
0x1de8   : > { %17754 = vmatprep.subr.bf16.mxu0 %v17753_v23  ;;  %17786 = vmatprep.subr.bf16.mxu1 %v17785_v40  ;;  %v17797_v40 = vpack.c.bf16 %v14903_v36, %v14902_v26  ;;  %v17799_v15 = vpack.c.bf16 %v14887_v11, %v14886_v33  ;;  %v14908_v26 = vld [vmem:[%s21875_s30 + $0xac0] sm:$0xff]  ;;  %v14941_v36 = vld [vmem:[%s21875_s30 + $0xbc8] sm:$0xff] }
0x1deb   : > { %17756 = vmatpush3.bf16.msra.mxu0 %v17755_v45  ;;  %17788 = vmatpush3.bf16.msra.mxu1 %v17787_v46  ;;  %v14904_v45 = vld [vmem:[%s21875_s30 + $0xaa0] sm:$0xff]  ;;  %v5440_v46 = vrot.slane %v20120_v1, %v19589_v34 }
0x1dec   : > { %17758 = vmatprep.subr.bf16.mxu0 %v17757_v50  ;;  %17790 = vmatprep.subr.bf16.mxu1 %v17789_v54  ;;  %v14937_v50 = vld [vmem:[%s21875_s30 + $0xba8] sm:$0xff]  ;;  %v17831_v54 = vpack.c.bf16 %v14919_v10, %v14918_v44  ;;  %v17801_v60 = vpack.c.bf16 %v14905_v48, %v14904_v45  ;;  %v14910_v44 = vld [vmem:[%s21875_s30 + $0xad0] sm:$0xff]  ;;  %v14911_v10 = vld [vmem:[%s21875_s30 + $0xad8] sm:$0xff] }
0x1ded   : > { %v17833_v61 = vpack.c.bf16 %v14937_v50, %v14936_v49  ;;  %v14942_v45 = vld [vmem:[%s21875_s30 + $0xbd0] sm:$0xff] }
0x1dee   : > { %v14894_v50 = vld [vmem:[%s21875_s30 + $0xa50] sm:$0xff] }
0x1def   : > { %17760 = vmatpush3.bf16.msra.mxu0 %v17759_v55  ;;  %17792 = vmatpush3.bf16.msra.mxu1 %v17791_v59  ;;  %v14888_v55 = vld [vmem:[%s21875_s30 + $0xa20] sm:$0xff] }
0x1df0   : > { %17794 = vmatprep.subr.bf16.mxu0 %v17793_v43  ;;  %17826 = vmatprep.subr.bf16.mxu1 %v17825_v0  ;;  %v14921_v43 = vld [vmem:[%s21875_s30 + $0xb28] sm:$0xff]  ;;  %v17803_v19 = vpack.c.bf16 %v14889_v22, %v14888_v55  ;;  %v17813_v55 = vpack.c.bf16 %v14911_v10, %v14910_v44 }
0x1df1   : > { %v17835_v20 = vpack.c.bf16 %v14921_v43, %v14920_v62  ;;  %v14944_v62 = vld [vmem:[%s21875_s30 + $0xbe0] sm:$0xff]  ;;  %v14945_v43 = vld [vmem:[%s21875_s30 + $0xbe8] sm:$0xff] }
0x1df2   : > { %v14965_v44 = vld [vmem:[%s21875_s30 + $0xc88] sm:$0xff] }
0x1e8d   : > { %v5566_v56 = vpop.f32.mrb[38].mxu0  ;;  %v5637_v57 = vpop.f32.mrb[46].mxu1 }
0x1e8e   : > { %v5567_v42 = vadd.f32 %v5566_v56, %v5420_v2  ;;  %v5638_v7 = vadd.f32 %v5637_v57, %v5428_v4  ;;  %v5568_v52 = vpop.f32.mrb[39].mxu0  ;;  %v5639_v21 = vpop.f32.mrb[47].mxu1  ;;  %v14907_v4 = vld [vmem:[%s21875_s30 + $0xab8] sm:$0xff] }
0x1e8f   : > { %v5569_v27 = vadd.f32 %v5568_v52, %v5424_v18  ;;  %v5640_v28 = vadd.f32 %v5639_v21, %v5432_v37  ;;  %v14938_v18 = vld [vmem:[%s21875_s30 + $0xbb0] sm:$0xff]  ;;  %v14939_v37 = vld [vmem:[%s21875_s30 + $0xbb8] sm:$0xff]  ;;  %v17805_v52 = vpack.c.bf16 %v14907_v4, %v14906_v63 }
0x1e90   : > { %v6068_v39 = vmax.f32 %v5567_v42, 0.0  ;;  %v6070_v23 = vmax.f32 %v5638_v7, 0.0  ;;  %v14890_v42 = vld [vmem:[%s21875_s30 + $0xa30] sm:$0xff]  ;;  %v14891_v7 = vld [vmem:[%s21875_s30 + $0xa38] sm:$0xff]  ;;  %v17837_v21 = vpack.c.bf16 %v14939_v37, %v14938_v18  ;;  %v14896_v18 = vld [vmem:[%s21875_s30 + $0xa60] sm:$0xff] }
0x1e91   : > { %v6069_v31 = vmax.f32 %v5569_v27, 0.0  ;;  %v6071_v32 = vmax.f32 %v5640_v28, 0.0  ;;  %v14909_v27 = vld [vmem:[%s21875_s30 + $0xac8] sm:$0xff]  ;;  %v14940_v28 = vld [vmem:[%s21875_s30 + $0xbc0] sm:$0xff] }
0x1e92   : > { %v14897_v37 = vld [vmem:[%s21875_s30 + $0xa68] sm:$0xff] }
0x1e93   : > { %6154 = vmatprep.mubr.f32.mxu0 %v6069_v31  ;;  %6224 = vmatprep.mubr.f32.mxu1 %v6071_v32  ;;  %v17807_v31 = vpack.c.bf16 %v14891_v7, %v14890_v42  ;;  %v17839_v32 = vpack.c.bf16 %v14923_v25, %v14922_v24  ;;  %v17849_v42 = vpack.c.bf16 %v14945_v43, %v14944_v62  ;;  %v14928_v7 = vld [vmem:[%s21875_s30 + $0xb60] sm:$0xff]  ;;  %v14915_v24 = vld [vmem:[%s21875_s30 + $0xaf8] sm:$0xff]  ;;  %v14946_v25 = vld [vmem:[%s21875_s30 + $0xbf0] sm:$0xff] }
0x1e94   : > { %6155 = vmatmul.mubr.f32.vlgmr.msra.gmra.mrb[46].mxu0 %v6068_v39  ;;  %6225 = vmatmul.mubr.f32.vlgmr.msra.gmra.mrb[54].mxu1 %v6070_v23  ;;  %v17809_v39 = vpack.c.bf16 %v14909_v27, %v14908_v26  ;;  %v17841_v23 = vpack.c.bf16 %v14941_v36, %v14940_v28  ;;  %v14947_v26 = vld [vmem:[%s21875_s30 + $0xbf8] sm:$0xff]  ;;  %v5436_v27 = vrot.slane %v20120_v1, %v19662_v5  ;;  %v14966_v62 = vld [vmem:[%s21875_s30 + $0xc90] sm:$0xff] }
0x1e95   : > { %v20150_v51 = vpop.f32.mrb[40].mxu0  ;;  %v20152_v53 = vpop.f32.mrb[48].mxu1  ;;  %17796 = vmatpush3.bf16.msra.mxu0 %v17795_v38  ;;  %17828 = vmatpush3.bf16.msra.mxu1 %v17827_v14  ;;  %v14892_v38 = vld [vmem:[%s21875_s30 + $0xa40] sm:$0xff]  ;;  %v14893_v14 = vld [vmem:[%s21875_s30 + $0xa48] sm:$0xff]  ;;  %v17819_v28 = vpack.c.bf16 %v14897_v37, %v14896_v18  ;;  %v14950_v37 = vld [vmem:[%s21875_s30 + $0xc10] sm:$0xff] }
0x1e96   : > { %v5710_v58 = vpop.f32.mrb[41].mxu0  ;;  %v5781_v59 = vpop.f32.mrb[49].mxu1  ;;  %17798 = vmatprep.subr.bf16.mxu0 %v17797_v40  ;;  %17830 = vmatprep.subr.bf16.mxu1 %v17829_v41  ;;  %v14924_v40 = vld [vmem:[%s21875_s30 + $0xb40] sm:$0xff]  ;;  %v14925_v41 = vld [vmem:[%s21875_s30 + $0xb48] sm:$0xff]  ;;  %v17811_v48 = vpack.c.bf16 %v14893_v14, %v14892_v38  ;;  %v14930_v38 = vld [vmem:[%s21875_s30 + $0xb70] sm:$0xff]  ;;  %v5444_v14 = vrot.slane %v20120_v1, %v19646_v8 }
0x1e97   : > { %v5711_v0 = vadd.f32 %v5710_v58, %v5440_v46  ;;  %v5782_v2 = vadd.f32 %v5781_v59, %v5448_v47  ;;  %v14943_v46 = vld [vmem:[%s21875_s30 + $0xbd8] sm:$0xff]  ;;  %v17843_v49 = vpack.c.bf16 %v14925_v41, %v14924_v40  ;;  %v14926_v58 = vld [vmem:[%s21875_s30 + $0xb50] sm:$0xff]  ;;  %v14964_v41 = vld [vmem:[%s21875_s30 + $0xc80] sm:$0xff] }
0x1e98   : > { %v20187_v47 = vld [vmem:[%s21880_s24 + $0x18] sm:$0xff]  ;;  %v17845_v22 = vpack.c.bf16 %v14943_v46, %v14942_v45  ;;  %v14996_v45 = vld [vmem:[%s21875_s30 + $0xd80] sm:$0xff]  ;;  %v14997_v46 = vld [vmem:[%s21875_s30 + $0xd88] sm:$0xff]  ;;  %s1300_s24 = scalar_lea.vmem %s21911_s14, %s21912_s19  ;;  %s21913_s14 = sld [smem:[#allocation24_spill]] }
0x1e99   : > { %v6073_v56 = vmax.f32 %v5711_v0, 0.0  ;;  %v6075_v57 = vmax.f32 %v5782_v2, 0.0  ;;  %17800 = vmatpush3.bf16.msra.mxu0 %v17799_v15  ;;  %17832 = vmatpush3.bf16.msra.mxu1 %v17831_v54  ;;  %v14895_v15 = vld [vmem:[%s21875_s30 + $0xa58] sm:$0xff]  ;;  %v5476_v54 = vrot.slane %v20187_v47, %v19646_v8  ;;  %v5456_v10 = vrot.slane %v20187_v47, %v19570_v16  ;;  %s21914_s19 = sld [smem:[#allocation8_spill]] }
0x1e9a   : > { %17802 = vmatprep.subr.bf16.mxu0 %v17801_v60  ;;  %17834 = vmatprep.subr.bf16.mxu1 %v17833_v61  ;;  %v14927_v59 = vld [vmem:[%s21875_s30 + $0xb58] sm:$0xff]  ;;  %v14912_v60 = vld [vmem:[%s21875_s30 + $0xae0] sm:$0xff]  ;;  %v14913_v61 = vld [vmem:[%s21875_s30 + $0xae8] sm:$0xff]  ;;  %v17815_v2 = vpack.c.bf16 %v14895_v15, %v14894_v50  ;;  %v17857_v50 = vpack.c.bf16 %v14965_v44, %v14964_v41  ;;  %v5709_v15 = vadd.f32 %v20150_v51, %v5436_v27 }
0x1e9b   : > { %6294 = vmatprep.mubr.f32.mxu0 %v6073_v56  ;;  %6364 = vmatprep.mubr.f32.mxu1 %v6075_v57  ;;  %v17847_v4 = vpack.c.bf16 %v14927_v59, %v14926_v58  ;;  %v14931_v40 = vld [vmem:[%s21875_s30 + $0xb78] sm:$0xff]  ;;  %v14949_v58 = vld [vmem:[%s21875_s30 + $0xc08] sm:$0xff]  ;;  %v15000_v27 = vld [vmem:[%s21875_s30 + $0xda0] sm:$0xff] }
0x1e9c   : > { %v14999_v51 = vld [vmem:[%s21875_s30 + $0xd98] sm:$0xff]  ;;  %v14970_v41 = vld [vmem:[%s21875_s30 + $0xcb0] sm:$0xff] }
0x1e9d   : > { %v20170_v29 = vpop.f32.mrb[42].mxu0  ;;  %v20172_v30 = vpop.f32.mrb[50].mxu1  ;;  %17804 = vmatpush3.bf16.msra.mxu0 %v17803_v19  ;;  %17836 = vmatpush3.bf16.msra.mxu1 %v17835_v20  ;;  %v17817_v20 = vpack.c.bf16 %v14913_v61, %v14912_v60  ;;  %v14980_v60 = vld [vmem:[%s21875_s30 + $0xd00] sm:$0xff]  ;;  %v14981_v61 = vld [vmem:[%s21875_s30 + $0xd08] sm:$0xff]  ;;  %v14971_v44 = vld [vmem:[%s21875_s30 + $0xcb8] sm:$0xff] }
0x1e9e   : > { %v20176_v33 = vpop.f32.mrb[43].mxu0  ;;  %v20178_v11 = vpop.f32.mrb[51].mxu1  ;;  %17806 = vmatprep.subr.bf16.mxu0 %v17805_v52  ;;  %17838 = vmatprep.subr.bf16.mxu1 %v17837_v21  ;;  %v14929_v52 = vld [vmem:[%s21875_s30 + $0xb68] sm:$0xff]  ;;  %v14914_v21 = vld [vmem:[%s21875_s30 + $0xaf0] sm:$0xff] }
0x1e9f   : > { %v17851_v36 = vpack.c.bf16 %v14929_v52, %v14928_v7  ;;  %v5853_v59 = vadd.f32 %v20176_v33, %v5456_v10  ;;  %v17891_v33 = vpack.c.bf16 %v14981_v61, %v14980_v60  ;;  %v15002_v10 = vld [vmem:[%s21875_s30 + $0xdb0] sm:$0xff]  ;;  %v15005_v60 = vld [vmem:[%s21875_s30 + $0xdc8] sm:$0xff] }
0x1ea1   : > { %17808 = vmatpush3.bf16.msra.mxu0 %v17807_v31  ;;  %17840 = vmatpush3.bf16.msra.mxu1 %v17839_v32  ;;  %v14898_v31 = vld [vmem:[%s21875_s30 + $0xa70] sm:$0xff]  ;;  %v14899_v32 = vld [vmem:[%s21875_s30 + $0xa78] sm:$0xff] }
0x1ea2   : > { %17810 = vmatprep.subr.bf16.mxu0 %v17809_v39  ;;  %17842 = vmatprep.subr.bf16.mxu1 %v17841_v23  ;;  %v17821_v39 = vpack.c.bf16 %v14915_v24, %v14914_v21  ;;  %v17853_v23 = vpack.c.bf16 %v14947_v26, %v14946_v25  ;;  %v17823_v1 = vpack.c.bf16 %v14899_v32, %v14898_v31  ;;  %v14983_v21 = vld [vmem:[%s21875_s30 + $0xd18] sm:$0xff]  ;;  %v14968_v24 = vld [vmem:[%s21875_s30 + $0xca0] sm:$0xff]  ;;  %v14969_v25 = vld [vmem:[%s21875_s30 + $0xca8] sm:$0xff] }
0x1ea3   : > { %v17865_v32 = vpack.c.bf16 %v14969_v25, %v14968_v24  ;;  %v14990_v24 = vld [vmem:[%s21875_s30 + $0xd50] sm:$0xff] }
0x1ea5   : > { %v20199_v63 = vpop.f32.mrb[44].mxu0  ;;  %v6063_v0 = vpop.f32.mrb[52].mxu1  ;;  %17812 = vmatpush3.bf16.msra.mxu0 %v17811_v48  ;;  %17844 = vmatpush3.bf16.msra.mxu1 %v17843_v49  ;;  %v5464_v48 = vrot.slane %v20187_v47, %v19573_v17  ;;  %v17855_v49 = vpack.c.bf16 %v14931_v40, %v14930_v38  ;;  %v14952_v38 = vld [vmem:[%s21875_s30 + $0xc20] sm:$0xff]  ;;  %v14985_v40 = vld [vmem:[%s21875_s30 + $0xd28] sm:$0xff] }
0x1ea6   : > { %v20203_v56 = vadd.f32 %v6063_v0, %v5476_v54  ;;  %v20205_v57 = vpop.f32.mrb[45].mxu0  ;;  %v20207_v19 = vpop.f32.mrb[53].mxu1  ;;  %17814 = vmatprep.subr.bf16.mxu0 %v17813_v55  ;;  %17846 = vmatprep.subr.bf16.mxu1 %v17845_v22  ;;  %v5780_v54 = vadd.f32 %v20152_v53, %v5444_v14  ;;  %v17889_v55 = vpack.c.bf16 %v14997_v46, %v14996_v45  ;;  %v14948_v22 = vld [vmem:[%s21875_s30 + $0xc00] sm:$0xff]  ;;  %v14967_v0 = vld [vmem:[%s21875_s30 + $0xc98] sm:$0xff]  ;;  %v14953_v14 = vld [vmem:[%s21875_s30 + $0xc28] sm:$0xff] }
0x1ea7   : > { %v5924_v43 = vadd.f32 %v20178_v11, %v5464_v48  ;;  %v17859_v53 = vpack.c.bf16 %v14949_v58, %v14948_v22  ;;  %v6077_v11 = vmax.f32 %v5853_v59, 0.0  ;;  %v17861_v7 = vpack.c.bf16 %v14967_v0, %v14966_v62  ;;  %v15003_v45 = vld [vmem:[%s21875_s30 + $0xdb8] sm:$0xff]  ;;  %v14972_v22 = vld [vmem:[%s21875_s30 + $0xcc0] sm:$0xff]  ;;  %v14973_v58 = vld [vmem:[%s21875_s30 + $0xcc8] sm:$0xff] }
0x1ea8   : > { %v6074_v18 = vmax.f32 %v5780_v54, 0.0  ;;  %v17867_v46 = vpack.c.bf16 %v14953_v14, %v14952_v38  ;;  %v17901_v54 = vpack.c.bf16 %v15003_v45, %v15002_v10  ;;  %v15004_v59 = vld [vmem:[%s21875_s30 + $0xdc0] sm:$0xff]  ;;  %v14978_v10 = vld [vmem:[%s21875_s30 + $0xcf0] sm:$0xff]  ;;  %v14979_v45 = vld [vmem:[%s21875_s30 + $0xcf8] sm:$0xff] }
0x1ea9   : > { %17816 = vmatpush3.bf16.msra.mxu0 %v17815_v2  ;;  %17848 = vmatpush3.bf16.msra.mxu1 %v17847_v4  ;;  %v14998_v2 = vld [vmem:[%s21875_s30 + $0xd90] sm:$0xff]  ;;  %v6072_v4 = vmax.f32 %v5709_v15, 0.0  ;;  %v6079_v26 = vmax.f32 %v5924_v43, 0.0  ;;  %v17873_v43 = vpack.c.bf16 %v14973_v58, %v14972_v22  ;;  %v14956_v0 = vld [vmem:[%s21875_s30 + $0xc40] sm:$0xff]  ;;  %v5460_v58 = vrot.slane %v20187_v47, %v19564_v13 }
0x1eaa   : > { %17818 = vmatprep.subr.bf16.mxu0 %v17817_v20  ;;  %17850 = vmatprep.subr.bf16.mxu1 %v17849_v42  ;;  %v14951_v20 = vld [vmem:[%s21875_s30 + $0xc18] sm:$0xff]  ;;  %v14982_v42 = vld [vmem:[%s21875_s30 + $0xd10] sm:$0xff]  ;;  %v17893_v52 = vpack.c.bf16 %v14999_v51, %v14998_v2  ;;  %v14957_v2 = vld [vmem:[%s21875_s30 + $0xc48] sm:$0xff] }
0x1eab   : > { %v17895_v31 = vpack.c.bf16 %v14983_v21, %v14982_v42  ;;  %v14986_v15 = vld [vmem:[%s21875_s30 + $0xd30] sm:$0xff]  ;;  %v14988_v51 = vld [vmem:[%s21875_s30 + $0xd40] sm:$0xff]  ;;  %v17875_v42 = vpack.c.bf16 %v14957_v2, %v14956_v0  ;;  %v14959_v21 = vld [vmem:[%s21875_s30 + $0xc58] sm:$0xff] }
0x1eac   : > { %v14994_v22 = vld [vmem:[%s21875_s30 + $0xd70] sm:$0xff]  ;;  %v15060_v0 = vld [vmem:[%s21875_s30 + $0xf80] sm:$0xff]  ;;  %v15061_v2 = vld [vmem:[%s21875_s30 + $0xf88] sm:$0xff] }
0x1ead   : > { %17820 = vmatpush3.bf16.msra.mxu0 %v17819_v28  ;;  %17852 = vmatpush3.bf16.msra.mxu1 %v17851_v36  ;;  %v15001_v28 = vld [vmem:[%s21875_s30 + $0xda8] sm:$0xff]  ;;  %v17863_v36 = vpack.c.bf16 %v14951_v20, %v14950_v37  ;;  %v15006_v37 = vld [vmem:[%s21875_s30 + $0xdd0] sm:$0xff]  ;;  %v15007_v20 = vld [vmem:[%s21875_s30 + $0xdd8] sm:$0xff] }
0x1eae   : > { %17822 = vmatprep.subr.bf16.mxu0 %v17821_v39  ;;  %17854 = vmatprep.subr.bf16.mxu1 %v17853_v23  ;;  %v14984_v39 = vld [vmem:[%s21875_s30 + $0xd20] sm:$0xff]  ;;  %v17897_v23 = vpack.c.bf16 %v15001_v28, %v15000_v27  ;;  %v17909_v25 = vpack.c.bf16 %v15007_v20, %v15006_v37  ;;  %v14977_v28 = vld [vmem:[%s21875_s30 + $0xce8] sm:$0xff] }
0x1eaf   : > { %v17899_v48 = vpack.c.bf16 %v14985_v40, %v14984_v39  ;;  %v14976_v27 = vld [vmem:[%s21875_s30 + $0xce0] sm:$0xff]  ;;  %v15013_v20 = vld [vmem:[%s21875_s30 + $0xe08] sm:$0xff] }
0x1eb0   : > { %v17881_v14 = vpack.c.bf16 %v14977_v28, %v14976_v27  ;;  %v14960_v39 = vld [vmem:[%s21875_s30 + $0xc60] sm:$0xff]  ;;  %v15062_v27 = vld [vmem:[%s21875_s30 + $0xf90] sm:$0xff] }
0x1eb1   : > { %17824 = vmatpush3.bf16.msra.mxu0 %v17823_v1  ;;  %17856 = vmatpush3.bf16.msra.mxu1 %v17855_v49  ;;  %v17869_v1 = vpack.c.bf16 %v14971_v44, %v14970_v41  ;;  %v14954_v49 = vld [vmem:[%s21875_s30 + $0xc30] sm:$0xff]  ;;  %v14992_v40 = vld [vmem:[%s21875_s30 + $0xd60] sm:$0xff]  ;;  %v14993_v44 = vld [vmem:[%s21875_s30 + $0xd68] sm:$0xff] }
0x1eb2   : > { %17858 = vmatprep.subr.bf16.mxu0 %v17857_v50  ;;  %17890 = vmatprep.subr.bf16.mxu1 %v17889_v55  ;;  %v14955_v50 = vld [vmem:[%s21875_s30 + $0xc38] sm:$0xff]  ;;  %v15012_v37 = vld [vmem:[%s21875_s30 + $0xe00] sm:$0xff] }
0x1eb3   : > { %v14987_v55 = vld [vmem:[%s21875_s30 + $0xd38] sm:$0xff]  ;;  %v17871_v61 = vpack.c.bf16 %v14955_v50, %v14954_v49  ;;  %v5452_v49 = vrot.slane %v20187_v47, %v19561_v12  ;;  %v17915_v50 = vpack.c.bf16 %v14993_v44, %v14992_v40  ;;  %v15064_v44 = vld [vmem:[%s21875_s30 + $0xfa0] sm:$0xff] }
0x1eb4   : > { %6295 = vmatmul.mubr.f32.vlgmr.msra.gmra.mrb[48].mxu0 %v6072_v4  ;;  %6365 = vmatmul.mubr.f32.vlgmr.msra.gmra.mrb[56].mxu1 %v6074_v18  ;;  %v17903_v62 = vpack.c.bf16 %v14987_v55, %v14986_v15  ;;  %v14989_v4 = vld [vmem:[%s21875_s30 + $0xd48] sm:$0xff]  ;;  %v14974_v18 = vld [vmem:[%s21875_s30 + $0xcd0] sm:$0xff]  ;;  %v17885_v15 = vpack.c.bf16 %v14979_v45, %v14978_v10  ;;  %v14963_v55 = vld [vmem:[%s21875_s30 + $0xc78] sm:$0xff] }
0x1eb5   : > { %17860 = vmatpush3.bf16.msra.mxu0 %v17859_v53  ;;  %6434 = vmatprep.mubr.f32.mxu0 %v6077_v11  ;;  %v17905_v53 = vpack.c.bf16 %v15005_v60, %v15004_v59  ;;  %v17907_v11 = vpack.c.bf16 %v14989_v4, %v14988_v51  ;;  %v14995_v60 = vld [vmem:[%s21875_s30 + $0xd78] sm:$0xff]  ;;  %v5480_v51 = vrot.slane %v20187_v47, %v19592_v35  ;;  %v15065_v10 = vld [vmem:[%s21875_s30 + $0xfa8] sm:$0xff] }
0x1eb6   : > { %17892 = vmatpush3.bf16.msra.mxu1 %v17891_v33  ;;  %6504 = vmatprep.mubr.f32.mxu1 %v6079_v26  ;;  %v14975_v33 = vld [vmem:[%s21875_s30 + $0xcd8] sm:$0xff]  ;;  %v5851_v4 = vadd.f32 %v20170_v29, %v5452_v49  ;;  %v15030_v29 = vld [vmem:[%s21875_s30 + $0xe90] sm:$0xff]  ;;  %v15016_v49 = vld [vmem:[%s21875_s30 + $0xe20] sm:$0xff] }
0x1eb7   : > { %17862 = vmatprep.subr.bf16.mxu0 %v17861_v7  ;;  %17894 = vmatprep.subr.bf16.mxu1 %v17893_v52  ;;  %v17877_v7 = vpack.c.bf16 %v14975_v33, %v14974_v18  ;;  %v14958_v52 = vld [vmem:[%s21875_s30 + $0xc50] sm:$0xff]  ;;  %v14991_v26 = vld [vmem:[%s21875_s30 + $0xd58] sm:$0xff]  ;;  %v17919_v18 = vpack.c.bf16 %v14995_v60, %v14994_v22 }
0x1eb8   : > { %v17911_v38 = vpack.c.bf16 %v14991_v26, %v14990_v24  ;;  %v15031_v24 = vld [vmem:[%s21875_s30 + $0xe98] sm:$0xff]  ;;  %v17923_v26 = vpack.c.bf16 %v15013_v20, %v15012_v37  ;;  %v6076_v28 = vmax.f32 %v5851_v4, 0.0  ;;  %v15034_v22 = vld [vmem:[%s21875_s30 + $0xeb0] sm:$0xff]  ;;  %v15068_v37 = vld [vmem:[%s21875_s30 + $0xfc0] sm:$0xff] }
0x1eb9   : > { %17864 = vmatpush3.bf16.msra.mxu0 %v17863_v36  ;;  %v15008_v36 = vld [vmem:[%s21875_s30 + $0xde0] sm:$0xff]  ;;  %v15067_v60 = vld [vmem:[%s21875_s30 + $0xfb8] sm:$0xff]  ;;  %v15069_v20 = vld [vmem:[%s21875_s30 + $0xfc8] sm:$0xff] }
0x1eba   : > { %17896 = vmatpush3.bf16.msra.mxu1 %v17895_v31  ;;  %17866 = vmatprep.subr.bf16.mxu0 %v17865_v32  ;;  %v15009_v31 = vld [vmem:[%s21875_s30 + $0xde8] sm:$0xff]  ;;  %v17879_v32 = vpack.c.bf16 %v14959_v21, %v14958_v52  ;;  %v15051_v4 = vld [vmem:[%s21875_s30 + $0xf38] sm:$0xff] }
0x1ebb   : > { %17898 = vmatprep.subr.bf16.mxu1 %v17897_v23  ;;  %v14961_v23 = vld [vmem:[%s21875_s30 + $0xc68] sm:$0xff]  ;;  %v17913_v41 = vpack.c.bf16 %v15009_v31, %v15008_v36  ;;  %v15014_v31 = vld [vmem:[%s21875_s30 + $0xe10] sm:$0xff] }
0x1ebc   : > { %v15045_v52 = vld [vmem:[%s21875_s30 + $0xf08] sm:$0xff] }
0x1ebd   : > { %17868 = vmatpush3.bf16.msra.mxu0 %v17867_v46  ;;  %v15010_v46 = vld [vmem:[%s21875_s30 + $0xdf0] sm:$0xff] }
0x1ebe   : > { %17900 = vmatpush3.bf16.msra.mxu1 %v17899_v48  ;;  %17870 = vmatprep.subr.bf16.mxu0 %v17869_v1  ;;  %v15011_v48 = vld [vmem:[%s21875_s30 + $0xdf8] sm:$0xff]  ;;  %v17883_v1 = vpack.c.bf16 %v14961_v23, %v14960_v39  ;;  %v15033_v23 = vld [vmem:[%s21875_s30 + $0xea8] sm:$0xff] }
0x1ebf   : > { %17902 = vmatprep.subr.bf16.mxu1 %v17901_v54  ;;  %v14962_v54 = vld [vmem:[%s21875_s30 + $0xc70] sm:$0xff]  ;;  %v17917_v59 = vpack.c.bf16 %v15011_v48, %v15010_v46  ;;  %v15047_v39 = vld [vmem:[%s21875_s30 + $0xf18] sm:$0xff] }
0x1ec1   : > { %17872 = vmatpush3.bf16.msra.mxu0 %v17871_v61  ;;  %v15028_v61 = vld [vmem:[%s21875_s30 + $0xe80] sm:$0xff] }
0x1ec2   : > { %17904 = vmatpush3.bf16.msra.mxu1 %v17903_v62  ;;  %17874 = vmatprep.subr.bf16.mxu0 %v17873_v43  ;;  %v15029_v62 = vld [vmem:[%s21875_s30 + $0xe88] sm:$0xff]  ;;  %v5472_v43 = vrot.slane %v20187_v47, %v19589_v34 }
0x1ec3   : > { %17906 = vmatprep.subr.bf16.mxu1 %v17905_v53  ;;  %v17887_v53 = vpack.c.bf16 %v14963_v55, %v14962_v54  ;;  %v17921_v33 = vpack.c.bf16 %v15029_v62, %v15028_v61  ;;  %v17961_v54 = vpack.c.bf16 %v15065_v10, %v15064_v44  ;;  %v15049_v55 = vld [vmem:[%s21875_s30 + $0xf28] sm:$0xff] }
0x1ec4   : > { %v5995_v21 = vadd.f32 %v20205_v57, %v5472_v43  ;;  %v15046_v57 = vld [vmem:[%s21875_s30 + $0xf10] sm:$0xff]  ;;  %v15073_v44 = vld [vmem:[%s21875_s30 + $0xfe8] sm:$0xff] }
0x1ec5   : > { %17876 = vmatpush3.bf16.msra.mxu0 %v17875_v42  ;;  %v5922_v42 = vadd.f32 %v20172_v30, %v5460_v58  ;;  %v15063_v30 = vld [vmem:[%s21875_s30 + $0xf98] sm:$0xff]  ;;  %v17959_v48 = vpack.c.bf16 %v15047_v39, %v15046_v57  ;;  %v15022_v57 = vld [vmem:[%s21875_s30 + $0xe50] sm:$0xff] }
0x1ec6   : > { %17908 = vmatpush3.bf16.msra.mxu1 %v17907_v11  ;;  %17878 = vmatprep.subr.bf16.mxu0 %v17877_v7  ;;  %v17953_v11 = vpack.c.bf16 %v15061_v2, %v15060_v0  ;;  %v15044_v7 = vld [vmem:[%s21875_s30 + $0xf00] sm:$0xff]  ;;  %v6081_v40 = vmax.f32 %v5995_v21, 0.0  ;;  %v15035_v58 = vld [vmem:[%s21875_s30 + $0xeb8] sm:$0xff]  ;;  %v15018_v0 = vld [vmem:[%s21875_s30 + $0xe30] sm:$0xff] }
0x1ec7   : > { %17910 = vmatprep.subr.bf16.mxu1 %v17909_v25  ;;  %v6066_v25 = vadd.f32 %v20207_v19, %v5480_v51  ;;  %v17955_v36 = vpack.c.bf16 %v15045_v52, %v15044_v7  ;;  %v15032_v19 = vld [vmem:[%s21875_s30 + $0xea0] sm:$0xff]  ;;  %v17933_v43 = vpack.c.bf16 %v15035_v58, %v15034_v22  ;;  %v15019_v2 = vld [vmem:[%s21875_s30 + $0xe38] sm:$0xff]  ;;  %v15050_v51 = vld [vmem:[%s21875_s30 + $0xf30] sm:$0xff] }
0x1ec8   : > { %v15020_v52 = vld [vmem:[%s21875_s30 + $0xe40] sm:$0xff]  ;;  %v15021_v21 = vld [vmem:[%s21875_s30 + $0xe48] sm:$0xff]  ;;  %v15074_v22 = vld [vmem:[%s21875_s30 + $0xff0] sm:$0xff] }
0x1ec9   : > { %17880 = vmatpush3.bf16.msra.mxu0 %v17879_v32  ;;  %v15015_v32 = vld [vmem:[%s21875_s30 + $0xe18] sm:$0xff]  ;;  %v6083_v45 = vmax.f32 %v6066_v25, 0.0  ;;  %v15053_v25 = vld [vmem:[%s21875_s30 + $0xf48] sm:$0xff] }
0x1eca   : > { %17912 = vmatpush3.bf16.msra.mxu1 %v17911_v38  ;;  %17882 = vmatprep.subr.bf16.mxu0 %v17881_v14  ;;  %v6078_v38 = vmax.f32 %v5922_v42, 0.0  ;;  %v17925_v14 = vpack.c.bf16 %v15031_v24, %v15030_v29  ;;  %v17927_v46 = vpack.c.bf16 %v15015_v32, %v15014_v31  ;;  %v17935_v42 = vpack.c.bf16 %v15019_v2, %v15018_v0  ;;  %v15052_v29 = vld [vmem:[%s21875_s30 + $0xf40] sm:$0xff]  ;;  %v15075_v58 = vld [vmem:[%s21875_s30 + $0xff8] sm:$0xff] }
0x1ecb   : > { %17914 = vmatprep.subr.bf16.mxu1 %v17913_v41  ;;  %v17957_v41 = vpack.c.bf16 %v15063_v30, %v15062_v27  ;;  %v17969_v24 = vpack.c.bf16 %v15069_v20, %v15068_v37  ;;  %v15039_v27 = vld [vmem:[%s21875_s30 + $0xed8] sm:$0xff]  ;;  %v15070_v30 = vld [vmem:[%s21875_s30 + $0xfd0] sm:$0xff]  ;;  %v17971_v31 = vpack.c.bf16 %v15053_v25, %v15052_v29  ;;  %v17981_v2 = vpack.c.bf16 %v15075_v58, %v15074_v22  ;;  %v6714_v37 = vld [vmem:[%s21910_s8 + $0x8] sm:$0xff] }
0x1ecc   : > { %v15027_v0 = vld [vmem:[%s21875_s30 + $0xe78] sm:$0xff] }
0x1ecd   : > { %17884 = vmatpush3.bf16.msra.mxu0 %v17883_v1  ;;  %v17929_v1 = vpack.c.bf16 %v15033_v23, %v15032_v19  ;;  %v15055_v19 = vld [vmem:[%s21875_s30 + $0xf58] sm:$0xff]  ;;  %v15040_v23 = vld [vmem:[%s21875_s30 + $0xee0] sm:$0xff] }
0x1ece   : > { %17916 = vmatpush3.bf16.msra.mxu1 %v17915_v50  ;;  %17886 = vmatprep.subr.bf16.mxu0 %v17885_v15  ;;  %v15017_v50 = vld [vmem:[%s21875_s30 + $0xe28] sm:$0xff]  ;;  %v15048_v15 = vld [vmem:[%s21875_s30 + $0xf20] sm:$0xff] }
0x1ecf   : > { %17918 = vmatprep.subr.bf16.mxu1 %v17917_v59  ;;  %v15066_v59 = vld [vmem:[%s21875_s30 + $0xfb0] sm:$0xff]  ;;  %v17931_v61 = vpack.c.bf16 %v15017_v50, %v15016_v49  ;;  %v17963_v62 = vpack.c.bf16 %v15049_v55, %v15048_v15  ;;  %v15056_v49 = vld [vmem:[%s21875_s30 + $0xf60] sm:$0xff]  ;;  %v15057_v15 = vld [vmem:[%s21875_s30 + $0xf68] sm:$0xff] }
0x1ed0   : > { %v15043_v55 = vld [vmem:[%s21875_s30 + $0xef8] sm:$0xff] }
0x1ed1   : > { %17888 = vmatpush3.bf16.msra.mxu0 %v17887_v53  ;;  %v17965_v53 = vpack.c.bf16 %v15067_v60, %v15066_v59  ;;  %v5468_v60 = vrot.slane %v20187_v47, %v19662_v5 }
0x1ed2   : > { %17920 = vmatpush3.bf16.msra.mxu1 %v17919_v18  ;;  %17922 = vmatprep.subr.bf16.mxu0 %v17921_v33  ;;  %v15036_v18 = vld [vmem:[%s21875_s30 + $0xec0] sm:$0xff]  ;;  %v15037_v33 = vld [vmem:[%s21875_s30 + $0xec8] sm:$0xff] }
0x1ed3   : > { %17954 = vmatprep.subr.bf16.mxu1 %v17953_v11  ;;  %v17967_v11 = vpack.c.bf16 %v15051_v4, %v15050_v51  ;;  %v17937_v7 = vpack.c.bf16 %v15037_v33, %v15036_v18  ;;  %v15058_v51 = vld [vmem:[%s21875_s30 + $0xf70] sm:$0xff]  ;;  %v5993_v18 = vadd.f32 %v20199_v63, %v5468_v60  ;;  %v6713_v33 = vld [vmem:[%s21910_s8] sm:$0xff] }
0x1ed4   : > { %6435 = vmatmul.mubr.f32.vlgmr.msra.gmra.mrb[50].mxu0 %v6076_v28  ;;  %v15071_v28 = vld [vmem:[%s21875_s30 + $0xfd8] sm:$0xff]  ;;  %v17986_v20 = vpack.c.bf16 %v6714_v37, %v6713_v33  ;;  %v15092_v60 = vld [vmem:[%s21913_s14] ss:$0 sm:$0xff] }
0x1ed5   : > { %6505 = vmatmul.mubr.f32.vlgmr.msra.gmra.mrb[58].mxu1 %v6078_v38  ;;  %17924 = vmatpush3.bf16.msra.mxu0 %v17923_v26  ;;  %v15038_v26 = vld [vmem:[%s21875_s30 + $0xed0] sm:$0xff]  ;;  %v15023_v38 = vld [vmem:[%s21875_s30 + $0xe58] sm:$0xff]  ;;  %v17973_v39 = vpack.c.bf16 %v15071_v28, %v15070_v30 }
0x1ed6   : > { %6574 = vmatprep.mubr.f32.mxu0 %v6081_v40  ;;  %17956 = vmatpush3.bf16.msra.mxu1 %v17955_v36  ;;  %v17939_v36 = vpack.c.bf16 %v15021_v21, %v15020_v52  ;;  %v17941_v32 = vpack.c.bf16 %v15039_v27, %v15038_v26  ;;  %v15041_v40 = vld [vmem:[%s21875_s30 + $0xee8] sm:$0xff]  ;;  %v17943_v10 = vpack.c.bf16 %v15023_v38, %v15022_v57  ;;  %v6082_v52 = vmax.f32 %v20203_v56, 0.0  ;;  %v20389_v21 = vld [vmem:[%s1300_s24] sm:$0xff]  ;;  %s20417_s24 = scalar_lea.vmem %s21914_s19, %s19285_s11  ;;  %s21916_s11 = sld [smem:[#allocation26_spill]] }
0x1ed7   : > { %6644 = vmatprep.mubr.f32.mxu1 %v6083_v45  ;;  %17926 = vmatprep.subr.bf16.mxu0 %v17925_v14  ;;  %v15054_v14 = vld [vmem:[%s21875_s30 + $0xf50] sm:$0xff]  ;;  %s21917_s19 = sld [smem:[#allocation31_spill]] }
0x1ed8   : > { %17958 = vmatprep.subr.bf16.mxu1 %v17957_v41  ;;  %v15072_v41 = vld [vmem:[%s21875_s30 + $0xfe0] sm:$0xff]  ;;  %v17975_v45 = vpack.c.bf16 %v15055_v19, %v15054_v14 }
0x1ed9   : > { %17928 = vmatpush3.bf16.msra.mxu0 %v17927_v46  ;;  %v17945_v46 = vpack.c.bf16 %v15041_v40, %v15040_v23  ;;  %v17977_v50 = vpack.c.bf16 %v15073_v44, %v15072_v41 }
0x1eda   : > { %17960 = vmatpush3.bf16.msra.mxu1 %v17959_v48  ;;  %17930 = vmatprep.subr.bf16.mxu0 %v17929_v1  ;;  %v15024_v48 = vld [vmem:[%s21875_s30 + $0xe60] sm:$0xff]  ;;  %v15025_v1 = vld [vmem:[%s21875_s30 + $0xe68] sm:$0xff] }
0x1edb   : > { %17962 = vmatprep.subr.bf16.mxu1 %v17961_v54  ;;  %v15042_v54 = vld [vmem:[%s21875_s30 + $0xef0] sm:$0xff]  ;;  %v17947_v59 = vpack.c.bf16 %v15025_v1, %v15024_v48 }
0x1edd   : > { %17932 = vmatpush3.bf16.msra.mxu0 %v17931_v61  ;;  %v17979_v61 = vpack.c.bf16 %v15057_v15, %v15056_v49 }
0x1ede   : > { %17964 = vmatpush3.bf16.msra.mxu1 %v17963_v62  ;;  %17934 = vmatprep.subr.bf16.mxu0 %v17933_v43  ;;  %v17949_v62 = vpack.c.bf16 %v15043_v55, %v15042_v54  ;;  %v15026_v43 = vld [vmem:[%s21875_s30 + $0xe70] sm:$0xff] }
0x1edf   : > { %17966 = vmatprep.subr.bf16.mxu1 %v17965_v53  ;;  %v15059_v53 = vld [vmem:[%s21875_s30 + $0xf78] sm:$0xff]  ;;  %v17951_v4 = vpack.c.bf16 %v15027_v0, %v15026_v43  ;;  %s21921_s30 = sld [smem:[#allocation27_spill]] }
0x1ee0   : > { %v17983_v47 = vpack.c.bf16 %v15059_v53, %v15058_v51  ;;  %v20420_v51 = vld [vmem:[%s20417_s24] ss:$0 sm:$0xff] }
0x1ee1   : > { %17936 = vmatpush3.bf16.msra.mxu0 %v17935_v42  ;;  %v6080_v42 = vmax.f32 %v5993_v18, 0.0 }
0x1ee2   : > { %17968 = vmatpush3.bf16.msra.mxu1 %v17967_v11  ;;  %17938 = vmatprep.subr.bf16.mxu0 %v17937_v7  ;;  %v6715_v11 = vld [vmem:[%s21910_s8 + $0x10] sm:$0xff]  ;;  %v6716_v7 = vld [vmem:[%s21910_s8 + $0x18] sm:$0xff] }
0x1ee3   : > { %17970 = vmatprep.subr.bf16.mxu1 %v17969_v24  ;;  %v17989_v63 = vpack.c.bf16 %v6716_v7, %v6715_v11  ;;  %v15085_v24 = vld [vmem:[%s21879_s6 + $0x1] ss:$0 sm:$0xff]  ;;  %s21915_s6 = sld [smem:[#allocation25_spill]] }
0x1ee5   : > { %17940 = vmatpush3.bf16.msra.mxu0 %v17939_v36 }
0x1ee6   : > { %17972 = vmatpush3.bf16.msra.mxu1 %v17971_v31  ;;  %17942 = vmatprep.subr.bf16.mxu0 %v17941_v32 }
0x1ee7   : > { %17974 = vmatprep.subr.bf16.mxu1 %v17973_v39 }
0x1ee9   : > { %17944 = vmatpush3.bf16.msra.mxu0 %v17943_v10 }
0x1eea   : > { %17976 = vmatpush3.bf16.msra.mxu1 %v17975_v45  ;;  %17946 = vmatprep.subr.bf16.mxu0 %v17945_v46 }
0x1eeb   : > { %17978 = vmatprep.subr.bf16.mxu1 %v17977_v50 }
0x1eed   : > { %17948 = vmatpush3.bf16.msra.mxu0 %v17947_v59 }
0x1eee   : > { %17980 = vmatpush3.bf16.msra.mxu1 %v17979_v61  ;;  %17950 = vmatprep.subr.bf16.mxu0 %v17949_v62 }
0x1eef   : > { %17982 = vmatprep.subr.bf16.mxu1 %v17981_v2 }
0x1ef1   : > { %17952 = vmatpush3.bf16.msra.mxu0 %v17951_v4 }
0x1ef2   : > { %17984 = vmatpush3.bf16.msra.mxu1 %v17983_v47  ;;  %17985 = vmatprep.subr.bf16.mxu0 %v18990_v3 }
0x1ef3   : > { %17027 = vmatprep.subr.mxu1 %v18992_v6 }
0x1ef4   : > { %6575 = vmatmul.mubr.f32.vlgmr.msra.gmra.mrb[52].mxu0 %v6080_v42 }
0x1ef5   : > { %6645 = vmatmul.mubr.f32.vlgmr.msra.gmra.mrb[60].mxu1 %v6082_v52  ;;  %17987 = vmatpush3.bf16.msra.mxu0 %v17986_v20 }
0x1ef6   : > { %17988 = vmatprep.subr.bf16.mxu0 %v18990_v3  ;;  %17024 = vmatprep.mubr.msk.f32.mxu0 %vm18991_vm0, %v18992_v6 }
0x1ef7   : > { %17029 = vmatprep.mubr.msk.f32.mxu1 %vm18991_vm0, %v18992_v6 }
0x1ef9   : > { %17990 = vmatpush3.bf16.msra.mxu0 %v17989_v63 }
0x1efa   : > { %17037 = vmatprep.subr.mxu0 %v18992_v6 }
0x1efc   : > { %17025 = vmatmul.mubr.msk.f32.vlgmr.msra.gmra.mrb[54].mxu0 %vm1320_vm1, %v20389_v21 }
0x1efd   : > { %17039 = vmatprep.mubr.msk.f32.mxu0 %vm18991_vm0, %v18992_v6 }
0x1f67   : > { %v15935_v56 = vpop.f32.mrb[46].mxu0  ;;  %v15970_v29 = vpop.f32.mrb[54].mxu1 }
0x1f68   : > { %v15936_v25 = vpop.f32.mrb[47].mxu0  ;;  %v15971_v26 = vpop.f32.mrb[55].mxu1 }
0x1f69   : > { %v15937_v27 = vadd.f32 %v15936_v25, %v15935_v56  ;;  %v15972_v30 = vadd.f32 %v15971_v26, %v15970_v29  ;;  %v6797_v25 = vld [vmem:[%s21915_s6] sm:$0xff] }
0x1f6a   : > { %17038 = vmatpush3.msra.mxu0 %v6797_v25 }
0x1f6b   : > { %v6157_v28 = vadd.f32 %v15937_v27, %v15085_v24  ;;  %17047 = vmatprep.subr.mxu0 %v18992_v6 }
0x1f6d   : > { %v6227_v36 = vadd.f32 %v15972_v30, %v6157_v28 }
0x1f87   : > { %v16005_v31 = vpop.f32.mrb[48].mxu0  ;;  %v16040_v32 = vpop.f32.mrb[56].mxu1 }
0x1f88   : > { %v16006_v57 = vpop.f32.mrb[49].mxu0  ;;  %v16041_v38 = vpop.f32.mrb[57].mxu1 }
0x1f89   : > { %v16007_v14 = vadd.f32 %v16006_v57, %v16005_v31  ;;  %v16042_v39 = vadd.f32 %v16041_v38, %v16040_v32 }
0x1f8b   : > { %v6297_v19 = vadd.f32 %v16007_v14, %v6227_v36 }
0x1f8d   : > { %v6367_v23 = vadd.f32 %v16042_v39, %v6297_v19 }
0x1fa7   : > { %v16075_v40 = vpop.f32.mrb[50].mxu0 }
0x1fa8   : > { %v16110_v41 = vpop.f32.mrb[58].mxu1  ;;  %v16076_v44 = vpop.f32.mrb[51].mxu0 }
0x1fa9   : > { %v16077_v10 = vadd.f32 %v16076_v44, %v16075_v40  ;;  %v16111_v45 = vpop.f32.mrb[59].mxu1  ;;  %v6798_v40 = vld [vmem:[%s21915_s6 + $0x8] sm:$0xff] }
0x1faa   : > { %v16112_v46 = vadd.f32 %v16111_v45, %v16110_v41 }
0x1fab   : > { %v6437_v48 = vadd.f32 %v16077_v10, %v6367_v23 }
0x1fad   : > { %v6507_v1 = vadd.f32 %v16112_v46, %v6437_v48 }
0x1fc7   : > { %v16145_v49 = vpop.f32.mrb[52].mxu0 }
0x1fc8   : > { %v16180_v50 = vpop.f32.mrb[60].mxu1  ;;  %v16146_v15 = vpop.f32.mrb[53].mxu0 }
0x1fc9   : > { %v16147_v54 = vadd.f32 %v16146_v15, %v16145_v49  ;;  %v16181_v55 = vpop.f32.mrb[61].mxu1 }
0x1fca   : > { %v16182_v22 = vadd.f32 %v16181_v55, %v16180_v50 }
0x1fcb   : > { %v6577_v58 = vadd.f32 %v16147_v54, %v6507_v1 }
0x1fcd   : > { %v20397_v59 = vadd.f32 %v16182_v22, %v6577_v58 }
0x1fcf   : > { %v6793_v61 = vpop.f32.mrb[54].mxu0 }
0x1fd0   : > { %v20400_v62 = vadd.f32 %v15092_v60, %v6793_v61  ;;  %v17026_v43 = vpop.f32.mrb[55].mxu0 }
0x1fd2   : > { %6898 = vrot.lane.b32.xlu1 %v20400_v62, %s21900_s23  ;;  %6803 = vrot.lane.b32.xlu0 %v20400_v62, %s21899_s5 }
0x1fd6   : > { %7056 = vrot.lane.b32.xlu1 %v20400_v62, %s21901_s1 }
0x2044   : > { %v6804_v0 = vpop.permute.xlu0 %6803  ;;  %v6899_v2 = vpop.permute.xlu1 %6898 }
0x2045   : > { %17028 = vmatpush3.xpose.msk.msra.mxu1 %vm1402_vm2, %v6804_v0 }
0x2046   : > { %17032 = vmatprep.subr.mxu1 %v18992_v6 }
0x2048   : > { %17030 = vmatmul.mubr.msk.f32.vlgmr.msra.gmra.mrb[62].mxu1 %vm1402_vm2, %v20400_v62  ;;  %v7057_v52 = vpop.permute.xlu1 %7056 }
0x2049   : > { %17033 = vmatpush3.msra.mxu1 %v6899_v2  ;;  %17034 = vmatprep.mubr.msk.f32.mxu1 %vm18991_vm0, %v18992_v6 }
0x204a   : > { %17042 = vmatprep.subr.mxu1 %v18992_v6 }
0x211b   : > { %v6875_v53 = vpop.f32.mrb[62].mxu1 }
0x211c   : > { %v6879_v4 = vmul.f32 0.35355338, %v6875_v53  ;;  %v17031_v18 = vpop.f32.mrb[63].mxu1 }
0x211e   : > { %v6886_v47 = vadd.f32 %v20420_v51, %v6879_v4  ;;  %v15099_v4 = vld [vmem:[%s21916_s11] ss:$0 sm:$0xff] }
0x2120   : > { %v6887_v33 = vsel %vm1402_vm2, %v6886_v47, -inf }
0x2121   : > { %6888 = vmax.xlane.f32.xlu0 %v6887_v33 }
0x21ae   : > { %v6889_v37 = vpop.xlane.xlu0 %6888 }
0x21af   : > { %v6890_v20 = vsub.f32 %v6886_v47, %v6889_v37 }
0x21b1   : > { %v6891_v42 = vmul.f32 1.442695, %v6890_v20 }
0x21b3   : > { %18800 = vpow2.f32 %v6891_v42 }
0x21bd   : > { %v18801_v11 = vpop.eup %18800 }
0x21be   : > { %v6893_v7 = vsel %vm1402_vm2, %v18801_v11, 0.0 }
0x21bf   : > { %6894 = vadd.xlane.f32.xlu1 %v6893_v7 }
0x21d0   : > { %7054 = vrot.lane.b32.xlu1 %v20400_v62, %s21902_s13 }
0x224c   : > { %v6895_v63 = vpop.xlane.xlu1 %6894 }
0x224d   : > { %18802 = vrcp.f32 %v6895_v63  ;;  %v6799_v63 = vld [vmem:[%s21915_s6 + $0x10] sm:$0xff] }
0x2250   : > { %v7055_v24 = vpop.permute.xlu1 %7054 }
0x2257   : > { %v18803_v56 = vpop.eup %18802 }
0x2258   : > { %v6897_v29 = vmul.f32 %v18803_v56, %v18801_v11 }
0x225a   : > { %17035 = vmatmul.mubr.msk.f32.vlgmr.msra.gmra.mrb[64].mxu1 %vm1402_vm2, %v6897_v29 }
0x225b   : > { %17043 = vmatpush3.xpose.msk.msra.mxu1 %vm1402_vm2, %v7057_v52  ;;  %17044 = vmatprep.mubr.msk.f32.mxu1 %vm18991_vm0, %v18992_v6 }
0x225c   : > { %17052 = vmatprep.subr.mxu1 %v18992_v6 }
0x225e   : > { %17045 = vmatmul.mubr.msk.f32.vlgmr.msra.gmra.mrb[66].mxu1 %vm1402_vm2, %v7055_v24 }
0x225f   : > { %17054 = vmatprep.mubr.msk.f32.mxu1 %vm18991_vm0, %v18992_v6  ;;  %17053 = vmatpush3.msra.mxu1 %v6798_v40 }
0x2260   : > { %17062 = vmatprep.subr.mxu1 %v18992_v6 }
0x232d   : > { %v6970_v26 = vpop.f32.mrb[64].mxu1 }
0x232e   : > { %v17036_v27 = vpop.f32.mrb[65].mxu1  ;;  %17040 = vmatmul.mubr.msk.f32.vlgmr.msra.gmra.mrb[56].mxu0 %vm1402_vm2, %v6970_v26 }
0x232f   : > { %17049 = vmatprep.mubr.msk.f32.mxu0 %vm18991_vm0, %v18992_v6 }
0x2331   : > { %v7128_v30 = vpop.f32.mrb[66].mxu1 }
0x2332   : > { %v7132_v28 = vmul.f32 0.35355338, %v7128_v30  ;;  %v17046_v36 = vpop.f32.mrb[67].mxu1 }
0x2334   : > { %v7133_v31 = vadd.f32 %v20420_v51, %v7132_v28  ;;  %v6650_v28 = vadd.f32 %v20397_v59, %v19993_v9 }
0x2336   : > { %v7134_v32 = vsel %vm1402_vm2, %v7133_v31, -inf  ;;  %v6655_v36 = vsel %vm1320_vm1, %v6650_v28, 0.0 }
0x2337   : > { %7135 = vmax.xlane.f32.xlu0 %v7134_v32 }
0x234d   : > { %7145 = vrot.lane.b32.xlu0 %v20400_v62, %s21903_s28 }
0x2351   : > { %7297 = vrot.lane.b32.xlu0 %v20400_v62, %s21904_s21 }
0x2355   : > { %7295 = vrot.lane.b32.xlu0 %v20400_v62, %s21905_s25 }
0x23c4   : > { %v7136_v57 = vpop.xlane.xlu0 %7135 }
0x23c5   : > { %v7137_v38 = vsub.f32 %v7133_v31, %v7136_v57 }
0x23c7   : > { %v7138_v14 = vmul.f32 1.442695, %v7137_v38 }
0x23c8   : > { %v7146_v39 = vpop.permute.xlu0 %7145 }
0x23c9   : > { %18804 = vpow2.f32 %v7138_v14  ;;  %17048 = vmatpush3.msra.mxu0 %v7146_v39 }
0x23ca   : > { %17057 = vmatprep.subr.mxu0 %v18992_v6 }
0x23cc   : > { %v7298_v46 = vpop.permute.xlu0 %7297 }
0x23d0   : > { %v7296_v1 = vpop.permute.xlu0 %7295 }
0x23d3   : > { %v18805_v19 = vpop.eup %18804 }
0x23d4   : > { %v7140_v23 = vsel %vm1402_vm2, %v18805_v19, 0.0 }
0x23d5   : > { %7141 = vadd.xlane.f32.xlu1 %v7140_v23 }
0x23e6   : > { %7386 = vrot.lane.b32.xlu1 %v20400_v62, %s21906_s2 }
0x23ea   : > { %7538 = vrot.lane.b32.xlu1 %v20400_v62, %s21907_s18 }
0x2401   : > { %v7043_v41 = vpop.f32.mrb[56].mxu0 }
0x2402   : > { %v17041_v44 = vpop.f32.mrb[57].mxu0  ;;  %v7053_v18 = vadd.f32 %v15099_v4, %v7043_v41 }
0x2462   : > { %v7142_v10 = vpop.xlane.xlu1 %7141 }
0x2463   : > { %18806 = vrcp.f32 %v7142_v10 }
0x2466   : > { %v7387_v50 = vpop.permute.xlu1 %7386 }
0x246a   : > { %v7539_v20 = vpop.permute.xlu1 %7538 }
0x246d   : > { %v18807_v45 = vpop.eup %18806 }
0x246e   : > { %v7144_v48 = vmul.f32 %v18807_v45, %v18805_v19 }
0x2470   : > { %17050 = vmatmul.mubr.msk.f32.vlgmr.msra.gmra.mrb[58].mxu0 %vm1402_vm2, %v7144_v48 }
0x2471   : > { %17058 = vmatpush3.xpose.msk.msra.mxu0 %vm1402_vm2, %v7298_v46  ;;  %17059 = vmatprep.mubr.msk.f32.mxu0 %vm18991_vm0, %v18992_v6 }
0x2472   : > { %17067 = vmatprep.subr.mxu0 %v18992_v6 }
0x2474   : > { %17060 = vmatmul.mubr.msk.f32.vlgmr.msra.gmra.mrb[60].mxu0 %vm1402_vm2, %v7296_v1 }
0x2475   : > { %17069 = vmatprep.mubr.msk.f32.mxu0 %vm18991_vm0, %v18992_v6  ;;  %17068 = vmatpush3.msra.mxu0 %v6799_v63  ;;  %v7893_v63 = vld [vmem:[%s21917_s19 + $0x10] sm:$0xff] }
0x2476   : > { %17077 = vmatprep.subr.mxu0 %v18992_v6 }
0x2543   : > { %v7217_v49 = vpop.f32.mrb[58].mxu0 }
0x2544   : > { %v17051_v15 = vpop.f32.mrb[59].mxu0  ;;  %17055 = vmatmul.mubr.msk.f32.vlgmr.msra.gmra.mrb[68].mxu1 %vm1402_vm2, %v7217_v49 }
0x2545   : > { %17063 = vmatpush3.msra.mxu1 %v7387_v50  ;;  %17064 = vmatprep.mubr.msk.f32.mxu1 %vm18991_vm0, %v18992_v6  ;;  %v15088_v50 = vld [vmem:[%s21878_s12 + $0x1] ss:$0 sm:$0xff]  ;;  %s21918_s12 = sld [smem:[#allocation21_spill]] }
0x2546   : > { %17072 = vmatprep.subr.mxu1 %v18992_v6 }
0x2547   : > { %v7369_v54 = vpop.f32.mrb[60].mxu0 }
0x2548   : > { %v7373_v55 = vmul.f32 0.35355338, %v7369_v54  ;;  %v17061_v22 = vpop.f32.mrb[61].mxu0  ;;  %v15089_v54 = vld [vmem:[%s21877_s20 + $0x1] ss:$0 sm:$0xff]  ;;  %s21919_s20 = sld [smem:[#allocation22_spill]] }
0x254a   : > { %v7374_v58 = vadd.f32 %v20420_v51, %v7373_v55 }
0x254c   : > { %v7375_v60 = vsel %vm1402_vm2, %v7374_v58, -inf }
0x254d   : > { %7376 = vmax.xlane.f32.xlu0 %v7375_v60  ;;  %v6800_v60 = vld [vmem:[%s21915_s6 + $0x18] sm:$0xff] }
0x25da   : > { %v7377_v61 = vpop.xlane.xlu0 %7376 }
0x25db   : > { %v7378_v43 = vsub.f32 %v7374_v58, %v7377_v61 }
0x25dd   : > { %v7379_v0 = vmul.f32 1.442695, %v7378_v43 }
0x25df   : > { %18808 = vpow2.f32 %v7379_v0 }
0x25e9   : > { %v18809_v2 = vpop.eup %18808 }
0x25ea   : > { %v7381_v53 = vsel %vm1402_vm2, %v18809_v2, 0.0 }
0x25eb   : > { %7382 = vadd.xlane.f32.xlu1 %v7381_v53 }
0x25fc   : > { %7536 = vrot.lane.b32.xlu1 %v20400_v62, %s21908_s26 }
0x2617   : > { %v7290_v47 = vpop.f32.mrb[68].mxu1 }
0x2618   : > { %v7294_v33 = vadd.f32 %v7290_v47, %v7053_v18  ;;  %v17056_v37 = vpop.f32.mrb[69].mxu1 }
0x2678   : > { %v7383_v42 = vpop.xlane.xlu1 %7382 }
0x2679   : > { %18810 = vrcp.f32 %v7383_v42 }
0x267c   : > { %v7537_v52 = vpop.permute.xlu1 %7536 }
0x2683   : > { %v18811_v11 = vpop.eup %18810 }
0x2684   : > { %v7385_v7 = vmul.f32 %v18811_v11, %v18809_v2  ;;  %v7891_v11 = vld [vmem:[%s21917_s19] sm:$0xff] }
0x2686   : > { %17065 = vmatmul.mubr.msk.f32.vlgmr.msra.gmra.mrb[70].mxu1 %vm1402_vm2, %v7385_v7  ;;  %v7892_v7 = vld [vmem:[%s21917_s19 + $0x8] sm:$0xff] }
0x2687   : > { %17073 = vmatpush3.xpose.msk.msra.mxu1 %vm1402_vm2, %v7539_v20  ;;  %17074 = vmatprep.mubr.msk.f32.mxu1 %vm18991_vm0, %v18992_v6 }
0x2688   : > { %17082 = vmatprep.subr.mxu1 %v18992_v6 }
0x268a   : > { %17075 = vmatmul.mubr.msk.f32.vlgmr.msra.gmra.mrb[72].mxu1 %vm1402_vm2, %v7537_v52  ;;  %v17998_v52 = vpack.c.bf16 %v7892_v7, %v7891_v11 }
0x268b   : > { %17084 = vmatprep.mubr.msk.f32.mxu1 %vm18991_vm0, %v18992_v6  ;;  %17083 = vmatpush3.msra.mxu1 %v6800_v60 }
0x268c   : > { %17997 = vmatprep.subr.bf16.mxu1 %v18990_v3 }
0x2759   : > { %v7458_v56 = vpop.f32.mrb[70].mxu1 }
0x275a   : > { %v17066_v29 = vpop.f32.mrb[71].mxu1  ;;  %17070 = vmatmul.mubr.msk.f32.vlgmr.msra.gmra.mrb[62].mxu0 %vm1402_vm2, %v7458_v56  ;;  %v7894_v56 = vld [vmem:[%s21917_s19 + $0x18] sm:$0xff] }
0x275b   : > { %17079 = vmatprep.mubr.msk.f32.mxu0 %vm18991_vm0, %v18992_v6  ;;  %v18001_v29 = vpack.c.bf16 %v7894_v56, %v7893_v63  ;;  %v7975_v56 = vld [vmem:[%s21925_s15] sm:$0xff]  ;;  %s21927_s15 = sld [smem:[#allocation34_spill]] }
0x275d   : > { %v7610_v24 = vpop.f32.mrb[72].mxu1 }
0x275e   : > { %v7614_v25 = vmul.f32 0.35355338, %v7610_v24  ;;  %v17076_v26 = vpop.f32.mrb[73].mxu1 }
0x2760   : > { %v7615_v27 = vadd.f32 %v20420_v51, %v7614_v25 }
0x2761   : > { %s21928_s17 = smov %s21927_s15 }
0x2762   : > { %v7616_v30 = vsel %vm1402_vm2, %v7615_v27, -inf }
0x2763   : > { %7617 = vmax.xlane.f32.xlu0 %v7616_v30 }
0x2779   : > { %7627 = vrot.lane.b32.xlu0 %v20400_v62, %s21909_s3 }
0x2798   : > { %6656 = vadd.xlane.f32.xlu0 %v6655_v36 }
0x27f0   : > { %v7618_v31 = vpop.xlane.xlu0 %7617 }
0x27f1   : > { %v7619_v32 = vsub.f32 %v7615_v27, %v7618_v31 }
0x27f3   : > { %v7620_v57 = vmul.f32 1.442695, %v7619_v32  ;;  %v15090_v32 = vld [vmem:[%s21918_s12] ss:$0 sm:$0xff]  ;;  %s21923_s12 = sld [smem:[#allocation32_spill]] }
0x27f4   : > { %v7628_v38 = vpop.permute.xlu0 %7627 }
0x27f5   : > { %18812 = vpow2.f32 %v7620_v57  ;;  %17078 = vmatpush3.msra.mxu0 %v7628_v38  ;;  %v15091_v38 = vld [vmem:[%s21919_s20] ss:$0 sm:$0xff]  ;;  %s21924_s20 = sld [smem:[#allocation30_spill]] }
0x27f6   : > { %17991 = vmatprep.subr.bf16.mxu0 %v18990_v3 }
0x27ff   : > { %v18813_v51 = vpop.eup %18812 }
0x2800   : > { %v7622_v14 = vsel %vm1402_vm2, %v18813_v51, 0.0 }
0x2801   : > { %7623 = vadd.xlane.f32.xlu1 %v7622_v14 }
0x2825   : > { %v6657_v39 = vpop.xlane.xlu0 %6656 }
0x2826   : > { %v6658_v62 = vmul.f32 0.03125, %v6657_v39  ;;  %v7807_v39 = vld [vmem:[%s21920_s29] sm:$0xff] }
0x2828   : > { %v6659_v19 = vsub.f32 %v6650_v28, %v6658_v62  ;;  %v7808_v62 = vld [vmem:[%s21920_s29 + $0x8] sm:$0xff] }
0x282a   : > { %v6660_v23 = vmul.f32 %v6659_v19, %v6659_v19 }
0x282c   : > { %v6661_v9 = vsel %vm1320_vm1, %v6660_v23, 0.0  ;;  %v7809_v23 = vld [vmem:[%s21920_s29 + $0x10] sm:$0xff] }
0x282d   : > { %v7531_v59 = vpop.f32.mrb[62].mxu0  ;;  %6662 = vadd.xlane.f32.xlu1 %v6661_v9  ;;  %v7810_v9 = vld [vmem:[%s21920_s29 + $0x18] sm:$0xff] }
0x282e   : > { %v7535_v40 = vadd.f32 %v7531_v59, %v7294_v33  ;;  %v17071_v41 = vpop.f32.mrb[63].mxu0  ;;  %v17995_v59 = vpack.c.bf16 %v7810_v9, %v7809_v23 }
0x288e   : > { %v7624_v44 = vpop.xlane.xlu1 %7623 }
0x288f   : > { %18814 = vrcp.f32 %v7624_v44 }
0x2899   : > { %v18815_v10 = vpop.eup %18814 }
0x289a   : > { %v7626_v45 = vmul.f32 %v18815_v10, %v18813_v51 }
0x289c   : > { %17080 = vmatmul.mubr.msk.f32.vlgmr.msra.gmra.mrb[64].mxu0 %vm1402_vm2, %v7626_v45  ;;  %v15112_v45 = vld [vmem:[%s21921_s30] ss:$0 sm:$0xff] }
0x289d   : > { %17095 = vmatprep.mubr.msk.f32.mxu0 %vm18991_vm0, %v18992_v6 }
0x28ba   : > { %v6663_v46 = vpop.xlane.xlu1 %6662 }
0x28bb   : > { %v6664_v48 = vmul.f32 0.03125, %v6663_v46 }
0x28bd   : > { %v6665_v1 = vadd.f32 1e-05, %v6664_v48  ;;  %v15113_v48 = vld [vmem:[%s21922_s10] ss:$0 sm:$0xff] }
0x28bf   : > { %18816 = vrsqrt.f32 %v6665_v1 }
0x28c9   : > { %v18817_v49 = vpop.eup %18816 }
0x28ca   : > { %v6667_v15 = vmul.f32 %v18817_v49, %v6659_v19  ;;  %v17992_v19 = vpack.c.bf16 %v7808_v62, %v7807_v39 }
0x28cc   : > { %v6674_v55 = vmul.f32 %v15088_v50, %v6667_v15  ;;  %17993 = vmatpush3.bf16.msra.mxu0 %v17992_v19  ;;  %v15116_v50 = vld [vmem:[%s21923_s12] ss:$0 sm:$0xff] }
0x28cd   : > { %17994 = vmatprep.subr.bf16.mxu0 %v18990_v3 }
0x28ce   : > { %v6681_v22 = vadd.f32 %v15089_v54, %v6674_v55 }
0x28d0   : > { %v6684_v58 = vsel %vm1320_vm1, %v6681_v22, 0.0  ;;  %17996 = vmatpush3.bf16.msra.mxu0 %v17995_v59  ;;  %v7976_v59 = vld [vmem:[%s21926_s7 + $0x8] sm:$0xff] }
0x28d1   : > { %6685 = vadd.xlane.f32.xlu1 %v6684_v58  ;;  %17109 = vmatprep.subr.mxu0 %v18992_v6 }
0x295e   : > { %v6686_v0 = vpop.xlane.xlu1 %6685 }
0x295f   : > { %v6687_v2 = vmul.f32 0.03125, %v6686_v0 }
0x2961   : > { %v6688_v4 = vsub.f32 %v6681_v22, %v6687_v2  ;;  %v15114_v22 = vld [vmem:[%s21924_s20] ss:$0 sm:$0xff] }
0x2963   : > { %v6689_v20 = vmul.f32 %v6688_v4, %v6688_v4 }
0x2965   : > { %v6690_v42 = vsel %vm1320_vm1, %v6689_v20, 0.0 }
0x296f   : > { %v7699_v61 = vpop.f32.mrb[64].mxu0 }
0x2970   : > { %v17081_v43 = vpop.f32.mrb[65].mxu0  ;;  %17085 = vmatmul.mubr.msk.f32.vlgmr.msra.gmra.mrb[74].mxu1 %vm1402_vm2, %v7699_v61 }
0x2971   : > { %17106 = vmatprep.mubr.msk.f32.mxu1 %vm18991_vm0, %v18992_v6  ;;  %17999 = vmatpush3.bf16.msra.mxu1 %v17998_v52 }
0x2972   : > { %18000 = vmatprep.subr.bf16.mxu1 %v18990_v3 }
0x2975   : > { %18002 = vmatpush3.bf16.msra.mxu1 %v18001_v29 }
0x2976   : > { %17114 = vmatprep.subr.mxu1 %v18992_v6 }
0x2a43   : > { %v7772_v53 = vpop.f32.mrb[74].mxu1 }
0x2a44   : > { %v7776_v18 = vadd.f32 %v7772_v53, %v7535_v40  ;;  %v17086_v47 = vpop.f32.mrb[75].mxu1 }
0x2a46   : > { %v7777_v33 = vadd.f32 %v7776_v18, %v20389_v21 }
0x2a48   : > { %v7780_v37 = vsel %vm1320_vm1, %v7777_v33, 0.0 }
0x2a49   : > { %7781 = vadd.xlane.f32.xlu1 %v7780_v37 }
0x2a4d   : > { %6691 = vadd.xlane.f32.xlu1 %v6690_v42 }
0x2ad6   : > { %v7782_v21 = vpop.xlane.xlu1 %7781 }
0x2ad7   : > { %v7783_v24 = vmul.f32 0.03125, %v7782_v21 }
0x2ad9   : > { %v7784_v25 = vsub.f32 %v7777_v33, %v7783_v24 }
0x2ada   : > { %v6692_v26 = vpop.xlane.xlu1 %6691 }
0x2adb   : > { %v6693_v27 = vmul.f32 0.03125, %v6692_v26  ;;  %v7785_v30 = vmul.f32 %v7784_v25, %v7784_v25 }
0x2add   : > { %v6694_v28 = vadd.f32 1e-05, %v6693_v27  ;;  %v7786_v36 = vsel %vm1320_vm1, %v7785_v30, 0.0 }
0x2ade   : > { %7787 = vadd.xlane.f32.xlu1 %v7786_v36 }
0x2adf   : > { %18818 = vrsqrt.f32 %v6694_v28 }
0x2ae9   : > { %v18819_v31 = vpop.eup %18818 }
0x2aea   : > { %v6696_v57 = vmul.f32 %v18819_v31, %v6688_v4 }
0x2aec   : > { %v6703_v51 = vmul.f32 %v15090_v32, %v6696_v57 }
0x2aee   : > { %v20520_v14 = vadd.f32 %v15091_v38, %v6703_v51 }
0x2af0   : > { %17107 = vmatmul.mubr.msk.f32.vlgmr.msra.gmra.mrb[76].mxu1 %vm1320_vm1, %v20520_v14 }
0x2af1   : > { %17116 = vmatprep.mubr.msk.f32.mxu1 %vm18991_vm0, %v18992_v6 }
0x2b6b   : > { %v7788_v40 = vpop.xlane.xlu1 %7787 }
0x2b6c   : > { %v7789_v41 = vmul.f32 0.03125, %v7788_v40 }
0x2b6e   : > { %v7790_v44 = vadd.f32 1e-05, %v7789_v41 }
0x2b70   : > { %18820 = vrsqrt.f32 %v7790_v44 }
0x2b7a   : > { %v18821_v10 = vpop.eup %18820 }
0x2b7b   : > { %v7792_v46 = vmul.f32 %v18821_v10, %v7784_v25 }
0x2b7d   : > { %v7799_v1 = vmul.f32 %v15112_v45, %v7792_v46 }
0x2b7f   : > { %v20534_v49 = vadd.f32 %v15113_v48, %v7799_v1 }
0x2b81   : > { %17096 = vmatmul.mubr.msk.f32.vlgmr.msra.gmra.mrb[66].mxu0 %vm1320_vm1, %v20534_v49 }
0x2b82   : > { %17111 = vmatprep.mubr.msk.f32.mxu0 %vm18991_vm0, %v18992_v6 }
0x2bc3   : > { %v7971_v15 = vpop.f32.mrb[76].mxu1 }
0x2bc4   : > { %v20541_v54 = vadd.f32 %v15116_v50, %v7971_v15  ;;  %v17108_v55 = vpop.f32.mrb[77].mxu1 }
0x2bc6   : > { %8226 = vrot.lane.b32.xlu1 %v20541_v54, %s21902_s13  ;;  %17110 = vmatpush3.xpose.msk.msra.mxu0 %vm1402_vm2, %v20541_v54 }
0x2bc7   : > { %17119 = vmatprep.subr.mxu0 %v18992_v6 }
0x2c38   : > { %v8227_v42 = vpop.permute.xlu1 %8226 }
0x2c54   : > { %v7887_v58 = vpop.f32.mrb[66].mxu0 }
0x2c55   : > { %v20549_v60 = vadd.f32 %v15114_v22, %v7887_v58  ;;  %v17097_v61 = vpop.f32.mrb[67].mxu0  ;;  %v15122_v22 = vld [vmem:[%s21927_s15] ss:$0 sm:$0xff]  ;;  %s21929_s15 = sld [smem:[#allocation37_spill]] }
0x2c57   : > { %17112 = vmatmul.mubr.msk.f32.vlgmr.msra.gmra.mrb[68].mxu0 %vm1402_vm2, %v20549_v60 }
0x2c58   : > { %17121 = vmatprep.mubr.msk.f32.mxu0 %vm18991_vm0, %v18992_v6  ;;  %17120 = vmatpush3.msra.mxu0 %v7975_v56 }
0x2c59   : > { %17129 = vmatprep.subr.mxu0 %v18992_v6 }
0x2c5b   : > { %s21930_s0 = smov %s21929_s15 }
0x2d2a   : > { %v8052_v43 = vpop.f32.mrb[68].mxu0 }
0x2d2b   : > { %v8056_v0 = vmul.f32 0.35355338, %v8052_v43  ;;  %v17113_v2 = vpop.f32.mrb[69].mxu0 }
0x2d2d   : > { %v8057_v53 = vsel %vm1402_vm2, %v8056_v0, -inf }
0x2d2e   : > { %8058 = vmax.xlane.f32.xlu0 %v8057_v53 }
0x2d44   : > { %8068 = vrot.lane.b32.xlu0 %v20541_v54, %s21899_s5 }
0x2dbb   : > { %v8059_v4 = vpop.xlane.xlu0 %8058 }
0x2dbc   : > { %v8060_v18 = vsub.f32 %v8056_v0, %v8059_v4 }
0x2dbe   : > { %v8061_v47 = vmul.f32 1.442695, %v8060_v18 }
0x2dbf   : > { %v8069_v33 = vpop.permute.xlu0 %8068 }
0x2dc0   : > { %18822 = vpow2.f32 %v8061_v47  ;;  %17115 = vmatpush3.msra.mxu1 %v8069_v33  ;;  %v7977_v33 = vld [vmem:[%s21926_s7 + $0x10] sm:$0xff] }
0x2dc1   : > { %17124 = vmatprep.subr.mxu1 %v18992_v6 }
0x2dca   : > { %v18823_v37 = vpop.eup %18822 }
0x2dcb   : > { %v8063_v20 = vsel %vm1402_vm2, %v18823_v37, 0.0 }
0x2dcc   : > { %8064 = vadd.xlane.f32.xlu1 %v8063_v20 }
0x2ddd   : > { %8224 = vrot.lane.b32.xlu1 %v20549_v60, %s21902_s13 }
0x2e59   : > { %v8065_v11 = vpop.xlane.xlu1 %8064 }
0x2e5a   : > { %18824 = vrcp.f32 %v8065_v11 }
0x2e5d   : > { %v8225_v63 = vpop.permute.xlu1 %8224 }
0x2e64   : > { %v18825_v7 = vpop.eup %18824 }
0x2e65   : > { %v8067_v52 = vmul.f32 %v18825_v7, %v18823_v37 }
0x2e67   : > { %17117 = vmatmul.mubr.msk.f32.vlgmr.msra.gmra.mrb[78].mxu1 %vm1402_vm2, %v8067_v52 }
0x2e68   : > { %17125 = vmatpush3.xpose.msk.msra.mxu1 %vm1402_vm2, %v8227_v42  ;;  %17126 = vmatprep.mubr.msk.f32.mxu1 %vm18991_vm0, %v18992_v6 }
0x2e69   : > { %17134 = vmatprep.subr.mxu1 %v18992_v6 }
0x2e6b   : > { %17127 = vmatmul.mubr.msk.f32.vlgmr.msra.gmra.mrb[80].mxu1 %vm1402_vm2, %v8225_v63 }
0x2e6c   : > { %17136 = vmatprep.mubr.msk.f32.mxu1 %vm18991_vm0, %v18992_v6  ;;  %17135 = vmatpush3.msra.mxu1 %v7976_v59 }
0x2e6d   : > { %17144 = vmatprep.subr.mxu1 %v18992_v6 }
0x2f3a   : > { %v8140_v29 = vpop.f32.mrb[78].mxu1 }
0x2f3b   : > { %v17118_v21 = vpop.f32.mrb[79].mxu1  ;;  %17122 = vmatmul.mubr.msk.f32.vlgmr.msra.gmra.mrb[70].mxu0 %vm1402_vm2, %v8140_v29 }
0x2f3c   : > { %17131 = vmatprep.mubr.msk.f32.mxu0 %vm18991_vm0, %v18992_v6 }
0x2f3e   : > { %v8298_v24 = vpop.f32.mrb[80].mxu1 }
0x2f3f   : > { %v8302_v25 = vmul.f32 0.35355338, %v8298_v24  ;;  %v17128_v26 = vpop.f32.mrb[81].mxu1 }
0x2f40   : > { %v7978_v26 = vld [vmem:[%s21926_s7 + $0x18] sm:$0xff] }
0x2f41   : > { %v8303_v27 = vsel %vm1402_vm2, %v8302_v25, -inf }
0x2f42   : > { %8304 = vmax.xlane.f32.xlu0 %v8303_v27 }
0x2f58   : > { %8314 = vrot.lane.b32.xlu0 %v20541_v54, %s21901_s1 }
0x2f5c   : > { %8464 = vrot.lane.b32.xlu0 %v20549_v60, %s21905_s25 }
0x2fcf   : > { %v8305_v30 = vpop.xlane.xlu0 %8304 }
0x2fd0   : > { %v8306_v28 = vsub.f32 %v8302_v25, %v8305_v30 }
0x2fd2   : > { %v8307_v36 = vmul.f32 1.442695, %v8306_v28 }
0x2fd3   : > { %v8315_v31 = vpop.permute.xlu0 %8314 }
0x2fd4   : > { %18826 = vpow2.f32 %v8307_v36  ;;  %17130 = vmatpush3.msra.mxu0 %v8315_v31 }
0x2fd5   : > { %17139 = vmatprep.subr.mxu0 %v18992_v6 }
0x2fd7   : > { %v8465_v9 = vpop.permute.xlu0 %8464 }
0x2fde   : > { %v18827_v32 = vpop.eup %18826 }
0x2fdf   : > { %v8309_v57 = vsel %vm1402_vm2, %v18827_v32, 0.0 }
0x2fe0   : > { %8310 = vadd.xlane.f32.xlu1 %v8309_v57 }
0x2ff1   : > { %8466 = vrot.lane.b32.xlu1 %v20541_v54, %s21905_s25 }
0x300e   : > { %v8213_v38 = vpop.f32.mrb[70].mxu0 }
0x300f   : > { %v17123_v51 = vpop.f32.mrb[71].mxu0  ;;  %v8223_v58 = vadd.f32 %v15122_v22, %v8213_v38  ;;  %v8992_v22 = vld [vmem:[%s21930_s0 + $0x90] sm:$0xff] }
0x306d   : > { %v8311_v39 = vpop.xlane.xlu1 %8310 }
0x306e   : > { %18828 = vrcp.f32 %v8311_v39 }
0x3071   : > { %v8467_v23 = vpop.permute.xlu1 %8466 }
0x3078   : > { %v18829_v62 = vpop.eup %18828 }
0x3079   : > { %v8313_v19 = vmul.f32 %v18829_v62, %v18827_v32 }
0x307b   : > { %17132 = vmatmul.mubr.msk.f32.vlgmr.msra.gmra.mrb[72].mxu0 %vm1402_vm2, %v8313_v19 }
0x307c   : > { %17140 = vmatpush3.xpose.msk.msra.mxu0 %vm1402_vm2, %v8467_v23  ;;  %17141 = vmatprep.mubr.msk.f32.mxu0 %vm18991_vm0, %v18992_v6 }
0x307d   : > { %17149 = vmatprep.subr.mxu0 %v18992_v6 }
0x307f   : > { %17142 = vmatmul.mubr.msk.f32.vlgmr.msra.gmra.mrb[74].mxu0 %vm1402_vm2, %v8465_v9 }
0x3080   : > { %17151 = vmatprep.mubr.msk.f32.mxu0 %vm18991_vm0, %v18992_v6  ;;  %17150 = vmatpush3.msra.mxu0 %v7977_v33  ;;  %v9008_v33 = vld [vmem:[%s21930_s0 + $0x110] sm:$0xff] }
0x3081   : > { %17159 = vmatprep.subr.mxu0 %v18992_v6 }
0x314e   : > { %v8386_v40 = vpop.f32.mrb[72].mxu0 }
0x314f   : > { %v17133_v41 = vpop.f32.mrb[73].mxu0  ;;  %17137 = vmatmul.mubr.msk.f32.vlgmr.msra.gmra.mrb[82].mxu1 %vm1402_vm2, %v8386_v40 }
0x3150   : > { %17146 = vmatprep.mubr.msk.f32.mxu1 %vm18991_vm0, %v18992_v6 }
0x3152   : > { %v8538_v44 = vpop.f32.mrb[74].mxu0 }
0x3153   : > { %v8542_v10 = vmul.f32 0.35355338, %v8538_v44  ;;  %v17143_v45 = vpop.f32.mrb[75].mxu0  ;;  %v8975_v44 = vld [vmem:[%s21929_s15 + $0x8] sm:$0xff]  ;;  %s21931_s15 = sld [smem:[#allocation35_spill]] }
0x3154   : > { %v8977_v45 = vld [vmem:[%s21930_s0 + $0x18] sm:$0xff] }
0x3155   : > { %v8543_v46 = vsel %vm1402_vm2, %v8542_v10, -inf }
0x3156   : > { %8544 = vmax.xlane.f32.xlu1 %v8543_v46 }
0x3159   : > { %s21932_s4 = smov %s21931_s15 }
0x3167   : > { %8706 = vrot.lane.b32.xlu1 %v20541_v54, %s21908_s26 }
0x316b   : > { %8704 = vrot.lane.b32.xlu1 %v20549_v60, %s21908_s26 }
0x31e3   : > { %v8545_v48 = vpop.xlane.xlu1 %8544 }
0x31e4   : > { %v8546_v1 = vsub.f32 %v8542_v10, %v8545_v48  ;;  %v8991_v10 = vld [vmem:[%s21930_s0 + $0x88] sm:$0xff]  ;;  %v8974_v48 = vld [vmem:[%s21930_s0] sm:$0xff] }
0x31e5   : > { %v18003_v46 = vpack.c.bf16 %v8991_v10, %v8975_v44  ;;  %v9012_v44 = vld [vmem:[%s21930_s0 + $0x130] sm:$0xff] }
0x31e6   : > { %v8547_v50 = vmul.f32 1.442695, %v8546_v1  ;;  %v8990_v1 = vld [vmem:[%s21930_s0 + $0x80] sm:$0xff]  ;;  %v9028_v10 = vld [vmem:[%s21930_s0 + $0x1b0] sm:$0xff] }
0x31e7   : > { %v8707_v4 = vpop.permute.xlu1 %8706 }
0x31e8   : > { %18830 = vpow2.f32 %v8547_v50 }
0x31eb   : > { %v8705_v47 = vpop.permute.xlu1 %8704 }
0x31f2   : > { %v18831_v15 = vpop.eup %18830 }
0x31f3   : > { %v8549_v55 = vsel %vm1402_vm2, %v18831_v15, 0.0 }
0x31f4   : > { %8550 = vadd.xlane.f32.xlu0 %v8549_v55  ;;  %v8976_v55 = vld [vmem:[%s21930_s0 + $0x10] sm:$0xff] }
0x320a   : > { %8554 = vrot.lane.b32.xlu0 %v20541_v54, %s21904_s21 }
0x3222   : > { %v8459_v61 = vpop.f32.mrb[82].mxu1 }
0x3223   : > { %v8463_v43 = vadd.f32 %v8459_v61, %v8223_v58  ;;  %v17138_v0 = vpop.f32.mrb[83].mxu1  ;;  %v18013_v58 = vpack.c.bf16 %v8992_v22, %v8976_v55  ;;  %v9007_v61 = vld [vmem:[%s21930_s0 + $0x108] sm:$0xff]  ;;  %v8998_v55 = vld [vmem:[%s21930_s0 + $0xc0] sm:$0xff] }
0x3224   : > { %v9009_v0 = vld [vmem:[%s21930_s0 + $0x118] sm:$0xff] }
0x3281   : > { %v8551_v2 = vpop.xlane.xlu0 %8550 }
0x3282   : > { %18832 = vrcp.f32 %v8551_v2 }
0x3285   : > { %v8555_v60 = vpop.permute.xlu0 %8554 }
0x3286   : > { %17145 = vmatpush3.msra.mxu1 %v8555_v60  ;;  %v9025_v60 = vld [vmem:[%s21930_s0 + $0x198] sm:$0xff] }
0x3287   : > { %17154 = vmatprep.subr.mxu1 %v18992_v6 }
0x328c   : > { %v18833_v53 = vpop.eup %18832 }
0x328d   : > { %v8553_v18 = vmul.f32 %v18833_v53, %v18831_v15  ;;  %v18005_v15 = vpack.c.bf16 %v8990_v1, %v8974_v48  ;;  %v9006_v53 = vld [vmem:[%s21930_s0 + $0x100] sm:$0xff]  ;;  %v9001_v48 = vld [vmem:[%s21930_s0 + $0xd8] sm:$0xff] }
0x328f   : > { %17147 = vmatmul.mubr.msk.f32.vlgmr.msra.gmra.mrb[84].mxu1 %vm1402_vm2, %v8553_v18  ;;  %v18015_v18 = vpack.c.bf16 %v9025_v60, %v9009_v0  ;;  %v9015_v0 = vld [vmem:[%s21930_s0 + $0x148] sm:$0xff]  ;;  %v9017_v60 = vld [vmem:[%s21930_s0 + $0x158] sm:$0xff] }
0x3290   : > { %17155 = vmatpush3.xpose.msk.msra.mxu1 %vm1402_vm2, %v8707_v4  ;;  %17156 = vmatprep.mubr.msk.f32.mxu1 %vm18991_vm0, %v18992_v6  ;;  %v9022_v4 = vld [vmem:[%s21930_s0 + $0x180] sm:$0xff] }
0x3291   : > { %17164 = vmatprep.subr.mxu1 %v18992_v6 }
0x3293   : > { %17157 = vmatmul.mubr.msk.f32.vlgmr.msra.gmra.mrb[86].mxu1 %vm1402_vm2, %v8705_v47  ;;  %v18009_v47 = vpack.c.bf16 %v9022_v4, %v9006_v53  ;;  %v9033_v53 = vld [vmem:[%s21930_s0 + $0x1d8] sm:$0xff] }
0x3294   : > { %17166 = vmatprep.mubr.msk.f32.mxu1 %vm18991_vm0, %v18992_v6  ;;  %17165 = vmatpush3.msra.mxu1 %v7978_v26 }
0x3362   : > { %v8626_v37 = vpop.f32.mrb[84].mxu1 }
0x3363   : > { %v17148_v20 = vpop.f32.mrb[85].mxu1  ;;  %17152 = vmatmul.mubr.msk.f32.vlgmr.msra.gmra.mrb[76].mxu0 %vm1402_vm2, %v8626_v37  ;;  %v9024_v37 = vld [vmem:[%s21930_s0 + $0x190] sm:$0xff] }
0x3364   : > { %17161 = vmatprep.mubr.msk.f32.mxu0 %vm18991_vm0, %v18992_v6  ;;  %v18017_v20 = vpack.c.bf16 %v9024_v37, %v9008_v33  ;;  %v9030_v33 = vld [vmem:[%s21930_s0 + $0x1c0] sm:$0xff] }
0x3366   : > { %v8778_v42 = vpop.f32.mrb[86].mxu1 }
0x3367   : > { %v8782_v11 = vmul.f32 0.35355338, %v8778_v42  ;;  %v17158_v7 = vpop.f32.mrb[87].mxu1  ;;  %v8979_v42 = vld [vmem:[%s21930_s0 + $0x28] sm:$0xff] }
0x3368   : > { %v8981_v7 = vld [vmem:[%s21930_s0 + $0x38] sm:$0xff] }
0x3369   : > { %v8783_v52 = vsel %vm1402_vm2, %v8782_v11, -inf }
0x336a   : > { %8784 = vmax.xlane.f32.xlu0 %v8783_v52 }
0x3380   : > { %8794 = vrot.lane.b32.xlu0 %v20541_v54, %s21907_s18 }
0x33f7   : > { %v8785_v63 = vpop.xlane.xlu0 %8784 }
0x33f8   : > { %v8786_v56 = vsub.f32 %v8782_v11, %v8785_v63  ;;  %v8995_v11 = vld [vmem:[%s21930_s0 + $0xa8] sm:$0xff]  ;;  %v8997_v63 = vld [vmem:[%s21930_s0 + $0xb8] sm:$0xff] }
0x33f9   : > { %v18019_v52 = vpack.c.bf16 %v8995_v11, %v8979_v42  ;;  %v9016_v42 = vld [vmem:[%s21930_s0 + $0x150] sm:$0xff] }
0x33fa   : > { %v8787_v29 = vmul.f32 1.442695, %v8786_v56  ;;  %v18027_v56 = vpack.c.bf16 %v8997_v63, %v8981_v7  ;;  %v9032_v11 = vld [vmem:[%s21930_s0 + $0x1d0] sm:$0xff]  ;;  %v8987_v7 = vld [vmem:[%s21930_s0 + $0x68] sm:$0xff]  ;;  %v8989_v63 = vld [vmem:[%s21930_s0 + $0x78] sm:$0xff] }
0x33fb   : > { %v8795_v21 = vpop.permute.xlu0 %8794 }
0x33fc   : > { %18834 = vpow2.f32 %v8787_v29  ;;  %17160 = vmatpush3.msra.mxu0 %v8795_v21 }
0x33fd   : > { %18004 = vmatprep.subr.bf16.mxu0 %v18003_v46  ;;  %v8999_v46 = vld [vmem:[%s21930_s0 + $0xc8] sm:$0xff] }
0x3406   : > { %v18835_v24 = vpop.eup %18834 }
0x3407   : > { %v8789_v25 = vsel %vm1402_vm2, %v18835_v24, 0.0 }
0x3408   : > { %8790 = vadd.xlane.f32.xlu1 %v8789_v25  ;;  %v15135_v25 = vld [vmem:[%s21931_s15] ss:$0 sm:$0xff]  ;;  %s21936_s15 = sld [smem:[#allocation38_spill]] }
0x340e   : > { %s21937_s9 = smov %s21936_s15 }
0x3436   : > { %v8699_v27 = vpop.f32.mrb[76].mxu0 }
0x3437   : > { %v8703_v30 = vadd.f32 %v8699_v27, %v8463_v43  ;;  %v17153_v28 = vpop.f32.mrb[77].mxu0  ;;  %v9023_v43 = vld [vmem:[%s21930_s0 + $0x188] sm:$0xff]  ;;  %v15136_v27 = vld [vmem:[%s21933_s22] ss:$0 sm:$0xff]  ;;  %s21934_s22 = sld [smem:[#allocation39_spill]] }
0x3438   : > { %v18007_v2 = vpack.c.bf16 %v9023_v43, %v9007_v61  ;;  %v8994_v28 = vld [vmem:[%s21930_s0 + $0xa0] sm:$0xff]  ;;  %v8984_v61 = vld [vmem:[%s21930_s0 + $0x50] sm:$0xff] }
0x3439   : > { %v9000_v43 = vld [vmem:[%s21930_s0 + $0xd0] sm:$0xff] }
0x343d   : > { %s21935_s27 = smov %s21934_s22 }
0x3495   : > { %v8791_v36 = vpop.xlane.xlu1 %8790 }
0x3496   : > { %18836 = vrcp.f32 %v8791_v36 }
0x34a0   : > { %v18837_v31 = vpop.eup %18836 }
0x34a1   : > { %v8793_v32 = vmul.f32 %v18837_v31, %v18835_v24  ;;  %v8980_v31 = vld [vmem:[%s21930_s0 + $0x30] sm:$0xff] }
0x34a3   : > { %17162 = vmatmul.mubr.msk.f32.vlgmr.msra.gmra.mrb[78].mxu0 %vm1402_vm2, %v8793_v32  ;;  %v8996_v32 = vld [vmem:[%s21930_s0 + $0xb0] sm:$0xff] }
0x34a4   : > { %9446 = vmatprep.mubr.f32.mxu0 %v18992_v6  ;;  %18006 = vmatpush1.bf16.msra.mxu0 %v18005_v15  ;;  %v8982_v15 = vld [vmem:[%s21930_s0 + $0x40] sm:$0xff] }
0x34a5   : > { %18008 = vmatprep.subr.bf16.mxu0 %v18007_v2  ;;  %v9031_v2 = vld [vmem:[%s21930_s0 + $0x1c8] sm:$0xff]  ;;  %v18037_v4 = vpack.c.bf16 %v8998_v55, %v8982_v15  ;;  %v9072_v15 = vld [vmem:[%s21935_s27 + $0x100] sm:$0xff] }
0x34a6   : > { %v18039_v37 = vpack.c.bf16 %v9031_v2, %v9015_v0  ;;  %v9073_v55 = vld [vmem:[%s21935_s27 + $0x108] sm:$0xff] }
0x34a7   : > { %v18101_v2 = vpack.c.bf16 %v9073_v55, %v9072_v15  ;;  %v9098_v15 = vld [vmem:[%s21935_s27 + $0x1d0] sm:$0xff]  ;;  %v9099_v55 = vld [vmem:[%s21935_s27 + $0x1d8] sm:$0xff] }
0x34a8   : > { %18010 = vmatpush1.bf16.msra.mxu0 %v18009_v47  ;;  %v9014_v47 = vld [vmem:[%s21930_s0 + $0x140] sm:$0xff] }
0x34a9   : > { %18020 = vmatprep.subr.bf16.mxu0 %v18019_v52  ;;  %v9003_v52 = vld [vmem:[%s21930_s0 + $0xe8] sm:$0xff] }
0x3576   : > { %v8866_v54 = vpop.f32.mrb[78].mxu0 }
0x3577   : > { %v17163_v57 = vpop.f32.mrb[79].mxu0  ;;  %17167 = vmatmul.mubr.msk.f32.vlgmr.msra.gmra.mrb[88].mxu1 %vm1402_vm2, %v8866_v54  ;;  %v9011_v54 = vld [vmem:[%s21930_s0 + $0x128] sm:$0xff] }
0x3578   : > { %9517 = vmatprep.mubr.f32.mxu1 %v18992_v6  ;;  %v9027_v57 = vld [vmem:[%s21930_s0 + $0x1a8] sm:$0xff] }
0x364a   : > { %v8939_v38 = vpop.f32.mrb[88].mxu1 }
0x364b   : > { %v8943_v51 = vadd.f32 %v8939_v38, %v8703_v30  ;;  %v17168_v39 = vpop.f32.mrb[89].mxu1  ;;  %v8978_v30 = vld [vmem:[%s21930_s0 + $0x20] sm:$0xff]  ;;  %v9013_v38 = vld [vmem:[%s21930_s0 + $0x138] sm:$0xff] }
0x364d   : > { %v8944_v62 = vadd.f32 %v8943_v51, %v20534_v49  ;;  %v8993_v49 = vld [vmem:[%s21930_s0 + $0x98] sm:$0xff] }
0x364e   : > { %v18011_v50 = vpack.c.bf16 %v8993_v49, %v8977_v45  ;;  %v9029_v51 = vld [vmem:[%s21930_s0 + $0x1b8] sm:$0xff]  ;;  %v8983_v45 = vld [vmem:[%s21930_s0 + $0x48] sm:$0xff] }
0x364f   : > { %v8947_v19 = vsel %vm1320_vm1, %v8944_v62, 0.0  ;;  %v8985_v49 = vld [vmem:[%s21930_s0 + $0x58] sm:$0xff]  ;;  %v18035_v22 = vpack.c.bf16 %v8999_v46, %v8983_v45 }
0x3650   : > { %8948 = vadd.xlane.f32.xlu1 %v8947_v19  ;;  %18012 = vmatprep.subr.bf16.mxu1 %v18011_v50  ;;  %v18029_v19 = vpack.c.bf16 %v8996_v32, %v8980_v31  ;;  %v18033_v50 = vpack.c.bf16 %v9028_v10, %v9012_v44  ;;  %v9035_v31 = vld [vmem:[%s21930_s0 + $0x1e8] sm:$0xff]  ;;  %v9021_v32 = vld [vmem:[%s21930_s0 + $0x178] sm:$0xff]  ;;  %v9088_v44 = vld [vmem:[%s21935_s27 + $0x180] sm:$0xff] }
0x3651   : > { %18014 = vmatpush1.bf16.msra.mxu1 %v18013_v58  ;;  %v18043_v58 = vpack.c.bf16 %v9001_v48, %v8985_v49  ;;  %v9089_v10 = vld [vmem:[%s21935_s27 + $0x188] sm:$0xff]  ;;  %v9040_v49 = vld [vmem:[%s21935_s27] sm:$0xff] }
0x3652   : > { %18016 = vmatprep.subr.bf16.mxu1 %v18015_v18  ;;  %v18045_v18 = vpack.c.bf16 %v9000_v43, %v8984_v61  ;;  %v9041_v48 = vld [vmem:[%s21935_s27 + $0x8] sm:$0xff]  ;;  %v9090_v61 = vld [vmem:[%s21935_s27 + $0x190] sm:$0xff]  ;;  %v9091_v43 = vld [vmem:[%s21935_s27 + $0x198] sm:$0xff] }
0x3653   : > { %v18069_v0 = vpack.c.bf16 %v9041_v48, %v9040_v49  ;;  %v9080_v49 = vld [vmem:[%s21935_s27 + $0x140] sm:$0xff]  ;;  %v9081_v48 = vld [vmem:[%s21935_s27 + $0x148] sm:$0xff] }
0x3655   : > { %18018 = vmatpush1.bf16.msra.mxu1 %v18017_v20  ;;  %v18047_v20 = vpack.c.bf16 %v9033_v53, %v9017_v60  ;;  %v9042_v60 = vld [vmem:[%s21935_s27 + $0x10] sm:$0xff]  ;;  %v9043_v53 = vld [vmem:[%s21935_s27 + $0x18] sm:$0xff] }
0x3656   : > { %18028 = vmatprep.subr.bf16.mxu1 %v18027_v56  ;;  %v9005_v56 = vld [vmem:[%s21930_s0 + $0xf8] sm:$0xff] }
0x36dd   : > { %v8949_v23 = vpop.xlane.xlu1 %8948 }
0x36de   : > { %v8950_v9 = vmul.f32 0.03125, %v8949_v23  ;;  %v9010_v23 = vld [vmem:[%s21930_s0 + $0x120] sm:$0xff] }
0x36e0   : > { %v8951_v59 = vsub.f32 %v8944_v62, %v8950_v9  ;;  %v18021_v62 = vpack.c.bf16 %v8994_v28, %v8978_v30  ;;  %v9026_v9 = vld [vmem:[%s21930_s0 + $0x1a0] sm:$0xff]  ;;  %v8988_v30 = vld [vmem:[%s21930_s0 + $0x70] sm:$0xff] }
0x36e1   : > { %v18025_v1 = vpack.c.bf16 %v9026_v9, %v9010_v23  ;;  %v9004_v28 = vld [vmem:[%s21930_s0 + $0xf0] sm:$0xff] }
0x36e2   : > { %v8952_v40 = vmul.f32 %v8951_v59, %v8951_v59  ;;  %v9020_v23 = vld [vmem:[%s21930_s0 + $0x170] sm:$0xff] }
0x36e3   : > { %v9036_v9 = vld [vmem:[%s21930_s0 + $0x1f0] sm:$0xff] }
0x36e4   : > { %v8953_v41 = vsel %vm1320_vm1, %v8952_v40, 0.0  ;;  %v18065_v46 = vpack.c.bf16 %v9036_v9, %v9020_v23  ;;  %v9096_v23 = vld [vmem:[%s21935_s27 + $0x1c0] sm:$0xff]  ;;  %v9097_v9 = vld [vmem:[%s21935_s27 + $0x1c8] sm:$0xff] }
0x36e5   : > { %8954 = vadd.xlane.f32.xlu1 %v8953_v41  ;;  %v18031_v41 = vpack.c.bf16 %v9029_v51, %v9013_v38  ;;  %v18061_v38 = vpack.c.bf16 %v9004_v28, %v8988_v30  ;;  %v9018_v51 = vld [vmem:[%s21930_s0 + $0x160] sm:$0xff]  ;;  %v9094_v30 = vld [vmem:[%s21935_s27 + $0x1b0] sm:$0xff]  ;;  %v9095_v28 = vld [vmem:[%s21935_s27 + $0x1b8] sm:$0xff] }
0x3772   : > { %v8955_v29 = vpop.xlane.xlu1 %8954 }
0x3773   : > { %v8956_v21 = vmul.f32 0.03125, %v8955_v29  ;;  %v18041_v29 = vpack.c.bf16 %v9030_v33, %v9014_v47  ;;  %v9074_v47 = vld [vmem:[%s21935_s27 + $0x110] sm:$0xff]  ;;  %v9075_v33 = vld [vmem:[%s21935_s27 + $0x118] sm:$0xff] }
0x3775   : > { %v8957_v24 = vadd.f32 1e-05, %v8956_v21  ;;  %v18049_v21 = vpack.c.bf16 %v9032_v11, %v9016_v42  ;;  %v9092_v42 = vld [vmem:[%s21935_s27 + $0x1a0] sm:$0xff]  ;;  %v9093_v11 = vld [vmem:[%s21935_s27 + $0x1a8] sm:$0xff] }
0x3777   : > { %18838 = vrsqrt.f32 %v8957_v24  ;;  %v8986_v24 = vld [vmem:[%s21930_s0 + $0x60] sm:$0xff] }
0x3781   : > { %v18839_v26 = vpop.eup %18838 }
0x3782   : > { %v8959_v36 = vmul.f32 %v18839_v26, %v8951_v59  ;;  %v18023_v59 = vpack.c.bf16 %v9027_v57, %v9011_v54  ;;  %v18051_v26 = vpack.c.bf16 %v9003_v52, %v8987_v7  ;;  %v9037_v54 = vld [vmem:[%s21930_s0 + $0x1f8] sm:$0xff]  ;;  %v18073_v7 = vpack.c.bf16 %v9043_v53, %v9042_v60  ;;  %v9082_v60 = vld [vmem:[%s21935_s27 + $0x150] sm:$0xff] }
0x3783   : > { %v18105_v52 = vpack.c.bf16 %v9075_v33, %v9074_v47  ;;  %v9083_v53 = vld [vmem:[%s21935_s27 + $0x158] sm:$0xff]  ;;  %v9100_v47 = vld [vmem:[%s21935_s27 + $0x1e0] sm:$0xff]  ;;  %v9101_v33 = vld [vmem:[%s21935_s27 + $0x1e8] sm:$0xff] }
0x3784   : > { %v8966_v39 = vmul.f32 %v15135_v25, %v8959_v36  ;;  %v9002_v25 = vld [vmem:[%s21930_s0 + $0xe0] sm:$0xff]  ;;  %v9019_v36 = vld [vmem:[%s21930_s0 + $0x168] sm:$0xff] }
0x3785   : > { %v18053_v57 = vpack.c.bf16 %v9002_v25, %v8986_v24  ;;  %v9076_v24 = vld [vmem:[%s21935_s27 + $0x120] sm:$0xff]  ;;  %v9077_v25 = vld [vmem:[%s21935_s27 + $0x128] sm:$0xff] }
0x3786   : > { %v20664_v40 = vadd.f32 %v15136_v27, %v8966_v39  ;;  %v18059_v27 = vpack.c.bf16 %v9005_v56, %v8989_v63  ;;  %v9034_v39 = vld [vmem:[%s21930_s0 + $0x1e0] sm:$0xff]  ;;  %v9045_v56 = vld [vmem:[%s21935_s27 + $0x28] sm:$0xff] }
0x3787   : > { %v18057_v45 = vpack.c.bf16 %v9034_v39, %v9018_v51  ;;  %v9044_v63 = vld [vmem:[%s21935_s27 + $0x20] sm:$0xff]  ;;  %v9078_v51 = vld [vmem:[%s21935_s27 + $0x130] sm:$0xff]  ;;  %v9079_v39 = vld [vmem:[%s21935_s27 + $0x138] sm:$0xff] }
0x3788   : > { %15137 = vmatmul.mubr.msk.f32.vlgmr.msra.gmra.mrb[80].mxu0 %vm1320_vm1, %v20664_v40  ;;  %15138 = vmatmul.mubr.msk.f32.vlgmr.msra.gmra.mrb[90].mxu1 %vm1320_vm1, %v20664_v40 }
0x3789   : > { %18022 = vmatpush1.bf16.msra.mxu0 %v18021_v62  ;;  %18030 = vmatpush1.bf16.msra.mxu1 %v18029_v19  ;;  %v18055_v62 = vpack.c.bf16 %v9035_v31, %v9019_v36  ;;  %v18063_v19 = vpack.c.bf16 %v9037_v54, %v9021_v32  ;;  %v18077_v36 = vpack.c.bf16 %v9045_v56, %v9044_v63  ;;  %v9046_v32 = vld [vmem:[%s21935_s27 + $0x30] sm:$0xff]  ;;  %v9047_v54 = vld [vmem:[%s21935_s27 + $0x38] sm:$0xff]  ;;  %v9084_v63 = vld [vmem:[%s21935_s27 + $0x160] sm:$0xff] }
0x378a   : > { %18024 = vmatprep.subr.bf16.mxu0 %v18023_v59  ;;  %18032 = vmatprep.subr.bf16.mxu1 %v18031_v41  ;;  %v9056_v59 = vld [vmem:[%s21934_s22 + $0x80] sm:$0xff]  ;;  %v9057_v41 = vld [vmem:[%s21935_s27 + $0x88] sm:$0xff]  ;;  %v18109_v31 = vpack.c.bf16 %v9077_v25, %v9076_v24  ;;  %v9070_v24 = vld [vmem:[%s21935_s27 + $0xf0] sm:$0xff]  ;;  %s21938_s22 = sld [smem:[#allocation40_spill]] }
0x378b   : > { %9588 = vmatprep.mubr.f32.mxu0 %v18992_v6  ;;  %9659 = vmatprep.mubr.f32.mxu1 %v18992_v6  ;;  %v9085_v56 = vld [vmem:[%s21935_s27 + $0x168] sm:$0xff]  ;;  %v9071_v25 = vld [vmem:[%s21935_s27 + $0xf8] sm:$0xff] }
0x378d   : > { %18026 = vmatpush1.bf16.msra.mxu0 %v18025_v1  ;;  %18034 = vmatpush1.bf16.msra.mxu1 %v18033_v50  ;;  %v18067_v1 = vpack.c.bf16 %v9057_v41, %v9056_v59  ;;  %v18099_v50 = vpack.c.bf16 %v9089_v10, %v9088_v44  ;;  %v18081_v59 = vpack.c.bf16 %v9047_v54, %v9046_v32  ;;  %v9048_v44 = vld [vmem:[%s21935_s27 + $0x40] sm:$0xff]  ;;  %v9049_v10 = vld [vmem:[%s21935_s27 + $0x48] sm:$0xff]  ;;  %v9086_v54 = vld [vmem:[%s21935_s27 + $0x170] sm:$0xff] }
0x378e   : > { %18036 = vmatprep.subr.bf16.mxu0 %v18035_v22  ;;  %18044 = vmatprep.subr.bf16.mxu1 %v18043_v58  ;;  %v9058_v22 = vld [vmem:[%s21935_s27 + $0x90] sm:$0xff]  ;;  %v9059_v58 = vld [vmem:[%s21935_s27 + $0x98] sm:$0xff]  ;;  %v18113_v41 = vpack.c.bf16 %v9079_v39, %v9078_v51  ;;  %v9120_v51 = vld [vmem:[%s21935_s27 + $0x280] sm:$0xff] }
0x378f   : > { %v9121_v39 = vld [vmem:[%s21935_s27 + $0x288] sm:$0xff] }
0x3790   : > { %15139 = vmatmul.mubr.msk.f32.vlgmr.msra.gmra.mrb[82].mxu0 %vm1320_vm1, %v20664_v40  ;;  %15140 = vmatmul.mubr.msk.f32.vlgmr.msra.gmra.mrb[92].mxu1 %vm1320_vm1, %v20664_v40 }
0x3791   : > { %18038 = vmatpush1.bf16.msra.mxu0 %v18037_v4  ;;  %18046 = vmatpush1.bf16.msra.mxu1 %v18045_v18  ;;  %v18071_v4 = vpack.c.bf16 %v9059_v58, %v9058_v22  ;;  %v18103_v18 = vpack.c.bf16 %v9091_v43, %v9090_v61  ;;  %v18085_v22 = vpack.c.bf16 %v9049_v10, %v9048_v44  ;;  %v9050_v61 = vld [vmem:[%s21935_s27 + $0x50] sm:$0xff]  ;;  %v9051_v43 = vld [vmem:[%s21935_s27 + $0x58] sm:$0xff] }
0x3792   : > { %18040 = vmatprep.subr.bf16.mxu0 %v18039_v37  ;;  %18048 = vmatprep.subr.bf16.mxu1 %v18047_v20  ;;  %v9060_v37 = vld [vmem:[%s21935_s27 + $0xa0] sm:$0xff]  ;;  %v9061_v20 = vld [vmem:[%s21935_s27 + $0xa8] sm:$0xff]  ;;  %v18117_v58 = vpack.c.bf16 %v9081_v48, %v9080_v49 }
0x3793   : > { %9730 = vmatprep.mubr.f32.mxu0 %v18992_v6  ;;  %9801 = vmatprep.mubr.f32.mxu1 %v18992_v6  ;;  %v9104_v48 = vld [vmem:[%s21935_s27 + $0x200] sm:$0xff] }
0x3795   : > { %18042 = vmatpush1.bf16.msra.mxu0 %v18041_v29  ;;  %18050 = vmatpush1.bf16.msra.mxu1 %v18049_v21  ;;  %v18075_v29 = vpack.c.bf16 %v9061_v20, %v9060_v37  ;;  %v18107_v21 = vpack.c.bf16 %v9093_v11, %v9092_v42  ;;  %v18089_v37 = vpack.c.bf16 %v9051_v43, %v9050_v61  ;;  %v9052_v42 = vld [vmem:[%s21935_s27 + $0x60] sm:$0xff]  ;;  %v9137_v61 = vld [vmem:[%s21935_s27 + $0x308] sm:$0xff]  ;;  %v9122_v43 = vld [vmem:[%s21935_s27 + $0x290] sm:$0xff] }
0x3796   : > { %18052 = vmatprep.subr.bf16.mxu0 %v18051_v26  ;;  %18060 = vmatprep.subr.bf16.mxu1 %v18059_v27  ;;  %v9062_v26 = vld [vmem:[%s21935_s27 + $0xb0] sm:$0xff]  ;;  %v9063_v27 = vld [vmem:[%s21935_s27 + $0xb8] sm:$0xff]  ;;  %v18121_v20 = vpack.c.bf16 %v9083_v53, %v9082_v60 }
0x3797   : > { %v9123_v60 = vld [vmem:[%s21935_s27 + $0x298] sm:$0xff]  ;;  %v9154_v53 = vld [vmem:[%s21935_s27 + $0x390] sm:$0xff] }
0x3798   : > { %15141 = vmatmul.mubr.msk.f32.vlgmr.msra.gmra.mrb[84].mxu0 %vm1320_vm1, %v20664_v40  ;;  %15142 = vmatmul.mubr.msk.f32.vlgmr.msra.gmra.mrb[94].mxu1 %vm1320_vm1, %v20664_v40 }
0x3799   : > { %18054 = vmatpush1.bf16.msra.mxu0 %v18053_v57  ;;  %18062 = vmatpush1.bf16.msra.mxu1 %v18061_v38  ;;  %v18079_v57 = vpack.c.bf16 %v9063_v27, %v9062_v26  ;;  %v18111_v38 = vpack.c.bf16 %v9095_v28, %v9094_v30  ;;  %v9102_v26 = vld [vmem:[%s21935_s27 + $0x1f0] sm:$0xff]  ;;  %v18095_v27 = vpack.c.bf16 %v9071_v25, %v9070_v24  ;;  %v9103_v30 = vld [vmem:[%s21935_s27 + $0x1f8] sm:$0xff] }
0x379a   : > { %18056 = vmatprep.subr.bf16.mxu0 %v18055_v62  ;;  %18064 = vmatprep.subr.bf16.mxu1 %v18063_v19  ;;  %v9064_v62 = vld [vmem:[%s21935_s27 + $0xc0] sm:$0xff]  ;;  %v9065_v19 = vld [vmem:[%s21935_s27 + $0xc8] sm:$0xff]  ;;  %v9054_v28 = vld [vmem:[%s21935_s27 + $0x70] sm:$0xff] }
0x379b   : > { %9872 = vmatprep.mubr.f32.mxu0 %v18992_v6  ;;  %9943 = vmatprep.mubr.f32.mxu1 %v18992_v6 }
0x379d   : > { %18058 = vmatpush1.bf16.msra.mxu0 %v18057_v45  ;;  %18066 = vmatpush1.bf16.msra.mxu1 %v18065_v46  ;;  %v18083_v45 = vpack.c.bf16 %v9065_v19, %v9064_v62  ;;  %v18115_v46 = vpack.c.bf16 %v9097_v9, %v9096_v23  ;;  %v9152_v62 = vld [vmem:[%s21935_s27 + $0x380] sm:$0xff]  ;;  %v18131_v19 = vpack.c.bf16 %v9121_v39, %v9120_v51  ;;  %v9153_v23 = vld [vmem:[%s21935_s27 + $0x388] sm:$0xff] }
0x379e   : > { %18068 = vmatprep.subr.bf16.mxu0 %v18067_v1  ;;  %18100 = vmatprep.subr.bf16.mxu1 %v18099_v50  ;;  %v9066_v1 = vld [vmem:[%s21935_s27 + $0xd0] sm:$0xff]  ;;  %v9067_v50 = vld [vmem:[%s21935_s27 + $0xd8] sm:$0xff]  ;;  %v18163_v9 = vpack.c.bf16 %v9153_v23, %v9152_v62  ;;  %v9141_v23 = vld [vmem:[%s21935_s27 + $0x328] sm:$0xff] }
0x37a0   : > { %15143 = vmatmul.mubr.msk.f32.vlgmr.msra.gmra.mrb[86].mxu0 %vm1320_vm1, %v20664_v40  ;;  %15144 = vmatmul.mubr.msk.f32.vlgmr.msra.gmra.mrb[96].mxu1 %vm1320_vm1, %v20664_v40 }
0x37a1   : > { %18070 = vmatpush3.bf16.msra.mxu0 %v18069_v0  ;;  %18102 = vmatpush3.bf16.msra.mxu1 %v18101_v2  ;;  %v18087_v0 = vpack.c.bf16 %v9067_v50, %v9066_v1  ;;  %v18119_v2 = vpack.c.bf16 %v9099_v55, %v9098_v15  ;;  %v9105_v1 = vld [vmem:[%s21935_s27 + $0x208] sm:$0xff] }
0x37a2   : > { %18072 = vmatprep.subr.bf16.mxu0 %v18071_v4  ;;  %18104 = vmatprep.subr.bf16.mxu1 %v18103_v18  ;;  %v9068_v4 = vld [vmem:[%s21935_s27 + $0xe0] sm:$0xff]  ;;  %v9069_v18 = vld [vmem:[%s21935_s27 + $0xe8] sm:$0xff] }
0x37a3   : > { %v18091_v11 = vpack.c.bf16 %v9069_v18, %v9068_v4  ;;  %v9155_v4 = vld [vmem:[%s21935_s27 + $0x398] sm:$0xff] }
0x37a5   : > { %18074 = vmatpush3.bf16.msra.mxu0 %v18073_v7  ;;  %18106 = vmatpush3.bf16.msra.mxu1 %v18105_v52  ;;  %v18123_v7 = vpack.c.bf16 %v9101_v33, %v9100_v47  ;;  %v9053_v52 = vld [vmem:[%s21935_s27 + $0x68] sm:$0xff]  ;;  %v18133_v33 = vpack.c.bf16 %v9105_v1, %v9104_v48 }
0x37a6   : > { %18076 = vmatprep.subr.bf16.mxu0 %v18075_v29  ;;  %18108 = vmatprep.subr.bf16.mxu1 %v18107_v21  ;;  %v18093_v29 = vpack.c.bf16 %v9053_v52, %v9052_v42  ;;  %v18125_v21 = vpack.c.bf16 %v9085_v56, %v9084_v63  ;;  %v9107_v42 = vld [vmem:[%s21935_s27 + $0x218] sm:$0xff]  ;;  %v18135_v52 = vpack.c.bf16 %v9123_v60, %v9122_v43  ;;  %v9138_v56 = vld [vmem:[%s21935_s27 + $0x310] sm:$0xff]  ;;  %v9160_v60 = vld [vmem:[%s21935_s27 + $0x3c0] sm:$0xff] }
0x37a7   : > { %v18167_v63 = vpack.c.bf16 %v9155_v4, %v9154_v53  ;;  %v9143_v43 = vld [vmem:[%s21935_s27 + $0x338] sm:$0xff]  ;;  %v9161_v53 = vld [vmem:[%s21935_s27 + $0x3c8] sm:$0xff] }
0x37a9   : > { %18078 = vmatpush3.bf16.msra.mxu0 %v18077_v36  ;;  %18110 = vmatpush3.bf16.msra.mxu1 %v18109_v31  ;;  %v9055_v36 = vld [vmem:[%s21935_s27 + $0x78] sm:$0xff]  ;;  %v18127_v31 = vpack.c.bf16 %v9103_v30, %v9102_v26  ;;  %v9125_v26 = vld [vmem:[%s21935_s27 + $0x2a8] sm:$0xff] }
0x37aa   : > { %18080 = vmatprep.subr.bf16.mxu0 %v18079_v57  ;;  %18112 = vmatprep.subr.bf16.mxu1 %v18111_v38  ;;  %v18097_v32 = vpack.c.bf16 %v9055_v36, %v9054_v28  ;;  %v9087_v57 = vld [vmem:[%s21935_s27 + $0x178] sm:$0xff]  ;;  %v9157_v30 = vld [vmem:[%s21935_s27 + $0x3a8] sm:$0xff] }
0x37ab   : > { %v18129_v38 = vpack.c.bf16 %v9087_v57, %v9086_v54  ;;  %v9108_v54 = vld [vmem:[%s21935_s27 + $0x220] sm:$0xff]  ;;  %v9109_v57 = vld [vmem:[%s21935_s27 + $0x228] sm:$0xff] }
0x37ac   : > { %v18141_v1 = vpack.c.bf16 %v9109_v57, %v9108_v54 }
0x37ad   : > { %18082 = vmatpush3.bf16.msra.mxu0 %v18081_v59  ;;  %18114 = vmatpush3.bf16.msra.mxu1 %v18113_v41  ;;  %v20791_v59 = vld [vmem:[%s21936_s15] sm:$0xff]  ;;  %s21939_s15 = sld [smem:[#allocation41_spill]] }
0x37ae   : > { %18084 = vmatprep.subr.bf16.mxu0 %v18083_v45  ;;  %18116 = vmatprep.subr.bf16.mxu1 %v18115_v46  ;;  %v9302_v41 = vrot.slane %v20791_v59, %v19561_v12  ;;  %v9310_v44 = vrot.slane %v20791_v59, %v19564_v13  ;;  %v9306_v10 = vrot.slane %v20791_v59, %v19570_v16 }
0x37af   : > { %v9314_v45 = vrot.slane %v20791_v59, %v19573_v17  ;;  %v9322_v24 = vrot.slane %v20791_v59, %v19589_v34  ;;  %v9330_v25 = vrot.slane %v20791_v59, %v19592_v35 }
0x37b1   : > { %18086 = vmatpush3.bf16.msra.mxu0 %v18085_v22  ;;  %18118 = vmatpush3.bf16.msra.mxu1 %v18117_v58  ;;  %v9136_v58 = vld [vmem:[%s21935_s27 + $0x300] sm:$0xff] }
0x37b2   : > { %18088 = vmatprep.subr.bf16.mxu0 %v18087_v0  ;;  %18120 = vmatprep.subr.bf16.mxu1 %v18119_v2 }
0x37b5   : > { %18090 = vmatpush3.bf16.msra.mxu0 %v18089_v37  ;;  %18122 = vmatpush3.bf16.msra.mxu1 %v18121_v20  ;;  %v18165_v37 = vpack.c.bf16 %v9137_v61, %v9136_v58  ;;  %v9106_v20 = vld [vmem:[%s21935_s27 + $0x210] sm:$0xff] }
0x37b6   : > { %18092 = vmatprep.subr.bf16.mxu0 %v18091_v11  ;;  %18124 = vmatprep.subr.bf16.mxu1 %v18123_v7  ;;  %v9142_v61 = vld [vmem:[%s21935_s27 + $0x330] sm:$0xff] }
0x37b9   : > { %18094 = vmatpush3.bf16.msra.mxu0 %v18093_v29  ;;  %18126 = vmatpush3.bf16.msra.mxu1 %v18125_v21  ;;  %v9139_v29 = vld [vmem:[%s21935_s27 + $0x318] sm:$0xff]  ;;  %v9124_v21 = vld [vmem:[%s21935_s27 + $0x2a0] sm:$0xff] }
0x37ba   : > { %18096 = vmatprep.subr.bf16.mxu0 %v18095_v27  ;;  %18128 = vmatprep.subr.bf16.mxu1 %v18127_v31  ;;  %v9156_v27 = vld [vmem:[%s21935_s27 + $0x3a0] sm:$0xff]  ;;  %v18137_v31 = vpack.c.bf16 %v9107_v42, %v9106_v20  ;;  %v18139_v39 = vpack.c.bf16 %v9125_v26, %v9124_v21  ;;  %v9113_v20 = vld [vmem:[%s21935_s27 + $0x248] sm:$0xff]  ;;  %v9131_v21 = vld [vmem:[%s21935_s27 + $0x2d8] sm:$0xff] }
0x37bb   : > { %v18171_v62 = vpack.c.bf16 %v9157_v30, %v9156_v27  ;;  %v20858_v26 = vld [vmem:[%s21937_s9 + $0x8] sm:$0xff]  ;;  %s21940_s9 = smov %s21939_s15 }
0x37bc   : > { %v9358_v54 = vrot.slane %v20858_v26, %v19646_v8 }
0x37bd   : > { %18098 = vmatpush3.bf16.msra.mxu0 %v18097_v32  ;;  %18130 = vmatpush3.bf16.msra.mxu1 %v18129_v38  ;;  %v18169_v32 = vpack.c.bf16 %v9139_v29, %v9138_v56  ;;  %v9145_v56 = vld [vmem:[%s21935_s27 + $0x348] sm:$0xff]  ;;  %v9130_v29 = vld [vmem:[%s21935_s27 + $0x2d0] sm:$0xff] }
0x37be   : > { %18132 = vmatprep.subr.bf16.mxu0 %v18131_v19  ;;  %18164 = vmatprep.subr.bf16.mxu1 %v18163_v9  ;;  %v9140_v19 = vld [vmem:[%s21935_s27 + $0x320] sm:$0xff]  ;;  %v9126_v9 = vld [vmem:[%s21935_s27 + $0x2b0] sm:$0xff]  ;;  %v18151_v57 = vpack.c.bf16 %v9131_v21, %v9130_v29  ;;  %v9185_v21 = vld [vmem:[%s21935_s27 + $0x488] sm:$0xff] }
0x37bf   : > { %v9184_v29 = vld [vmem:[%s21935_s27 + $0x480] sm:$0xff] }
0x385b   : > { %v9448_v46 = vpop.f32.mrb[80].mxu0  ;;  %v9519_v49 = vpop.f32.mrb[90].mxu1 }
0x385c   : > { %v9449_v50 = vadd.f32 %v9448_v46, %v9302_v41  ;;  %v9520_v15 = vadd.f32 %v9519_v49, %v9310_v44  ;;  %v9450_v55 = vpop.f32.mrb[81].mxu0  ;;  %v9521_v22 = vpop.f32.mrb[91].mxu1  ;;  %v9159_v46 = vld [vmem:[%s21935_s27 + $0x3b8] sm:$0xff] }
0x385d   : > { %v9451_v0 = vadd.f32 %v9450_v55, %v9306_v10  ;;  %v9522_v2 = vadd.f32 %v9521_v22, %v9314_v45  ;;  %v9127_v10 = vld [vmem:[%s21935_s27 + $0x2b8] sm:$0xff]  ;;  %v9158_v45 = vld [vmem:[%s21935_s27 + $0x3b0] sm:$0xff] }
0x385e   : > { %v9950_v11 = vmax.f32 %v9449_v50, 0.0  ;;  %v9952_v7 = vmax.f32 %v9520_v15, 0.0  ;;  %v18173_v50 = vpack.c.bf16 %v9141_v23, %v9140_v19  ;;  %v9110_v15 = vld [vmem:[%s21935_s27 + $0x230] sm:$0xff]  ;;  %v9111_v55 = vld [vmem:[%s21935_s27 + $0x238] sm:$0xff]  ;;  %v18143_v22 = vpack.c.bf16 %v9127_v10, %v9126_v9  ;;  %v9133_v19 = vld [vmem:[%s21935_s27 + $0x2e8] sm:$0xff] }
0x385f   : > { %v9951_v18 = vmax.f32 %v9451_v0, 0.0  ;;  %v9953_v47 = vmax.f32 %v9522_v2, 0.0  ;;  %v18175_v58 = vpack.c.bf16 %v9159_v46, %v9158_v45  ;;  %v9128_v0 = vld [vmem:[%s21935_s27 + $0x2c0] sm:$0xff]  ;;  %v9129_v2 = vld [vmem:[%s21935_s27 + $0x2c8] sm:$0xff] }
0x3860   : > { %v9164_v23 = vld [vmem:[%s21935_s27 + $0x3e0] sm:$0xff]  ;;  %v9165_v9 = vld [vmem:[%s21935_s27 + $0x3e8] sm:$0xff] }
0x3861   : > { %10036 = vmatprep.mubr.f32.mxu0 %v9951_v18  ;;  %10106 = vmatprep.mubr.f32.mxu1 %v9953_v47  ;;  %v18145_v47 = vpack.c.bf16 %v9111_v55, %v9110_v15  ;;  %v9116_v46 = vld [vmem:[%s21935_s27 + $0x260] sm:$0xff]  ;;  %v18187_v55 = vpack.c.bf16 %v9165_v9, %v9164_v23  ;;  %v9201_v23 = vld [vmem:[%s21935_s27 + $0x508] sm:$0xff]  ;;  %v9186_v9 = vld [vmem:[%s21935_s27 + $0x490] sm:$0xff] }
0x3862   : > { %10037 = vmatmul.mubr.f32.vlgmr.msra.gmra.mrb[88].mxu0 %v9950_v11  ;;  %10107 = vmatmul.mubr.f32.vlgmr.msra.gmra.mrb[98].mxu1 %v9952_v7  ;;  %v18147_v7 = vpack.c.bf16 %v9129_v2, %v9128_v0  ;;  %v9166_v0 = vld [vmem:[%s21935_s27 + $0x3f0] sm:$0xff]  ;;  %v9167_v2 = vld [vmem:[%s21935_s27 + $0x3f8] sm:$0xff] }
0x3863   : > { %v20821_v28 = vpop.f32.mrb[82].mxu0  ;;  %v20823_v36 = vpop.f32.mrb[92].mxu1  ;;  %18134 = vmatpush3.bf16.msra.mxu0 %v18133_v33  ;;  %18166 = vmatpush3.bf16.msra.mxu1 %v18165_v37  ;;  %v18177_v33 = vpack.c.bf16 %v9143_v43, %v9142_v61  ;;  %v9112_v37 = vld [vmem:[%s21935_s27 + $0x240] sm:$0xff]  ;;  %v9134_v61 = vld [vmem:[%s21935_s27 + $0x2f0] sm:$0xff]  ;;  %v9135_v43 = vld [vmem:[%s21935_s27 + $0x2f8] sm:$0xff] }
0x3864   : > { %v9592_v38 = vpop.f32.mrb[83].mxu0  ;;  %v9663_v51 = vpop.f32.mrb[93].mxu1  ;;  %18136 = vmatprep.subr.bf16.mxu0 %v18135_v52  ;;  %18168 = vmatprep.subr.bf16.mxu1 %v18167_v63  ;;  %v18179_v52 = vpack.c.bf16 %v9161_v53, %v9160_v60  ;;  %v9144_v63 = vld [vmem:[%s21935_s27 + $0x340] sm:$0xff]  ;;  %v18149_v27 = vpack.c.bf16 %v9113_v20, %v9112_v37  ;;  %v9318_v60 = vrot.slane %v20791_v59, %v19662_v5  ;;  %v9119_v37 = vld [vmem:[%s21935_s27 + $0x278] sm:$0xff]  ;;  %v9150_v20 = vld [vmem:[%s21935_s27 + $0x370] sm:$0xff] }
0x3865   : > { %v9593_v41 = vadd.f32 %v9592_v38, %v9322_v24  ;;  %v9664_v44 = vadd.f32 %v9663_v51, %v9330_v25  ;;  %v9162_v24 = vld [vmem:[%s21935_s27 + $0x3d0] sm:$0xff]  ;;  %v9163_v25 = vld [vmem:[%s21935_s27 + $0x3d8] sm:$0xff]  ;;  %v18181_v30 = vpack.c.bf16 %v9145_v56, %v9144_v63  ;;  %v18191_v63 = vpack.c.bf16 %v9167_v2, %v9166_v0  ;;  %v9188_v0 = vld [vmem:[%s21935_s27 + $0x4a0] sm:$0xff] }
0x3866   : > { %v18183_v38 = vpack.c.bf16 %v9163_v25, %v9162_v24  ;;  %v9146_v51 = vld [vmem:[%s21935_s27 + $0x350] sm:$0xff]  ;;  %v9151_v56 = vld [vmem:[%s21935_s27 + $0x378] sm:$0xff]  ;;  %v9338_v24 = vrot.slane %v20858_v26, %v19570_v16  ;;  %v9216_v25 = vld [vmem:[%s21935_s27 + $0x580] sm:$0xff] }
0x3867   : > { %v9955_v49 = vmax.f32 %v9593_v41, 0.0  ;;  %v9957_v48 = vmax.f32 %v9664_v44, 0.0  ;;  %18138 = vmatpush3.bf16.msra.mxu0 %v18137_v31  ;;  %18170 = vmatpush3.bf16.msra.mxu1 %v18169_v32  ;;  %v9114_v31 = vld [vmem:[%s21935_s27 + $0x250] sm:$0xff]  ;;  %v9115_v32 = vld [vmem:[%s21935_s27 + $0x258] sm:$0xff]  ;;  %v9189_v2 = vld [vmem:[%s21935_s27 + $0x4a8] sm:$0xff] }
0x3868   : > { %18140 = vmatprep.subr.bf16.mxu0 %v18139_v39  ;;  %18172 = vmatprep.subr.bf16.mxu1 %v18171_v62  ;;  %v9147_v39 = vld [vmem:[%s21935_s27 + $0x358] sm:$0xff]  ;;  %v9132_v62 = vld [vmem:[%s21935_s27 + $0x2e0] sm:$0xff]  ;;  %v18153_v10 = vpack.c.bf16 %v9115_v32, %v9114_v31  ;;  %v18193_v31 = vpack.c.bf16 %v9151_v56, %v9150_v20  ;;  %v18195_v32 = vpack.c.bf16 %v9185_v21, %v9184_v29  ;;  %v9205_v29 = vld [vmem:[%s21935_s27 + $0x528] sm:$0xff] }
0x3869   : > { %10176 = vmatprep.mubr.f32.mxu0 %v9955_v49  ;;  %10246 = vmatprep.mubr.f32.mxu1 %v9957_v48  ;;  %v18185_v45 = vpack.c.bf16 %v9147_v39, %v9146_v51  ;;  %v9117_v49 = vld [vmem:[%s21935_s27 + $0x268] sm:$0xff]  ;;  %v18155_v15 = vpack.c.bf16 %v9133_v19, %v9132_v62  ;;  %v9168_v51 = vld [vmem:[%s21935_s27 + $0x400] sm:$0xff]  ;;  %v18203_v20 = vpack.c.bf16 %v9189_v2, %v9188_v0  ;;  %v9190_v21 = vld [vmem:[%s21935_s27 + $0x4b0] sm:$0xff] }
0x386a   : > { %v18157_v53 = vpack.c.bf16 %v9117_v49, %v9116_v46  ;;  %v9169_v39 = vld [vmem:[%s21935_s27 + $0x408] sm:$0xff]  ;;  %v9200_v19 = vld [vmem:[%s21935_s27 + $0x500] sm:$0xff]  ;;  %v9179_v0 = vld [vmem:[%s21935_s27 + $0x458] sm:$0xff] }
0x386b   : > { %v20841_v4 = vpop.f32.mrb[84].mxu0  ;;  %v20843_v18 = vpop.f32.mrb[94].mxu1  ;;  %18142 = vmatpush3.bf16.msra.mxu0 %v18141_v1  ;;  %18174 = vmatpush3.bf16.msra.mxu1 %v18173_v50  ;;  %v9210_v2 = vld [vmem:[%s21935_s27 + $0x550] sm:$0xff] }
0x386c   : > { %v20847_v42 = vpop.f32.mrb[85].mxu0  ;;  %v20849_v11 = vpop.f32.mrb[95].mxu1  ;;  %18144 = vmatprep.subr.bf16.mxu0 %v18143_v22  ;;  %18176 = vmatprep.subr.bf16.mxu1 %v18175_v58  ;;  %v9148_v22 = vld [vmem:[%s21935_s27 + $0x360] sm:$0xff]  ;;  %v9149_v58 = vld [vmem:[%s21935_s27 + $0x368] sm:$0xff] }
0x386d   : > { %v9735_v62 = vadd.f32 %v20847_v42, %v9338_v24  ;;  %v18229_v42 = vpack.c.bf16 %v9201_v23, %v9200_v19  ;;  %v9191_v24 = vld [vmem:[%s21935_s27 + $0x4b8] sm:$0xff]  ;;  %v9224_v19 = vld [vmem:[%s21935_s27 + $0x5c0] sm:$0xff]  ;;  %v9225_v23 = vld [vmem:[%s21935_s27 + $0x5c8] sm:$0xff] }
0x386f   : > { %18146 = vmatpush3.bf16.msra.mxu0 %v18145_v47  ;;  %18178 = vmatpush3.bf16.msra.mxu1 %v18177_v33  ;;  %v18189_v47 = vpack.c.bf16 %v9149_v58, %v9148_v22  ;;  %v9118_v33 = vld [vmem:[%s21935_s27 + $0x270] sm:$0xff] }
0x3870   : > { %18148 = vmatprep.subr.bf16.mxu0 %v18147_v7  ;;  %18180 = vmatprep.subr.bf16.mxu1 %v18179_v52  ;;  %v9326_v7 = vrot.slane %v20791_v59, %v19646_v8  ;;  %v18159_v52 = vpack.c.bf16 %v9135_v43, %v9134_v61  ;;  %v18161_v59 = vpack.c.bf16 %v9119_v37, %v9118_v33  ;;  %v9202_v22 = vld [vmem:[%s21935_s27 + $0x510] sm:$0xff]  ;;  %v9203_v43 = vld [vmem:[%s21935_s27 + $0x518] sm:$0xff] }
0x3871   : > { %v18233_v37 = vpack.c.bf16 %v9203_v43, %v9202_v22  ;;  %v9227_v22 = vld [vmem:[%s21935_s27 + $0x5d8] sm:$0xff]  ;;  %v9178_v43 = vld [vmem:[%s21935_s27 + $0x450] sm:$0xff] }
0x3873   : > { %v20870_v41 = vpop.f32.mrb[86].mxu0  ;;  %v9945_v44 = vpop.f32.mrb[96].mxu1  ;;  %18150 = vmatpush3.bf16.msra.mxu0 %v18149_v27  ;;  %18182 = vmatpush3.bf16.msra.mxu1 %v18181_v30  ;;  %v9217_v27 = vld [vmem:[%s21935_s27 + $0x588] sm:$0xff]  ;;  %v9346_v30 = vrot.slane %v20858_v26, %v19573_v17 }
0x3874   : > { %v20874_v48 = vadd.f32 %v9945_v44, %v9358_v54  ;;  %v20876_v1 = vpop.f32.mrb[87].mxu0  ;;  %v20878_v50 = vpop.f32.mrb[97].mxu1  ;;  %18152 = vmatprep.subr.bf16.mxu0 %v18151_v57  ;;  %18184 = vmatprep.subr.bf16.mxu1 %v18183_v38  ;;  %v9591_v54 = vadd.f32 %v20821_v28, %v9318_v60  ;;  %v9662_v57 = vadd.f32 %v20823_v36, %v9326_v7  ;;  %v9219_v28 = vld [vmem:[%s21935_s27 + $0x598] sm:$0xff]  ;;  %v9172_v7 = vld [vmem:[%s21935_s27 + $0x420] sm:$0xff] }
0x3875   : > { %v18227_v38 = vpack.c.bf16 %v9217_v27, %v9216_v25  ;;  %v9806_v44 = vadd.f32 %v20849_v11, %v9346_v30  ;;  %v18197_v36 = vpack.c.bf16 %v9169_v39, %v9168_v51  ;;  %v9959_v11 = vmax.f32 %v9735_v62, 0.0  ;;  %v9222_v25 = vld [vmem:[%s21935_s27 + $0x5b0] sm:$0xff]  ;;  %v9223_v27 = vld [vmem:[%s21935_s27 + $0x5b8] sm:$0xff]  ;;  %v9192_v39 = vld [vmem:[%s21935_s27 + $0x4c0] sm:$0xff] }
0x3876   : > { %v9954_v46 = vmax.f32 %v9591_v54, 0.0  ;;  %v9956_v49 = vmax.f32 %v9662_v57, 0.0  ;;  %v9175_v54 = vld [vmem:[%s21935_s27 + $0x438] sm:$0xff]  ;;  %v9206_v57 = vld [vmem:[%s21935_s27 + $0x530] sm:$0xff]  ;;  %v9193_v62 = vld [vmem:[%s21935_s27 + $0x4c8] sm:$0xff] }
0x3877   : > { %18154 = vmatpush3.bf16.msra.mxu0 %v18153_v10  ;;  %18186 = vmatpush3.bf16.msra.mxu1 %v18185_v45  ;;  %v9187_v10 = vld [vmem:[%s21935_s27 + $0x498] sm:$0xff]  ;;  %v9218_v45 = vld [vmem:[%s21935_s27 + $0x590] sm:$0xff]  ;;  %v9961_v60 = vmax.f32 %v9806_v44, 0.0 }
0x3878   : > { %18156 = vmatprep.subr.bf16.mxu0 %v18155_v15  ;;  %18188 = vmatprep.subr.bf16.mxu1 %v18187_v55  ;;  %v9170_v15 = vld [vmem:[%s21935_s27 + $0x410] sm:$0xff]  ;;  %v9171_v55 = vld [vmem:[%s21935_s27 + $0x418] sm:$0xff]  ;;  %v18199_v58 = vpack.c.bf16 %v9187_v10, %v9186_v9  ;;  %v18231_v61 = vpack.c.bf16 %v9219_v28, %v9218_v45  ;;  %v18211_v10 = vpack.c.bf16 %v9193_v62, %v9192_v39  ;;  %v9176_v45 = vld [vmem:[%s21935_s27 + $0x440] sm:$0xff] }
0x3879   : > { %v18201_v33 = vpack.c.bf16 %v9171_v55, %v9170_v15  ;;  %v9207_v51 = vld [vmem:[%s21935_s27 + $0x538] sm:$0xff]  ;;  %v9177_v28 = vld [vmem:[%s21935_s27 + $0x448] sm:$0xff]  ;;  %v9226_v55 = vld [vmem:[%s21935_s27 + $0x5d0] sm:$0xff] }
0x387a   : > { %v18241_v44 = vpack.c.bf16 %v9207_v51, %v9206_v57  ;;  %v9195_v15 = vld [vmem:[%s21935_s27 + $0x4d8] sm:$0xff]  ;;  %v9182_v51 = vld [vmem:[%s21935_s27 + $0x470] sm:$0xff] }
0x387b   : > { %18158 = vmatpush3.bf16.msra.mxu0 %v18157_v53  ;;  %18190 = vmatpush3.bf16.msra.mxu1 %v18189_v47  ;;  %v9220_v53 = vld [vmem:[%s21935_s27 + $0x5a0] sm:$0xff]  ;;  %v9221_v47 = vld [vmem:[%s21935_s27 + $0x5a8] sm:$0xff]  ;;  %v9183_v39 = vld [vmem:[%s21935_s27 + $0x478] sm:$0xff] }
0x387c   : > { %18160 = vmatprep.subr.bf16.mxu0 %v18159_v52  ;;  %18192 = vmatprep.subr.bf16.mxu1 %v18191_v63  ;;  %v9173_v52 = vld [vmem:[%s21935_s27 + $0x428] sm:$0xff]  ;;  %v9204_v63 = vld [vmem:[%s21935_s27 + $0x520] sm:$0xff]  ;;  %v18235_v56 = vpack.c.bf16 %v9221_v47, %v9220_v53  ;;  %v9211_v53 = vld [vmem:[%s21935_s27 + $0x558] sm:$0xff] }
0x387d   : > { %v18205_v30 = vpack.c.bf16 %v9173_v52, %v9172_v7  ;;  %v9196_v47 = vld [vmem:[%s21935_s27 + $0x4e0] sm:$0xff]  ;;  %v18217_v7 = vpack.c.bf16 %v9179_v0, %v9178_v43  ;;  %v18249_v52 = vpack.c.bf16 %v9211_v53, %v9210_v2  ;;  %v9214_v62 = vld [vmem:[%s21935_s27 + $0x570] sm:$0xff]  ;;  %v9265_v0 = vld [vmem:[%s21935_s27 + $0x708] sm:$0xff] }
0x387e   : > { %v9264_v43 = vld [vmem:[%s21935_s27 + $0x700] sm:$0xff] }
0x387f   : > { %18162 = vmatpush3.bf16.msra.mxu0 %v18161_v59  ;;  %18194 = vmatpush3.bf16.msra.mxu1 %v18193_v31  ;;  %v18237_v59 = vpack.c.bf16 %v9205_v29, %v9204_v63  ;;  %v18207_v31 = vpack.c.bf16 %v9191_v24, %v9190_v21  ;;  %v9181_v29 = vld [vmem:[%s21935_s27 + $0x468] sm:$0xff]  ;;  %v9212_v21 = vld [vmem:[%s21935_s27 + $0x560] sm:$0xff] }
0x3880   : > { %18196 = vmatprep.subr.bf16.mxu0 %v18195_v32  ;;  %18228 = vmatprep.subr.bf16.mxu1 %v18227_v38  ;;  %v9174_v32 = vld [vmem:[%s21935_s27 + $0x430] sm:$0xff]  ;;  %v18239_v38 = vpack.c.bf16 %v9223_v27, %v9222_v25  ;;  %v9213_v25 = vld [vmem:[%s21935_s27 + $0x568] sm:$0xff] }
0x3881   : > { %v18209_v9 = vpack.c.bf16 %v9175_v54, %v9174_v32  ;;  %v9198_v27 = vld [vmem:[%s21935_s27 + $0x4f0] sm:$0xff]  ;;  %v9334_v54 = vrot.slane %v20858_v26, %v19561_v12  ;;  %v18253_v57 = vpack.c.bf16 %v9213_v25, %v9212_v21  ;;  %v9253_v21 = vld [vmem:[%s21935_s27 + $0x6a8] sm:$0xff] }
0x3882   : > { %10177 = vmatmul.mubr.f32.vlgmr.msra.gmra.mrb[90].mxu0 %v9954_v46  ;;  %10247 = vmatmul.mubr.f32.vlgmr.msra.gmra.mrb[100].mxu1 %v9956_v49  ;;  %v18243_v46 = vpack.c.bf16 %v9225_v23, %v9224_v19  ;;  %v9209_v49 = vld [vmem:[%s21935_s27 + $0x548] sm:$0xff]  ;;  %v9342_v19 = vrot.slane %v20858_v26, %v19564_v13 }
0x3883   : > { %18198 = vmatpush3.bf16.msra.mxu0 %v18197_v36  ;;  %10316 = vmatprep.mubr.f32.mxu0 %v9959_v11  ;;  %v9208_v36 = vld [vmem:[%s21935_s27 + $0x540] sm:$0xff]  ;;  %v18213_v11 = vpack.c.bf16 %v9177_v28, %v9176_v45  ;;  %v9354_v45 = vrot.slane %v20858_v26, %v19589_v34 }
0x3884   : > { %18230 = vmatpush3.bf16.msra.mxu1 %v18229_v42  ;;  %10386 = vmatprep.mubr.f32.mxu1 %v9961_v60  ;;  %v9194_v42 = vld [vmem:[%s21935_s27 + $0x4d0] sm:$0xff]  ;;  %v18247_v60 = vpack.c.bf16 %v9227_v22, %v9226_v55  ;;  %v9280_v28 = vld [vmem:[%s21935_s27 + $0x780] sm:$0xff] }
0x3885   : > { %18200 = vmatprep.subr.bf16.mxu0 %v18199_v58  ;;  %18232 = vmatprep.subr.bf16.mxu1 %v18231_v61  ;;  %v18245_v58 = vpack.c.bf16 %v9209_v49, %v9208_v36  ;;  %v18215_v61 = vpack.c.bf16 %v9195_v15, %v9194_v42  ;;  %v9281_v36 = vld [vmem:[%s21935_s27 + $0x788] sm:$0xff]  ;;  %v18225_v49 = vpack.c.bf16 %v9183_v39, %v9182_v51  ;;  %v9232_v22 = vld [vmem:[%s21935_s27 + $0x600] sm:$0xff] }
0x3886   : > { %v9733_v42 = vadd.f32 %v20841_v4, %v9334_v54  ;;  %v9877_v2 = vadd.f32 %v20876_v1, %v9354_v45  ;;  %v9250_v4 = vld [vmem:[%s21935_s27 + $0x690] sm:$0xff]  ;;  %v9268_v51 = vld [vmem:[%s21935_s27 + $0x720] sm:$0xff] }
0x3887   : > { %18202 = vmatpush3.bf16.msra.mxu0 %v18201_v33  ;;  %v9197_v33 = vld [vmem:[%s21935_s27 + $0x4e8] sm:$0xff]  ;;  %v9266_v1 = vld [vmem:[%s21935_s27 + $0x710] sm:$0xff] }
0x3888   : > { %18234 = vmatpush3.bf16.msra.mxu1 %v18233_v37  ;;  %18204 = vmatprep.subr.bf16.mxu0 %v18203_v20  ;;  %v9228_v37 = vld [vmem:[%s21935_s27 + $0x5e0] sm:$0xff]  ;;  %v9229_v20 = vld [vmem:[%s21935_s27 + $0x5e8] sm:$0xff]  ;;  %v18219_v63 = vpack.c.bf16 %v9197_v33, %v9196_v47  ;;  %v9282_v33 = vld [vmem:[%s21935_s27 + $0x790] sm:$0xff] }
0x3889   : > { %18236 = vmatprep.subr.bf16.mxu1 %v18235_v56  ;;  %v9180_v56 = vld [vmem:[%s21935_s27 + $0x460] sm:$0xff]  ;;  %v18251_v24 = vpack.c.bf16 %v9229_v20, %v9228_v37  ;;  %v9958_v37 = vmax.f32 %v9733_v42, 0.0  ;;  %v18293_v20 = vpack.c.bf16 %v9265_v0, %v9264_v43 }
0x388a   : > { %v18221_v32 = vpack.c.bf16 %v9181_v29, %v9180_v56  ;;  %v9267_v29 = vld [vmem:[%s21935_s27 + $0x718] sm:$0xff] }
0x388b   : > { %18206 = vmatpush3.bf16.msra.mxu0 %v18205_v30  ;;  %v9199_v30 = vld [vmem:[%s21935_s27 + $0x4f8] sm:$0xff] }
0x388c   : > { %18238 = vmatpush3.bf16.msra.mxu1 %v18237_v59  ;;  %18208 = vmatprep.subr.bf16.mxu0 %v18207_v31  ;;  %v9230_v59 = vld [vmem:[%s21935_s27 + $0x5f0] sm:$0xff]  ;;  %v9231_v31 = vld [vmem:[%s21935_s27 + $0x5f8] sm:$0xff] }
0x388d   : > { %18240 = vmatprep.subr.bf16.mxu1 %v18239_v38  ;;  %v18223_v38 = vpack.c.bf16 %v9199_v30, %v9198_v27  ;;  %v18255_v23 = vpack.c.bf16 %v9231_v31, %v9230_v59  ;;  %v9284_v27 = vld [vmem:[%s21935_s27 + $0x7a0] sm:$0xff]  ;;  %v9285_v30 = vld [vmem:[%s21935_s27 + $0x7a8] sm:$0xff] }
0x388e   : > { %v18299_v39 = vpack.c.bf16 %v9285_v30, %v9284_v27  ;;  %v9292_v27 = vld [vmem:[%s21935_s27 + $0x7e0] sm:$0xff]  ;;  %v9293_v30 = vld [vmem:[%s21935_s27 + $0x7e8] sm:$0xff] }
0x388f   : > { %18210 = vmatpush3.bf16.msra.mxu0 %v18209_v9  ;;  %v9215_v9 = vld [vmem:[%s21935_s27 + $0x578] sm:$0xff] }
0x3890   : > { %18242 = vmatpush3.bf16.msra.mxu1 %v18241_v44  ;;  %18212 = vmatprep.subr.bf16.mxu0 %v18211_v10  ;;  %v9248_v44 = vld [vmem:[%s21935_s27 + $0x680] sm:$0xff]  ;;  %v9249_v10 = vld [vmem:[%s21935_s27 + $0x688] sm:$0xff]  ;;  %v18257_v15 = vpack.c.bf16 %v9215_v9, %v9214_v62  ;;  %v9286_v9 = vld [vmem:[%s21935_s27 + $0x7b0] sm:$0xff] }
0x3891   : > { %18244 = vmatprep.subr.bf16.mxu1 %v18243_v46  ;;  %v9362_v46 = vrot.slane %v20858_v26, %v19592_v35  ;;  %v18259_v55 = vpack.c.bf16 %v9249_v10, %v9248_v44  ;;  %v9269_v62 = vld [vmem:[%s21935_s27 + $0x728] sm:$0xff]  ;;  %v9287_v44 = vld [vmem:[%s21935_s27 + $0x7b8] sm:$0xff] }
0x3892   : > { %v18301_v45 = vpack.c.bf16 %v9269_v62, %v9268_v51  ;;  %v18303_v42 = vpack.c.bf16 %v9287_v44, %v9286_v9  ;;  %v18315_v51 = vpack.c.bf16 %v9293_v30, %v9292_v27  ;;  %v9262_v62 = vld [vmem:[%s21935_s27 + $0x6f0] sm:$0xff]  ;;  %v9295_v9 = vld [vmem:[%s21935_s27 + $0x7f8] sm:$0xff] }
0x3893   : > { %18214 = vmatpush3.bf16.msra.mxu0 %v18213_v11  ;;  %v9233_v11 = vld [vmem:[%s21935_s27 + $0x608] sm:$0xff]  ;;  %v9948_v53 = vadd.f32 %v20878_v50, %v9362_v46  ;;  %v9252_v50 = vld [vmem:[%s21935_s27 + $0x6a0] sm:$0xff]  ;;  %v9239_v46 = vld [vmem:[%s21935_s27 + $0x638] sm:$0xff] }
0x3894   : > { %18246 = vmatpush3.bf16.msra.mxu1 %v18245_v58  ;;  %18216 = vmatprep.subr.bf16.mxu0 %v18215_v61  ;;  %v9804_v58 = vadd.f32 %v20843_v18, %v9342_v19  ;;  %v18291_v61 = vpack.c.bf16 %v9281_v36, %v9280_v28  ;;  %v18261_v47 = vpack.c.bf16 %v9233_v11, %v9232_v22  ;;  %v9283_v18 = vld [vmem:[%s21935_s27 + $0x798] sm:$0xff]  ;;  %v9254_v19 = vld [vmem:[%s21935_s27 + $0x6b0] sm:$0xff]  ;;  %v9257_v22 = vld [vmem:[%s21935_s27 + $0x6c8] sm:$0xff] }
0x3895   : > { %18248 = vmatprep.subr.bf16.mxu1 %v18247_v60  ;;  %v9251_v60 = vld [vmem:[%s21935_s27 + $0x698] sm:$0xff]  ;;  %v18295_v25 = vpack.c.bf16 %v9283_v18, %v9282_v33  ;;  %v9965_v59 = vmax.f32 %v9948_v53, 0.0  ;;  %v18267_v54 = vpack.c.bf16 %v9253_v21, %v9252_v50  ;;  %v9238_v36 = vld [vmem:[%s21935_s27 + $0x630] sm:$0xff]  ;;  %v9288_v11 = vld [vmem:[%s21935_s27 + $0x7c0] sm:$0xff] }
0x3896   : > { %v18263_v56 = vpack.c.bf16 %v9251_v60, %v9250_v4  ;;  %v9241_v4 = vld [vmem:[%s21935_s27 + $0x648] sm:$0xff]  ;;  %v9272_v60 = vld [vmem:[%s21935_s27 + $0x740] sm:$0xff]  ;;  %v9258_v33 = vld [vmem:[%s21935_s27 + $0x6d0] sm:$0xff] }
0x3897   : > { %18218 = vmatpush3.bf16.msra.mxu0 %v18217_v7  ;;  %v9234_v7 = vld [vmem:[%s21935_s27 + $0x610] sm:$0xff]  ;;  %v9259_v18 = vld [vmem:[%s21935_s27 + $0x6d8] sm:$0xff] }
0x3898   : > { %18250 = vmatpush3.bf16.msra.mxu1 %v18249_v52  ;;  %18220 = vmatprep.subr.bf16.mxu0 %v18219_v63  ;;  %v9235_v52 = vld [vmem:[%s21935_s27 + $0x618] sm:$0xff]  ;;  %v9960_v63 = vmax.f32 %v9804_v58, 0.0  ;;  %v9289_v58 = vld [vmem:[%s21935_s27 + $0x7c8] sm:$0xff] }
0x3899   : > { %18252 = vmatprep.subr.bf16.mxu1 %v18251_v24  ;;  %v9963_v24 = vmax.f32 %v9877_v2, 0.0  ;;  %v18265_v31 = vpack.c.bf16 %v9235_v52, %v9234_v7  ;;  %v9240_v2 = vld [vmem:[%s21935_s27 + $0x640] sm:$0xff]  ;;  %v18307_v53 = vpack.c.bf16 %v9289_v58, %v9288_v11  ;;  %v9275_v21 = vld [vmem:[%s21935_s27 + $0x758] sm:$0xff]  ;;  %v9964_v58 = vmax.f32 %v20874_v48, 0.0 }
0x389a   : > { %v18277_v7 = vpack.c.bf16 %v9241_v4, %v9240_v2 }
0x389b   : > { %18222 = vmatpush3.bf16.msra.mxu0 %v18221_v32  ;;  %v18297_v32 = vpack.c.bf16 %v9267_v29, %v9266_v1  ;;  %v18279_v1 = vpack.c.bf16 %v9259_v18, %v9258_v33  ;;  %v9274_v29 = vld [vmem:[%s21935_s27 + $0x750] sm:$0xff] }
0x389c   : > { %18254 = vmatpush3.bf16.msra.mxu1 %v18253_v57  ;;  %18224 = vmatprep.subr.bf16.mxu0 %v18223_v38  ;;  %v9236_v57 = vld [vmem:[%s21935_s27 + $0x620] sm:$0xff]  ;;  %v9237_v38 = vld [vmem:[%s21935_s27 + $0x628] sm:$0xff] }
0x389d   : > { %18256 = vmatprep.subr.bf16.mxu1 %v18255_v23  ;;  %v9255_v23 = vld [vmem:[%s21935_s27 + $0x6b8] sm:$0xff]  ;;  %v18269_v10 = vpack.c.bf16 %v9237_v38, %v9236_v57  ;;  %v9245_v57 = vld [vmem:[%s21935_s27 + $0x668] sm:$0xff]  ;;  %v9276_v38 = vld [vmem:[%s21935_s27 + $0x760] sm:$0xff] }
0x389e   : > { %v18271_v28 = vpack.c.bf16 %v9255_v23, %v9254_v19  ;;  %v9263_v19 = vld [vmem:[%s21935_s27 + $0x6f8] sm:$0xff]  ;;  %v9294_v23 = vld [vmem:[%s21935_s27 + $0x7f0] sm:$0xff] }
0x389f   : > { %18226 = vmatpush3.bf16.msra.mxu0 %v18225_v49  ;;  %v9270_v49 = vld [vmem:[%s21935_s27 + $0x730] sm:$0xff] }
0x38a0   : > { %18258 = vmatpush3.bf16.msra.mxu1 %v18257_v15  ;;  %18260 = vmatprep.subr.bf16.mxu0 %v18259_v55  ;;  %v9271_v15 = vld [vmem:[%s21935_s27 + $0x738] sm:$0xff]  ;;  %v9256_v55 = vld [vmem:[%s21935_s27 + $0x6c0] sm:$0xff] }
0x38a1   : > { %18292 = vmatprep.subr.bf16.mxu1 %v18291_v61  ;;  %v18273_v61 = vpack.c.bf16 %v9239_v46, %v9238_v36  ;;  %v18305_v43 = vpack.c.bf16 %v9271_v15, %v9270_v49  ;;  %v18275_v0 = vpack.c.bf16 %v9257_v22, %v9256_v55  ;;  %v9246_v36 = vld [vmem:[%s21935_s27 + $0x670] sm:$0xff]  ;;  %v9247_v46 = vld [vmem:[%s21935_s27 + $0x678] sm:$0xff]  ;;  %v18319_v49 = vpack.c.bf16 %v9295_v9, %v9294_v23 }
0x38a2   : > { %10317 = vmatmul.mubr.f32.vlgmr.msra.gmra.mrb[92].mxu0 %v9958_v37  ;;  %v9290_v37 = vld [vmem:[%s21935_s27 + $0x7d0] sm:$0xff]  ;;  %v9279_v15 = vld [vmem:[%s21935_s27 + $0x778] sm:$0xff]  ;;  %v18289_v55 = vpack.c.bf16 %v9247_v46, %v9246_v36 }
0x38a3   : > { %10387 = vmatmul.mubr.f32.vlgmr.msra.gmra.mrb[102].mxu1 %v9960_v63  ;;  %18262 = vmatpush3.bf16.msra.mxu0 %v18261_v47  ;;  %v9273_v47 = vld [vmem:[%s21935_s27 + $0x748] sm:$0xff]  ;;  %v9242_v63 = vld [vmem:[%s21935_s27 + $0x650] sm:$0xff] }
0x38a4   : > { %10456 = vmatprep.mubr.f32.mxu0 %v9963_v24  ;;  %18294 = vmatpush3.bf16.msra.mxu1 %v18293_v20  ;;  %v9291_v20 = vld [vmem:[%s21935_s27 + $0x7d8] sm:$0xff]  ;;  %v18309_v52 = vpack.c.bf16 %v9273_v47, %v9272_v60  ;;  %v9260_v24 = vld [vmem:[%s21935_s27 + $0x6e0] sm:$0xff]  ;;  %v15150_v46 = vld [vmem:[%s21910_s8 + $0x30] sm:$0xff] }
0x38a5   : > { %10526 = vmatprep.mubr.f32.mxu1 %v9965_v59  ;;  %18264 = vmatprep.subr.bf16.mxu0 %v18263_v56  ;;  %v9243_v56 = vld [vmem:[%s21935_s27 + $0x658] sm:$0xff]  ;;  %v18311_v50 = vpack.c.bf16 %v9291_v20, %v9290_v37 }
0x38a6   : > { %18296 = vmatprep.subr.bf16.mxu1 %v18295_v25  ;;  %v9261_v25 = vld [vmem:[%s21935_s27 + $0x6e8] sm:$0xff]  ;;  %v18281_v59 = vpack.c.bf16 %v9243_v56, %v9242_v63 }
0x38a7   : > { %18266 = vmatpush3.bf16.msra.mxu0 %v18265_v31  ;;  %v18313_v31 = vpack.c.bf16 %v9275_v21, %v9274_v29 }
0x38a8   : > { %18298 = vmatpush3.bf16.msra.mxu1 %v18297_v32  ;;  %18268 = vmatprep.subr.bf16.mxu0 %v18267_v54  ;;  %v18283_v32 = vpack.c.bf16 %v9261_v25, %v9260_v24  ;;  %v9244_v54 = vld [vmem:[%s21935_s27 + $0x660] sm:$0xff] }
0x38a9   : > { %18300 = vmatprep.subr.bf16.mxu1 %v18299_v39  ;;  %v9277_v39 = vld [vmem:[%s21935_s27 + $0x768] sm:$0xff]  ;;  %v18285_v44 = vpack.c.bf16 %v9245_v57, %v9244_v54 }
0x38ab   : > { %18270 = vmatpush3.bf16.msra.mxu0 %v18269_v10  ;;  %v9350_v10 = vrot.slane %v20858_v26, %v19662_v5 }
0x38ac   : > { %18302 = vmatpush3.bf16.msra.mxu1 %v18301_v45  ;;  %18272 = vmatprep.subr.bf16.mxu0 %v18271_v28  ;;  %v18317_v45 = vpack.c.bf16 %v9277_v39, %v9276_v38  ;;  %v18287_v28 = vpack.c.bf16 %v9263_v19, %v9262_v62 }
0x38ad   : > { %18304 = vmatprep.subr.bf16.mxu1 %v18303_v42  ;;  %v9278_v42 = vld [vmem:[%s21935_s27 + $0x770] sm:$0xff]  ;;  %v9875_v22 = vadd.f32 %v20870_v41, %v9350_v10 }
0x38ae   : > { %v18321_v11 = vpack.c.bf16 %v9279_v15, %v9278_v42 }
0x38af   : > { %18274 = vmatpush3.bf16.msra.mxu0 %v18273_v61  ;;  %v9962_v26 = vmax.f32 %v9875_v22, 0.0 }
0x38b0   : > { %18306 = vmatpush3.bf16.msra.mxu1 %v18305_v43  ;;  %18276 = vmatprep.subr.bf16.mxu0 %v18275_v0  ;;  %v15145_v43 = vld [vmem:[%s21938_s22] ss:$0 sm:$0xff]  ;;  %s21941_s22 = sld [smem:[#allocation42_spill]] }
0x38b1   : > { %18308 = vmatprep.subr.bf16.mxu1 %v18307_v53 }
0x38b3   : > { %18278 = vmatpush3.bf16.msra.mxu0 %v18277_v7 }
0x38b4   : > { %18310 = vmatpush3.bf16.msra.mxu1 %v18309_v52  ;;  %18280 = vmatprep.subr.bf16.mxu0 %v18279_v1 }
0x38b5   : > { %18312 = vmatprep.subr.bf16.mxu1 %v18311_v50 }
0x38b6   : > { %s21942_s27 = smov %s21941_s22 }
0x38b7   : > { %18282 = vmatpush3.bf16.msra.mxu0 %v18281_v59 }
0x38b8   : > { %18314 = vmatpush3.bf16.msra.mxu1 %v18313_v31  ;;  %18284 = vmatprep.subr.bf16.mxu0 %v18283_v32 }
0x38b9   : > { %18316 = vmatprep.subr.bf16.mxu1 %v18315_v51 }
0x38bb   : > { %18286 = vmatpush3.bf16.msra.mxu0 %v18285_v44 }
0x38bc   : > { %18318 = vmatpush3.bf16.msra.mxu1 %v18317_v45  ;;  %18288 = vmatprep.subr.bf16.mxu0 %v18287_v28  ;;  %v15148_v45 = vld [vmem:[%s21910_s8 + $0x20] sm:$0xff]  ;;  %v15149_v28 = vld [vmem:[%s21910_s8 + $0x28] sm:$0xff] }
0x38bd   : > { %18320 = vmatprep.subr.bf16.mxu1 %v18319_v49  ;;  %v18324_v36 = vpack.c.bf16 %v15149_v28, %v15148_v45  ;;  %v15151_v49 = vld [vmem:[%s21910_s8 + $0x38] sm:$0xff] }
0x38be   : > { %v18327_v42 = vpack.c.bf16 %v15151_v49, %v15150_v46 }
0x38bf   : > { %18290 = vmatpush3.bf16.msra.mxu0 %v18289_v55 }
0x38c0   : > { %18322 = vmatpush3.bf16.msra.mxu1 %v18321_v11  ;;  %18323 = vmatprep.subr.bf16.mxu0 %v18990_v3  ;;  %v15146_v11 = vld [vmem:[%s21939_s15] ss:$0 sm:$0xff] }
0x38c1   : > { %17180 = vmatprep.subr.mxu1 %v18992_v6 }
0x38c2   : > { %10457 = vmatmul.mubr.f32.vlgmr.msra.gmra.mrb[94].mxu0 %v9962_v26 }
0x38c3   : > { %10527 = vmatmul.mubr.f32.vlgmr.msra.gmra.mrb[104].mxu1 %v9964_v58  ;;  %17177 = vmatprep.mubr.msk.f32.mxu0 %vm18991_vm0, %v18992_v6  ;;  %v15147_v58 = vld [vmem:[%s21941_s22] ss:$0 sm:$0xff] }
0x38c4   : > { %17182 = vmatprep.mubr.msk.f32.mxu1 %vm18991_vm0, %v18992_v6  ;;  %18325 = vmatpush3.bf16.msra.mxu0 %v18324_v36 }
0x38c5   : > { %18326 = vmatprep.subr.bf16.mxu0 %v18990_v3 }
0x38c8   : > { %18328 = vmatpush3.bf16.msra.mxu0 %v18327_v42  ;;  %v15156_v42 = vld [vmem:[%s21915_s6 + $0x28] sm:$0xff] }
0x38c9   : > { %17190 = vmatprep.subr.mxu0 %v18992_v6 }
0x3935   : > { %v16278_v41 = vpop.f32.mrb[88].mxu0  ;;  %v16313_v61 = vpop.f32.mrb[98].mxu1 }
0x3936   : > { %v16279_v0 = vpop.f32.mrb[89].mxu0  ;;  %v16314_v2 = vpop.f32.mrb[99].mxu1 }
0x3937   : > { %v16280_v4 = vadd.f32 %v16279_v0, %v16278_v41  ;;  %v16315_v60 = vadd.f32 %v16314_v2, %v16313_v61 }
0x3939   : > { %v10039_v53 = vadd.f32 %v16280_v4, %v15145_v43  ;;  %v15153_v43 = vld [vmem:[%s21913_s14 + $0x1] ss:$0 sm:$0xff] }
0x393b   : > { %v10109_v47 = vadd.f32 %v16315_v60, %v10039_v53 }
0x3955   : > { %v16348_v48 = vpop.f32.mrb[90].mxu0  ;;  %v16383_v33 = vpop.f32.mrb[100].mxu1 }
0x3956   : > { %v16349_v18 = vpop.f32.mrb[91].mxu0  ;;  %v16384_v37 = vpop.f32.mrb[101].mxu1 }
0x3957   : > { %v16350_v20 = vadd.f32 %v16349_v18, %v16348_v48  ;;  %v16385_v7 = vadd.f32 %v16384_v37, %v16383_v33  ;;  %v21082_v33 = vld [vmem:[%s20417_s24] ss:$0 sm:$0xff]  ;;  %s1290_s24 = sand.u32 1, %s18938_s16  }
0x3958   : > { %s14685_s15 = sshll.u32 %s1290_s24, 3 }
0x3959   : > { %v10179_v52 = vadd.f32 %v16350_v20, %v10109_v47 }
0x395b   : > { %v10249_v1 = vadd.f32 %v16385_v7, %v10179_v52 }
0x3975   : > { %v16418_v63 = vpop.f32.mrb[92].mxu0 }
0x3976   : > { %v16453_v56 = vpop.f32.mrb[102].mxu1  ;;  %v16419_v29 = vpop.f32.mrb[93].mxu0 }
0x3977   : > { %v16420_v50 = vadd.f32 %v16419_v29, %v16418_v63  ;;  %v16454_v21 = vpop.f32.mrb[103].mxu1 }
0x3978   : > { %v16455_v24 = vadd.f32 %v16454_v21, %v16453_v56 }
0x3979   : > { %v10319_v25 = vadd.f32 %v16420_v50, %v10249_v1 }
0x397b   : > { %v10389_v27 = vadd.f32 %v16455_v24, %v10319_v25 }
0x3995   : > { %v16488_v30 = vpop.f32.mrb[94].mxu0 }
0x3996   : > { %v16523_v59 = vpop.f32.mrb[104].mxu1  ;;  %v16489_v31 = vpop.f32.mrb[95].mxu0 }
0x3997   : > { %v16490_v32 = vadd.f32 %v16489_v31, %v16488_v30  ;;  %v16524_v54 = vpop.f32.mrb[105].mxu1 }
0x3998   : > { %v16525_v57 = vadd.f32 %v16524_v54, %v16523_v59 }
0x3999   : > { %v10459_v38 = vadd.f32 %v16490_v32, %v10389_v27  ;;  %v15155_v27 = vld [vmem:[%s21915_s6 + $0x20] sm:$0xff] }
0x399b   : > { %v10529_v51 = vadd.f32 %v16525_v57, %v10459_v38 }
0x399d   : > { %v10532_v39 = vadd.f32 %v10529_v51, %v20664_v40 }
0x399f   : > { %v10535_v62 = vsel %vm1320_vm1, %v10532_v39, 0.0 }
0x39a0   : > { %10536 = vadd.xlane.f32.xlu1 %v10535_v62 }
0x3a2d   : > { %v10537_v19 = vpop.xlane.xlu1 %10536 }
0x3a2e   : > { %v10538_v23 = vmul.f32 0.03125, %v10537_v19 }
0x3a30   : > { %v10539_v9 = vsub.f32 %v10532_v39, %v10538_v23 }
0x3a32   : > { %v10540_v44 = vmul.f32 %v10539_v9, %v10539_v9 }
0x3a34   : > { %v10541_v10 = vsel %vm1320_vm1, %v10540_v44, 0.0 }
0x3a35   : > { %10542 = vadd.xlane.f32.xlu1 %v10541_v10 }
0x3ac2   : > { %v10543_v40 = vpop.xlane.xlu1 %10542 }
0x3ac3   : > { %v10544_v15 = vmul.f32 0.03125, %v10543_v40 }
0x3ac5   : > { %v10545_v55 = vadd.f32 1e-05, %v10544_v15 }
0x3ac7   : > { %18840 = vrsqrt.f32 %v10545_v55 }
0x3ad1   : > { %v18841_v22 = vpop.eup %18840 }
0x3ad2   : > { %v10547_v26 = vmul.f32 %v18841_v22, %v10539_v9 }
0x3ad4   : > { %v10554_v41 = vmul.f32 %v15146_v11, %v10547_v26 }
0x3ad6   : > { %v21064_v61 = vadd.f32 %v15147_v58, %v10554_v41 }
0x3ad8   : > { %17178 = vmatmul.mubr.msk.f32.vlgmr.msra.gmra.mrb[96].mxu0 %vm1320_vm1, %v21064_v61 }
0x3ad9   : > { %17192 = vmatprep.mubr.msk.f32.mxu0 %vm18991_vm0, %v18992_v6  ;;  %17191 = vmatpush3.msra.mxu0 %v15155_v27 }
0x3ada   : > { %17200 = vmatprep.subr.mxu0 %v18992_v6 }
0x3bab   : > { %v10644_v0 = vpop.f32.mrb[96].mxu0 }
0x3bac   : > { %v21071_v2 = vadd.f32 %v15153_v43, %v10644_v0  ;;  %v17179_v4 = vpop.f32.mrb[97].mxu0 }
0x3bae   : > { %10656 = vrot.lane.b32.xlu1 %v21071_v2, %s21899_s5 }
0x3c20   : > { %v10657_v60 = vpop.permute.xlu1 %10656 }
0x3c21   : > { %17181 = vmatpush3.xpose.msk.msra.mxu1 %vm1402_vm2, %v10657_v60 }
0x3c22   : > { %17185 = vmatprep.subr.mxu1 %v18992_v6 }
0x3c24   : > { %17183 = vmatmul.mubr.msk.f32.vlgmr.msra.gmra.mrb[106].mxu1 %vm1402_vm2, %v21071_v2 }
0x3c25   : > { %17187 = vmatprep.mubr.msk.f32.mxu1 %vm18991_vm0, %v18992_v6 }
0x3cf7   : > { %v10728_v53 = vpop.f32.mrb[106].mxu1 }
0x3cf8   : > { %v10732_v47 = vmul.f32 0.35355338, %v10728_v53  ;;  %v17184_v48 = vpop.f32.mrb[107].mxu1 }
0x3cfa   : > { %v10733_v18 = vadd.f32 %v21082_v33, %v10732_v47  ;;  %v15164_v47 = vld [vmem:[%s21916_s11 + $0x1] ss:$0 sm:$0xff] }
0x3cfc   : > { %v10734_v37 = vsel %vm1402_vm2, %v10733_v18, -inf }
0x3cfd   : > { %10735 = vmax.xlane.f32.xlu0 %v10734_v37 }
0x3d13   : > { %10745 = vrot.lane.b32.xlu0 %v21071_v2, %s21900_s23  ;;  %s21951_s23 = sld [smem:[#allocation51_spill]] }
0x3d17   : > { %10901 = vrot.lane.b32.xlu0 %v21071_v2, %s21902_s13 }
0x3d19   : > { %s15562_s22 = sshll.u32 %s21951_s23, 7 }
0x3d8a   : > { %v10736_v20 = vpop.xlane.xlu0 %10735 }
0x3d8b   : > { %v10737_v7 = vsub.f32 %v10733_v18, %v10736_v20 }
0x3d8d   : > { %v10738_v52 = vmul.f32 1.442695, %v10737_v7 }
0x3d8e   : > { %v10746_v1 = vpop.permute.xlu0 %10745 }
0x3d8f   : > { %18842 = vpow2.f32 %v10738_v52  ;;  %17186 = vmatpush3.msra.mxu1 %v10746_v1 }
0x3d90   : > { %17195 = vmatprep.subr.mxu1 %v18992_v6 }
0x3d92   : > { %v10902_v25 = vpop.permute.xlu0 %10901 }
0x3d99   : > { %v18843_v63 = vpop.eup %18842 }
0x3d9a   : > { %v10740_v56 = vsel %vm1402_vm2, %v18843_v63, 0.0 }
0x3d9b   : > { %10741 = vadd.xlane.f32.xlu1 %v10740_v56 }
0x3dac   : > { %10903 = vrot.lane.b32.xlu1 %v21071_v2, %s21901_s1 }
0x3e28   : > { %v10742_v29 = vpop.xlane.xlu1 %10741 }
0x3e29   : > { %18844 = vrcp.f32 %v10742_v29  ;;  %v15157_v29 = vld [vmem:[%s21915_s6 + $0x30] sm:$0xff] }
0x3e2c   : > { %v10904_v24 = vpop.permute.xlu1 %10903 }
0x3e33   : > { %v18845_v50 = vpop.eup %18844 }
0x3e34   : > { %v10744_v21 = vmul.f32 %v18845_v50, %v18843_v63 }
0x3e36   : > { %17188 = vmatmul.mubr.msk.f32.vlgmr.msra.gmra.mrb[108].mxu1 %vm1402_vm2, %v10744_v21 }
0x3e37   : > { %17196 = vmatpush3.xpose.msk.msra.mxu1 %vm1402_vm2, %v10904_v24  ;;  %17197 = vmatprep.mubr.msk.f32.mxu1 %vm18991_vm0, %v18992_v6 }
0x3e38   : > { %17205 = vmatprep.subr.mxu1 %v18992_v6 }
0x3e3a   : > { %17198 = vmatmul.mubr.msk.f32.vlgmr.msra.gmra.mrb[110].mxu1 %vm1402_vm2, %v10902_v25 }
0x3e3b   : > { %17207 = vmatprep.mubr.msk.f32.mxu1 %vm18991_vm0, %v18992_v6  ;;  %17206 = vmatpush3.msra.mxu1 %v15156_v42 }
0x3e3c   : > { %17215 = vmatprep.subr.mxu1 %v18992_v6 }
0x3f09   : > { %v10817_v30 = vpop.f32.mrb[108].mxu1 }
0x3f0a   : > { %v17189_v59 = vpop.f32.mrb[109].mxu1  ;;  %17193 = vmatmul.mubr.msk.f32.vlgmr.msra.gmra.mrb[98].mxu0 %vm1402_vm2, %v10817_v30 }
0x3f0b   : > { %17202 = vmatprep.mubr.msk.f32.mxu0 %vm18991_vm0, %v18992_v6 }
0x3f0d   : > { %v10975_v31 = vpop.f32.mrb[110].mxu1 }
0x3f0e   : > { %v10979_v32 = vmul.f32 0.35355338, %v10975_v31  ;;  %v17199_v54 = vpop.f32.mrb[111].mxu1 }
0x3f10   : > { %v10980_v57 = vadd.f32 %v21082_v33, %v10979_v32 }
0x3f12   : > { %v10981_v38 = vsel %vm1402_vm2, %v10980_v57, -inf }
0x3f13   : > { %10982 = vmax.xlane.f32.xlu0 %v10981_v38 }
0x3f29   : > { %10992 = vrot.lane.b32.xlu0 %v21071_v2, %s21903_s28 }
0x3f2d   : > { %11142 = vrot.lane.b32.xlu0 %v21071_v2, %s21905_s25 }
0x3fa0   : > { %v10983_v51 = vpop.xlane.xlu0 %10982 }
0x3fa1   : > { %v10984_v39 = vsub.f32 %v10980_v57, %v10983_v51 }
0x3fa3   : > { %v10985_v62 = vmul.f32 1.442695, %v10984_v39 }
0x3fa4   : > { %v10993_v19 = vpop.permute.xlu0 %10992 }
0x3fa5   : > { %18846 = vpow2.f32 %v10985_v62  ;;  %17201 = vmatpush3.msra.mxu0 %v10993_v19 }
0x3fa6   : > { %17210 = vmatprep.subr.mxu0 %v18992_v6 }
0x3fa8   : > { %v11143_v49 = vpop.permute.xlu0 %11142 }
0x3faf   : > { %v18847_v23 = vpop.eup %18846 }
0x3fb0   : > { %v10987_v9 = vsel %vm1402_vm2, %v18847_v23, 0.0 }
0x3fb1   : > { %10988 = vadd.xlane.f32.xlu1 %v10987_v9 }
0x3fc2   : > { %11144 = vrot.lane.b32.xlu1 %v21071_v2, %s21904_s21 }
0x3fdd   : > { %v10890_v44 = vpop.f32.mrb[98].mxu0 }
0x3fde   : > { %v17194_v10 = vpop.f32.mrb[99].mxu0  ;;  %v10900_v48 = vadd.f32 %v15164_v47, %v10890_v44  ;;  %v15188_v44 = vld [vmem:[%s21917_s19 + $0x20] sm:$0xff] }
0x3fdf   : > { %v15189_v10 = vld [vmem:[%s21917_s19 + $0x28] sm:$0xff]  ;;  %v15181_v47 = vld [vmem:[%s21920_s29 + $0x20] sm:$0xff] }
0x403e   : > { %v10989_v45 = vpop.xlane.xlu1 %10988 }
0x403f   : > { %18848 = vrcp.f32 %v10989_v45  ;;  %v18336_v45 = vpack.c.bf16 %v15189_v10, %v15188_v44 }
0x4042   : > { %v11145_v46 = vpop.permute.xlu1 %11144 }
0x4049   : > { %v18849_v28 = vpop.eup %18848 }
0x404a   : > { %v10991_v36 = vmul.f32 %v18849_v28, %v18847_v23  ;;  %v15190_v28 = vld [vmem:[%s21917_s19 + $0x30] sm:$0xff] }
0x404c   : > { %17203 = vmatmul.mubr.msk.f32.vlgmr.msra.gmra.mrb[100].mxu0 %vm1402_vm2, %v10991_v36  ;;  %v15191_v36 = vld [vmem:[%s21917_s19 + $0x38] sm:$0xff] }
0x404d   : > { %17211 = vmatpush3.xpose.msk.msra.mxu0 %vm1402_vm2, %v11145_v46  ;;  %17212 = vmatprep.mubr.msk.f32.mxu0 %vm18991_vm0, %v18992_v6  ;;  %v18339_v42 = vpack.c.bf16 %v15191_v36, %v15190_v28 }
0x404e   : > { %17220 = vmatprep.subr.mxu0 %v18992_v6 }
0x4050   : > { %17213 = vmatmul.mubr.msk.f32.vlgmr.msra.gmra.mrb[102].mxu0 %vm1402_vm2, %v11143_v49 }
0x4051   : > { %17222 = vmatprep.mubr.msk.f32.mxu0 %vm18991_vm0, %v18992_v6  ;;  %17221 = vmatpush3.msra.mxu0 %v15157_v29  ;;  %v15179_v29 = vld [vmem:[%s21921_s30 + $0x1] ss:$0 sm:$0xff] }
0x4052   : > { %17230 = vmatprep.subr.mxu0 %v18992_v6 }
0x411f   : > { %v11064_v40 = vpop.f32.mrb[100].mxu0 }
0x4120   : > { %v17204_v15 = vpop.f32.mrb[101].mxu0  ;;  %17208 = vmatmul.mubr.msk.f32.vlgmr.msra.gmra.mrb[112].mxu1 %vm1402_vm2, %v11064_v40 }
0x4121   : > { %17217 = vmatprep.mubr.msk.f32.mxu1 %vm18991_vm0, %v18992_v6 }
0x4123   : > { %v11216_v55 = vpop.f32.mrb[102].mxu0 }
0x4124   : > { %v11220_v22 = vmul.f32 0.35355338, %v11216_v55  ;;  %v17214_v11 = vpop.f32.mrb[103].mxu0 }
0x4126   : > { %v11221_v26 = vadd.f32 %v21082_v33, %v11220_v22 }
0x4128   : > { %v11222_v58 = vsel %vm1402_vm2, %v11221_v26, -inf }
0x4129   : > { %11223 = vmax.xlane.f32.xlu0 %v11222_v58 }
0x413f   : > { %11233 = vrot.lane.b32.xlu0 %v21071_v2, %s21906_s2  ;;  %s21950_s2 = sld [smem:[#allocation46_spill]] }
0x4143   : > { %11383 = vrot.lane.b32.xlu0 %v21071_v2, %s21908_s26 }
0x41b6   : > { %v11224_v41 = vpop.xlane.xlu0 %11223 }
0x41b7   : > { %v11225_v43 = vsub.f32 %v11221_v26, %v11224_v41  ;;  %v15193_v26 = vld [vmem:[%s21923_s12 + $0x1] ss:$0 sm:$0xff] }
0x41b9   : > { %v11226_v0 = vmul.f32 1.442695, %v11225_v43 }
0x41ba   : > { %v11234_v4 = vpop.permute.xlu0 %11233 }
0x41bb   : > { %18850 = vpow2.f32 %v11226_v0  ;;  %17216 = vmatpush3.msra.mxu1 %v11234_v4 }
0x41bc   : > { %17225 = vmatprep.subr.mxu1 %v18992_v6 }
0x41be   : > { %v11384_v56 = vpop.permute.xlu0 %11383 }
0x41c5   : > { %v18851_v60 = vpop.eup %18850 }
0x41c6   : > { %v11228_v53 = vsel %vm1402_vm2, %v18851_v60, 0.0 }
0x41c7   : > { %11229 = vadd.xlane.f32.xlu1 %v11228_v53 }
0x41d8   : > { %11385 = vrot.lane.b32.xlu1 %v21071_v2, %s21907_s18 }
0x41f3   : > { %v11137_v18 = vpop.f32.mrb[112].mxu1 }
0x41f4   : > { %v11141_v37 = vadd.f32 %v11137_v18, %v10900_v48  ;;  %v17209_v20 = vpop.f32.mrb[113].mxu1  ;;  %v15182_v48 = vld [vmem:[%s21920_s29 + $0x28] sm:$0xff] }
0x41f5   : > { %v18330_v18 = vpack.c.bf16 %v15182_v48, %v15181_v47  ;;  %v15184_v20 = vld [vmem:[%s21920_s29 + $0x38] sm:$0xff]  ;;  %v15196_v47 = vld [vmem:[%s21926_s7 + $0x28] sm:$0xff] }
0x4254   : > { %v11230_v7 = vpop.xlane.xlu1 %11229 }
0x4255   : > { %18852 = vrcp.f32 %v11230_v7 }
0x4258   : > { %v11386_v63 = vpop.permute.xlu1 %11385 }
0x425f   : > { %v18853_v52 = vpop.eup %18852 }
0x4260   : > { %v11232_v1 = vmul.f32 %v18853_v52, %v18851_v60 }
0x4262   : > { %17218 = vmatmul.mubr.msk.f32.vlgmr.msra.gmra.mrb[114].mxu1 %vm1402_vm2, %v11232_v1 }
0x4263   : > { %17226 = vmatpush3.xpose.msk.msra.mxu1 %vm1402_vm2, %v11386_v63  ;;  %17227 = vmatprep.mubr.msk.f32.mxu1 %vm18991_vm0, %v18992_v6 }
0x4264   : > { %17235 = vmatprep.subr.mxu1 %v18992_v6 }
0x4266   : > { %17228 = vmatmul.mubr.msk.f32.vlgmr.msra.gmra.mrb[116].mxu1 %vm1402_vm2, %v11384_v56 }
0x4267   : > { %17237 = vmatprep.mubr.msk.f32.mxu1 %vm18991_vm0, %v18992_v6 }
0x4335   : > { %v11305_v50 = vpop.f32.mrb[114].mxu1 }
0x4336   : > { %v17219_v21 = vpop.f32.mrb[115].mxu1  ;;  %17223 = vmatmul.mubr.msk.f32.vlgmr.msra.gmra.mrb[104].mxu0 %vm1402_vm2, %v11305_v50 }
0x4337   : > { %17232 = vmatprep.mubr.msk.f32.mxu0 %vm18991_vm0, %v18992_v6  ;;  %v15180_v21 = vld [vmem:[%s21922_s10 + $0x1] ss:$0 sm:$0xff] }
0x4339   : > { %v11457_v24 = vpop.f32.mrb[116].mxu1 }
0x433a   : > { %v11461_v25 = vmul.f32 0.35355338, %v11457_v24  ;;  %v17229_v27 = vpop.f32.mrb[117].mxu1 }
0x433b   : > { %v15186_v27 = vld [vmem:[%s21924_s20 + $0x1] ss:$0 sm:$0xff] }
0x433c   : > { %v11462_v30 = vadd.f32 %v21082_v33, %v11461_v25  ;;  %v15158_v33 = vld [vmem:[%s21915_s6 + $0x38] sm:$0xff] }
0x433d   : > { %17236 = vmatpush3.msra.mxu1 %v15158_v33 }
0x433e   : > { %v11463_v59 = vsel %vm1402_vm2, %v11462_v30, -inf  ;;  %18335 = vmatprep.subr.bf16.mxu1 %v18990_v3 }
0x433f   : > { %11464 = vmax.xlane.f32.xlu0 %v11463_v59 }
0x4355   : > { %11474 = vrot.lane.b32.xlu0 %v21071_v2, %s21909_s3  ;;  %s21947_s3 = sld [smem:[#allocation45_spill]] }
0x43cc   : > { %v11465_v31 = vpop.xlane.xlu0 %11464 }
0x43cd   : > { %v11466_v32 = vsub.f32 %v11462_v30, %v11465_v31 }
0x43cf   : > { %v11467_v54 = vmul.f32 1.442695, %v11466_v32 }
0x43d0   : > { %v11475_v57 = vpop.permute.xlu0 %11474 }
0x43d1   : > { %18854 = vpow2.f32 %v11467_v54  ;;  %17231 = vmatpush3.msra.mxu0 %v11475_v57 }
0x43d2   : > { %18329 = vmatprep.subr.bf16.mxu0 %v18990_v3 }
0x43db   : > { %v18855_v38 = vpop.eup %18854 }
0x43dc   : > { %v11469_v51 = vsel %vm1402_vm2, %v18855_v38, 0.0 }
0x43dd   : > { %11470 = vadd.xlane.f32.xlu1 %v11469_v51 }
0x4409   : > { %v11378_v2 = vpop.f32.mrb[104].mxu0 }
0x440a   : > { %v11382_v39 = vadd.f32 %v11378_v2, %v11141_v37  ;;  %v17224_v62 = vpop.f32.mrb[105].mxu0  ;;  %v15183_v37 = vld [vmem:[%s21920_s29 + $0x30] sm:$0xff] }
0x440b   : > { %v18333_v7 = vpack.c.bf16 %v15184_v20, %v15183_v37 }
0x446a   : > { %v11471_v19 = vpop.xlane.xlu1 %11470 }
0x446b   : > { %18856 = vrcp.f32 %v11471_v19 }
0x4475   : > { %v18857_v23 = vpop.eup %18856 }
0x4476   : > { %v11473_v9 = vmul.f32 %v18857_v23, %v18855_v38 }
0x4478   : > { %17233 = vmatmul.mubr.msk.f32.vlgmr.msra.gmra.mrb[106].mxu0 %vm1402_vm2, %v11473_v9 }
0x4479   : > { %17248 = vmatprep.mubr.msk.f32.mxu0 %vm18991_vm0, %v18992_v6  ;;  %18331 = vmatpush3.bf16.msra.mxu0 %v18330_v18 }
0x447a   : > { %18332 = vmatprep.subr.bf16.mxu0 %v18990_v3 }
0x447d   : > { %18334 = vmatpush3.bf16.msra.mxu0 %v18333_v7 }
0x447e   : > { %17262 = vmatprep.subr.mxu0 %v18992_v6 }
0x454b   : > { %v11546_v46 = vpop.f32.mrb[106].mxu0 }
0x454c   : > { %v17234_v49 = vpop.f32.mrb[107].mxu0  ;;  %17238 = vmatmul.mubr.msk.f32.vlgmr.msra.gmra.mrb[118].mxu1 %vm1402_vm2, %v11546_v46 }
0x454d   : > { %18337 = vmatpush3.bf16.msra.mxu1 %v18336_v45  ;;  %17259 = vmatprep.mubr.msk.f32.mxu1 %vm18991_vm0, %v18992_v6  ;;  %v15195_v45 = vld [vmem:[%s21926_s7 + $0x20] sm:$0xff] }
0x454e   : > { %18338 = vmatprep.subr.bf16.mxu1 %v18990_v3 }
0x4551   : > { %18340 = vmatpush3.bf16.msra.mxu1 %v18339_v42 }
0x4552   : > { %17267 = vmatprep.subr.mxu1 %v18992_v6 }
0x4554   : > { %17260 = vmatmul.mubr.msk.f32.vlgmr.msra.gmra.mrb[120].mxu1 %vm1320_vm1, %v20520_v14 }
0x4555   : > { %17269 = vmatprep.mubr.msk.f32.mxu1 %vm18991_vm0, %v18992_v6 }
0x461f   : > { %v11619_v40 = vpop.f32.mrb[118].mxu1 }
0x4620   : > { %v11623_v15 = vadd.f32 %v11619_v40, %v11382_v39  ;;  %v17239_v55 = vpop.f32.mrb[119].mxu1 }
0x4622   : > { %v11624_v22 = vadd.f32 %v11623_v15, %v21064_v61 }
0x4624   : > { %v11629_v11 = vsel %vm1320_vm1, %v11624_v22, 0.0 }
0x4625   : > { %11630 = vadd.xlane.f32.xlu1 %v11629_v11 }
0x4627   : > { %v11821_v58 = vpop.f32.mrb[120].mxu1 }
0x4628   : > { %v21181_v41 = vadd.f32 %v15193_v26, %v11821_v58  ;;  %v17261_v43 = vpop.f32.mrb[121].mxu1 }
0x462a   : > { %11920 = vrot.lane.b32.xlu0 %v21181_v41, %s21899_s5  ;;  %s21943_s5 = sld [smem:[#allocation36_spill]] }
0x469c   : > { %v11921_v14 = vpop.permute.xlu0 %11920 }
0x469d   : > { %17268 = vmatpush3.msra.mxu1 %v11921_v14 }
0x469e   : > { %17277 = vmatprep.subr.mxu1 %v18992_v6 }
0x46b2   : > { %v11631_v61 = vpop.xlane.xlu1 %11630 }
0x46b3   : > { %v11632_v0 = vmul.f32 0.03125, %v11631_v61 }
0x46b5   : > { %v11633_v4 = vsub.f32 %v11624_v22, %v11632_v0 }
0x46b7   : > { %v11634_v60 = vmul.f32 %v11633_v4, %v11633_v4 }
0x46b9   : > { %v11635_v53 = vsel %vm1320_vm1, %v11634_v60, 0.0 }
0x46ba   : > { %11636 = vadd.xlane.f32.xlu1 %v11635_v53 }
0x4747   : > { %v11637_v52 = vpop.xlane.xlu1 %11636 }
0x4748   : > { %v11638_v1 = vmul.f32 0.03125, %v11637_v52 }
0x474a   : > { %v11639_v63 = vadd.f32 1e-05, %v11638_v1 }
0x474c   : > { %18858 = vrsqrt.f32 %v11639_v63 }
0x4756   : > { %v18859_v56 = vpop.eup %18858 }
0x4757   : > { %v11641_v50 = vmul.f32 %v18859_v56, %v11633_v4 }
0x4759   : > { %v11648_v24 = vmul.f32 %v15179_v29, %v11641_v50 }
0x475b   : > { %v21195_v25 = vadd.f32 %v15180_v21, %v11648_v24  ;;  %v15204_v24 = vld [vmem:[%s21928_s17 + $0x1] ss:$0 sm:$0xff] }
0x475d   : > { %17249 = vmatmul.mubr.msk.f32.vlgmr.msra.gmra.mrb[108].mxu0 %vm1320_vm1, %v21195_v25 }
0x475e   : > { %17263 = vmatpush3.xpose.msk.msra.mxu0 %vm1402_vm2, %v21181_v41  ;;  %17264 = vmatprep.mubr.msk.f32.mxu0 %vm18991_vm0, %v18992_v6 }
0x475f   : > { %17272 = vmatprep.subr.mxu0 %v18992_v6 }
0x4830   : > { %v11738_v30 = vpop.f32.mrb[108].mxu0 }
0x4831   : > { %v21205_v59 = vadd.f32 %v15186_v27, %v11738_v30  ;;  %v17250_v31 = vpop.f32.mrb[109].mxu0 }
0x4833   : > { %12076 = vrot.lane.b32.xlu0 %v21205_v59, %s21902_s13  ;;  %17265 = vmatmul.mubr.msk.f32.vlgmr.msra.gmra.mrb[110].mxu0 %vm1402_vm2, %v21205_v59 }
0x4834   : > { %17274 = vmatprep.mubr.msk.f32.mxu0 %vm18991_vm0, %v18992_v6  ;;  %17273 = vmatpush3.msra.mxu0 %v15195_v45 }
0x4835   : > { %17282 = vmatprep.subr.mxu0 %v18992_v6 }
0x48a5   : > { %v12077_v10 = vpop.permute.xlu0 %12076 }
0x4906   : > { %v11904_v32 = vpop.f32.mrb[110].mxu0 }
0x4907   : > { %v11908_v54 = vmul.f32 0.35355338, %v11904_v32  ;;  %v17266_v57 = vpop.f32.mrb[111].mxu0 }
0x4909   : > { %v11909_v38 = vsel %vm1402_vm2, %v11908_v54, -inf }
0x490a   : > { %11910 = vmax.xlane.f32.xlu1 %v11909_v38 }
0x4997   : > { %v11911_v51 = vpop.xlane.xlu1 %11910 }
0x4998   : > { %v11912_v33 = vsub.f32 %v11908_v54, %v11911_v51 }
0x499a   : > { %v11913_v2 = vmul.f32 1.442695, %v11912_v33  ;;  %v15197_v33 = vld [vmem:[%s21926_s7 + $0x30] sm:$0xff] }
0x499c   : > { %18860 = vpow2.f32 %v11913_v2 }
0x49a6   : > { %v18861_v39 = vpop.eup %18860 }
0x49a7   : > { %v11915_v62 = vsel %vm1402_vm2, %v18861_v39, 0.0 }
0x49a8   : > { %11916 = vadd.xlane.f32.xlu1 %v11915_v62 }
0x49b9   : > { %12078 = vrot.lane.b32.xlu1 %v21181_v41, %s21902_s13  ;;  %s21944_s13 = sld [smem:[#allocation39_spill]] }
0x4a35   : > { %v11917_v19 = vpop.xlane.xlu1 %11916 }
0x4a36   : > { %18862 = vrcp.f32 %v11917_v19 }
0x4a39   : > { %v12079_v44 = vpop.permute.xlu1 %12078 }
0x4a40   : > { %v18863_v23 = vpop.eup %18862 }
0x4a41   : > { %v11919_v9 = vmul.f32 %v18863_v23, %v18861_v39 }
0x4a43   : > { %17270 = vmatmul.mubr.msk.f32.vlgmr.msra.gmra.mrb[122].mxu1 %vm1402_vm2, %v11919_v9 }
0x4a44   : > { %17278 = vmatpush3.xpose.msk.msra.mxu1 %vm1402_vm2, %v12079_v44  ;;  %17279 = vmatprep.mubr.msk.f32.mxu1 %vm18991_vm0, %v18992_v6 }
0x4a45   : > { %17287 = vmatprep.subr.mxu1 %v18992_v6 }
0x4a47   : > { %17280 = vmatmul.mubr.msk.f32.vlgmr.msra.gmra.mrb[124].mxu1 %vm1402_vm2, %v12077_v10 }
0x4a48   : > { %17289 = vmatprep.mubr.msk.f32.mxu1 %vm18991_vm0, %v18992_v6  ;;  %17288 = vmatpush3.msra.mxu1 %v15196_v47 }
0x4a49   : > { %17297 = vmatprep.subr.mxu1 %v18992_v6 }
0x4b16   : > { %v11992_v28 = vpop.f32.mrb[122].mxu1 }
0x4b17   : > { %v17271_v36 = vpop.f32.mrb[123].mxu1  ;;  %17275 = vmatmul.mubr.msk.f32.vlgmr.msra.gmra.mrb[112].mxu0 %vm1402_vm2, %v11992_v28 }
0x4b18   : > { %17284 = vmatprep.mubr.msk.f32.mxu0 %vm18991_vm0, %v18992_v6 }
0x4b1a   : > { %v12150_v46 = vpop.f32.mrb[124].mxu1 }
0x4b1b   : > { %v12154_v49 = vmul.f32 0.35355338, %v12150_v46  ;;  %v17281_v42 = vpop.f32.mrb[125].mxu1 }
0x4b1d   : > { %v12155_v40 = vsel %vm1402_vm2, %v12154_v49, -inf }
0x4b1e   : > { %12156 = vmax.xlane.f32.xlu0 %v12155_v40 }
0x4b34   : > { %12166 = vrot.lane.b32.xlu0 %v21181_v41, %s21901_s1  ;;  %s21952_s1 = sld [smem:[#allocation47_spill]] }
0x4b38   : > { %12316 = vrot.lane.b32.xlu0 %v21205_v59, %s21905_s25 }
0x4bab   : > { %v12157_v15 = vpop.xlane.xlu0 %12156 }
0x4bac   : > { %v12158_v55 = vsub.f32 %v12154_v49, %v12157_v15  ;;  %v15198_v49 = vld [vmem:[%s21926_s7 + $0x38] sm:$0xff] }
0x4bae   : > { %v12159_v22 = vmul.f32 1.442695, %v12158_v55 }
0x4baf   : > { %v12167_v11 = vpop.permute.xlu0 %12166 }
0x4bb0   : > { %18864 = vpow2.f32 %v12159_v22  ;;  %17283 = vmatpush3.msra.mxu0 %v12167_v11 }
0x4bb1   : > { %17292 = vmatprep.subr.mxu0 %v18992_v6 }
0x4bb3   : > { %v12317_v53 = vpop.permute.xlu0 %12316 }
0x4bba   : > { %v18865_v26 = vpop.eup %18864 }
0x4bbb   : > { %v12161_v58 = vsel %vm1402_vm2, %v18865_v26, 0.0 }
0x4bbc   : > { %12162 = vadd.xlane.f32.xlu1 %v12161_v58 }
0x4bcd   : > { %12318 = vrot.lane.b32.xlu1 %v21181_v41, %s21905_s25  ;;  %s21946_s25 = sld [smem:[#allocation40_spill]] }
0x4bea   : > { %v12065_v43 = vpop.f32.mrb[112].mxu0 }
0x4beb   : > { %v17276_v14 = vpop.f32.mrb[113].mxu0  ;;  %v12075_v27 = vadd.f32 %v15204_v24, %v12065_v43  ;;  %v15254_v24 = vld [vmem:[%s21930_s0 + $0x308] sm:$0xff] }
0x4c49   : > { %v12163_v61 = vpop.xlane.xlu1 %12162 }
0x4c4a   : > { %18866 = vrcp.f32 %v12163_v61 }
0x4c4d   : > { %v12319_v60 = vpop.permute.xlu1 %12318 }
0x4c54   : > { %v18867_v0 = vpop.eup %18866 }
0x4c55   : > { %v12165_v4 = vmul.f32 %v18867_v0, %v18865_v26 }
0x4c57   : > { %17285 = vmatmul.mubr.msk.f32.vlgmr.msra.gmra.mrb[114].mxu0 %vm1402_vm2, %v12165_v4 }
0x4c58   : > { %17293 = vmatpush3.xpose.msk.msra.mxu0 %vm1402_vm2, %v12319_v60  ;;  %17294 = vmatprep.mubr.msk.f32.mxu0 %vm18991_vm0, %v18992_v6 }
0x4c59   : > { %17302 = vmatprep.subr.mxu0 %v18992_v6 }
0x4c5b   : > { %17295 = vmatmul.mubr.msk.f32.vlgmr.msra.gmra.mrb[116].mxu0 %vm1402_vm2, %v12317_v53 }
0x4c5c   : > { %17304 = vmatprep.mubr.msk.f32.mxu0 %vm18991_vm0, %v18992_v6  ;;  %17303 = vmatpush3.msra.mxu0 %v15197_v33  ;;  %v15271_v33 = vld [vmem:[%s21930_s0 + $0x390] sm:$0xff] }
0x4c5d   : > { %17312 = vmatprep.subr.mxu0 %v18992_v6 }
0x4d2a   : > { %v12238_v48 = vpop.f32.mrb[114].mxu0 }
0x4d2b   : > { %v17286_v18 = vpop.f32.mrb[115].mxu0  ;;  %17290 = vmatmul.mubr.msk.f32.vlgmr.msra.gmra.mrb[126].mxu1 %vm1402_vm2, %v12238_v48 }
0x4d2c   : > { %17299 = vmatprep.mubr.msk.f32.mxu1 %vm18991_vm0, %v18992_v6  ;;  %v15222_v18 = vld [vmem:[%s21930_s0 + $0x208] sm:$0xff] }
0x4d2e   : > { %v12390_v37 = vpop.f32.mrb[116].mxu0 }
0x4d2f   : > { %v12394_v20 = vmul.f32 0.35355338, %v12390_v37  ;;  %v17296_v7 = vpop.f32.mrb[117].mxu0  ;;  %v15238_v37 = vld [vmem:[%s21930_s0 + $0x288] sm:$0xff] }
0x4d30   : > { %v18341_v7 = vpack.c.bf16 %v15238_v37, %v15222_v18  ;;  %v15275_v18 = vld [vmem:[%s21930_s0 + $0x3b0] sm:$0xff]  ;;  %v15230_v37 = vld [vmem:[%s21930_s0 + $0x248] sm:$0xff] }
0x4d31   : > { %v12395_v52 = vsel %vm1402_vm2, %v12394_v20, -inf }
0x4d32   : > { %12396 = vmax.xlane.f32.xlu0 %v12395_v52  ;;  %v15221_v52 = vld [vmem:[%s21930_s0 + $0x200] sm:$0xff] }
0x4d48   : > { %12406 = vrot.lane.b32.xlu0 %v21181_v41, %s21904_s21  ;;  %s21945_s21 = sld [smem:[#allocation38_spill]] }
0x4d4c   : > { %12556 = vrot.lane.b32.xlu0 %v21205_v59, %s21908_s26 }
0x4dbf   : > { %v12397_v1 = vpop.xlane.xlu0 %12396 }
0x4dc0   : > { %v12398_v63 = vsub.f32 %v12394_v20, %v12397_v1  ;;  %v15224_v20 = vld [vmem:[%s21930_s0 + $0x218] sm:$0xff]  ;;  %v15237_v1 = vld [vmem:[%s21930_s0 + $0x280] sm:$0xff] }
0x4dc2   : > { %v12399_v56 = vmul.f32 1.442695, %v12398_v63 }
0x4dc3   : > { %v12407_v29 = vpop.permute.xlu0 %12406 }
0x4dc4   : > { %18868 = vpow2.f32 %v12399_v56  ;;  %17298 = vmatpush3.msra.mxu1 %v12407_v29  ;;  %v18343_v56 = vpack.c.bf16 %v15237_v1, %v15221_v52  ;;  %v15223_v29 = vld [vmem:[%s21930_s0 + $0x210] sm:$0xff] }
0x4dc5   : > { %17307 = vmatprep.subr.mxu1 %v18992_v6 }
0x4dc7   : > { %v12557_v51 = vpop.permute.xlu0 %12556 }
0x4dce   : > { %v18869_v50 = vpop.eup %18868 }
0x4dcf   : > { %v12401_v21 = vsel %vm1402_vm2, %v18869_v50, 0.0 }
0x4dd0   : > { %12402 = vadd.xlane.f32.xlu1 %v12401_v21 }
0x4de1   : > { %12558 = vrot.lane.b32.xlu1 %v21181_v41, %s21908_s26  ;;  %s21949_s26 = sld [smem:[#allocation44_spill]] }
0x4dfe   : > { %v12311_v30 = vpop.f32.mrb[126].mxu1 }
0x4dff   : > { %v12315_v59 = vadd.f32 %v12311_v30, %v12075_v27  ;;  %v17291_v31 = vpop.f32.mrb[127].mxu1  ;;  %v15270_v27 = vld [vmem:[%s21930_s0 + $0x388] sm:$0xff]  ;;  %v15256_v30 = vld [vmem:[%s21930_s0 + $0x318] sm:$0xff] }
0x4e00   : > { %v15272_v31 = vld [vmem:[%s21930_s0 + $0x398] sm:$0xff] }
0x4e5d   : > { %v12403_v32 = vpop.xlane.xlu1 %12402 }
0x4e5e   : > { %18870 = vrcp.f32 %v12403_v32  ;;  %v15253_v32 = vld [vmem:[%s21930_s0 + $0x300] sm:$0xff] }
0x4e61   : > { %v12559_v38 = vpop.permute.xlu1 %12558 }
0x4e68   : > { %v18871_v54 = vpop.eup %18870 }
0x4e69   : > { %v12405_v57 = vmul.f32 %v18871_v54, %v18869_v50  ;;  %v15239_v50 = vld [vmem:[%s21930_s0 + $0x290] sm:$0xff]  ;;  %v15269_v54 = vld [vmem:[%s21930_s0 + $0x380] sm:$0xff] }
0x4e6a   : > { %v18351_v21 = vpack.c.bf16 %v15239_v50, %v15223_v29 }
0x4e6b   : > { %17300 = vmatmul.mubr.msk.f32.vlgmr.msra.gmra.mrb[128].mxu1 %vm1402_vm2, %v12405_v57  ;;  %v18353_v57 = vpack.c.bf16 %v15272_v31, %v15256_v30  ;;  %v15278_v30 = vld [vmem:[%s21930_s0 + $0x3c8] sm:$0xff]  ;;  %v15280_v31 = vld [vmem:[%s21930_s0 + $0x3d8] sm:$0xff] }
0x4e6c   : > { %17308 = vmatpush3.xpose.msk.msra.mxu1 %vm1402_vm2, %v12559_v38  ;;  %17309 = vmatprep.mubr.msk.f32.mxu1 %vm18991_vm0, %v18992_v6  ;;  %v18347_v38 = vpack.c.bf16 %v15269_v54, %v15253_v32 }
0x4e6d   : > { %17317 = vmatprep.subr.mxu1 %v18992_v6 }
0x4e6f   : > { %17310 = vmatmul.mubr.msk.f32.vlgmr.msra.gmra.mrb[130].mxu1 %vm1402_vm2, %v12557_v51  ;;  %v15255_v51 = vld [vmem:[%s21930_s0 + $0x310] sm:$0xff] }
0x4e70   : > { %17319 = vmatprep.mubr.msk.f32.mxu1 %vm18991_vm0, %v18992_v6  ;;  %17318 = vmatpush3.msra.mxu1 %v15198_v49  ;;  %v15220_v49 = vld [vmem:[%s21943_s5 + $0x1] ss:$0 sm:$0xff]  ;;  %s1292_s5 = scalar_lea.vmem [#allocation2], %s14685_s15 }
0x4f3e   : > { %v12478_v2 = vpop.f32.mrb[128].mxu1 }
0x4f3f   : > { %v17301_v39 = vpop.f32.mrb[129].mxu1  ;;  %17305 = vmatmul.mubr.msk.f32.vlgmr.msra.gmra.mrb[118].mxu0 %vm1402_vm2, %v12478_v2  ;;  %v18355_v2 = vpack.c.bf16 %v15271_v33, %v15255_v51 }
0x4f40   : > { %17314 = vmatprep.mubr.msk.f32.mxu0 %vm18991_vm0, %v18992_v6  ;;  %v15226_v39 = vld [vmem:[%s21930_s0 + $0x228] sm:$0xff] }
0x4f42   : > { %v12630_v62 = vpop.f32.mrb[130].mxu1 }
0x4f43   : > { %v12634_v19 = vmul.f32 0.35355338, %v12630_v62  ;;  %v17311_v23 = vpop.f32.mrb[131].mxu1  ;;  %v15242_v62 = vld [vmem:[%s21930_s0 + $0x2a8] sm:$0xff] }
0x4f44   : > { %v18357_v23 = vpack.c.bf16 %v15242_v62, %v15226_v39  ;;  %v15279_v39 = vld [vmem:[%s21930_s0 + $0x3d0] sm:$0xff]  ;;  %v15234_v62 = vld [vmem:[%s21930_s0 + $0x268] sm:$0xff] }
0x4f45   : > { %v12635_v9 = vsel %vm1402_vm2, %v12634_v19, -inf }
0x4f46   : > { %12636 = vmax.xlane.f32.xlu0 %v12635_v9  ;;  %v15244_v9 = vld [vmem:[%s21930_s0 + $0x2b8] sm:$0xff] }
0x4f5c   : > { %12646 = vrot.lane.b32.xlu0 %v21181_v41, %s21907_s18  ;;  %s21948_s18 = sld [smem:[#allocation43_spill]] }
0x4fd3   : > { %v12637_v44 = vpop.xlane.xlu0 %12636 }
0x4fd4   : > { %v12638_v10 = vsub.f32 %v12634_v19, %v12637_v44  ;;  %v15228_v19 = vld [vmem:[%s21930_s0 + $0x238] sm:$0xff] }
0x4fd5   : > { %v18365_v44 = vpack.c.bf16 %v15244_v9, %v15228_v19  ;;  %v15250_v19 = vld [vmem:[%s21930_s0 + $0x2e8] sm:$0xff]  ;;  %v15252_v9 = vld [vmem:[%s21930_s0 + $0x2f8] sm:$0xff] }
0x4fd6   : > { %v12639_v45 = vmul.f32 1.442695, %v12638_v10 }
0x4fd7   : > { %v12647_v28 = vpop.permute.xlu0 %12646 }
0x4fd8   : > { %18872 = vpow2.f32 %v12639_v45  ;;  %17313 = vmatpush3.msra.mxu0 %v12647_v28 }
0x4fd9   : > { %18342 = vmatprep.subr.bf16.mxu0 %v18341_v7  ;;  %v15232_v7 = vld [vmem:[%s21930_s0 + $0x258] sm:$0xff] }
0x4fe2   : > { %v18873_v36 = vpop.eup %18872 }
0x4fe3   : > { %v12641_v46 = vsel %vm1402_vm2, %v18873_v36, 0.0 }
0x4fe4   : > { %12642 = vadd.xlane.f32.xlu1 %v12641_v46 }
0x5012   : > { %v12551_v42 = vpop.f32.mrb[118].mxu0 }
0x5013   : > { %v12555_v40 = vadd.f32 %v12551_v42, %v12315_v59  ;;  %v17306_v15 = vpop.f32.mrb[119].mxu0  ;;  %v18345_v59 = vpack.c.bf16 %v15270_v27, %v15254_v24  ;;  %v15225_v42 = vld [vmem:[%s21930_s0 + $0x220] sm:$0xff]  ;;  %v15247_v24 = vld [vmem:[%s21930_s0 + $0x2d0] sm:$0xff]  ;;  %v15262_v27 = vld [vmem:[%s21930_s0 + $0x348] sm:$0xff] }
0x5014   : > { %v18377_v51 = vpack.c.bf16 %v15278_v30, %v15262_v27  ;;  %v15289_v30 = vld [vmem:[%s21944_s13 + $0x810] sm:$0xff] }
0x5071   : > { %v12643_v55 = vpop.xlane.xlu1 %12642 }
0x5072   : > { %18874 = vrcp.f32 %v12643_v55  ;;  %v15227_v55 = vld [vmem:[%s21930_s0 + $0x230] sm:$0xff] }
0x507c   : > { %v18875_v22 = vpop.eup %18874 }
0x507d   : > { %v12645_v11 = vmul.f32 %v18875_v22, %v18873_v36  ;;  %v15219_v36 = vld [vmem:[%s21932_s4 + $0x1] ss:$0 sm:$0xff]  ;;  %v15243_v22 = vld [vmem:[%s21930_s0 + $0x2b0] sm:$0xff] }
0x507f   : > { %17315 = vmatmul.mubr.msk.f32.vlgmr.msra.gmra.mrb[120].mxu0 %vm1402_vm2, %v12645_v11  ;;  %v15258_v11 = vld [vmem:[%s21930_s0 + $0x328] sm:$0xff] }
0x5080   : > { %13304 = vmatprep.mubr.f32.mxu0 %v18992_v6  ;;  %18344 = vmatpush1.bf16.msra.mxu0 %v18343_v56  ;;  %v15245_v56 = vld [vmem:[%s21930_s0 + $0x2c0] sm:$0xff] }
0x5081   : > { %18346 = vmatprep.subr.bf16.mxu0 %v18345_v59  ;;  %v15264_v59 = vld [vmem:[%s21930_s0 + $0x358] sm:$0xff] }
0x5082   : > { %v18385_v33 = vpack.c.bf16 %v15280_v31, %v15264_v59  ;;  %v15290_v59 = vld [vmem:[%s21944_s13 + $0x818] sm:$0xff] }
0x5084   : > { %18348 = vmatpush1.bf16.msra.mxu0 %v18347_v38  ;;  %v15277_v38 = vld [vmem:[%s21930_s0 + $0x3c0] sm:$0xff] }
0x5085   : > { %18358 = vmatprep.subr.bf16.mxu0 %v18357_v23  ;;  %v15236_v23 = vld [vmem:[%s21930_s0 + $0x278] sm:$0xff] }
0x5152   : > { %v12718_v41 = vpop.f32.mrb[120].mxu0 }
0x5153   : > { %v17316_v26 = vpop.f32.mrb[121].mxu0  ;;  %17320 = vmatmul.mubr.msk.f32.vlgmr.msra.gmra.mrb[132].mxu1 %vm1402_vm2, %v12718_v41  ;;  %v15274_v41 = vld [vmem:[%s21930_s0 + $0x3a8] sm:$0xff] }
0x5154   : > { %13375 = vmatprep.mubr.f32.mxu1 %v18992_v6  ;;  %v15260_v26 = vld [vmem:[%s21930_s0 + $0x338] sm:$0xff] }
0x5226   : > { %v12791_v58 = vpop.f32.mrb[132].mxu1 }
0x5227   : > { %v12795_v43 = vadd.f32 %v12791_v58, %v12555_v40  ;;  %v17321_v14 = vpop.f32.mrb[133].mxu1  ;;  %v15241_v40 = vld [vmem:[%s21930_s0 + $0x2a0] sm:$0xff]  ;;  %v15276_v58 = vld [vmem:[%s21930_s0 + $0x3b8] sm:$0xff] }
0x5228   : > { %v18359_v14 = vpack.c.bf16 %v15241_v40, %v15225_v42  ;;  %v15251_v42 = vld [vmem:[%s21930_s0 + $0x2f0] sm:$0xff]  ;;  %v15266_v40 = vld [vmem:[%s21930_s0 + $0x368] sm:$0xff] }
0x5229   : > { %v12796_v61 = vadd.f32 %v12795_v43, %v21195_v25  ;;  %v15240_v25 = vld [vmem:[%s21930_s0 + $0x298] sm:$0xff] }
0x522a   : > { %v18349_v63 = vpack.c.bf16 %v15240_v25, %v15224_v20  ;;  %v15246_v20 = vld [vmem:[%s21930_s0 + $0x2c8] sm:$0xff]  ;;  %v15248_v25 = vld [vmem:[%s21930_s0 + $0x2d8] sm:$0xff] }
0x522b   : > { %v12801_v0 = vsel %vm1320_vm1, %v12796_v61, 0.0  ;;  %v18373_v29 = vpack.c.bf16 %v15246_v20, %v15230_v37  ;;  %v18381_v50 = vpack.c.bf16 %v15248_v25, %v15232_v7  ;;  %v15287_v20 = vld [vmem:[%s21944_s13 + $0x800] sm:$0xff]  ;;  %v15288_v7 = vld [vmem:[%s21944_s13 + $0x808] sm:$0xff] }
0x522c   : > { %12802 = vadd.xlane.f32.xlu1 %v12801_v0  ;;  %18350 = vmatprep.subr.bf16.mxu1 %v18349_v63  ;;  %v15257_v0 = vld [vmem:[%s21930_s0 + $0x320] sm:$0xff] }
0x522d   : > { %18352 = vmatpush1.bf16.msra.mxu1 %v18351_v21  ;;  %v15229_v63 = vld [vmem:[%s21930_s0 + $0x240] sm:$0xff]  ;;  %v15231_v21 = vld [vmem:[%s21930_s0 + $0x250] sm:$0xff] }
0x522e   : > { %18354 = vmatprep.subr.bf16.mxu1 %v18353_v57  ;;  %v18375_v32 = vpack.c.bf16 %v15245_v56, %v15229_v63  ;;  %v18383_v54 = vpack.c.bf16 %v15247_v24, %v15231_v21  ;;  %v15261_v57 = vld [vmem:[%s21930_s0 + $0x340] sm:$0xff]  ;;  %v15320_v63 = vld [vmem:[%s21944_s13 + $0x908] sm:$0xff]  ;;  %v15305_v56 = vld [vmem:[%s21944_s13 + $0x890] sm:$0xff]  ;;  %v18407_v24 = vpack.c.bf16 %v15288_v7, %v15287_v20 }
0x522f   : > { %v15338_v21 = vld [vmem:[%s21944_s13 + $0x998] sm:$0xff]  ;;  %v15328_v20 = vld [vmem:[%s21944_s13 + $0x948] sm:$0xff]  ;;  %v15313_v7 = vld [vmem:[%s21944_s13 + $0x8d0] sm:$0xff] }
0x5231   : > { %18356 = vmatpush1.bf16.msra.mxu1 %v18355_v2  ;;  %v15263_v2 = vld [vmem:[%s21930_s0 + $0x350] sm:$0xff] }
0x5232   : > { %18366 = vmatprep.subr.bf16.mxu1 %v18365_v44  ;;  %v18379_v44 = vpack.c.bf16 %v15277_v38, %v15261_v57  ;;  %v15322_v57 = vld [vmem:[%s21944_s13 + $0x918] sm:$0xff]  ;;  %v15307_v38 = vld [vmem:[%s21944_s13 + $0x8a0] sm:$0xff] }
0x52b9   : > { %v12803_v4 = vpop.xlane.xlu1 %12802 }
0x52ba   : > { %v12804_v60 = vmul.f32 0.03125, %v12803_v4  ;;  %v15273_v4 = vld [vmem:[%s21930_s0 + $0x3a0] sm:$0xff] }
0x52bb   : > { %v18363_v52 = vpack.c.bf16 %v15273_v4, %v15257_v0  ;;  %v15283_v0 = vld [vmem:[%s21930_s0 + $0x3f0] sm:$0xff]  ;;  %v15303_v4 = vld [vmem:[%s21944_s13 + $0x880] sm:$0xff] }
0x52bc   : > { %v12805_v53 = vsub.f32 %v12796_v61, %v12804_v60  ;;  %v18367_v61 = vpack.c.bf16 %v15243_v22, %v15227_v55  ;;  %v15268_v55 = vld [vmem:[%s21930_s0 + $0x378] sm:$0xff] }
0x52bd   : > { %v15284_v22 = vld [vmem:[%s21930_s0 + $0x3f8] sm:$0xff] }
0x52be   : > { %v12806_v47 = vmul.f32 %v12805_v53, %v12805_v53 }
0x52c0   : > { %v12807_v48 = vsel %vm1320_vm1, %v12806_v47, 0.0  ;;  %v18369_v47 = vpack.c.bf16 %v15276_v58, %v15260_v26  ;;  %v15265_v26 = vld [vmem:[%s21930_s0 + $0x360] sm:$0xff] }
0x52c1   : > { %12808 = vadd.xlane.f32.xlu1 %v12807_v48  ;;  %v15259_v48 = vld [vmem:[%s21930_s0 + $0x330] sm:$0xff]  ;;  %v15281_v58 = vld [vmem:[%s21930_s0 + $0x3e0] sm:$0xff] }
0x52c2   : > { %v18371_v1 = vpack.c.bf16 %v15275_v18, %v15259_v48  ;;  %v15336_v48 = vld [vmem:[%s21944_s13 + $0x988] sm:$0xff]  ;;  %v18395_v18 = vpack.c.bf16 %v15281_v58, %v15265_v26  ;;  %v15326_v26 = vld [vmem:[%s21944_s13 + $0x938] sm:$0xff]  ;;  %v15311_v58 = vld [vmem:[%s21944_s13 + $0x8c0] sm:$0xff] }
0x534e   : > { %v12809_v10 = vpop.xlane.xlu1 %12808 }
0x534f   : > { %v12810_v45 = vmul.f32 0.03125, %v12809_v10  ;;  %v18387_v10 = vpack.c.bf16 %v15279_v39, %v15263_v2  ;;  %v15340_v2 = vld [vmem:[%s21944_s13 + $0x9a8] sm:$0xff]  ;;  %v18411_v39 = vpack.c.bf16 %v15290_v59, %v15289_v30  ;;  %v15330_v30 = vld [vmem:[%s21944_s13 + $0x958] sm:$0xff]  ;;  %v15315_v59 = vld [vmem:[%s21944_s13 + $0x8e0] sm:$0xff] }
0x5351   : > { %v12811_v28 = vadd.f32 1e-05, %v12810_v45  ;;  %v15233_v45 = vld [vmem:[%s21930_s0 + $0x260] sm:$0xff] }
0x5353   : > { %18876 = vrsqrt.f32 %v12811_v28  ;;  %v15249_v28 = vld [vmem:[%s21930_s0 + $0x2e0] sm:$0xff] }
0x535d   : > { %v18877_v46 = vpop.eup %18876 }
0x535e   : > { %v12813_v15 = vmul.f32 %v18877_v46, %v12805_v53  ;;  %v18361_v53 = vpack.c.bf16 %v15274_v41, %v15258_v11  ;;  %v18397_v46 = vpack.c.bf16 %v15252_v9, %v15236_v23  ;;  %v18391_v11 = vpack.c.bf16 %v15249_v28, %v15233_v45  ;;  %v15292_v23 = vld [vmem:[%s21944_s13 + $0x828] sm:$0xff]  ;;  %v15309_v28 = vld [vmem:[%s21944_s13 + $0x8b0] sm:$0xff] }
0x535f   : > { %v15324_v45 = vld [vmem:[%s21944_s13 + $0x928] sm:$0xff] }
0x5360   : > { %v12820_v43 = vmul.f32 %v15219_v36, %v12813_v15  ;;  %v18389_v36 = vpack.c.bf16 %v15250_v19, %v15234_v62  ;;  %v15282_v15 = vld [vmem:[%s21930_s0 + $0x3e8] sm:$0xff]  ;;  %v15291_v19 = vld [vmem:[%s21944_s13 + $0x820] sm:$0xff] }
0x5362   : > { %v21319_v60 = vadd.f32 %v15220_v49, %v12820_v43  ;;  %v15235_v49 = vld [vmem:[%s21930_s0 + $0x270] sm:$0xff]  ;;  %v18393_v43 = vpack.c.bf16 %v15282_v15, %v15266_v40 }
0x5363   : > { %v18399_v41 = vpack.c.bf16 %v15251_v42, %v15235_v49  ;;  %v15342_v49 = vld [vmem:[%s21944_s13 + $0x9b8] sm:$0xff]  ;;  %v18415_v42 = vpack.c.bf16 %v15292_v23, %v15291_v19  ;;  %v15293_v15 = vld [vmem:[%s21944_s13 + $0x830] sm:$0xff]  ;;  %v15332_v19 = vld [vmem:[%s21944_s13 + $0x968] sm:$0xff] }
0x5364   : > { %15544 = vmatmul.mubr.msk.f32.vlgmr.msra.gmra.mrb[122].mxu0 %vm1320_vm1, %v21319_v60  ;;  %15545 = vmatmul.mubr.msk.f32.vlgmr.msra.gmra.mrb[134].mxu1 %vm1320_vm1, %v21319_v60 }
0x5365   : > { %18360 = vmatpush1.bf16.msra.mxu0 %v18359_v14  ;;  %18368 = vmatpush1.bf16.msra.mxu1 %v18367_v61  ;;  %v18401_v14 = vpack.c.bf16 %v15284_v22, %v15268_v55  ;;  %v15267_v61 = vld [vmem:[%s21930_s0 + $0x370] sm:$0xff]  ;;  %v15294_v55 = vld [vmem:[%s21944_s13 + $0x838] sm:$0xff]  ;;  %s21724_s0 = scalar_lea.hbm %s21952_s1, %s15562_s22 }
0x5366   : > { %18362 = vmatprep.subr.bf16.mxu0 %v18361_v53  ;;  %18370 = vmatprep.subr.bf16.mxu1 %v18369_v47  ;;  %v15304_v53 = vld [vmem:[%s21944_s13 + $0x888] sm:$0xff]  ;;  %v15335_v47 = vld [vmem:[%s21944_s13 + $0x980] sm:$0xff]  ;;  %v18403_v37 = vpack.c.bf16 %v15283_v0, %v15267_v61  ;;  %v18419_v0 = vpack.c.bf16 %v15294_v55, %v15293_v15  ;;  %v15333_v15 = vld [vmem:[%s21944_s13 + $0x970] sm:$0xff] }
0x5367   : > { %13446 = vmatprep.mubr.f32.mxu0 %v18992_v6  ;;  %13517 = vmatprep.mubr.f32.mxu1 %v18992_v6  ;;  %v18405_v25 = vpack.c.bf16 %v15304_v53, %v15303_v4  ;;  %v15344_v61 = vld [vmem:[%s21944_s13 + $0x9c8] sm:$0xff]  ;;  %v15295_v53 = vld [vmem:[%s21944_s13 + $0x840] sm:$0xff]  ;;  %v15334_v55 = vld [vmem:[%s21944_s13 + $0x978] sm:$0xff] }
0x5369   : > { %18364 = vmatpush1.bf16.msra.mxu0 %v18363_v52  ;;  %18372 = vmatpush1.bf16.msra.mxu1 %v18371_v1  ;;  %v18437_v52 = vpack.c.bf16 %v15336_v48, %v15335_v47  ;;  %v15319_v1 = vld [vmem:[%s21944_s13 + $0x900] sm:$0xff]  ;;  %v15296_v47 = vld [vmem:[%s21944_s13 + $0x848] sm:$0xff] }
0x536a   : > { %18374 = vmatprep.subr.bf16.mxu0 %v18373_v29  ;;  %18382 = vmatprep.subr.bf16.mxu1 %v18381_v50  ;;  %v15306_v29 = vld [vmem:[%s21944_s13 + $0x898] sm:$0xff]  ;;  %v15337_v50 = vld [vmem:[%s21944_s13 + $0x990] sm:$0xff]  ;;  %v18439_v27 = vpack.c.bf16 %v15320_v63, %v15319_v1  ;;  %v18423_v63 = vpack.c.bf16 %v15296_v47, %v15295_v53 }
0x536b   : > { %v18409_v31 = vpack.c.bf16 %v15306_v29, %v15305_v56  ;;  %v15346_v1 = vld [vmem:[%s21944_s13 + $0x9d8] sm:$0xff]  ;;  %v15297_v29 = vld [vmem:[%s21944_s13 + $0x850] sm:$0xff] }
0x536c   : > { %15546 = vmatmul.mubr.msk.f32.vlgmr.msra.gmra.mrb[124].mxu0 %vm1320_vm1, %v21319_v60  ;;  %15547 = vmatmul.mubr.msk.f32.vlgmr.msra.gmra.mrb[136].mxu1 %vm1320_vm1, %v21319_v60 }
0x536d   : > { %18376 = vmatpush1.bf16.msra.mxu0 %v18375_v32  ;;  %18384 = vmatpush1.bf16.msra.mxu1 %v18383_v54  ;;  %v18441_v32 = vpack.c.bf16 %v15338_v21, %v15337_v50  ;;  %v15321_v54 = vld [vmem:[%s21944_s13 + $0x910] sm:$0xff]  ;;  %v15298_v50 = vld [vmem:[%s21944_s13 + $0x858] sm:$0xff] }
0x536e   : > { %18378 = vmatprep.subr.bf16.mxu0 %v18377_v51  ;;  %18386 = vmatprep.subr.bf16.mxu1 %v18385_v33  ;;  %v15308_v51 = vld [vmem:[%s21944_s13 + $0x8a8] sm:$0xff]  ;;  %v15339_v33 = vld [vmem:[%s21944_s13 + $0x9a0] sm:$0xff]  ;;  %v18443_v62 = vpack.c.bf16 %v15322_v57, %v15321_v54  ;;  %v18427_v57 = vpack.c.bf16 %v15298_v50, %v15297_v29  ;;  %v15369_v29 = vld [vmem:[%s21944_s13 + $0xa90] sm:$0xff] }
0x536f   : > { %13588 = vmatprep.mubr.f32.mxu0 %v18992_v6  ;;  %13659 = vmatprep.mubr.f32.mxu1 %v18992_v6  ;;  %v18413_v9 = vpack.c.bf16 %v15308_v51, %v15307_v38  ;;  %v15348_v54 = vld [vmem:[%s21944_s13 + $0x9e8] sm:$0xff]  ;;  %v15299_v51 = vld [vmem:[%s21944_s13 + $0x860] sm:$0xff] }
0x5371   : > { %18380 = vmatpush1.bf16.msra.mxu0 %v18379_v44  ;;  %18388 = vmatpush1.bf16.msra.mxu1 %v18387_v10  ;;  %v18445_v44 = vpack.c.bf16 %v15340_v2, %v15339_v33  ;;  %v15323_v10 = vld [vmem:[%s21944_s13 + $0x920] sm:$0xff] }
0x5372   : > { %18390 = vmatprep.subr.bf16.mxu0 %v18389_v36  ;;  %18398 = vmatprep.subr.bf16.mxu1 %v18397_v46  ;;  %v15310_v36 = vld [vmem:[%s21944_s13 + $0x8b8] sm:$0xff]  ;;  %v15341_v46 = vld [vmem:[%s21944_s13 + $0x9b0] sm:$0xff]  ;;  %v18447_v40 = vpack.c.bf16 %v15324_v45, %v15323_v10 }
0x5373   : > { %v18417_v22 = vpack.c.bf16 %v15310_v36, %v15309_v28  ;;  %v15318_v10 = vld [vmem:[%s21944_s13 + $0x8f8] sm:$0xff]  ;;  %v15349_v45 = vld [vmem:[%s21944_s13 + $0x9f0] sm:$0xff] }
0x5374   : > { %15548 = vmatmul.mubr.msk.f32.vlgmr.msra.gmra.mrb[126].mxu0 %vm1320_vm1, %v21319_v60  ;;  %15549 = vmatmul.mubr.msk.f32.vlgmr.msra.gmra.mrb[138].mxu1 %vm1320_vm1, %v21319_v60  ;;  %v15350_v36 = vld [vmem:[%s21944_s13 + $0x9f8] sm:$0xff] }
0x5375   : > { %18392 = vmatpush1.bf16.msra.mxu0 %v18391_v11  ;;  %18400 = vmatpush1.bf16.msra.mxu1 %v18399_v41  ;;  %v18449_v11 = vpack.c.bf16 %v15342_v49, %v15341_v46  ;;  %v15325_v41 = vld [vmem:[%s21944_s13 + $0x930] sm:$0xff]  ;;  %v15302_v49 = vld [vmem:[%s21944_s13 + $0x878] sm:$0xff] }
0x5376   : > { %18394 = vmatprep.subr.bf16.mxu0 %v18393_v43  ;;  %18402 = vmatprep.subr.bf16.mxu1 %v18401_v14  ;;  %v15312_v43 = vld [vmem:[%s21944_s13 + $0x8c8] sm:$0xff]  ;;  %v15343_v14 = vld [vmem:[%s21944_s13 + $0x9c0] sm:$0xff]  ;;  %v18451_v4 = vpack.c.bf16 %v15326_v26, %v15325_v41  ;;  %v15301_v46 = vld [vmem:[%s21944_s13 + $0x870] sm:$0xff] }
0x5377   : > { %13730 = vmatprep.mubr.f32.mxu0 %v18992_v6  ;;  %13801 = vmatprep.mubr.f32.mxu1 %v18992_v6  ;;  %v18421_v48 = vpack.c.bf16 %v15312_v43, %v15311_v58  ;;  %v15368_v41 = vld [vmem:[%s21944_s13 + $0xa88] sm:$0xff]  ;;  %v15399_v26 = vld [vmem:[%s21944_s13 + $0xb80] sm:$0xff] }
0x5378   : > { %v15400_v43 = vld [vmem:[%s21944_s13 + $0xb88] sm:$0xff] }
0x5379   : > { %18396 = vmatpush1.bf16.msra.mxu0 %v18395_v18  ;;  %18404 = vmatpush1.bf16.msra.mxu1 %v18403_v37  ;;  %v18453_v18 = vpack.c.bf16 %v15344_v61, %v15343_v14  ;;  %v15327_v37 = vld [vmem:[%s21944_s13 + $0x940] sm:$0xff]  ;;  %v18501_v14 = vpack.c.bf16 %v15400_v43, %v15399_v26  ;;  %v21446_v61 = vld [vmem:[%s21945_s21 + $0x10] sm:$0xff] }
0x537a   : > { %18406 = vmatprep.subr.bf16.mxu0 %v18405_v25  ;;  %18438 = vmatprep.subr.bf16.mxu1 %v18437_v52  ;;  %v15314_v25 = vld [vmem:[%s21944_s13 + $0x8d8] sm:$0xff]  ;;  %v15345_v52 = vld [vmem:[%s21944_s13 + $0x9d0] sm:$0xff]  ;;  %v18455_v56 = vpack.c.bf16 %v15328_v20, %v15327_v37  ;;  %v13164_v53 = vrot.slane %v21446_v61, %v19570_v16  ;;  %v13172_v47 = vrot.slane %v21446_v61, %v19573_v17  ;;  %v15351_v37 = vld [vmem:[%s21944_s13 + $0xa00] sm:$0xff] }
0x537b   : > { %v18425_v21 = vpack.c.bf16 %v15314_v25, %v15313_v7  ;;  %v15352_v20 = vld [vmem:[%s21944_s13 + $0xa08] sm:$0xff]  ;;  %v15387_v26 = vld [vmem:[%s21944_s13 + $0xb20] sm:$0xff]  ;;  %v15373_v43 = vld [vmem:[%s21944_s13 + $0xab0] sm:$0xff] }
0x537c   : > { %15550 = vmatmul.mubr.msk.f32.vlgmr.msra.gmra.mrb[128].mxu0 %vm1320_vm1, %v21319_v60  ;;  %15551 = vmatmul.mubr.msk.f32.vlgmr.msra.gmra.mrb[140].mxu1 %vm1320_vm1, %v21319_v60 }
0x537d   : > { %18408 = vmatpush3.bf16.msra.mxu0 %v18407_v24  ;;  %18440 = vmatpush3.bf16.msra.mxu1 %v18439_v27  ;;  %v18457_v24 = vpack.c.bf16 %v15346_v1, %v15345_v52  ;;  %v15329_v27 = vld [vmem:[%s21944_s13 + $0x950] sm:$0xff] }
0x537e   : > { %18410 = vmatprep.subr.bf16.mxu0 %v18409_v31  ;;  %18442 = vmatprep.subr.bf16.mxu1 %v18441_v32  ;;  %v15316_v31 = vld [vmem:[%s21944_s13 + $0x8e8] sm:$0xff]  ;;  %v15347_v32 = vld [vmem:[%s21944_s13 + $0x9e0] sm:$0xff]  ;;  %v18459_v38 = vpack.c.bf16 %v15330_v30, %v15329_v27  ;;  %v15401_v27 = vld [vmem:[%s21944_s13 + $0xb90] sm:$0xff] }
0x537f   : > { %v18429_v33 = vpack.c.bf16 %v15316_v31, %v15315_v59  ;;  %v18461_v2 = vpack.c.bf16 %v15348_v54, %v15347_v32  ;;  %v15402_v30 = vld [vmem:[%s21944_s13 + $0xb98] sm:$0xff]  ;;  %v18471_v32 = vpack.c.bf16 %v15352_v20, %v15351_v37 }
0x5381   : > { %18412 = vmatpush3.bf16.msra.mxu0 %v18411_v39  ;;  %18444 = vmatpush3.bf16.msra.mxu1 %v18443_v62  ;;  %v15300_v39 = vld [vmem:[%s21944_s13 + $0x868] sm:$0xff]  ;;  %v15331_v62 = vld [vmem:[%s21944_s13 + $0x960] sm:$0xff] }
0x5382   : > { %18414 = vmatprep.subr.bf16.mxu0 %v18413_v9  ;;  %18446 = vmatprep.subr.bf16.mxu1 %v18445_v44  ;;  %v18431_v23 = vpack.c.bf16 %v15300_v39, %v15299_v51  ;;  %v18463_v9 = vpack.c.bf16 %v15332_v19, %v15331_v62  ;;  %v15317_v44 = vld [vmem:[%s21944_s13 + $0x8f0] sm:$0xff]  ;;  %v18505_v39 = vpack.c.bf16 %v15402_v30, %v15401_v27  ;;  %v15386_v19 = vld [vmem:[%s21944_s13 + $0xb18] sm:$0xff] }
0x5383   : > { %v18433_v28 = vpack.c.bf16 %v15318_v10, %v15317_v44  ;;  %v15385_v62 = vld [vmem:[%s21944_s13 + $0xb10] sm:$0xff]  ;;  %v13188_v44 = vrot.slane %v21446_v61, %v19592_v35  ;;  %v15372_v10 = vld [vmem:[%s21944_s13 + $0xaa8] sm:$0xff] }
0x5385   : > { %18416 = vmatpush3.bf16.msra.mxu0 %v18415_v42  ;;  %18448 = vmatpush3.bf16.msra.mxu1 %v18447_v40  ;;  %v18465_v42 = vpack.c.bf16 %v15350_v36, %v15349_v45  ;;  %v18435_v40 = vpack.c.bf16 %v15302_v49, %v15301_v46  ;;  %v15403_v45 = vld [vmem:[%s21944_s13 + $0xba0] sm:$0xff] }
0x5386   : > { %18418 = vmatprep.subr.bf16.mxu0 %v18417_v22  ;;  %18450 = vmatprep.subr.bf16.mxu1 %v18449_v11  ;;  %v18467_v22 = vpack.c.bf16 %v15334_v55, %v15333_v15  ;;  %v15367_v11 = vld [vmem:[%s21944_s13 + $0xa80] sm:$0xff]  ;;  %v15356_v15 = vld [vmem:[%s21944_s13 + $0xa28] sm:$0xff] }
0x5387   : > { %v18469_v58 = vpack.c.bf16 %v15368_v41, %v15367_v11 }
0x5389   : > { %18420 = vmatpush3.bf16.msra.mxu0 %v18419_v0  ;;  %18452 = vmatpush3.bf16.msra.mxu1 %v18451_v4  ;;  %v13160_v0 = vrot.slane %v21446_v61, %v19561_v12  ;;  %v13168_v4 = vrot.slane %v21446_v61, %v19564_v13 }
0x538a   : > { %18422 = vmatprep.subr.bf16.mxu0 %v18421_v48  ;;  %18454 = vmatprep.subr.bf16.mxu1 %v18453_v18 }
0x538d   : > { %18424 = vmatpush3.bf16.msra.mxu0 %v18423_v63  ;;  %18456 = vmatpush3.bf16.msra.mxu1 %v18455_v56  ;;  %v15383_v63 = vld [vmem:[%s21944_s13 + $0xb00] sm:$0xff]  ;;  %v15384_v56 = vld [vmem:[%s21944_s13 + $0xb08] sm:$0xff] }
0x538e   : > { %18426 = vmatprep.subr.bf16.mxu0 %v18425_v21  ;;  %18458 = vmatprep.subr.bf16.mxu1 %v18457_v24  ;;  %v15370_v24 = vld [vmem:[%s21944_s13 + $0xa98] sm:$0xff]  ;;  %v18503_v54 = vpack.c.bf16 %v15384_v56, %v15383_v63  ;;  %v15389_v63 = vld [vmem:[%s21944_s13 + $0xb30] sm:$0xff] }
0x538f   : > { %v15390_v56 = vld [vmem:[%s21944_s13 + $0xb38] sm:$0xff] }
0x5391   : > { %18428 = vmatpush3.bf16.msra.mxu0 %v18427_v57  ;;  %18460 = vmatpush3.bf16.msra.mxu1 %v18459_v38  ;;  %v15353_v57 = vld [vmem:[%s21944_s13 + $0xa10] sm:$0xff]  ;;  %v15354_v38 = vld [vmem:[%s21944_s13 + $0xa18] sm:$0xff] }
0x5392   : > { %18430 = vmatprep.subr.bf16.mxu0 %v18429_v33  ;;  %18462 = vmatprep.subr.bf16.mxu1 %v18461_v2  ;;  %v18473_v2 = vpack.c.bf16 %v15370_v24, %v15369_v29  ;;  %v18475_v49 = vpack.c.bf16 %v15354_v38, %v15353_v57  ;;  %v15375_v29 = vld [vmem:[%s21944_s13 + $0xac0] sm:$0xff]  ;;  %v15408_v24 = vld [vmem:[%s21944_s13 + $0xbc8] sm:$0xff] }
0x5395   : > { %18432 = vmatpush3.bf16.msra.mxu0 %v18431_v23  ;;  %18464 = vmatpush3.bf16.msra.mxu1 %v18463_v9  ;;  %v15371_v23 = vld [vmem:[%s21944_s13 + $0xaa0] sm:$0xff]  ;;  %v13180_v9 = vrot.slane %v21446_v61, %v19589_v34 }
0x5396   : > { %18434 = vmatprep.subr.bf16.mxu0 %v18433_v28  ;;  %18466 = vmatprep.subr.bf16.mxu1 %v18465_v42  ;;  %v15404_v28 = vld [vmem:[%s21944_s13 + $0xba8] sm:$0xff]  ;;  %v18507_v42 = vpack.c.bf16 %v15386_v19, %v15385_v62  ;;  %v18477_v11 = vpack.c.bf16 %v15372_v10, %v15371_v23  ;;  %v15377_v62 = vld [vmem:[%s21944_s13 + $0xad0] sm:$0xff]  ;;  %v15378_v19 = vld [vmem:[%s21944_s13 + $0xad8] sm:$0xff] }
0x5397   : > { %v18509_v41 = vpack.c.bf16 %v15404_v28, %v15403_v45  ;;  %v15409_v23 = vld [vmem:[%s21944_s13 + $0xbd0] sm:$0xff] }
0x5398   : > { %v15361_v28 = vld [vmem:[%s21944_s13 + $0xa50] sm:$0xff] }
0x5399   : > { %18436 = vmatpush3.bf16.msra.mxu0 %v18435_v40  ;;  %18468 = vmatpush3.bf16.msra.mxu1 %v18467_v22  ;;  %v15355_v40 = vld [vmem:[%s21944_s13 + $0xa20] sm:$0xff] }
0x539a   : > { %18470 = vmatprep.subr.bf16.mxu0 %v18469_v58  ;;  %18502 = vmatprep.subr.bf16.mxu1 %v18501_v14  ;;  %v15388_v58 = vld [vmem:[%s21944_s13 + $0xb28] sm:$0xff]  ;;  %v18479_v37 = vpack.c.bf16 %v15356_v15, %v15355_v40  ;;  %v18489_v40 = vpack.c.bf16 %v15378_v19, %v15377_v62 }
0x539b   : > { %v18511_v20 = vpack.c.bf16 %v15388_v58, %v15387_v26  ;;  %v15411_v26 = vld [vmem:[%s21944_s13 + $0xbe0] sm:$0xff]  ;;  %v15412_v58 = vld [vmem:[%s21944_s13 + $0xbe8] sm:$0xff] }
0x539c   : > { %v15432_v62 = vld [vmem:[%s21944_s13 + $0xc88] sm:$0xff] }
0x5437   : > { %v13306_v48 = vpop.f32.mrb[122].mxu0  ;;  %v13377_v18 = vpop.f32.mrb[134].mxu1 }
0x5438   : > { %v13307_v7 = vadd.f32 %v13306_v48, %v13160_v0  ;;  %v13378_v25 = vadd.f32 %v13377_v18, %v13168_v4  ;;  %v13308_v52 = vpop.f32.mrb[123].mxu0  ;;  %v13379_v1 = vpop.f32.mrb[135].mxu1  ;;  %v15374_v4 = vld [vmem:[%s21944_s13 + $0xab8] sm:$0xff] }
0x5439   : > { %v13309_v50 = vadd.f32 %v13308_v52, %v13164_v53  ;;  %v13380_v21 = vadd.f32 %v13379_v1, %v13172_v47  ;;  %v15405_v53 = vld [vmem:[%s21944_s13 + $0xbb0] sm:$0xff]  ;;  %v15406_v47 = vld [vmem:[%s21944_s13 + $0xbb8] sm:$0xff]  ;;  %v18481_v52 = vpack.c.bf16 %v15374_v4, %v15373_v43 }
0x543a   : > { %v13808_v51 = vmax.f32 %v13307_v7, 0.0  ;;  %v13810_v33 = vmax.f32 %v13378_v25, 0.0  ;;  %v15357_v7 = vld [vmem:[%s21944_s13 + $0xa30] sm:$0xff]  ;;  %v15358_v25 = vld [vmem:[%s21944_s13 + $0xa38] sm:$0xff]  ;;  %v18513_v1 = vpack.c.bf16 %v15406_v47, %v15405_v53  ;;  %v15363_v53 = vld [vmem:[%s21944_s13 + $0xa60] sm:$0xff] }
0x543b   : > { %v13809_v59 = vmax.f32 %v13309_v50, 0.0  ;;  %v13811_v31 = vmax.f32 %v13380_v21, 0.0  ;;  %v15376_v50 = vld [vmem:[%s21944_s13 + $0xac8] sm:$0xff]  ;;  %v15407_v21 = vld [vmem:[%s21944_s13 + $0xbc0] sm:$0xff] }
0x543c   : > { %v15364_v47 = vld [vmem:[%s21944_s13 + $0xa68] sm:$0xff] }
0x543d   : > { %13894 = vmatprep.mubr.f32.mxu0 %v13809_v59  ;;  %13964 = vmatprep.mubr.f32.mxu1 %v13811_v31  ;;  %v18483_v59 = vpack.c.bf16 %v15358_v25, %v15357_v7  ;;  %v18515_v31 = vpack.c.bf16 %v15390_v56, %v15389_v63  ;;  %v18525_v7 = vpack.c.bf16 %v15412_v58, %v15411_v26  ;;  %v15395_v25 = vld [vmem:[%s21944_s13 + $0xb60] sm:$0xff]  ;;  %v15382_v63 = vld [vmem:[%s21944_s13 + $0xaf8] sm:$0xff]  ;;  %v15413_v56 = vld [vmem:[%s21944_s13 + $0xbf0] sm:$0xff] }
0x543e   : > { %13895 = vmatmul.mubr.f32.vlgmr.msra.gmra.mrb[130].mxu0 %v13808_v51  ;;  %13965 = vmatmul.mubr.f32.vlgmr.msra.gmra.mrb[142].mxu1 %v13810_v33  ;;  %v18485_v51 = vpack.c.bf16 %v15376_v50, %v15375_v29  ;;  %v18517_v33 = vpack.c.bf16 %v15408_v24, %v15407_v21  ;;  %v15414_v29 = vld [vmem:[%s21944_s13 + $0xbf8] sm:$0xff]  ;;  %v13176_v50 = vrot.slane %v21446_v61, %v19662_v5  ;;  %v15465_v26 = vld [vmem:[%s21944_s13 + $0xd90] sm:$0xff] }
0x543f   : > { %v21476_v36 = vpop.f32.mrb[124].mxu0  ;;  %v21478_v46 = vpop.f32.mrb[136].mxu1  ;;  %18472 = vmatpush3.bf16.msra.mxu0 %v18471_v32  ;;  %18504 = vmatpush3.bf16.msra.mxu1 %v18503_v54  ;;  %v15359_v32 = vld [vmem:[%s21944_s13 + $0xa40] sm:$0xff]  ;;  %v15360_v54 = vld [vmem:[%s21944_s13 + $0xa48] sm:$0xff]  ;;  %v18495_v21 = vpack.c.bf16 %v15364_v47, %v15363_v53  ;;  %v15449_v53 = vld [vmem:[%s21944_s13 + $0xd10] sm:$0xff] }
0x5440   : > { %v13450_v55 = vpop.f32.mrb[125].mxu0  ;;  %v13521_v22 = vpop.f32.mrb[137].mxu1  ;;  %18474 = vmatprep.subr.bf16.mxu0 %v18473_v2  ;;  %18506 = vmatprep.subr.bf16.mxu1 %v18505_v39  ;;  %v15391_v2 = vld [vmem:[%s21944_s13 + $0xb40] sm:$0xff]  ;;  %v15392_v39 = vld [vmem:[%s21944_s13 + $0xb48] sm:$0xff]  ;;  %v18487_v10 = vpack.c.bf16 %v15360_v54, %v15359_v32  ;;  %v15397_v32 = vld [vmem:[%s21944_s13 + $0xb70] sm:$0xff]  ;;  %v13184_v54 = vrot.slane %v21446_v61, %v19646_v8 }
0x5441   : > { %v13451_v14 = vadd.f32 %v13450_v55, %v13180_v9  ;;  %v13522_v0 = vadd.f32 %v13521_v22, %v13188_v44  ;;  %v15410_v9 = vld [vmem:[%s21944_s13 + $0xbd8] sm:$0xff]  ;;  %v18519_v45 = vpack.c.bf16 %v15392_v39, %v15391_v2  ;;  %v15393_v55 = vld [vmem:[%s21944_s13 + $0xb50] sm:$0xff]  ;;  %v15431_v39 = vld [vmem:[%s21944_s13 + $0xc80] sm:$0xff] }
0x5442   : > { %v21513_v44 = vld [vmem:[%s21945_s21 + $0x18] sm:$0xff]  ;;  %v18521_v15 = vpack.c.bf16 %v15410_v9, %v15409_v23  ;;  %v15463_v23 = vld [vmem:[%s21944_s13 + $0xd80] sm:$0xff]  ;;  %v15464_v9 = vld [vmem:[%s21944_s13 + $0xd88] sm:$0xff] }
0x5443   : > { %v13813_v48 = vmax.f32 %v13451_v14, 0.0  ;;  %v13815_v18 = vmax.f32 %v13522_v0, 0.0  ;;  %18476 = vmatpush3.bf16.msra.mxu0 %v18475_v49  ;;  %18508 = vmatpush3.bf16.msra.mxu1 %v18507_v42  ;;  %v15362_v49 = vld [vmem:[%s21944_s13 + $0xa58] sm:$0xff]  ;;  %v13216_v42 = vrot.slane %v21513_v44, %v19646_v8  ;;  %v13196_v19 = vrot.slane %v21513_v44, %v19570_v16 }
0x5444   : > { %18478 = vmatprep.subr.bf16.mxu0 %v18477_v11  ;;  %18510 = vmatprep.subr.bf16.mxu1 %v18509_v41  ;;  %v15394_v22 = vld [vmem:[%s21944_s13 + $0xb58] sm:$0xff]  ;;  %v15379_v11 = vld [vmem:[%s21944_s13 + $0xae0] sm:$0xff]  ;;  %v15380_v41 = vld [vmem:[%s21944_s13 + $0xae8] sm:$0xff]  ;;  %v18491_v0 = vpack.c.bf16 %v15362_v49, %v15361_v28  ;;  %v13449_v28 = vadd.f32 %v21476_v36, %v13176_v50  ;;  %v13520_v16 = vadd.f32 %v21478_v46, %v13184_v54 }
0x5445   : > { %14034 = vmatprep.mubr.f32.mxu0 %v13813_v48  ;;  %14104 = vmatprep.mubr.f32.mxu1 %v13815_v18  ;;  %v18523_v4 = vpack.c.bf16 %v15394_v22, %v15393_v55  ;;  %v15398_v2 = vld [vmem:[%s21944_s13 + $0xb78] sm:$0xff]  ;;  %v18565_v49 = vpack.c.bf16 %v15464_v9, %v15463_v23  ;;  %v15448_v55 = vld [vmem:[%s21944_s13 + $0xd08] sm:$0xff]  ;;  %v15433_v22 = vld [vmem:[%s21944_s13 + $0xc90] sm:$0xff] }
0x5446   : > { %v18531_v61 = vpack.c.bf16 %v15398_v2, %v15397_v32  ;;  %v15466_v36 = vld [vmem:[%s21944_s13 + $0xd98] sm:$0xff]  ;;  %v13812_v58 = vmax.f32 %v13449_v28, 0.0  ;;  %v15452_v54 = vld [vmem:[%s21944_s13 + $0xd28] sm:$0xff]  ;;  %v15469_v2 = vld [vmem:[%s21944_s13 + $0xdb0] sm:$0xff] }
0x5447   : > { %v21496_v27 = vpop.f32.mrb[126].mxu0  ;;  %v21498_v30 = vpop.f32.mrb[138].mxu1  ;;  %18480 = vmatpush3.bf16.msra.mxu0 %v18479_v37  ;;  %18512 = vmatpush3.bf16.msra.mxu1 %v18511_v20  ;;  %v18493_v20 = vpack.c.bf16 %v15380_v41, %v15379_v11  ;;  %v15434_v41 = vld [vmem:[%s21944_s13 + $0xc98] sm:$0xff]  ;;  %v15421_v9 = vld [vmem:[%s21944_s13 + $0xc30] sm:$0xff]  ;;  %v15439_v28 = vld [vmem:[%s21944_s13 + $0xcc0] sm:$0xff] }
0x5448   : > { %v21502_v57 = vpop.f32.mrb[127].mxu0  ;;  %v21504_v38 = vpop.f32.mrb[139].mxu1  ;;  %18482 = vmatprep.subr.bf16.mxu0 %v18481_v52  ;;  %18514 = vmatprep.subr.bf16.mxu1 %v18513_v1  ;;  %v15396_v52 = vld [vmem:[%s21944_s13 + $0xb68] sm:$0xff]  ;;  %v15381_v1 = vld [vmem:[%s21944_s13 + $0xaf0] sm:$0xff]  ;;  %v18537_v47 = vpack.c.bf16 %v15434_v41, %v15433_v22 }
0x5449   : > { %v18527_v24 = vpack.c.bf16 %v15396_v52, %v15395_v25  ;;  %v15435_v25 = vld [vmem:[%s21944_s13 + $0xca0] sm:$0xff]  ;;  %v15436_v52 = vld [vmem:[%s21944_s13 + $0xca8] sm:$0xff] }
0x544a   : > { %v15424_v22 = vld [vmem:[%s21944_s13 + $0xc48] sm:$0xff] }
0x544b   : > { %18484 = vmatpush3.bf16.msra.mxu0 %v18483_v59  ;;  %18516 = vmatpush3.bf16.msra.mxu1 %v18515_v31  ;;  %v15365_v59 = vld [vmem:[%s21944_s13 + $0xa70] sm:$0xff]  ;;  %v15366_v31 = vld [vmem:[%s21944_s13 + $0xa78] sm:$0xff] }
0x544c   : > { %18486 = vmatprep.subr.bf16.mxu0 %v18485_v51  ;;  %18518 = vmatprep.subr.bf16.mxu1 %v18517_v33  ;;  %v18497_v51 = vpack.c.bf16 %v15382_v63, %v15381_v1  ;;  %v18529_v33 = vpack.c.bf16 %v15414_v29, %v15413_v56  ;;  %v18499_v8 = vpack.c.bf16 %v15366_v31, %v15365_v59  ;;  %v15467_v63 = vld [vmem:[%s21944_s13 + $0xda0] sm:$0xff]  ;;  %v15468_v56 = vld [vmem:[%s21944_s13 + $0xda8] sm:$0xff] }
0x544d   : > { %v15420_v59 = vld [vmem:[%s21944_s13 + $0xc28] sm:$0xff]  ;;  %v15451_v31 = vld [vmem:[%s21944_s13 + $0xd20] sm:$0xff]  ;;  %v18573_v32 = vpack.c.bf16 %v15468_v56, %v15467_v63 }
0x544e   : > { %v15476_v63 = vld [vmem:[%s21944_s13 + $0xde8] sm:$0xff] }
0x544f   : > { %v21525_v43 = vpop.f32.mrb[128].mxu0  ;;  %v13803_v14 = vpop.f32.mrb[140].mxu1  ;;  %18488 = vmatpush3.bf16.msra.mxu0 %v18487_v10  ;;  %18520 = vmatpush3.bf16.msra.mxu1 %v18519_v45  ;;  %v13204_v10 = vrot.slane %v21513_v44, %v19573_v17  ;;  %v18533_v45 = vpack.c.bf16 %v15432_v62, %v15431_v39  ;;  %v13593_v17 = vadd.f32 %v21502_v57, %v13196_v19  ;;  %v15470_v39 = vld [vmem:[%s21944_s13 + $0xdb8] sm:$0xff] }
0x5450   : > { %v21529_v48 = vadd.f32 %v13803_v14, %v13216_v42  ;;  %v21531_v18 = vpop.f32.mrb[129].mxu0  ;;  %v21533_v37 = vpop.f32.mrb[141].mxu1  ;;  %18490 = vmatprep.subr.bf16.mxu0 %v18489_v40  ;;  %18522 = vmatprep.subr.bf16.mxu1 %v18521_v15  ;;  %v15415_v42 = vld [vmem:[%s21944_s13 + $0xc00] sm:$0xff]  ;;  %v15416_v40 = vld [vmem:[%s21944_s13 + $0xc08] sm:$0xff]  ;;  %v13814_v14 = vmax.f32 %v13520_v16, 0.0  ;;  %v18575_v19 = vpack.c.bf16 %v15452_v54, %v15451_v31  ;;  %v15445_v54 = vld [vmem:[%s21944_s13 + $0xcf0] sm:$0xff] }
0x5451   : > { %v15447_v15 = vld [vmem:[%s21944_s13 + $0xd00] sm:$0xff]  ;;  %v13664_v11 = vadd.f32 %v21504_v38, %v13204_v10  ;;  %v18535_v46 = vpack.c.bf16 %v15416_v40, %v15415_v42  ;;  %v13817_v38 = vmax.f32 %v13593_v17, 0.0  ;;  %v15422_v10 = vld [vmem:[%s21944_s13 + $0xc38] sm:$0xff]  ;;  %v15440_v16 = vld [vmem:[%s21944_s13 + $0xcc8] sm:$0xff] }
0x5452   : > { %v18567_v57 = vpack.c.bf16 %v15448_v55, %v15447_v15  ;;  %v15472_v42 = vld [vmem:[%s21944_s13 + $0xdc8] sm:$0xff]  ;;  %v18547_v40 = vpack.c.bf16 %v15422_v10, %v15421_v9  ;;  %v18549_v15 = vpack.c.bf16 %v15440_v16, %v15439_v28  ;;  %v15423_v55 = vld [vmem:[%s21944_s13 + $0xc40] sm:$0xff]  ;;  %v15429_v9 = vld [vmem:[%s21944_s13 + $0xc70] sm:$0xff] }
0x5453   : > { %18492 = vmatpush3.bf16.msra.mxu0 %v18491_v0  ;;  %18524 = vmatpush3.bf16.msra.mxu1 %v18523_v4  ;;  %v15417_v0 = vld [vmem:[%s21944_s13 + $0xc10] sm:$0xff]  ;;  %v15418_v4 = vld [vmem:[%s21944_s13 + $0xc18] sm:$0xff]  ;;  %v13819_v1 = vmax.f32 %v13664_v11, 0.0  ;;  %v15455_v11 = vld [vmem:[%s21944_s13 + $0xd40] sm:$0xff] }
0x5454   : > { %18494 = vmatprep.subr.bf16.mxu0 %v18493_v20  ;;  %18526 = vmatprep.subr.bf16.mxu1 %v18525_v7  ;;  %v18569_v20 = vpack.c.bf16 %v15466_v36, %v15465_v26  ;;  %v15450_v7 = vld [vmem:[%s21944_s13 + $0xd18] sm:$0xff]  ;;  %v18539_v29 = vpack.c.bf16 %v15418_v4, %v15417_v0  ;;  %v15456_v26 = vld [vmem:[%s21944_s13 + $0xd48] sm:$0xff]  ;;  %v15441_v36 = vld [vmem:[%s21944_s13 + $0xcd0] sm:$0xff] }
0x5455   : > { %v18571_v50 = vpack.c.bf16 %v15450_v7, %v15449_v53  ;;  %v18583_v0 = vpack.c.bf16 %v15456_v26, %v15455_v11  ;;  %v15425_v53 = vld [vmem:[%s21944_s13 + $0xc50] sm:$0xff]  ;;  %v15458_v7 = vld [vmem:[%s21944_s13 + $0xd58] sm:$0xff]  ;;  %v15495_v16 = vld [vmem:[%s21944_s13 + $0xe80] sm:$0xff] }
0x5456   : > { %v15430_v10 = vld [vmem:[%s21944_s13 + $0xc78] sm:$0xff]  ;;  %v15480_v11 = vld [vmem:[%s21944_s13 + $0xe08] sm:$0xff] }
0x5457   : > { %18496 = vmatpush3.bf16.msra.mxu0 %v18495_v21  ;;  %18528 = vmatpush3.bf16.msra.mxu1 %v18527_v24  ;;  %v18541_v21 = vpack.c.bf16 %v15436_v52, %v15435_v25  ;;  %v15419_v24 = vld [vmem:[%s21944_s13 + $0xc20] sm:$0xff]  ;;  %v15444_v52 = vld [vmem:[%s21944_s13 + $0xce8] sm:$0xff]  ;;  %v15462_v28 = vld [vmem:[%s21944_s13 + $0xd78] sm:$0xff] }
0x5458   : > { %18498 = vmatprep.subr.bf16.mxu0 %v18497_v51  ;;  %18530 = vmatprep.subr.bf16.mxu1 %v18529_v33  ;;  %v15437_v51 = vld [vmem:[%s21944_s13 + $0xcb0] sm:$0xff]  ;;  %v15438_v33 = vld [vmem:[%s21944_s13 + $0xcb8] sm:$0xff]  ;;  %v18543_v62 = vpack.c.bf16 %v15420_v59, %v15419_v24  ;;  %v15443_v25 = vld [vmem:[%s21944_s13 + $0xce0] sm:$0xff] }
0x5459   : > { %v18545_v23 = vpack.c.bf16 %v15438_v33, %v15437_v51  ;;  %v15428_v24 = vld [vmem:[%s21944_s13 + $0xc68] sm:$0xff]  ;;  %v15459_v59 = vld [vmem:[%s21944_s13 + $0xd60] sm:$0xff]  ;;  %v15446_v51 = vld [vmem:[%s21944_s13 + $0xcf8] sm:$0xff] }
0x545a   : > { %v15477_v33 = vld [vmem:[%s21944_s13 + $0xdf0] sm:$0xff] }
0x545b   : > { %18500 = vmatpush3.bf16.msra.mxu0 %v18499_v8  ;;  %18532 = vmatpush3.bf16.msra.mxu1 %v18531_v61  ;;  %v15453_v8 = vld [vmem:[%s21944_s13 + $0xd30] sm:$0xff]  ;;  %v18577_v61 = vpack.c.bf16 %v15470_v39, %v15469_v2  ;;  %v15478_v2 = vld [vmem:[%s21944_s13 + $0xdf8] sm:$0xff] }
0x545c   : > { %18534 = vmatprep.subr.bf16.mxu0 %v18533_v45  ;;  %18566 = vmatprep.subr.bf16.mxu1 %v18565_v49  ;;  %v15454_v45 = vld [vmem:[%s21944_s13 + $0xd38] sm:$0xff]  ;;  %v15471_v49 = vld [vmem:[%s21944_s13 + $0xdc0] sm:$0xff] }
0x545d   : > { %v18579_v17 = vpack.c.bf16 %v15454_v45, %v15453_v8  ;;  %v18581_v41 = vpack.c.bf16 %v15472_v42, %v15471_v49  ;;  %v15461_v8 = vld [vmem:[%s21944_s13 + $0xd70] sm:$0xff]  ;;  %v18593_v45 = vpack.c.bf16 %v15478_v2, %v15477_v33  ;;  %v15496_v49 = vld [vmem:[%s21944_s13 + $0xe88] sm:$0xff]  ;;  %v15527_v42 = vld [vmem:[%s21944_s13 + $0xf80] sm:$0xff] }
0x545e   : > { %14035 = vmatmul.mubr.f32.vlgmr.msra.gmra.mrb[132].mxu0 %v13812_v58  ;;  %14105 = vmatmul.mubr.f32.vlgmr.msra.gmra.mrb[144].mxu1 %v13814_v14  ;;  %v15473_v58 = vld [vmem:[%s21944_s13 + $0xdd0] sm:$0xff]  ;;  %v15474_v14 = vld [vmem:[%s21944_s13 + $0xdd8] sm:$0xff]  ;;  %v15516_v33 = vld [vmem:[%s21944_s13 + $0xf28] sm:$0xff] }
0x545f   : > { %18536 = vmatpush3.bf16.msra.mxu0 %v18535_v46  ;;  %14174 = vmatprep.mubr.f32.mxu0 %v13817_v38  ;;  %v15442_v46 = vld [vmem:[%s21944_s13 + $0xcd8] sm:$0xff]  ;;  %v15501_v2 = vld [vmem:[%s21944_s13 + $0xeb0] sm:$0xff] }
0x5460   : > { %18568 = vmatpush3.bf16.msra.mxu1 %v18567_v57  ;;  %14244 = vmatprep.mubr.f32.mxu1 %v13819_v1  ;;  %v18551_v57 = vpack.c.bf16 %v15424_v22, %v15423_v55  ;;  %v18553_v4 = vpack.c.bf16 %v15442_v46, %v15441_v36  ;;  %v15426_v38 = vld [vmem:[%s21944_s13 + $0xc58] sm:$0xff]  ;;  %v15475_v1 = vld [vmem:[%s21944_s13 + $0xde0] sm:$0xff]  ;;  %v18595_v55 = vpack.c.bf16 %v15462_v28, %v15461_v8  ;;  %v15512_v36 = vld [vmem:[%s21944_s13 + $0xf08] sm:$0xff] }
0x5461   : > { %18538 = vmatprep.subr.bf16.mxu0 %v18537_v47  ;;  %18570 = vmatprep.subr.bf16.mxu1 %v18569_v20  ;;  %v15457_v47 = vld [vmem:[%s21944_s13 + $0xd50] sm:$0xff]  ;;  %v18585_v20 = vpack.c.bf16 %v15474_v14, %v15473_v58  ;;  %v18555_v56 = vpack.c.bf16 %v15426_v38, %v15425_v53  ;;  %v18589_v31 = vpack.c.bf16 %v15476_v63, %v15475_v1  ;;  %v15498_v58 = vld [vmem:[%s21944_s13 + $0xe98] sm:$0xff] }
0x5462   : > { %v18597_v22 = vpack.c.bf16 %v15496_v49, %v15495_v16  ;;  %v15481_v38 = vld [vmem:[%s21944_s13 + $0xe10] sm:$0xff]  ;;  %v15518_v16 = vld [vmem:[%s21944_s13 + $0xf38] sm:$0xff]  ;;  %v15503_v49 = vld [vmem:[%s21944_s13 + $0xec0] sm:$0xff] }
0x5463   : > { %18540 = vmatpush3.bf16.msra.mxu0 %v18539_v29  ;;  %v18587_v29 = vpack.c.bf16 %v15458_v7, %v15457_v47  ;;  %v15482_v47 = vld [vmem:[%s21944_s13 + $0xe18] sm:$0xff]  ;;  %v15485_v8 = vld [vmem:[%s21944_s13 + $0xe30] sm:$0xff] }
0x5464   : > { %18572 = vmatpush3.bf16.msra.mxu1 %v18571_v50  ;;  %18542 = vmatprep.subr.bf16.mxu0 %v18541_v21  ;;  %v18557_v50 = vpack.c.bf16 %v15444_v52, %v15443_v25  ;;  %v15427_v21 = vld [vmem:[%s21944_s13 + $0xc60] sm:$0xff]  ;;  %v15514_v25 = vld [vmem:[%s21944_s13 + $0xf18] sm:$0xff]  ;;  %v15500_v52 = vld [vmem:[%s21944_s13 + $0xea8] sm:$0xff] }
0x5465   : > { %18574 = vmatprep.subr.bf16.mxu1 %v18573_v32  ;;  %v15460_v32 = vld [vmem:[%s21944_s13 + $0xd68] sm:$0xff]  ;;  %v18559_v39 = vpack.c.bf16 %v15428_v24, %v15427_v21  ;;  %v18603_v21 = vpack.c.bf16 %v15482_v47, %v15481_v38  ;;  %v15507_v38 = vld [vmem:[%s21944_s13 + $0xee0] sm:$0xff] }
0x5466   : > { %v15508_v47 = vld [vmem:[%s21944_s13 + $0xee8] sm:$0xff] }
0x5467   : > { %18544 = vmatpush3.bf16.msra.mxu0 %v18543_v62  ;;  %v13192_v62 = vrot.slane %v21513_v44, %v19561_v12  ;;  %v13212_v12 = vrot.slane %v21513_v44, %v19589_v34  ;;  %v15479_v34 = vld [vmem:[%s21944_s13 + $0xe00] sm:$0xff] }
0x5468   : > { %18576 = vmatpush3.bf16.msra.mxu1 %v18575_v19  ;;  %18546 = vmatprep.subr.bf16.mxu0 %v18545_v23  ;;  %v18591_v19 = vpack.c.bf16 %v15460_v32, %v15459_v59  ;;  %v18561_v23 = vpack.c.bf16 %v15446_v51, %v15445_v54  ;;  %v15484_v32 = vld [vmem:[%s21944_s13 + $0xe28] sm:$0xff]  ;;  %v15515_v54 = vld [vmem:[%s21944_s13 + $0xf20] sm:$0xff] }
0x5469   : > { %18578 = vmatprep.subr.bf16.mxu1 %v18577_v61  ;;  %v13200_v61 = vrot.slane %v21513_v44, %v19564_v13  ;;  %v18563_v13 = vpack.c.bf16 %v15430_v10, %v15429_v9  ;;  %v13735_v46 = vadd.f32 %v21531_v18, %v13212_v12  ;;  %v15513_v18 = vld [vmem:[%s21944_s13 + $0xf10] sm:$0xff]  ;;  %v18639_v9 = vpack.c.bf16 %v15516_v33, %v15515_v54  ;;  %v15504_v12 = vld [vmem:[%s21944_s13 + $0xec8] sm:$0xff] }
0x546a   : > { %v18635_v24 = vpack.c.bf16 %v15514_v25, %v15513_v18  ;;  %v15539_v18 = vld [vmem:[%s21944_s13 + $0xfe0] sm:$0xff]  ;;  %v15493_v33 = vld [vmem:[%s21944_s13 + $0xe70] sm:$0xff] }
0x546b   : > { %18548 = vmatpush3.bf16.msra.mxu0 %v18547_v40  ;;  %v15528_v40 = vld [vmem:[%s21944_s13 + $0xf88] sm:$0xff]  ;;  %v13821_v1 = vmax.f32 %v13735_v46, 0.0  ;;  %v15538_v46 = vld [vmem:[%s21944_s13 + $0xfd8] sm:$0xff] }
0x546c   : > { %18580 = vmatpush3.bf16.msra.mxu1 %v18579_v17  ;;  %18550 = vmatprep.subr.bf16.mxu0 %v18549_v15  ;;  %v13220_v17 = vrot.slane %v21513_v44, %v19592_v35  ;;  %v13591_v15 = vadd.f32 %v21496_v27, %v13192_v62  ;;  %v18629_v26 = vpack.c.bf16 %v15528_v40, %v15527_v42  ;;  %v15511_v35 = vld [vmem:[%s21944_s13 + $0xf00] sm:$0xff]  ;;  %v15497_v27 = vld [vmem:[%s21944_s13 + $0xe90] sm:$0xff]  ;;  %v15536_v40 = vld [vmem:[%s21944_s13 + $0xfc8] sm:$0xff] }
0x546d   : > { %18582 = vmatprep.subr.bf16.mxu1 %v18581_v41  ;;  %v13662_v41 = vadd.f32 %v21498_v30, %v13200_v61  ;;  %v15530_v30 = vld [vmem:[%s21944_s13 + $0xf98] sm:$0xff]  ;;  %v18631_v53 = vpack.c.bf16 %v15512_v36, %v15511_v35  ;;  %v18601_v7 = vpack.c.bf16 %v15498_v58, %v15497_v27  ;;  %v15533_v62 = vld [vmem:[%s21944_s13 + $0xfb0] sm:$0xff]  ;;  %v15535_v42 = vld [vmem:[%s21944_s13 + $0xfc0] sm:$0xff] }
0x546e   : > { %v13806_v14 = vadd.f32 %v21533_v37, %v13220_v17  ;;  %v15499_v37 = vld [vmem:[%s21944_s13 + $0xea0] sm:$0xff]  ;;  %v15486_v61 = vld [vmem:[%s21944_s13 + $0xe38] sm:$0xff]  ;;  %v15537_v36 = vld [vmem:[%s21944_s13 + $0xfd0] sm:$0xff] }
0x546f   : > { %18552 = vmatpush3.bf16.msra.mxu0 %v18551_v57  ;;  %v18599_v57 = vpack.c.bf16 %v15480_v11, %v15479_v34  ;;  %v18605_v59 = vpack.c.bf16 %v15500_v52, %v15499_v37  ;;  %v18611_v17 = vpack.c.bf16 %v15486_v61, %v15485_v8  ;;  %v15519_v34 = vld [vmem:[%s21944_s13 + $0xf40] sm:$0xff]  ;;  %v18645_v11 = vpack.c.bf16 %v15536_v40, %v15535_v42  ;;  %v15506_v35 = vld [vmem:[%s21944_s13 + $0xed8] sm:$0xff] }
0x5470   : > { %18584 = vmatpush3.bf16.msra.mxu1 %v18583_v0  ;;  %18554 = vmatprep.subr.bf16.mxu0 %v18553_v4  ;;  %v15529_v0 = vld [vmem:[%s21944_s13 + $0xf90] sm:$0xff]  ;;  %v13816_v4 = vmax.f32 %v13591_v15, 0.0  ;;  %v18613_v15 = vpack.c.bf16 %v15504_v12, %v15503_v49  ;;  %v18621_v37 = vpack.c.bf16 %v15508_v47, %v15507_v38  ;;  %v15491_v52 = vld [vmem:[%s21944_s13 + $0xe60] sm:$0xff] }
0x5471   : > { %18586 = vmatprep.subr.bf16.mxu1 %v18585_v20  ;;  %v13818_v20 = vmax.f32 %v13662_v41, 0.0  ;;  %v18633_v63 = vpack.c.bf16 %v15530_v30, %v15529_v0  ;;  %v15520_v41 = vld [vmem:[%s21944_s13 + $0xf48] sm:$0xff]  ;;  %v15490_v0 = vld [vmem:[%s21944_s13 + $0xe58] sm:$0xff]  ;;  %v15521_v30 = vld [vmem:[%s21944_s13 + $0xf50] sm:$0xff] }
0x5472   : > { %v18647_v58 = vpack.c.bf16 %v15520_v41, %v15519_v34 }
0x5473   : > { %18556 = vmatpush3.bf16.msra.mxu0 %v18555_v56  ;;  %v15531_v56 = vld [vmem:[%s21944_s13 + $0xfa0] sm:$0xff] }
0x5474   : > { %18588 = vmatpush3.bf16.msra.mxu1 %v18587_v29  ;;  %18558 = vmatprep.subr.bf16.mxu0 %v18557_v50  ;;  %v15532_v29 = vld [vmem:[%s21944_s13 + $0xfa8] sm:$0xff]  ;;  %v13823_v50 = vmax.f32 %v13806_v14, 0.0 }
0x5475   : > { %18590 = vmatprep.subr.bf16.mxu1 %v18589_v31  ;;  %v15483_v31 = vld [vmem:[%s21944_s13 + $0xe20] sm:$0xff]  ;;  %v18637_v51 = vpack.c.bf16 %v15532_v29, %v15531_v56  ;;  %v15524_v29 = vld [vmem:[%s21944_s13 + $0xf68] sm:$0xff] }
0x5477   : > { %18560 = vmatpush3.bf16.msra.mxu0 %v18559_v39  ;;  %v15502_v39 = vld [vmem:[%s21944_s13 + $0xeb8] sm:$0xff] }
0x5478   : > { %18592 = vmatpush3.bf16.msra.mxu1 %v18591_v19  ;;  %18562 = vmatprep.subr.bf16.mxu0 %v18561_v23  ;;  %v15534_v19 = vld [vmem:[%s21944_s13 + $0xfb8] sm:$0xff]  ;;  %v18607_v23 = vpack.c.bf16 %v15484_v32, %v15483_v31  ;;  %v18609_v10 = vpack.c.bf16 %v15502_v39, %v15501_v2  ;;  %v13208_v32 = vrot.slane %v21513_v44, %v19662_v5  ;;  %v13822_v44 = vmax.f32 %v21529_v48, 0.0 }
0x5479   : > { %18594 = vmatprep.subr.bf16.mxu1 %v18593_v45  ;;  %v15517_v45 = vld [vmem:[%s21944_s13 + $0xf30] sm:$0xff]  ;;  %v18641_v28 = vpack.c.bf16 %v15534_v19, %v15533_v62  ;;  %v15494_v2 = vld [vmem:[%s21944_s13 + $0xe78] sm:$0xff] }
0x547a   : > { %v15525_v62 = vld [vmem:[%s21944_s13 + $0xf70] sm:$0xff]  ;;  %v15526_v19 = vld [vmem:[%s21944_s13 + $0xf78] sm:$0xff] }
0x547b   : > { %18564 = vmatpush3.bf16.msra.mxu0 %v18563_v13  ;;  %v18643_v13 = vpack.c.bf16 %v15518_v16, %v15517_v45  ;;  %v15552_v45 = vld [vmem:[%s21946_s25 + $0x1] ss:$0 sm:$0xff]  ;;  %s14550_s25 = sshll.u32 %s1292_s5, 4  ;;  %s21726_s25 = int_to_ptr.vmem [resolvable:$true] %s14550_s25 }
0x547c   : > { %18596 = vmatpush3.bf16.msra.mxu1 %v18595_v55  ;;  %18598 = vmatprep.subr.bf16.mxu0 %v18597_v22  ;;  %v15487_v55 = vld [vmem:[%s21944_s13 + $0xe40] sm:$0xff]  ;;  %v15488_v22 = vld [vmem:[%s21944_s13 + $0xe48] sm:$0xff] }
0x547d   : > { %18630 = vmatprep.subr.bf16.mxu1 %v18629_v26  ;;  %v15505_v26 = vld [vmem:[%s21944_s13 + $0xed0] sm:$0xff]  ;;  %v18615_v27 = vpack.c.bf16 %v15488_v22, %v15487_v55 }
0x547e   : > { %14175 = vmatmul.mubr.f32.vlgmr.msra.gmra.mrb[134].mxu0 %v13816_v4  ;;  %v18617_v14 = vpack.c.bf16 %v15506_v35, %v15505_v26  ;;  %v18649_v4 = vpack.c.bf16 %v15538_v46, %v15537_v36 }
0x547f   : > { %14245 = vmatmul.mubr.f32.vlgmr.msra.gmra.mrb[146].mxu1 %v13818_v20  ;;  %18600 = vmatpush3.bf16.msra.mxu0 %v18599_v57  ;;  %v15489_v57 = vld [vmem:[%s21944_s13 + $0xe50] sm:$0xff]  ;;  %v15540_v20 = vld [vmem:[%s21944_s13 + $0xfe8] sm:$0xff] }
0x5480   : > { %14314 = vmatprep.mubr.f32.mxu0 %v13821_v1  ;;  %18632 = vmatpush3.bf16.msra.mxu1 %v18631_v53  ;;  %v15522_v53 = vld [vmem:[%s21944_s13 + $0xf58] sm:$0xff]  ;;  %v15492_v1 = vld [vmem:[%s21944_s13 + $0xe68] sm:$0xff]  ;;  %v18653_v56 = vpack.c.bf16 %v15540_v20, %v15539_v18 }
0x5481   : > { %14384 = vmatprep.mubr.f32.mxu1 %v13823_v50  ;;  %18602 = vmatprep.subr.bf16.mxu0 %v18601_v7  ;;  %v18619_v7 = vpack.c.bf16 %v15490_v0, %v15489_v57  ;;  %v18651_v25 = vpack.c.bf16 %v15522_v53, %v15521_v30  ;;  %v15509_v50 = vld [vmem:[%s21944_s13 + $0xef0] sm:$0xff]  ;;  %v18623_v31 = vpack.c.bf16 %v15492_v1, %v15491_v52 }
0x5482   : > { %18634 = vmatprep.subr.bf16.mxu1 %v18633_v63  ;;  %v15523_v63 = vld [vmem:[%s21944_s13 + $0xf60] sm:$0xff] }
0x5483   : > { %18604 = vmatpush3.bf16.msra.mxu0 %v18603_v21  ;;  %v15510_v21 = vld [vmem:[%s21944_s13 + $0xef8] sm:$0xff]  ;;  %v18655_v54 = vpack.c.bf16 %v15524_v29, %v15523_v63 }
0x5484   : > { %18636 = vmatpush3.bf16.msra.mxu1 %v18635_v24  ;;  %18606 = vmatprep.subr.bf16.mxu0 %v18605_v59  ;;  %v15541_v24 = vld [vmem:[%s21944_s13 + $0xff0] sm:$0xff]  ;;  %v15542_v59 = vld [vmem:[%s21944_s13 + $0xff8] sm:$0xff] }
0x5485   : > { %18638 = vmatprep.subr.bf16.mxu1 %v18637_v51  ;;  %v18625_v51 = vpack.c.bf16 %v15510_v21, %v15509_v50  ;;  %v18657_v39 = vpack.c.bf16 %v15542_v59, %v15541_v24  ;;  %v15555_v50 = vld [vmem:[%s21940_s9 + $0x1] ss:$0 sm:$0xff] }
0x5486   : > { %v15556_v21 = vld [vmem:[%s21942_s27 + $0x1] ss:$0 sm:$0xff] }
0x5487   : > { %18608 = vmatpush3.bf16.msra.mxu0 %v18607_v23  ;;  %v18627_v23 = vpack.c.bf16 %v15494_v2, %v15493_v33 }
0x5488   : > { %18640 = vmatpush3.bf16.msra.mxu1 %v18639_v9  ;;  %18610 = vmatprep.subr.bf16.mxu0 %v18609_v10  ;;  %v13733_v9 = vadd.f32 %v21525_v43, %v13208_v32  ;;  %v18659_v10 = vpack.c.bf16 %v15526_v19, %v15525_v62  ;;  %v14452_v62 = vld [vmem:[%s21947_s3 + $0x8] sm:$0xff] }
0x5489   : > { %18642 = vmatprep.subr.bf16.mxu1 %v18641_v28 }
0x548a   : > { %v13820_v5 = vmax.f32 %v13733_v9, 0.0  ;;  %v14454_v9 = vld [vmem:[%s21947_s3 + $0x18] sm:$0xff] }
0x548b   : > { %18612 = vmatpush3.bf16.msra.mxu0 %v18611_v17 }
0x548c   : > { %18644 = vmatpush3.bf16.msra.mxu1 %v18643_v13  ;;  %18614 = vmatprep.subr.bf16.mxu0 %v18613_v15 }
0x548d   : > { %18646 = vmatprep.subr.bf16.mxu1 %v18645_v11 }
0x548f   : > { %18616 = vmatpush3.bf16.msra.mxu0 %v18615_v27 }
0x5490   : > { %18648 = vmatpush3.bf16.msra.mxu1 %v18647_v58  ;;  %18618 = vmatprep.subr.bf16.mxu0 %v18617_v14 }
0x5491   : > { %18650 = vmatprep.subr.bf16.mxu1 %v18649_v4 }
0x5493   : > { %18620 = vmatpush3.bf16.msra.mxu0 %v18619_v7 }
0x5494   : > { %18652 = vmatpush3.bf16.msra.mxu1 %v18651_v25  ;;  %18622 = vmatprep.subr.bf16.mxu0 %v18621_v37 }
0x5495   : > { %18654 = vmatprep.subr.bf16.mxu1 %v18653_v56 }
0x5497   : > { %18624 = vmatpush3.bf16.msra.mxu0 %v18623_v31 }
0x5498   : > { %18656 = vmatpush3.bf16.msra.mxu1 %v18655_v54  ;;  %18626 = vmatprep.subr.bf16.mxu0 %v18625_v51 }
0x5499   : > { %18658 = vmatprep.subr.bf16.mxu1 %v18657_v39  ;;  %v14451_v39 = vld [vmem:[%s21947_s3] sm:$0xff] }
0x549a   : > { %v18662_v19 = vpack.c.bf16 %v14452_v62, %v14451_v39 }
0x549b   : > { %18628 = vmatpush3.bf16.msra.mxu0 %v18627_v23  ;;  %v14453_v23 = vld [vmem:[%s21947_s3 + $0x10] sm:$0xff] }
0x549c   : > { %18660 = vmatpush3.bf16.msra.mxu1 %v18659_v10  ;;  %18661 = vmatprep.subr.bf16.mxu0 %v18990_v3  ;;  %v18665_v10 = vpack.c.bf16 %v14454_v9, %v14453_v23 }
0x549e   : > { %14315 = vmatmul.mubr.f32.vlgmr.msra.gmra.mrb[136].mxu0 %v13820_v5 }
0x549f   : > { %14385 = vmatmul.mubr.f32.vlgmr.msra.gmra.mrb[148].mxu1 %v13822_v44  ;;  %17330 = vmatprep.mubr.msk.f32.mxu0 %vm18991_vm0, %v18992_v6 }
0x54a0   : > { %18663 = vmatpush3.bf16.msra.mxu0 %v18662_v19 }
0x54a1   : > { %18664 = vmatprep.subr.bf16.mxu0 %v18990_v3  ;;  %v15559_v3 = vld [vmem:[%s21950_s2] ss:$0 sm:$0xff]  ;;  %s19004_s2 = smov [#allocation2]  }
0x54a2   : > { %s18888_s23 = sshll.u32 %s19004_s2, 4  ;;  %s18889_s23 = int_to_ptr.vmem [resolvable:$false] %s18888_s23 }
0x54a3   : > { %s18890_s15 = scalar_lea.vmem %s18889_s23, 256  ;;  %p18891_p0 = scmp.lt.s32.totalorder %s21726_s25, %s18889_s23 }
0x54a4   : > { %18666 = vmatpush3.bf16.msra.mxu0 %v18665_v10 }
0x5511   : > { %v16621_v8 = vpop.f32.mrb[130].mxu0  ;;  %v16656_v61 = vpop.f32.mrb[142].mxu1 }
0x5512   : > { %v16622_v43 = vpop.f32.mrb[131].mxu0  ;;  %v16657_v28 = vpop.f32.mrb[143].mxu1 }
0x5513   : > { %v16623_v16 = vadd.f32 %v16622_v43, %v16621_v8  ;;  %v16658_v49 = vadd.f32 %v16657_v28, %v16656_v61  ;;  %v15558_v28 = vld [vmem:[%s21949_s26] ss:$0 sm:$0xff]  ;;  %s18884_s26 = scalar_lea.vmem %s21726_s25, 128 }
0x5514   : > { %p18885_p11 = scmp.ne.s32.totalorder %s21726_s25, %s18884_s26  ;;  %p18892_p1 = scmp.lt.s32.totalorder %s18890_s15, %s18884_s26 }
0x5515   : > { %v13897_v12 = vadd.f32 %v16623_v16, %v15552_v45  ;;  %v15557_v45 = vld [vmem:[%s21948_s18] ss:$0 sm:$0xff]  ;;  %s14537_s18 = scalar_lea.sflag [#allocation3], %s1290_s24 }
0x5516   : > { %p18886_p12 = pnand %p18885_p11, %p19263_p5  ;;  %p18893_p2 = por %p18892_p1, %p18891_p0 }
0x5517   : > { %v13967_v42 = vadd.f32 %v16658_v49, %v13897_v12 }
0x5518   : > { %p18887_p13 = pneg %p18886_p12 }
0x551a   : > { %p18894_p3 = pnand %p18893_p2, %p18887_p13 }
0x5531   : > { %v16691_v40 = vpop.f32.mrb[132].mxu0  ;;  %v16726_v17 = vpop.f32.mrb[144].mxu1 }
0x5532   : > { %v16692_v13 = vpop.f32.mrb[133].mxu0  ;;  %v16727_v15 = vpop.f32.mrb[145].mxu1 }
0x5533   : > { %v16693_v55 = vadd.f32 %v16692_v13, %v16691_v40  ;;  %v16728_v48 = vadd.f32 %v16727_v15, %v16726_v17 }
0x5535   : > { %v14037_v22 = vadd.f32 %v16693_v55, %v13967_v42 }
0x5537   : > { %v14107_v34 = vadd.f32 %v16728_v48, %v14037_v22 }
0x5551   : > { %v16761_v11 = vpop.f32.mrb[134].mxu0 }
0x5552   : > { %v16796_v41 = vpop.f32.mrb[146].mxu1  ;;  %v16762_v6 = vpop.f32.mrb[135].mxu0 }
0x5553   : > { %v16763_v26 = vadd.f32 %v16762_v6, %v16761_v11  ;;  %v16797_v35 = vpop.f32.mrb[147].mxu1 }
0x5554   : > { %v16798_v36 = vadd.f32 %v16797_v35, %v16796_v41 }
0x5555   : > { %v14177_v46 = vadd.f32 %v16763_v26, %v14107_v34 }
0x5557   : > { %v14247_v27 = vadd.f32 %v16798_v36, %v14177_v46 }
0x5571   : > { %v16831_v58 = vpop.f32.mrb[136].mxu0 }
0x5572   : > { %v16866_v14 = vpop.f32.mrb[148].mxu1  ;;  %v16832_v57 = vpop.f32.mrb[137].mxu0 }
0x5573   : > { %v16833_v0 = vadd.f32 %v16832_v57, %v16831_v58  ;;  %v16867_v30 = vpop.f32.mrb[149].mxu1 }
0x5574   : > { %v16868_v4 = vadd.f32 %v16867_v30, %v16866_v14 }
0x5575   : > { %v14317_v53 = vadd.f32 %v16833_v0, %v14247_v27 }
0x5577   : > { %v14387_v38 = vadd.f32 %v16868_v4, %v14317_v53 }
0x5579   : > { %v14390_v47 = vadd.f32 %v14387_v38, %v21319_v60 }
0x557b   : > { %v14395_v18 = vsel %vm1320_vm1, %v14390_v47, 0.0 }
0x557c   : > { %14396 = vadd.xlane.f32.xlu1 %v14395_v18 }
0x5609   : > { %v14397_v20 = vpop.xlane.xlu1 %14396 }
0x560a   : > { %v14398_v7 = vmul.f32 0.03125, %v14397_v20 }
0x560c   : > { %v14399_v25 = vsub.f32 %v14390_v47, %v14398_v7 }
0x560e   : > { %v14400_v37 = vmul.f32 %v14399_v25, %v14399_v25 }
0x5610   : > { %v14401_v52 = vsel %vm1320_vm1, %v14400_v37, 0.0 }
0x5611   : > { %14402 = vadd.xlane.f32.xlu1 %v14401_v52 }
0x569e   : > { %v14403_v1 = vpop.xlane.xlu1 %14402 }
0x569f   : > { %v14404_v63 = vmul.f32 0.03125, %v14403_v1 }
0x56a1   : > { %v14405_v56 = vadd.f32 1e-05, %v14404_v63 }
0x56a3   : > { %18878 = vrsqrt.f32 %v14405_v56 }
0x56ad   : > { %v18879_v29 = vpop.eup %18878 }
0x56ae   : > { %v14407_v60 = vmul.f32 %v18879_v29, %v14399_v25 }
0x56b0   : > { %v14414_v24 = vmul.f32 %v15555_v50, %v14407_v60 }
0x56b2   : > { %v14421_v59 = vadd.f32 %v15556_v21, %v14414_v24 }
0x56b4   : > { %v14424_v31 = vsel %vm1320_vm1, %v14421_v59, 0.0 }
0x56b5   : > { %14425 = vadd.xlane.f32.xlu0 %v14424_v31 }
0x5742   : > { %v14426_v32 = vpop.xlane.xlu0 %14425 }
0x5743   : > { %v14427_v54 = vmul.f32 0.03125, %v14426_v32 }
0x5745   : > { %v14428_v51 = vsub.f32 %v14421_v59, %v14427_v54 }
0x5747   : > { %v14429_v33 = vmul.f32 %v14428_v51, %v14428_v51 }
0x5749   : > { %v14430_v2 = vsel %vm1320_vm1, %v14429_v33, 0.0 }
0x574a   : > { %14431 = vadd.xlane.f32.xlu1 %v14430_v2 }
0x57d7   : > { %v14432_v5 = vpop.xlane.xlu1 %14431 }
0x57d8   : > { %v14433_v44 = vmul.f32 0.03125, %v14432_v5 }
0x57da   : > { %v14434_v8 = vadd.f32 1e-05, %v14433_v44 }
0x57dc   : > { %18880 = vrsqrt.f32 %v14434_v8 }
0x57e6   : > { %v18881_v61 = vpop.eup %18880 }
0x57e7   : > { %v14436_v43 = vmul.f32 %v18881_v61, %v14428_v51 }
0x57e9   : > { %v14443_v16 = vmul.f32 %v15557_v45, %v14436_v43 }
0x57eb   : > { %v14450_v49 = vadd.f32 %v15558_v28, %v14443_v16 }
0x57ed   : > { %17331 = vmatmul.mubr.msk.f32.vlgmr.msra.gmra.mrb[138].mxu0 %vm1320_vm1, %v14450_v49 }
0x58c0   : > { %v14531_v12 = vpop.f32.mrb[138].mxu0 }
0x58c1   : > { %v14532_v42 = vadd.f32 %v15559_v3, %v14531_v12  ;;  %v17332_v40 = vpop.f32.mrb[139].mxu0 }
0x58c3   : > { %14535 = vst [vmem:[%s1292_s5] sm:$0xff] %v14532_v42 }
0x58c4   : > { %18897 = shalt.err (!%p18894_p3)
}
0x58c5   : > { %s18898_s24 = scalar_lea.hbm %s21724_s0, 128  ;;  %s18902_s22 = scalar_lea.hbm %s21952_s1, 256 }
0x58c6   : > { %p18899_p4 = scmp.ne.s32.totalorder %s21724_s0, %s18898_s24  ;;  %p18903_p9 = scmp.lt.u32.totalorder %s21724_s0, %s21952_s1 }
0x58c7   : > { %p18904_p10 = scmp.lt.u32.totalorder %s18902_s22, %s18898_s24  ;;  %p18906_p12 = scmp.lt.u32.totalorder %s18898_s24, %s21724_s0 }
0x58c8   : > { %p18900_p7 = pnand %p18899_p4, %p19263_p5 }
0x58c9   : > { %p18905_p11 = por %p18904_p10, %p18903_p9 }
0x58ca   : > { %p18901_p8 = pneg %p18900_p7 }
0x58cb   : > { %p18907_p0 = por %p18906_p12, %p18905_p11 }
0x58cd   : > { %p18908_p13 = pnand %p18907_p0, %p18901_p8 }
0x58cf   : > { %18911 = shalt.err (!%p18908_p13)
}
0x58d0   : > { %18667 = dma.vmem_to_hbm [thread:$0]  (%p19263_p5), %s21726_s25, 128, %s21724_s0, %s14537_s18  }
0x58d1 PF: > { %s21954_s5 = sld [smem:[#allocation50_spill]]  ;;  %s21955_s26 = sld [smem:[#allocation48_spill]] }
0x58d7   : > { %p18673_p1 = scmp.ge.s32.totalorder %s21954_s5, 2  ;;  %s14562_s23 = sand.u32 1, %s21955_s26  }
0x58d8   : > { %s14563_s15 = scalar_lea.sflag [#allocation3], %s14562_s23 }
0x58d9   : > { %p18670_p2 = pnand %p18673_p1, %p19267_p6 }
0x58db   : > { %18929 = dma.done.wait (!%p18670_p2), %s14563_s15, 128  }
0x58dc   : > { %18931 = vsyncadd (!%p18670_p2), %s14563_s15, 4294967168  ;;  %s21957_s22 = sld [smem:[#allocation52_spill]]  ;;  %s21958_s24 = sld [smem:[#allocation49_spill]] }
0x58dd   : > { %s21959_s18 = sld [smem:[#allocation53_spill]]  ;;  %s21960_s15 = smov %s18938_s16 }
0x58e2   : > { %p95_p3 = scmp.ge.s32.totalorder %s21957_s22, 4   ;;  %s21961_s16 = smov %s21958_s24 }
0x58e4   :  { %97 = sbr.rel (!%p95_p3) target bundleno = 107 (0x6b), region = 306 }
0x58eb   :  { %14568 = vsyncpa [#allocation3], 1 }
0x58ec   :  { %14570 = vsyncpa [#allocation3 + $0x1], 1 }

</bundles_post_ra>
